<compile_context>
chip_gen: v7x
topology: tpu7x:2x2x1
jax: 0.10.0
libtpu: 0.0.40
codegen_flags: <defaults>
</compile_context>

<pallas_src>
import jax
import jax.numpy as jnp
import numpy as np
from jax import lax
from jax.experimental import pallas as pl
from jax.experimental.pallas import tpu as pltpu

EPS = 1e-5          # nn.InstanceNorm2d default eps
NEG_SLOPE = 0.01    # nn.LeakyReLU default negative_slope
LANE = 128          # TPU lane width; channels padded to a multiple of this


def residual_block_kernel(x_ref, w1_ref, b1_ref, w2_ref, b2_ref, o_ref):
    B, H, W, C = x_ref.shape          # block: B images, lane-padded channels C
    M = B * H * W

    def conv3x3(t_bf16, w_ref, b_ref):
        # t_bf16: (B, H, W, C) bf16.  w_ref: (9, C, C) bf16.  b_ref: (1, C) f32.
        # Reflection pad (PyTorch ReflectionPad2d(1) semantics) then 9
        # accumulating (M, C) @ (C, C) MXU matmuls -- no materialized im2col.
        tp = jnp.concatenate([t_bf16[:, 1:2], t_bf16, t_bf16[:, -2:-1]], axis=1)
        tp = jnp.concatenate([tp[:, :, 1:2], tp, tp[:, :, -2:-1]], axis=2)
        acc = None
        for ky in range(3):
            for kx in range(3):
                tap = tp[:, ky:ky + H, kx:kx + W, :].reshape(M, C)
                p = jnp.dot(tap, w_ref[ky * 3 + kx],
                            preferred_element_type=jnp.float32)
                acc = p if acc is None else acc + p
        return acc + b_ref[...]                            # (M, C) f32

    def instance_norm(t):
        # Per-image, per-channel norm (affine=False), centered two-pass variance.
        t3 = t.reshape(B, H * W, C)
        inv_m = 1.0 / (H * W)
        mean = jnp.sum(t3, axis=1, keepdims=True) * inv_m
        cen = t3 - mean
        var = jnp.sum(cen * cen, axis=1, keepdims=True) * inv_m
        return (cen * lax.rsqrt(var + EPS)).reshape(M, C)

    y = conv3x3(x_ref[...].astype(jnp.bfloat16), w1_ref, b1_ref)
    y = instance_norm(y)
    y = jnp.where(y > 0, y, NEG_SLOPE * y)                 # LeakyReLU (f32)
    y = conv3x3(y.reshape(B, H, W, C).astype(jnp.bfloat16), w2_ref, b2_ref)
    y = instance_norm(y)
    # Residual: re-read the input block here instead of holding an f32 copy
    # live across both convs (the block is resident in VMEM anyway).
    o_ref[...] = (x_ref[...] + y.reshape(B, H, W, C)).astype(o_ref.dtype)


def _vmem_plan(N, H, W, Cp):
    """Return (images_per_step, vmem_limit_bytes) derived from the actual chip."""
    try:
        phys = int(pltpu.get_tpu_info().vmem_capacity_bytes)
    except Exception:
        phys = 64 * 2 ** 20                    # assume the smallest (v7x) if query fails
    # Leave headroom for Mosaic internal scratch: ~48 MiB usable on v7x (64 MiB
    # physical), ~112 MiB on v5e/v6e (128 MiB physical).
    cap = phys - max(16 * 2 ** 20, phys // 8)

    def work(imgs):
        img_f32 = imgs * H * W * Cp * 4
        img_bf16 = imgs * H * W * Cp * 2
        pad_bf16 = imgs * (H + 2) * (W + 2) * Cp * 2
        wgt = 2 * 9 * Cp * Cp * 2 + 2 * Cp * 4             # single-buffered weights/bias
        # 2x double-buffered f32 in + out blocks, f32 intermediates, bf16 buffers.
        return 4 * img_f32 + 3 * img_f32 + 2 * img_bf16 + pad_bf16 + wgt

    imgs = 2 if (N % 2 == 0 and Cp <= LANE and 2 * work(2) <= cap) else 1
    limit = int(min(cap, max(32 * 2 ** 20, 2 * work(imgs))))
    return imgs, limit


def residual_block_nhwc(x, w1, b1, w2, b2):
    """x: (N,H,W,C) f32.  w*: (3,3,Cin,Cout) f32.  b*: (Cout,) or (1,Cout) f32."""
    N, H, W, C = x.shape
    Cp = ((C + LANE - 1) // LANE) * LANE
    pc = Cp - C

    def prep_w(w):
        if pc:
            w = jnp.pad(w, ((0, 0), (0, 0), (0, pc), (0, pc)))   # zero-pad Cin/Cout
        return w.reshape(9, Cp, Cp).astype(jnp.bfloat16)          # tap index = ky*3+kx

    def prep_b(b):
        b = b.reshape(1, -1).astype(jnp.float32)
        return jnp.pad(b, ((0, 0), (0, pc))) if pc else b

    xp = jnp.pad(x, ((0, 0), (0, 0), (0, 0), (0, pc))) if pc else x
    w1f, b1f, w2f, b2f = prep_w(w1), prep_b(b1), prep_w(w2), prep_b(b2)

    imgs_per_step, vmem_limit = _vmem_plan(N, H, W, Cp)
    steps = N // imgs_per_step

    # NOTE: a v7x-specific row-strip "parallel" axis (with cross-strip InstanceNorm
    # partials) would use the second TensorCore when N < 2; kept the batch-only
    # grid here for correctness/simplicity.
    out = pl.pallas_call(
        residual_block_kernel,
        out_shape=jax.ShapeDtypeStruct((N, H, W, Cp), x.dtype),
        grid_spec=pltpu.PrefetchScalarGridSpec(
            num_scalar_prefetch=0,
            grid=(steps,),
            in_specs=[
                pl.BlockSpec((imgs_per_step, H, W, Cp), lambda i: (i, 0, 0, 0)),
                # Constant-index weights/biases: fetched once, single-buffered.
                pl.BlockSpec((9, Cp, Cp), lambda i: (0, 0, 0),
                             pipeline_mode=pl.Buffered(1)),
                pl.BlockSpec((1, Cp), lambda i: (0, 0),
                             pipeline_mode=pl.Buffered(1)),
                pl.BlockSpec((9, Cp, Cp), lambda i: (0, 0, 0),
                             pipeline_mode=pl.Buffered(1)),
                pl.BlockSpec((1, Cp), lambda i: (0, 0),
                             pipeline_mode=pl.Buffered(1)),
            ],
            out_specs=pl.BlockSpec((imgs_per_step, H, W, Cp),
                                   lambda i: (i, 0, 0, 0)),
        ),
        compiler_params=pltpu.CompilerParams(
            dimension_semantics=("parallel",),   # image blocks across megacore TCs
            vmem_limit_bytes=vmem_limit,
        ),
    )(xp, w1f, b1f, w2f, b2f)

    return out[..., :C] if pc else out


def residual_block(x_nchw, w1, b1, w2, b2):
    """NCHW convenience wrapper (PyTorch layout).

    For a full network keep everything NHWC and call residual_block_nhwc directly,
    avoiding these two standalone HBM round-trip transposes.
    """
    x = jnp.transpose(x_nchw, (0, 2, 3, 1))
    y = residual_block_nhwc(x, w1, b1, w2, b2)
    return jnp.transpose(y, (0, 3, 1, 2))


# ----------------------------- reference (pure JAX, f32) -----------------------------
def _ref_forward(x_nchw, w1, b1, w2, b2):
    x = jnp.transpose(x_nchw, (0, 2, 3, 1))  # NHWC

    def conv(t, w, b):
        tp = jnp.pad(t, ((0, 0), (1, 1), (1, 1), (0, 0)), mode="reflect")
        y = lax.conv_general_dilated(
            tp, w, window_strides=(1, 1), padding="VALID",
            dimension_numbers=("NHWC", "HWIO", "NHWC"))
        return y + b.reshape(1, 1, 1, -1)

    def inorm(t):
        mean = jnp.mean(t, axis=(1, 2), keepdims=True)
        var = jnp.mean((t - mean) ** 2, axis=(1, 2), keepdims=True)
        return (t - mean) * lax.rsqrt(var + EPS)

    y = conv(x, w1, b1)
    y = inorm(y)
    y = jnp.where(y > 0, y, NEG_SLOPE * y)
    y = conv(y, w2, b2)
    y = inorm(y)
    return jnp.transpose(x + y, (0, 3, 1, 2))


if __name__ == "__main__":
    N, C, H, W = 2, 4, 16, 16
    key = jax.random.PRNGKey(0)
    kx, k1, kb1, k2, kb2 = jax.random.split(key, 5)

    x = jax.random.normal(kx, (N, C, H, W), jnp.float32)

    # Deterministic Conv2d-style init: uniform(-bound, bound), bound = 1/sqrt(fan_in)
    fan_in = C * 3 * 3
    bound = 1.0 / np.sqrt(fan_in)
    w1 = jax.random.uniform(k1, (3, 3, C, C), jnp.float32, -bound, bound)
    b1 = jax.random.uniform(kb1, (1, C), jnp.float32, -bound, bound)
    w2 = jax.random.uniform(k2, (3, 3, C, C), jnp.float32, -bound, bound)
    b2 = jax.random.uniform(kb2, (1, C), jnp.float32, -bound, bound)

    out = jax.block_until_ready(residual_block(x, w1, b1, w2, b2))
    ref = jax.block_until_ready(_ref_forward(x, w1, b1, w2, b2))

    assert out.shape == (N, C, H, W)
    # bf16 MXU operands (f32 accumulation) on both convs => ~1e-2 relative
    # deviation from the pure-f32 reference; structural semantics are exact.
    np.testing.assert_allclose(np.asarray(out), np.asarray(ref),
                               rtol=3e-2, atol=3e-2)
    print("KERNEL_OK")
</pallas_src>

<mosaic_0001>
module attributes {stable_mosaic.version = 11 : i64} {
  func.func @residual_block_kernel(%arg0: i32, %arg1: memref<2x16x16x128xf32, #tpu.memory_space<vmem>>, %arg2: memref<9x128x128xbf16, #tpu.memory_space<vmem>>, %arg3: memref<1x128xf32, #tpu.memory_space<vmem>>, %arg4: memref<9x128x128xbf16, #tpu.memory_space<vmem>>, %arg5: memref<1x128xf32, #tpu.memory_space<vmem>>, %arg6: memref<2x16x16x128xf32, #tpu.memory_space<vmem>>) attributes {dimension_semantics = [#tpu.dimension_semantics<parallel>], iteration_bounds = array<i64: 1>, scalar_prefetch = 0 : i64, scratch_operands = 0 : i64, tpu.core_type = #tpu.core_type<tc>, window_params = [{transform_indices = @transform_0, window_bounds = array<i64: 2, 16, 16, 128>}, {pipeline_mode = #tpu.pipeline_mode<synchronous>, transform_indices = @transform_1, window_bounds = array<i64: 9, 128, 128>}, {pipeline_mode = #tpu.pipeline_mode<synchronous>, transform_indices = @transform_2, window_bounds = array<i64: 1, 128>}, {pipeline_mode = #tpu.pipeline_mode<synchronous>, transform_indices = @transform_3, window_bounds = array<i64: 9, 128, 128>}, {pipeline_mode = #tpu.pipeline_mode<synchronous>, transform_indices = @transform_4, window_bounds = array<i64: 1, 128>}, {transform_indices = @transform_5, window_bounds = array<i64: 2, 16, 16, 128>}]} {
    %c0 = arith.constant 0 : index
    %c0_0 = arith.constant 0 : index
    %c0_1 = arith.constant 0 : index
    %c0_2 = arith.constant 0 : index
    %0 = vector.load %arg1[%c0, %c0_0, %c0_1, %c0_2] : memref<2x16x16x128xf32, #tpu.memory_space<vmem>>, vector<2x16x16x128xf32>
    %1 = arith.truncf %0 : vector<2x16x16x128xf32> to vector<2x16x16x128xbf16>
    %2 = vector.extract_strided_slice %1 {offsets = [0, 1, 0, 0], sizes = [2, 1, 16, 128], strides = [1, 1, 1, 1]} : vector<2x16x16x128xbf16> to vector<2x1x16x128xbf16>
    %3 = vector.extract_strided_slice %1 {offsets = [0, 14, 0, 0], sizes = [2, 1, 16, 128], strides = [1, 1, 1, 1]} : vector<2x16x16x128xbf16> to vector<2x1x16x128xbf16>
    %4 = tpu.concatenate %2, %1, %3 in 1 : vector<2x1x16x128xbf16>, vector<2x16x16x128xbf16>, vector<2x1x16x128xbf16> -> vector<2x18x16x128xbf16>
    %5 = vector.extract_strided_slice %4 {offsets = [0, 0, 1, 0], sizes = [2, 18, 1, 128], strides = [1, 1, 1, 1]} : vector<2x18x16x128xbf16> to vector<2x18x1x128xbf16>
    %6 = vector.extract_strided_slice %4 {offsets = [0, 0, 14, 0], sizes = [2, 18, 1, 128], strides = [1, 1, 1, 1]} : vector<2x18x16x128xbf16> to vector<2x18x1x128xbf16>
    %7 = tpu.concatenate %5, %4, %6 in 2 : vector<2x18x1x128xbf16>, vector<2x18x16x128xbf16>, vector<2x18x1x128xbf16> -> vector<2x18x18x128xbf16>
    %8 = vector.extract_strided_slice %7 {offsets = [0, 0, 0, 0], sizes = [2, 16, 16, 128], strides = [1, 1, 1, 1]} : vector<2x18x18x128xbf16> to vector<2x16x16x128xbf16>
    %9 = vector.shape_cast %8 : vector<2x16x16x128xbf16> to vector<512x128xbf16>
    %c0_3 = arith.constant 0 : index
    %c0_4 = arith.constant 0 : index
    %c0_5 = arith.constant 0 : index
    %10 = vector.load %arg2[%c0_3, %c0_4, %c0_5] : memref<9x128x128xbf16, #tpu.memory_space<vmem>>, vector<1x128x128xbf16>
    %11 = vector.shape_cast %10 : vector<1x128x128xbf16> to vector<128x128xbf16>
    %cst = arith.constant dense<0.000000e+00> : vector<512x128xf32>
    %12 = tpu.matmul %9, %11, %cst {dimension_numbers = #tpu.dot_dimension_numbers<[1], [0], [0], [1], [0, 0, 1, 1], [], []>} : vector<512x128xbf16>, vector<128x128xbf16>, vector<512x128xf32> -> vector<512x128xf32>
    %13 = vector.extract_strided_slice %7 {offsets = [0, 0, 1, 0], sizes = [2, 16, 16, 128], strides = [1, 1, 1, 1]} : vector<2x18x18x128xbf16> to vector<2x16x16x128xbf16>
    %14 = vector.shape_cast %13 : vector<2x16x16x128xbf16> to vector<512x128xbf16>
    %c1 = arith.constant 1 : index
    %c0_6 = arith.constant 0 : index
    %c0_7 = arith.constant 0 : index
    %15 = vector.load %arg2[%c1, %c0_6, %c0_7] : memref<9x128x128xbf16, #tpu.memory_space<vmem>>, vector<1x128x128xbf16>
    %16 = vector.shape_cast %15 : vector<1x128x128xbf16> to vector<128x128xbf16>
    %cst_8 = arith.constant dense<0.000000e+00> : vector<512x128xf32>
    %17 = tpu.matmul %14, %16, %cst_8 {dimension_numbers = #tpu.dot_dimension_numbers<[1], [0], [0], [1], [0, 0, 1, 1], [], []>} : vector<512x128xbf16>, vector<128x128xbf16>, vector<512x128xf32> -> vector<512x128xf32>
    %18 = arith.addf %12, %17 : vector<512x128xf32>
    %19 = vector.extract_strided_slice %7 {offsets = [0, 0, 2, 0], sizes = [2, 16, 16, 128], strides = [1, 1, 1, 1]} : vector<2x18x18x128xbf16> to vector<2x16x16x128xbf16>
    %20 = vector.shape_cast %19 : vector<2x16x16x128xbf16> to vector<512x128xbf16>
    %c2 = arith.constant 2 : index
    %c0_9 = arith.constant 0 : index
    %c0_10 = arith.constant 0 : index
    %21 = vector.load %arg2[%c2, %c0_9, %c0_10] : memref<9x128x128xbf16, #tpu.memory_space<vmem>>, vector<1x128x128xbf16>
    %22 = vector.shape_cast %21 : vector<1x128x128xbf16> to vector<128x128xbf16>
    %cst_11 = arith.constant dense<0.000000e+00> : vector<512x128xf32>
    %23 = tpu.matmul %20, %22, %cst_11 {dimension_numbers = #tpu.dot_dimension_numbers<[1], [0], [0], [1], [0, 0, 1, 1], [], []>} : vector<512x128xbf16>, vector<128x128xbf16>, vector<512x128xf32> -> vector<512x128xf32>
    %24 = arith.addf %18, %23 : vector<512x128xf32>
    %25 = vector.extract_strided_slice %7 {offsets = [0, 1, 0, 0], sizes = [2, 16, 16, 128], strides = [1, 1, 1, 1]} : vector<2x18x18x128xbf16> to vector<2x16x16x128xbf16>
    %26 = vector.shape_cast %25 : vector<2x16x16x128xbf16> to vector<512x128xbf16>
    %c3 = arith.constant 3 : index
    %c0_12 = arith.constant 0 : index
    %c0_13 = arith.constant 0 : index
    %27 = vector.load %arg2[%c3, %c0_12, %c0_13] : memref<9x128x128xbf16, #tpu.memory_space<vmem>>, vector<1x128x128xbf16>
    %28 = vector.shape_cast %27 : vector<1x128x128xbf16> to vector<128x128xbf16>
    %cst_14 = arith.constant dense<0.000000e+00> : vector<512x128xf32>
    %29 = tpu.matmul %26, %28, %cst_14 {dimension_numbers = #tpu.dot_dimension_numbers<[1], [0], [0], [1], [0, 0, 1, 1], [], []>} : vector<512x128xbf16>, vector<128x128xbf16>, vector<512x128xf32> -> vector<512x128xf32>
    %30 = arith.addf %24, %29 : vector<512x128xf32>
    %31 = vector.extract_strided_slice %7 {offsets = [0, 1, 1, 0], sizes = [2, 16, 16, 128], strides = [1, 1, 1, 1]} : vector<2x18x18x128xbf16> to vector<2x16x16x128xbf16>
    %32 = vector.shape_cast %31 : vector<2x16x16x128xbf16> to vector<512x128xbf16>
    %c4 = arith.constant 4 : index
    %c0_15 = arith.constant 0 : index
    %c0_16 = arith.constant 0 : index
    %33 = vector.load %arg2[%c4, %c0_15, %c0_16] : memref<9x128x128xbf16, #tpu.memory_space<vmem>>, vector<1x128x128xbf16>
    %34 = vector.shape_cast %33 : vector<1x128x128xbf16> to vector<128x128xbf16>
    %cst_17 = arith.constant dense<0.000000e+00> : vector<512x128xf32>
    %35 = tpu.matmul %32, %34, %cst_17 {dimension_numbers = #tpu.dot_dimension_numbers<[1], [0], [0], [1], [0, 0, 1, 1], [], []>} : vector<512x128xbf16>, vector<128x128xbf16>, vector<512x128xf32> -> vector<512x128xf32>
    %36 = arith.addf %30, %35 : vector<512x128xf32>
    %37 = vector.extract_strided_slice %7 {offsets = [0, 1, 2, 0], sizes = [2, 16, 16, 128], strides = [1, 1, 1, 1]} : vector<2x18x18x128xbf16> to vector<2x16x16x128xbf16>
    %38 = vector.shape_cast %37 : vector<2x16x16x128xbf16> to vector<512x128xbf16>
    %c5 = arith.constant 5 : index
    %c0_18 = arith.constant 0 : index
    %c0_19 = arith.constant 0 : index
    %39 = vector.load %arg2[%c5, %c0_18, %c0_19] : memref<9x128x128xbf16, #tpu.memory_space<vmem>>, vector<1x128x128xbf16>
    %40 = vector.shape_cast %39 : vector<1x128x128xbf16> to vector<128x128xbf16>
    %cst_20 = arith.constant dense<0.000000e+00> : vector<512x128xf32>
    %41 = tpu.matmul %38, %40, %cst_20 {dimension_numbers = #tpu.dot_dimension_numbers<[1], [0], [0], [1], [0, 0, 1, 1], [], []>} : vector<512x128xbf16>, vector<128x128xbf16>, vector<512x128xf32> -> vector<512x128xf32>
    %42 = arith.addf %36, %41 : vector<512x128xf32>
    %43 = vector.extract_strided_slice %7 {offsets = [0, 2, 0, 0], sizes = [2, 16, 16, 128], strides = [1, 1, 1, 1]} : vector<2x18x18x128xbf16> to vector<2x16x16x128xbf16>
    %44 = vector.shape_cast %43 : vector<2x16x16x128xbf16> to vector<512x128xbf16>
    %c6 = arith.constant 6 : index
    %c0_21 = arith.constant 0 : index
    %c0_22 = arith.constant 0 : index
    %45 = vector.load %arg2[%c6, %c0_21, %c0_22] : memref<9x128x128xbf16, #tpu.memory_space<vmem>>, vector<1x128x128xbf16>
    %46 = vector.shape_cast %45 : vector<1x128x128xbf16> to vector<128x128xbf16>
    %cst_23 = arith.constant dense<0.000000e+00> : vector<512x128xf32>
    %47 = tpu.matmul %44, %46, %cst_23 {dimension_numbers = #tpu.dot_dimension_numbers<[1], [0], [0], [1], [0, 0, 1, 1], [], []>} : vector<512x128xbf16>, vector<128x128xbf16>, vector<512x128xf32> -> vector<512x128xf32>
    %48 = arith.addf %42, %47 : vector<512x128xf32>
    %49 = vector.extract_strided_slice %7 {offsets = [0, 2, 1, 0], sizes = [2, 16, 16, 128], strides = [1, 1, 1, 1]} : vector<2x18x18x128xbf16> to vector<2x16x16x128xbf16>
    %50 = vector.shape_cast %49 : vector<2x16x16x128xbf16> to vector<512x128xbf16>
    %c7 = arith.constant 7 : index
    %c0_24 = arith.constant 0 : index
    %c0_25 = arith.constant 0 : index
    %51 = vector.load %arg2[%c7, %c0_24, %c0_25] : memref<9x128x128xbf16, #tpu.memory_space<vmem>>, vector<1x128x128xbf16>
    %52 = vector.shape_cast %51 : vector<1x128x128xbf16> to vector<128x128xbf16>
    %cst_26 = arith.constant dense<0.000000e+00> : vector<512x128xf32>
    %53 = tpu.matmul %50, %52, %cst_26 {dimension_numbers = #tpu.dot_dimension_numbers<[1], [0], [0], [1], [0, 0, 1, 1], [], []>} : vector<512x128xbf16>, vector<128x128xbf16>, vector<512x128xf32> -> vector<512x128xf32>
    %54 = arith.addf %48, %53 : vector<512x128xf32>
    %55 = vector.extract_strided_slice %7 {offsets = [0, 2, 2, 0], sizes = [2, 16, 16, 128], strides = [1, 1, 1, 1]} : vector<2x18x18x128xbf16> to vector<2x16x16x128xbf16>
    %56 = vector.shape_cast %55 : vector<2x16x16x128xbf16> to vector<512x128xbf16>
    %c8 = arith.constant 8 : index
    %c0_27 = arith.constant 0 : index
    %c0_28 = arith.constant 0 : index
    %57 = vector.load %arg2[%c8, %c0_27, %c0_28] : memref<9x128x128xbf16, #tpu.memory_space<vmem>>, vector<1x128x128xbf16>
    %58 = vector.shape_cast %57 : vector<1x128x128xbf16> to vector<128x128xbf16>
    %cst_29 = arith.constant dense<0.000000e+00> : vector<512x128xf32>
    %59 = tpu.matmul %56, %58, %cst_29 {dimension_numbers = #tpu.dot_dimension_numbers<[1], [0], [0], [1], [0, 0, 1, 1], [], []>} : vector<512x128xbf16>, vector<128x128xbf16>, vector<512x128xf32> -> vector<512x128xf32>
    %60 = arith.addf %54, %59 : vector<512x128xf32>
    %c0_30 = arith.constant 0 : index
    %c0_31 = arith.constant 0 : index
    %61 = vector.load %arg3[%c0_30, %c0_31] : memref<1x128xf32, #tpu.memory_space<vmem>>, vector<1x128xf32>
    %62 = vector.broadcast %61 : vector<1x128xf32> to vector<512x128xf32>
    %63 = arith.addf %60, %62 : vector<512x128xf32>
    %64 = vector.shape_cast %63 : vector<512x128xf32> to vector<2x256x128xf32>
    %cst_32 = arith.constant dense<0.000000e+00> : vector<2x128xf32>
    %65 = vector.multi_reduction <add>, %64, %cst_32 [1] : vector<2x256x128xf32> to vector<2x128xf32>
    %66 = vector.shape_cast %65 : vector<2x128xf32> to vector<2x1x128xf32>
    %cst_33 = arith.constant 3.906250e-03 : f32
    %67 = vector.broadcast %cst_33 : f32 to vector<2x1x128xf32>
    %68 = arith.mulf %66, %67 : vector<2x1x128xf32>
    %69 = vector.broadcast %68 : vector<2x1x128xf32> to vector<2x256x128xf32>
    %70 = arith.subf %64, %69 : vector<2x256x128xf32>
    %71 = arith.mulf %70, %70 : vector<2x256x128xf32>
    %cst_34 = arith.constant dense<0.000000e+00> : vector<2x128xf32>
    %72 = vector.multi_reduction <add>, %71, %cst_34 [1] : vector<2x256x128xf32> to vector<2x128xf32>
    %73 = vector.shape_cast %72 : vector<2x128xf32> to vector<2x1x128xf32>
    %cst_35 = arith.constant 3.906250e-03 : f32
    %74 = vector.broadcast %cst_35 : f32 to vector<2x1x128xf32>
    %75 = arith.mulf %73, %74 : vector<2x1x128xf32>
    %cst_36 = arith.constant 9.99999974E-6 : f32
    %76 = vector.broadcast %cst_36 : f32 to vector<2x1x128xf32>
    %77 = arith.addf %75, %76 : vector<2x1x128xf32>
    %78 = math.rsqrt %77 : vector<2x1x128xf32>
    %79 = vector.broadcast %78 : vector<2x1x128xf32> to vector<2x256x128xf32>
    %80 = arith.mulf %70, %79 : vector<2x256x128xf32>
    %81 = vector.shape_cast %80 : vector<2x256x128xf32> to vector<512x128xf32>
    %cst_37 = arith.constant 0.000000e+00 : f32
    %82 = vector.broadcast %cst_37 : f32 to vector<512x128xf32>
    %83 = arith.cmpf ogt, %81, %82 : vector<512x128xf32>
    %cst_38 = arith.constant 0.00999999977 : f32
    %84 = vector.broadcast %cst_38 : f32 to vector<512x128xf32>
    %85 = arith.mulf %84, %81 : vector<512x128xf32>
    %86 = arith.select %83, %81, %85 : vector<512x128xi1>, vector<512x128xf32>
    %87 = vector.shape_cast %86 : vector<512x128xf32> to vector<2x16x16x128xf32>
    %88 = arith.truncf %87 : vector<2x16x16x128xf32> to vector<2x16x16x128xbf16>
    %89 = vector.extract_strided_slice %88 {offsets = [0, 1, 0, 0], sizes = [2, 1, 16, 128], strides = [1, 1, 1, 1]} : vector<2x16x16x128xbf16> to vector<2x1x16x128xbf16>
    %90 = vector.extract_strided_slice %88 {offsets = [0, 14, 0, 0], sizes = [2, 1, 16, 128], strides = [1, 1, 1, 1]} : vector<2x16x16x128xbf16> to vector<2x1x16x128xbf16>
    %91 = tpu.concatenate %89, %88, %90 in 1 : vector<2x1x16x128xbf16>, vector<2x16x16x128xbf16>, vector<2x1x16x128xbf16> -> vector<2x18x16x128xbf16>
    %92 = vector.extract_strided_slice %91 {offsets = [0, 0, 1, 0], sizes = [2, 18, 1, 128], strides = [1, 1, 1, 1]} : vector<2x18x16x128xbf16> to vector<2x18x1x128xbf16>
    %93 = vector.extract_strided_slice %91 {offsets = [0, 0, 14, 0], sizes = [2, 18, 1, 128], strides = [1, 1, 1, 1]} : vector<2x18x16x128xbf16> to vector<2x18x1x128xbf16>
    %94 = tpu.concatenate %92, %91, %93 in 2 : vector<2x18x1x128xbf16>, vector<2x18x16x128xbf16>, vector<2x18x1x128xbf16> -> vector<2x18x18x128xbf16>
    %95 = vector.extract_strided_slice %94 {offsets = [0, 0, 0, 0], sizes = [2, 16, 16, 128], strides = [1, 1, 1, 1]} : vector<2x18x18x128xbf16> to vector<2x16x16x128xbf16>
    %96 = vector.shape_cast %95 : vector<2x16x16x128xbf16> to vector<512x128xbf16>
    %c0_39 = arith.constant 0 : index
    %c0_40 = arith.constant 0 : index
    %c0_41 = arith.constant 0 : index
    %97 = vector.load %arg4[%c0_39, %c0_40, %c0_41] : memref<9x128x128xbf16, #tpu.memory_space<vmem>>, vector<1x128x128xbf16>
    %98 = vector.shape_cast %97 : vector<1x128x128xbf16> to vector<128x128xbf16>
    %cst_42 = arith.constant dense<0.000000e+00> : vector<512x128xf32>
    %99 = tpu.matmul %96, %98, %cst_42 {dimension_numbers = #tpu.dot_dimension_numbers<[1], [0], [0], [1], [0, 0, 1, 1], [], []>} : vector<512x128xbf16>, vector<128x128xbf16>, vector<512x128xf32> -> vector<512x128xf32>
    %100 = vector.extract_strided_slice %94 {offsets = [0, 0, 1, 0], sizes = [2, 16, 16, 128], strides = [1, 1, 1, 1]} : vector<2x18x18x128xbf16> to vector<2x16x16x128xbf16>
    %101 = vector.shape_cast %100 : vector<2x16x16x128xbf16> to vector<512x128xbf16>
    %c1_43 = arith.constant 1 : index
    %c0_44 = arith.constant 0 : index
    %c0_45 = arith.constant 0 : index
    %102 = vector.load %arg4[%c1_43, %c0_44, %c0_45] : memref<9x128x128xbf16, #tpu.memory_space<vmem>>, vector<1x128x128xbf16>
    %103 = vector.shape_cast %102 : vector<1x128x128xbf16> to vector<128x128xbf16>
    %cst_46 = arith.constant dense<0.000000e+00> : vector<512x128xf32>
    %104 = tpu.matmul %101, %103, %cst_46 {dimension_numbers = #tpu.dot_dimension_numbers<[1], [0], [0], [1], [0, 0, 1, 1], [], []>} : vector<512x128xbf16>, vector<128x128xbf16>, vector<512x128xf32> -> vector<512x128xf32>
    %105 = arith.addf %99, %104 : vector<512x128xf32>
    %106 = vector.extract_strided_slice %94 {offsets = [0, 0, 2, 0], sizes = [2, 16, 16, 128], strides = [1, 1, 1, 1]} : vector<2x18x18x128xbf16> to vector<2x16x16x128xbf16>
    %107 = vector.shape_cast %106 : vector<2x16x16x128xbf16> to vector<512x128xbf16>
    %c2_47 = arith.constant 2 : index
    %c0_48 = arith.constant 0 : index
    %c0_49 = arith.constant 0 : index
    %108 = vector.load %arg4[%c2_47, %c0_48, %c0_49] : memref<9x128x128xbf16, #tpu.memory_space<vmem>>, vector<1x128x128xbf16>
    %109 = vector.shape_cast %108 : vector<1x128x128xbf16> to vector<128x128xbf16>
    %cst_50 = arith.constant dense<0.000000e+00> : vector<512x128xf32>
    %110 = tpu.matmul %107, %109, %cst_50 {dimension_numbers = #tpu.dot_dimension_numbers<[1], [0], [0], [1], [0, 0, 1, 1], [], []>} : vector<512x128xbf16>, vector<128x128xbf16>, vector<512x128xf32> -> vector<512x128xf32>
    %111 = arith.addf %105, %110 : vector<512x128xf32>
    %112 = vector.extract_strided_slice %94 {offsets = [0, 1, 0, 0], sizes = [2, 16, 16, 128], strides = [1, 1, 1, 1]} : vector<2x18x18x128xbf16> to vector<2x16x16x128xbf16>
    %113 = vector.shape_cast %112 : vector<2x16x16x128xbf16> to vector<512x128xbf16>
    %c3_51 = arith.constant 3 : index
    %c0_52 = arith.constant 0 : index
    %c0_53 = arith.constant 0 : index
    %114 = vector.load %arg4[%c3_51, %c0_52, %c0_53] : memref<9x128x128xbf16, #tpu.memory_space<vmem>>, vector<1x128x128xbf16>
    %115 = vector.shape_cast %114 : vector<1x128x128xbf16> to vector<128x128xbf16>
    %cst_54 = arith.constant dense<0.000000e+00> : vector<512x128xf32>
    %116 = tpu.matmul %113, %115, %cst_54 {dimension_numbers = #tpu.dot_dimension_numbers<[1], [0], [0], [1], [0, 0, 1, 1], [], []>} : vector<512x128xbf16>, vector<128x128xbf16>, vector<512x128xf32> -> vector<512x128xf32>
    %117 = arith.addf %111, %116 : vector<512x128xf32>
    %118 = vector.extract_strided_slice %94 {offsets = [0, 1, 1, 0], sizes = [2, 16, 16, 128], strides = [1, 1, 1, 1]} : vector<2x18x18x128xbf16> to vector<2x16x16x128xbf16>
    %119 = vector.shape_cast %118 : vector<2x16x16x128xbf16> to vector<512x128xbf16>
    %c4_55 = arith.constant 4 : index
    %c0_56 = arith.constant 0 : index
    %c0_57 = arith.constant 0 : index
    %120 = vector.load %arg4[%c4_55, %c0_56, %c0_57] : memref<9x128x128xbf16, #tpu.memory_space<vmem>>, vector<1x128x128xbf16>
    %121 = vector.shape_cast %120 : vector<1x128x128xbf16> to vector<128x128xbf16>
    %cst_58 = arith.constant dense<0.000000e+00> : vector<512x128xf32>
    %122 = tpu.matmul %119, %121, %cst_58 {dimension_numbers = #tpu.dot_dimension_numbers<[1], [0], [0], [1], [0, 0, 1, 1], [], []>} : vector<512x128xbf16>, vector<128x128xbf16>, vector<512x128xf32> -> vector<512x128xf32>
    %123 = arith.addf %117, %122 : vector<512x128xf32>
    %124 = vector.extract_strided_slice %94 {offsets = [0, 1, 2, 0], sizes = [2, 16, 16, 128], strides = [1, 1, 1, 1]} : vector<2x18x18x128xbf16> to vector<2x16x16x128xbf16>
    %125 = vector.shape_cast %124 : vector<2x16x16x128xbf16> to vector<512x128xbf16>
    %c5_59 = arith.constant 5 : index
    %c0_60 = arith.constant 0 : index
    %c0_61 = arith.constant 0 : index
    %126 = vector.load %arg4[%c5_59, %c0_60, %c0_61] : memref<9x128x128xbf16, #tpu.memory_space<vmem>>, vector<1x128x128xbf16>
    %127 = vector.shape_cast %126 : vector<1x128x128xbf16> to vector<128x128xbf16>
    %cst_62 = arith.constant dense<0.000000e+00> : vector<512x128xf32>
    %128 = tpu.matmul %125, %127, %cst_62 {dimension_numbers = #tpu.dot_dimension_numbers<[1], [0], [0], [1], [0, 0, 1, 1], [], []>} : vector<512x128xbf16>, vector<128x128xbf16>, vector<512x128xf32> -> vector<512x128xf32>
    %129 = arith.addf %123, %128 : vector<512x128xf32>
    %130 = vector.extract_strided_slice %94 {offsets = [0, 2, 0, 0], sizes = [2, 16, 16, 128], strides = [1, 1, 1, 1]} : vector<2x18x18x128xbf16> to vector<2x16x16x128xbf16>
    %131 = vector.shape_cast %130 : vector<2x16x16x128xbf16> to vector<512x128xbf16>
    %c6_63 = arith.constant 6 : index
    %c0_64 = arith.constant 0 : index
    %c0_65 = arith.constant 0 : index
    %132 = vector.load %arg4[%c6_63, %c0_64, %c0_65] : memref<9x128x128xbf16, #tpu.memory_space<vmem>>, vector<1x128x128xbf16>
    %133 = vector.shape_cast %132 : vector<1x128x128xbf16> to vector<128x128xbf16>
    %cst_66 = arith.constant dense<0.000000e+00> : vector<512x128xf32>
    %134 = tpu.matmul %131, %133, %cst_66 {dimension_numbers = #tpu.dot_dimension_numbers<[1], [0], [0], [1], [0, 0, 1, 1], [], []>} : vector<512x128xbf16>, vector<128x128xbf16>, vector<512x128xf32> -> vector<512x128xf32>
    %135 = arith.addf %129, %134 : vector<512x128xf32>
    %136 = vector.extract_strided_slice %94 {offsets = [0, 2, 1, 0], sizes = [2, 16, 16, 128], strides = [1, 1, 1, 1]} : vector<2x18x18x128xbf16> to vector<2x16x16x128xbf16>
    %137 = vector.shape_cast %136 : vector<2x16x16x128xbf16> to vector<512x128xbf16>
    %c7_67 = arith.constant 7 : index
    %c0_68 = arith.constant 0 : index
    %c0_69 = arith.constant 0 : index
    %138 = vector.load %arg4[%c7_67, %c0_68, %c0_69] : memref<9x128x128xbf16, #tpu.memory_space<vmem>>, vector<1x128x128xbf16>
    %139 = vector.shape_cast %138 : vector<1x128x128xbf16> to vector<128x128xbf16>
    %cst_70 = arith.constant dense<0.000000e+00> : vector<512x128xf32>
    %140 = tpu.matmul %137, %139, %cst_70 {dimension_numbers = #tpu.dot_dimension_numbers<[1], [0], [0], [1], [0, 0, 1, 1], [], []>} : vector<512x128xbf16>, vector<128x128xbf16>, vector<512x128xf32> -> vector<512x128xf32>
    %141 = arith.addf %135, %140 : vector<512x128xf32>
    %142 = vector.extract_strided_slice %94 {offsets = [0, 2, 2, 0], sizes = [2, 16, 16, 128], strides = [1, 1, 1, 1]} : vector<2x18x18x128xbf16> to vector<2x16x16x128xbf16>
    %143 = vector.shape_cast %142 : vector<2x16x16x128xbf16> to vector<512x128xbf16>
    %c8_71 = arith.constant 8 : index
    %c0_72 = arith.constant 0 : index
    %c0_73 = arith.constant 0 : index
    %144 = vector.load %arg4[%c8_71, %c0_72, %c0_73] : memref<9x128x128xbf16, #tpu.memory_space<vmem>>, vector<1x128x128xbf16>
    %145 = vector.shape_cast %144 : vector<1x128x128xbf16> to vector<128x128xbf16>
    %cst_74 = arith.constant dense<0.000000e+00> : vector<512x128xf32>
    %146 = tpu.matmul %143, %145, %cst_74 {dimension_numbers = #tpu.dot_dimension_numbers<[1], [0], [0], [1], [0, 0, 1, 1], [], []>} : vector<512x128xbf16>, vector<128x128xbf16>, vector<512x128xf32> -> vector<512x128xf32>
    %147 = arith.addf %141, %146 : vector<512x128xf32>
    %c0_75 = arith.constant 0 : index
    %c0_76 = arith.constant 0 : index
    %148 = vector.load %arg5[%c0_75, %c0_76] : memref<1x128xf32, #tpu.memory_space<vmem>>, vector<1x128xf32>
    %149 = vector.broadcast %148 : vector<1x128xf32> to vector<512x128xf32>
    %150 = arith.addf %147, %149 : vector<512x128xf32>
    %151 = vector.shape_cast %150 : vector<512x128xf32> to vector<2x256x128xf32>
    %cst_77 = arith.constant dense<0.000000e+00> : vector<2x128xf32>
    %152 = vector.multi_reduction <add>, %151, %cst_77 [1] : vector<2x256x128xf32> to vector<2x128xf32>
    %153 = vector.shape_cast %152 : vector<2x128xf32> to vector<2x1x128xf32>
    %cst_78 = arith.constant 3.906250e-03 : f32
    %154 = vector.broadcast %cst_78 : f32 to vector<2x1x128xf32>
    %155 = arith.mulf %153, %154 : vector<2x1x128xf32>
    %156 = vector.broadcast %155 : vector<2x1x128xf32> to vector<2x256x128xf32>
    %157 = arith.subf %151, %156 : vector<2x256x128xf32>
    %158 = arith.mulf %157, %157 : vector<2x256x128xf32>
    %cst_79 = arith.constant dense<0.000000e+00> : vector<2x128xf32>
    %159 = vector.multi_reduction <add>, %158, %cst_79 [1] : vector<2x256x128xf32> to vector<2x128xf32>
    %160 = vector.shape_cast %159 : vector<2x128xf32> to vector<2x1x128xf32>
    %cst_80 = arith.constant 3.906250e-03 : f32
    %161 = vector.broadcast %cst_80 : f32 to vector<2x1x128xf32>
    %162 = arith.mulf %160, %161 : vector<2x1x128xf32>
    %cst_81 = arith.constant 9.99999974E-6 : f32
    %163 = vector.broadcast %cst_81 : f32 to vector<2x1x128xf32>
    %164 = arith.addf %162, %163 : vector<2x1x128xf32>
    %165 = math.rsqrt %164 : vector<2x1x128xf32>
    %166 = vector.broadcast %165 : vector<2x1x128xf32> to vector<2x256x128xf32>
    %167 = arith.mulf %157, %166 : vector<2x256x128xf32>
    %168 = vector.shape_cast %167 : vector<2x256x128xf32> to vector<512x128xf32>
    %c0_82 = arith.constant 0 : index
    %c0_83 = arith.constant 0 : index
    %c0_84 = arith.constant 0 : index
    %c0_85 = arith.constant 0 : index
    %169 = vector.load %arg1[%c0_82, %c0_83, %c0_84, %c0_85] : memref<2x16x16x128xf32, #tpu.memory_space<vmem>>, vector<2x16x16x128xf32>
    %170 = vector.shape_cast %168 : vector<512x128xf32> to vector<2x16x16x128xf32>
    %171 = arith.addf %169, %170 : vector<2x16x16x128xf32>
    %c0_86 = arith.constant 0 : index
    %c0_87 = arith.constant 0 : index
    %c0_88 = arith.constant 0 : index
    %c0_89 = arith.constant 0 : index
    %172 = vector.load %arg6[%c0_86, %c0_87, %c0_88, %c0_89] : memref<2x16x16x128xf32, #tpu.memory_space<vmem>>, vector<2x16x16x128xf32>
    tpu.vector_store %arg6[%c0_86, %c0_87, %c0_88, %c0_89], %171 {strides = array<i32>} : memref<2x16x16x128xf32, #tpu.memory_space<vmem>>, vector<2x16x16x128xf32>,
    return
  }
  func.func @transform_0(%arg0: i32) -> (i32, i32, i32, i32) {
    %c0_i32 = arith.constant 0 : i32
    %c0_i32_0 = arith.constant 0 : i32
    %c0_i32_1 = arith.constant 0 : i32
    %c0_i32_2 = arith.constant 0 : i32
    return %arg0, %c0_i32, %c0_i32_0, %c0_i32_1 : i32, i32, i32, i32
  }
  func.func @transform_1(%arg0: i32) -> (i32, i32, i32) {
    %c0_i32 = arith.constant 0 : i32
    %c0_i32_0 = arith.constant 0 : i32
    %c0_i32_1 = arith.constant 0 : i32
    %c0_i32_2 = arith.constant 0 : i32
    return %c0_i32, %c0_i32_0, %c0_i32_1 : i32, i32, i32
  }
  func.func @transform_2(%arg0: i32) -> (i32, i32) {
    %c0_i32 = arith.constant 0 : i32
    %c0_i32_0 = arith.constant 0 : i32
    %c0_i32_1 = arith.constant 0 : i32
    return %c0_i32, %c0_i32_0 : i32, i32
  }
  func.func @transform_3(%arg0: i32) -> (i32, i32, i32) {
    %c0_i32 = arith.constant 0 : i32
    %c0_i32_0 = arith.constant 0 : i32
    %c0_i32_1 = arith.constant 0 : i32
    %c0_i32_2 = arith.constant 0 : i32
    return %c0_i32, %c0_i32_0, %c0_i32_1 : i32, i32, i32
  }
  func.func @transform_4(%arg0: i32) -> (i32, i32) {
    %c0_i32 = arith.constant 0 : i32
    %c0_i32_0 = arith.constant 0 : i32
    %c0_i32_1 = arith.constant 0 : i32
    return %c0_i32, %c0_i32_0 : i32, i32
  }
  func.func @transform_5(%arg0: i32) -> (i32, i32, i32, i32) {
    %c0_i32 = arith.constant 0 : i32
    %c0_i32_0 = arith.constant 0 : i32
    %c0_i32_1 = arith.constant 0 : i32
    %c0_i32_2 = arith.constant 0 : i32
    return %arg0, %c0_i32, %c0_i32_0, %c0_i32_1 : i32, i32, i32, i32
  }
}

</mosaic_0001>

<bundles_post_ra>
// kernel: tpu_custom_call.1
= control target key start
LH: loop header
LB: loop body
LE: loop exit
PB: predicated region body
PF: predicated region fallthrough
CT: control target
= control target key end

     0   :  { %10 = vsyncpa [#allocation3], 0  ;;  %s18532_s0 = inlined_call_operand.hbm [shape: f32[2,16,16,128], index: 0, kind: input, shape index: {}]   ;;  %s18533_s1 = inlined_call_operand.hbm [shape: bf16[9,128,128], index: 1, kind: input, shape index: {}]   ;;  %s18534_s2 = inlined_call_operand.vmem [shape: f32[1,128], index: 2, kind: input, shape index: {}]   ;;  %s18535_s3 = inlined_call_operand.hbm [shape: bf16[9,128,128], index: 3, kind: input, shape index: {}]   ;;  %s18536_s4 = inlined_call_operand.vmem [shape: f32[1,128], index: 4, kind: input, shape index: {}]   ;;  %s18537_s5 = inlined_call_operand.hbm [shape: f32[2,16,16,128], index: 5, kind: output, shape index: {}]  }
   0x1   :  { %11 = vsyncpa [#allocation6], 0 }
   0x2   :  { %12 = vsyncpa [#allocation4], 0  ;;  %s14399_s18 = smov [#allocation5]   ;;  %s14305_s22 = scalar_lea.hbm %s18533_s1, 9216 }
   0x3   :  { %s30_s19 = sshll.u32 %s14399_s18, 4  ;;  %p14306_p0 = scmp.ne.s32.totalorder %s18533_s1, %s14305_s22  ;;  %s31_s19 = int_to_ptr.vmem [resolvable:$true] %s30_s19 }
   0x4   :  { %p14309_p1 = scmp.lt.u32.totalorder %s14305_s22, %s18533_s1 }
   0x6   :  { %p14311_p2 = pnand %p14309_p1, %p14306_p0 }
   0x8   :  { %14314 = shalt.err (!%p14311_p2)
}
   0x9   :  { %s14315_s27 = scalar_lea.vmem %s31_s19, 9216  ;;  %p14320_p4 = scmp.lt.s32.totalorder %s31_s19, %s31_s19 }
   0xa   :  { %p14316_p3 = scmp.ne.s32.totalorder %s31_s19, %s14315_s27  ;;  %p14321_p5 = scmp.lt.s32.totalorder %s14315_s27, %s14315_s27 }
   0xc   :  { %p14322_p6 = por %p14321_p5, %p14320_p4 }
   0xe   :  { %p14323_p7 = pnand %p14322_p6, %p14316_p3 }
  0x10   :  { %14326 = shalt.err (!%p14323_p7)
}
  0x11   :  { %s14400_s28 = smov 64   ;;  %s14401_s29 = smov 4  }
  0x12   :  { %36 = dma.hbm_to_vmem [thread:$0]  %s18533_s1, 9216, %s31_s19, [#allocation6], %s14400_s28, %s14400_s28, %s14401_s29  }
  0x13   :  { %s14402_s7 = smov [#allocation2]   ;;  %s14327_s11 = scalar_lea.hbm %s18532_s0, 8192 }
  0x14   :  { %s18_s8 = sshll.u32 %s14402_s7, 4  ;;  %p14328_p8 = scmp.ne.s32.totalorder %s18532_s0, %s14327_s11  ;;  %s19_s8 = int_to_ptr.vmem [resolvable:$true] %s18_s8 }
  0x15   :  { %p14331_p9 = scmp.lt.u32.totalorder %s14327_s11, %s18532_s0 }
  0x17   :  { %p14333_p10 = pnand %p14331_p9, %p14328_p8 }
  0x19   :  { %14336 = shalt.err (!%p14333_p10)
}
  0x1a   :  { %s14337_s16 = scalar_lea.vmem %s19_s8, 8192  ;;  %p14342_p12 = scmp.lt.s32.totalorder %s19_s8, %s19_s8 }
  0x1b   :  { %p14338_p11 = scmp.ne.s32.totalorder %s19_s8, %s14337_s16  ;;  %p14343_p13 = scmp.lt.s32.totalorder %s14337_s16, %s14337_s16 }
  0x1d   :  { %p14344_p0 = por %p14343_p13, %p14342_p12 }
  0x1f   :  { %p14345_p1 = pnand %p14344_p0, %p14338_p11 }
  0x21   :  { %14348 = shalt.err (!%p14345_p1)
}
  0x22   :  { %s14403_s1 = smov 128   ;;  %s14404_s17 = smov 8  }
  0x23   :  { %24 = dma.hbm_to_vmem [thread:$0]  %s18532_s0, 8192, %s19_s8, [#allocation3], %s14403_s1, %s14403_s1, %s14404_s17  }
  0x24   :  { %s14405_s20 = smov [#allocation7]   ;;  %s14349_s24 = scalar_lea.hbm %s18535_s3, 9216 }
  0x25   :  { %s44_s21 = sshll.u32 %s14405_s20, 4  ;;  %p14350_p2 = scmp.ne.s32.totalorder %s18535_s3, %s14349_s24  ;;  %s45_s21 = int_to_ptr.vmem [resolvable:$true] %s44_s21 }
  0x26   :  { %p14353_p3 = scmp.lt.u32.totalorder %s14349_s24, %s18535_s3 }
  0x28   :  { %p14355_p4 = pnand %p14353_p3, %p14350_p2 }
  0x2a   :  { %14358 = shalt.err (!%p14355_p4)
}
  0x2b   :  { %s14359_s6 = scalar_lea.vmem %s45_s21, 9216  ;;  %p14364_p6 = scmp.lt.s32.totalorder %s45_s21, %s45_s21 }
  0x2c   :  { %p14360_p5 = scmp.ne.s32.totalorder %s45_s21, %s14359_s6  ;;  %p14365_p7 = scmp.lt.s32.totalorder %s14359_s6, %s14359_s6 }
  0x2e   :  { %p14366_p8 = por %p14365_p7, %p14364_p6 }
  0x30   :  { %p14367_p9 = pnand %p14366_p8, %p14360_p5 }
  0x32   :  { %14370 = shalt.err (!%p14367_p9)
}
  0x33   :  { %50 = dma.hbm_to_vmem [thread:$0]  %s18535_s3, 9216, %s45_s21, [#allocation6], %s14400_s28, %s14400_s28, %s14401_s29  }
  0x34   :  { %14393 = dma.done.wait [#allocation3], 8192  }
  0x35   :  { %14394 = vsyncadd [#allocation3], 4294959104 }
  0x36   :  { %14395 = dma.done.wait [#allocation6], 18432  }
  0x37   :  { %14396 = vsyncadd [#allocation6], 4294948864  ;;  %v14088_v0 = vld [vmem:[#allocation5 + $0x40] sm:$0xff]   ;;  %v14089_v1 = vld [vmem:[#allocation5 + $0x48] sm:$0xff]   ;;  %vm543_vm0 = vcmask 1040384   ;;  %v18884_v25 = vmov 0 }
  0x38   :  { %11616 = vmatprep.subr.bf16.mxu0 %v14088_v0  ;;  %v14090_v2 = vld [vmem:[#allocation5 + $0x50] sm:$0xff]   ;;  %v14091_v3 = vld [vmem:[#allocation5 + $0x58] sm:$0xff]   ;;  %v63_v6 = vld [vmem:[#allocation2] sm:$0xff]  ;;  %vm544_vm1 = vsmask.f32 256  ;;  %vm18706_vm4 = vcmask 1046528  }
  0x39   :  { %11617 = vmatpush3.bf16.msra.mxu0 %v14088_v0  ;;  %v65_v4 = vld [vmem:[#allocation2 + $0x10] sm:$0xff]  ;;  %v66_v5 = vld [vmem:[#allocation2 + $0x18] sm:$0xff]  ;;  %v64_v8 = vld [vmem:[#allocation2 + $0x8] sm:$0xff]  ;;  %vm18707_vm3 = vsmask.f32 7424 }
  0x3a   :  { %11618 = vmatprep.subr.bf16.mxu0 %v14089_v1  ;;  %v128_v7 = vpack.c.bf16 %v66_v5, %v65_v4  ;;  %v127_v9 = vpack.c.bf16 %v64_v8, %v63_v6  ;;  %v67_v10 = vld [vmem:[#allocation2 + $0x20] sm:$0xff]  ;;  %v68_v11 = vld [vmem:[#allocation2 + $0x28] sm:$0xff]  ;;  %v69_v15 = vld [vmem:[#allocation2 + $0x30] sm:$0xff] }
  0x3b   :  { %v129_v14 = vpack.c.bf16 %v68_v11, %v67_v10  ;;  %v70_v16 = vld [vmem:[#allocation2 + $0x38] sm:$0xff]  ;;  %v14092_v17 = vld [vmem:[#allocation5 + $0x60] sm:$0xff]   ;;  %vm14483_vm2 = vmand %vm543_vm0, %vm544_vm1 }
  0x3c   :  { %v160_v12 = vshrl.u32 %v128_v7, 16  ;;  %v288_v13 = vshll.u32 %v128_v7, 16  ;;  %v163_v18 = vshrl.u32 %v127_v9, 16  ;;  %v292_v19 = vshll.u32 %v127_v9, 16  ;;  %v14093_v32 = vld [vmem:[#allocation5 + $0x68] sm:$0xff]   ;;  %v71_v45 = vld [vmem:[#allocation2 + $0x40] sm:$0xff] }
  0x3d   :  { %11619 = vmatpush3.bf16.msra.mxu0 %v14089_v1  ;;  %v130_v20 = vpack.c.bf16 %v70_v16, %v69_v15  ;;  %v166_v23 = vshrl.u32 %v129_v14, 16  ;;  %v296_v24 = vshll.u32 %v129_v14, 16  ;;  %v18885_v25 = vsel %vm14483_vm2, 4294967295, %v18884_v25  ;;  %v72_v50 = vld [vmem:[#allocation2 + $0x48] sm:$0xff]  ;;  %v73_v51 = vld [vmem:[#allocation2 + $0x50] sm:$0xff]  ;;  %v74_v52 = vld [vmem:[#allocation2 + $0x58] sm:$0xff] }
  0x3e   :  { %11620 = vmatprep.subr.bf16.mxu0 %v14090_v2  ;;  %v287_v21 = vrot.slane %v160_v12, 7  ;;  %v479_v22 = vrot.slane %v288_v13, 7  ;;  %18886 = vst [vmem:[#allocation12_spill] sm:$0xff] %v18885_v25  ;;  %v291_v26 = vrot.slane %v163_v18, 7  ;;  %v480_v27 = vrot.slane %v292_v19, 7  ;;  %v14094_v53 = vld [vmem:[#allocation5 + $0x70] sm:$0xff]  }
  0x3f   :  { %v169_v28 = vshrl.u32 %v130_v20, 16  ;;  %v295_v31 = vrot.slane %v166_v23, 7  ;;  %v481_v36 = vrot.slane %v296_v24, 7  ;;  %v300_v40 = vshll.u32 %v130_v20, 16  ;;  %v75_v7 = vld [vmem:[#allocation2 + $0x60] sm:$0xff]  ;;  %v76_v8 = vld [vmem:[#allocation2 + $0x68] sm:$0xff] }
  0x40   :  { %v290_v29 = vor.u32 %v288_v13, %v287_v21  ;;  %v14489_v30 = vsel %vm14483_vm2, %v287_v21, %v479_v22  ;;  %v294_v34 = vor.u32 %v292_v19, %v291_v26  ;;  %v14494_v35 = vsel %vm14483_vm2, %v291_v26, %v480_v27  ;;  %v77_v22 = vld [vmem:[#allocation2 + $0x70] sm:$0xff] }
  0x41   :  { %11621 = vmatpush3.bf16.msra.mxu0 %v14090_v2  ;;  %v635_v33 = vshll.u32 %v14489_v30, 16  ;;  %18887 = vst [vmem:[#allocation13_spill] sm:$0xff] %v14494_v35  ;;  %v298_v38 = vor.u32 %v296_v24, %v295_v31  ;;  %v299_v39 = vrot.slane %v169_v28, 7  ;;  %v647_v44 = vshll.u32 %v14494_v35, 16 }
  0x42   :  { %11622 = vmatprep.subr.bf16.mxu0 %v14091_v3  ;;  %v14498_v37 = vsel %vm14483_vm2, %v160_v12, %v290_v29  ;;  %v14504_v43 = vsel %vm14483_vm2, %v163_v18, %v294_v34  ;;  %v14515_v55 = vsel %vm14483_vm2, %v295_v31, %v481_v36  ;;  %v482_v61 = vrot.slane %v300_v40, 7 }
  0x43   :  { %v628_v41 = vshrl.u32 %v14498_v37, 16  ;;  %v630_v42 = vshll.u32 %v14498_v37, 16  ;;  %v637_v46 = vrot.slane %v635_v33, 1  ;;  %v640_v47 = vshrl.u32 %v14504_v43, 16  ;;  %18888 = vst [vmem:[#allocation14_spill] sm:$0xff] %v14515_v55 }
  0x44   :  { %v642_v48 = vshll.u32 %v14504_v43, 16  ;;  %v14511_v49 = vsel %vm14483_vm2, %v166_v23, %v298_v38  ;;  %v659_v59 = vshll.u32 %v14515_v55, 16  ;;  %v302_v60 = vor.u32 %v300_v40, %v299_v39  ;;  %v78_v23 = vld [vmem:[#allocation2 + $0x78] sm:$0xff] }
  0x45   :  { %11623 = vmatpush3.bf16.msra.mxu0 %v14091_v3  ;;  %v632_v54 = vrot.slane %v630_v42, 1  ;;  %v652_v56 = vshrl.u32 %v14511_v49, 16  ;;  %v654_v57 = vshll.u32 %v14511_v49, 16  ;;  %v131_v0 = vpack.c.bf16 %v72_v50, %v71_v45  ;;  %v14095_v3 = vld [vmem:[#allocation5 + $0x78] sm:$0xff]   ;;  %v14097_v42 = vld [vmem:[#allocation5 + $0x8] sm:$0xff]  }
  0x46   :  { %11624 = vmatprep.subr.bf16.mxu0 %v14092_v17  ;;  %v644_v58 = vrot.slane %v642_v48, 1  ;;  %v132_v1 = vpack.c.bf16 %v74_v52, %v73_v51  ;;  %v14522_v2 = vsel %vm14483_vm2, %v169_v28, %v302_v60  ;;  %v14529_v5 = vsel %vm14483_vm2, %v299_v39, %v482_v61  ;;  %v79_v51 = vld [vmem:[#allocation2 + $0x80] sm:$0xff]  ;;  %v80_v52 = vld [vmem:[#allocation2 + $0x88] sm:$0xff] }
  0x47   :  { %v633_v62 = vor.u32 %v632_v54, %v628_v41  ;;  %v656_v63 = vrot.slane %v654_v57, 1  ;;  %18890 = vst [vmem:[#allocation16_spill] sm:$0xff] %v14529_v5  ;;  %v666_v6 = vshll.u32 %v14522_v2, 16  ;;  %v649_v10 = vrot.slane %v647_v44, 1 }
  0x48   :  { %v645_v9 = vor.u32 %v644_v58, %v640_v47  ;;  %v172_v11 = vshrl.u32 %v131_v0, 16  ;;  %v304_v12 = vshll.u32 %v131_v0, 16  ;;  %v661_v14 = vrot.slane %v659_v59, 1 }
  0x49   :  { %11625 = vmatpush3.bf16.msra.mxu0 %v14092_v17  ;;  %v14525_v4 = vsel %vm18707_vm3, %v633_v62, %v637_v46  ;;  %v657_v13 = vor.u32 %v656_v63, %v652_v56  ;;  %v175_v15 = vshrl.u32 %v132_v1, 16  ;;  %v308_v16 = vshll.u32 %v132_v1, 16  ;;  %v14096_v17 = vld [vmem:[#allocation5] sm:$0xff]  }
  0x4a   :  { %11626 = vmatprep.subr.bf16.mxu0 %v14093_v32  ;;  %18889 = vst [vmem:[#allocation15_spill] sm:$0xff] %v14525_v4  ;;  %11632 = vmatprep.mubr.bf16.mxu0 %v14525_v4  ;;  %v671_v18 = vshll.u32 %v14529_v5, 16  ;;  %v303_v19 = vrot.slane %v172_v11, 7  ;;  %v483_v20 = vrot.slane %v304_v12, 7  ;;  %v133_v21 = vpack.c.bf16 %v76_v8, %v75_v7  ;;  %v14098_v7 = vld [vmem:[#allocation5 + $0x10] sm:$0xff]  }
  0x4b   :  { %v664_v24 = vshrl.u32 %v14522_v2, 16  ;;  %v668_v26 = vrot.slane %v666_v6, 1  ;;  %v307_v27 = vrot.slane %v175_v15, 7  ;;  %v484_v28 = vrot.slane %v308_v16, 7  ;;  %v81_v8 = vld [vmem:[#allocation2 + $0x90] sm:$0xff] }
  0x4c   :  { %v306_v29 = vor.u32 %v304_v12, %v303_v19  ;;  %v14537_v31 = vsel %vm14483_vm2, %v303_v19, %v483_v20  ;;  %v312_v33 = vshll.u32 %v133_v21, 16  ;;  %v14540_v34 = vsel %vm18707_vm3, %v645_v9, %v649_v10  ;;  %v82_v9 = vld [vmem:[#allocation2 + $0x98] sm:$0xff] }
  0x4d   :  { %11627 = vmatpush3.bf16.msra.mxu0 %v14093_v32  ;;  %18891 = vst [vmem:[#allocation17_spill] sm:$0xff] %v14537_v31  ;;  %v178_v32 = vshrl.u32 %v133_v21, 16  ;;  %18892 = vst [vmem:[#allocation18_spill] sm:$0xff] %v14540_v34  ;;  %v310_v36 = vor.u32 %v308_v16, %v307_v27  ;;  %v14544_v38 = vsel %vm14483_vm2, %v307_v27, %v484_v28  ;;  %v673_v40 = vrot.slane %v671_v18, 1 }
  0x4e   :  { %11628 = vmatprep.subr.bf16.mxu0 %v14094_v53  ;;  %18893 = vst [vmem:[#allocation19_spill] sm:$0xff] %v14544_v38  ;;  %v134_v39 = vpack.c.bf16 %v78_v23, %v77_v22  ;;  %v14548_v41 = vsel %vm14483_vm2, %v172_v11, %v306_v29  ;;  %v485_v45 = vrot.slane %v312_v33, 7  ;;  %v669_v46 = vor.u32 %v668_v26, %v664_v24  ;;  %v83_v22 = vld [vmem:[#allocation2 + $0xa0] sm:$0xff]  ;;  %v84_v23 = vld [vmem:[#allocation2 + $0xa8] sm:$0xff]  ;;  %v85_v29 = vld [vmem:[#allocation2 + $0xb0] sm:$0xff] }
  0x4f   :  { %v311_v44 = vrot.slane %v178_v32, 7  ;;  %v678_v47 = vshll.u32 %v14548_v41, 16  ;;  %v683_v48 = vshll.u32 %v14537_v31, 16  ;;  %v14554_v50 = vsel %vm14483_vm2, %v175_v15, %v310_v36  ;;  %v121_v31 = vld [vmem:[#allocation2 + $0x1d0] sm:$0xff] }
  0x50   :  { %v690_v56 = vshll.u32 %v14554_v50, 16  ;;  %v181_v58 = vshrl.u32 %v134_v39, 16  ;;  %v316_v59 = vshll.u32 %v134_v39, 16  ;;  %v676_v60 = vshrl.u32 %v14548_v41, 16 }
  0x51   :  { %11629 = vmatpush3.bf16.msra.mxu0 %v14094_v53  ;;  %v695_v53 = vshll.u32 %v14544_v38, 16  ;;  %v314_v54 = vor.u32 %v312_v33, %v311_v44  ;;  %v14561_v57 = vsel %vm14483_vm2, %v311_v44, %v485_v45  ;;  %v680_v61 = vrot.slane %v678_v47, 1  ;;  %v120_v38 = vld [vmem:[#allocation2 + $0x1c8] sm:$0xff] }
  0x52   :  { %11630 = vmatprep.subr.bf16.mxu0 %v14095_v3  ;;  %18894 = vst [vmem:[#allocation20_spill] sm:$0xff] %v14561_v57  ;;  %v135_v63 = vpack.c.bf16 %v80_v52, %v79_v51  ;;  %v14570_v0 = vsel %vm18707_vm3, %v657_v13, %v661_v14  ;;  %v14573_v1 = vsel %vm18707_vm3, %v669_v46, %v673_v40  ;;  %v315_v6 = vrot.slane %v181_v58, 7 }
  0x53   :  { %v14567_v62 = vsel %vm14483_vm2, %v178_v32, %v314_v54  ;;  %18895 = vst [vmem:[#allocation21_spill] sm:$0xff] %v14570_v0  ;;  %18896 = vst [vmem:[#allocation22_spill] sm:$0xff] %v14573_v1  ;;  %v688_v10 = vshrl.u32 %v14554_v50, 16  ;;  %v707_v11 = vshll.u32 %v14561_v57, 16  ;;  %v486_v12 = vrot.slane %v316_v59, 7  ;;  %v14099_v32 = vld [vmem:[#allocation5 + $0x18] sm:$0xff]  }
  0x54   :  { %v184_v15 = vshrl.u32 %v135_v63, 16  ;;  %v692_v16 = vrot.slane %v690_v56, 1  ;;  %v318_v13 = vor.u32 %v316_v59, %v315_v6  ;;  %v320_v14 = vshll.u32 %v135_v63, 16  ;;  %v14100_v59 = vld [vmem:[#allocation5 + $0x20] sm:$0xff]  }
  0x55   :  { %11631 = vmatpush3.bf16.msra.mxu0 %v14095_v3  ;;  %v685_v3 = vrot.slane %v683_v48, 1  ;;  %v681_v18 = vor.u32 %v680_v61, %v676_v60  ;;  %v697_v19 = vrot.slane %v695_v53, 1  ;;  %v136_v21 = vpack.c.bf16 %v82_v9, %v81_v8 }
  0x56   :  { %11696 = vmatprep.subr.bf16.mxu0 %v14096_v17  ;;  %v319_v20 = vrot.slane %v184_v15, 7  ;;  %v700_v24 = vshrl.u32 %v14567_v62, 16  ;;  %v14581_v26 = vsel %vm14483_vm2, %v181_v58, %v318_v13  ;;  %v14585_v27 = vsel %vm14483_vm2, %v315_v6, %v486_v12  ;;  %v87_v6 = vld [vmem:[#allocation2 + $0xc0] sm:$0xff]  ;;  %v14101_v12 = vld [vmem:[#allocation5 + $0x28] sm:$0xff]  }
  0x57   :  { %18897 = vst [vmem:[#allocation23_spill] sm:$0xff] %v14585_v27  ;;  %v487_v28 = vrot.slane %v320_v14, 7  ;;  %v14587_v33 = vrot.slane %v707_v11, 1  ;;  %v714_v36 = vshll.u32 %v14581_v26, 16  ;;  %v187_v40 = vshrl.u32 %v136_v21, 16  ;;  %v88_v11 = vld [vmem:[#allocation2 + $0xc8] sm:$0xff] }
  0x58   :  { %11633 = vmatmul.mubr.bf16.vlgmr.msra.gmra.mrb[0].mxu0 %v14540_v34  ;;  %v322_v39 = vor.u32 %v320_v14, %v319_v20  ;;  %v693_v44 = vor.u32 %v692_v16, %v688_v10  ;;  %v324_v46 = vshll.u32 %v136_v21, 16  ;;  %v14593_v47 = vsel %vm18707_vm3, %v681_v18, %v685_v3  ;;  %v89_v14 = vld [vmem:[#allocation2 + $0xd0] sm:$0xff]  ;;  %v108_v34 = vld [vmem:[#allocation2 + $0x168] sm:$0xff] }
  0x59   :  { %11697 = vmatpush3.bf16.msra.mxu0 %v14096_v17  ;;  %11636 = vmatprep.mubr.bf16.mxu0 %v14525_v4  ;;  %v702_v17 = vshll.u32 %v14567_v62, 16  ;;  %18898 = vst [vmem:[#allocation24_spill] sm:$0xff] %v14593_v47  ;;  %v719_v48 = vshll.u32 %v14585_v27, 16  ;;  %v323_v52 = vrot.slane %v187_v40, 7  ;;  %v712_v53 = vshrl.u32 %v14581_v26, 16  ;;  %v103_v4 = vld [vmem:[#allocation2 + $0x140] sm:$0xff] }
  0x5a   :  { %11698 = vmatprep.subr.bf16.mxu0 %v14097_v42  ;;  %v14598_v51 = vsel %vm14483_vm2, %v184_v15, %v322_v39  ;;  %v14603_v54 = vsel %vm14483_vm2, %v319_v20, %v487_v28  ;;  %v488_v56 = vrot.slane %v324_v46, 7  ;;  %v137_v58 = vpack.c.bf16 %v84_v23, %v83_v22  ;;  %v117_v27 = vld [vmem:[#allocation2 + $0x1b0] sm:$0xff] }
  0x5b   :  { %v704_v45 = vrot.slane %v702_v17, 1  ;;  %18899 = vst [vmem:[#allocation25_spill] sm:$0xff] %v14603_v54  ;;  %v716_v60 = vrot.slane %v714_v36, 1  ;;  %v726_v61 = vshll.u32 %v14598_v51, 16  ;;  %v326_v63 = vor.u32 %v324_v46, %v323_v52  ;;  %v91_v46 = vld [vmem:[#allocation2 + $0xe0] sm:$0xff] }
  0x5c   :  { %v14607_v8 = vsel %vm18707_vm3, %v693_v44, %v697_v19  ;;  %v190_v9 = vshrl.u32 %v137_v58, 16  ;;  %v328_v10 = vshll.u32 %v137_v58, 16  ;;  %v721_v15 = vrot.slane %v719_v48, 1 }
  0x5d   :  { %11699 = vmatpush3.bf16.msra.mxu0 %v14097_v42  ;;  %v86_v42 = vld [vmem:[#allocation2 + $0xb8] sm:$0xff]  ;;  %18900 = vst [vmem:[#allocation26_spill] sm:$0xff] %v14607_v8  ;;  %v14611_v16 = vsel %vm14483_vm2, %v187_v40, %v326_v63  ;;  %v14615_v17 = vsel %vm14483_vm2, %v323_v52, %v488_v56  ;;  %v724_v18 = vshrl.u32 %v14598_v51, 16  ;;  %v731_v19 = vshll.u32 %v14603_v54, 16  ;;  %v92_v63 = vld [vmem:[#allocation2 + $0xe8] sm:$0xff] }
  0x5e   :  { %11700 = vmatprep.subr.bf16.mxu0 %v14098_v7  ;;  %v138_v3 = vpack.c.bf16 %v86_v42, %v85_v29  ;;  %18901 = vst [vmem:[#allocation27_spill] sm:$0xff] %v14615_v17  ;;  %v738_v20 = vshll.u32 %v14611_v16, 16  ;;  %v327_v21 = vrot.slane %v190_v9, 7  ;;  %v717_v22 = vor.u32 %v716_v60, %v712_v53  ;;  %v90_v29 = vld [vmem:[#allocation2 + $0xd8] sm:$0xff]  ;;  %v14102_v53 = vld [vmem:[#allocation5 + $0x30] sm:$0xff]  }
  0x5f   :  { %v728_v23 = vrot.slane %v726_v61, 1  ;;  %v743_v36 = vshll.u32 %v14615_v17, 16  ;;  %v139_v40 = vpack.c.bf16 %v88_v11, %v87_v6  ;;  %v736_v42 = vshrl.u32 %v14611_v16, 16 }
  0x60   :  { %11637 = vmatmul.mubr.bf16.gmra.mrb[4].mxu0 %v14570_v0  ;;  %v193_v13 = vshrl.u32 %v138_v3, 16  ;;  %v332_v28 = vshll.u32 %v138_v3, 16  ;;  %v330_v39 = vor.u32 %v328_v10, %v327_v21  ;;  %v740_v44 = vrot.slane %v738_v20, 1 }
  0x61   :  { %11640 = vmatprep.mubr.bf16.mxu0 %v14573_v1  ;;  %11701 = vmatpush3.bf16.msra.mxu0 %v14098_v7  ;;  %v705_v7 = vor.u32 %v704_v45, %v700_v24  ;;  %v196_v48 = vshrl.u32 %v139_v40, 16  ;;  %v140_v52 = vpack.c.bf16 %v90_v29, %v89_v14  ;;  %v729_v3 = vor.u32 %v728_v23, %v724_v18  ;;  %v97_v23 = vld [vmem:[#allocation2 + $0x110] sm:$0xff]  ;;  %v98_v29 = vld [vmem:[#allocation2 + $0x118] sm:$0xff] }
  0x62   :  { %11702 = vmatprep.subr.bf16.mxu0 %v14099_v32  ;;  %v331_v24 = vrot.slane %v193_v13, 7  ;;  %v14630_v58 = vsel %vm14483_vm2, %v190_v9, %v330_v39  ;;  %v490_v60 = vrot.slane %v332_v28, 7  ;;  %v733_v6 = vrot.slane %v731_v19, 1 }
  0x63   :  { %v14626_v56 = vsel %vm18707_vm3, %v705_v7, %v14587_v33  ;;  %v741_v33 = vor.u32 %v740_v44, %v736_v42  ;;  %v745_v7 = vrot.slane %v743_v36, 1  ;;  %v335_v11 = vrot.slane %v196_v48, 7  ;;  %v96_v42 = vld [vmem:[#allocation2 + $0x108] sm:$0xff]  ;;  %v14104_v44 = vld [vmem:[#allocation5 + $0x80] sm:$0xff]  }
  0x64   :  { %v334_v45 = vor.u32 %v332_v28, %v331_v24  ;;  %18902 = vst [vmem:[#allocation28_spill] sm:$0xff] %v14626_v56  ;;  %v336_v9 = vshll.u32 %v139_v40, 16  ;;  %v750_v14 = vshll.u32 %v14630_v58, 16  ;;  %v199_v20 = vshrl.u32 %v140_v52, 16  ;;  %v95_v40 = vld [vmem:[#allocation2 + $0x100] sm:$0xff] }
  0x65   :  { %11703 = vmatpush3.bf16.msra.mxu0 %v14099_v32  ;;  %v489_v32 = vrot.slane %v328_v10, 7  ;;  %v141_v28 = vpack.c.bf16 %v92_v63, %v91_v46  ;;  %v14648_v19 = vsel %vm14483_vm2, %v331_v24, %v490_v60 }
  0x66   :  { %11704 = vmatprep.subr.bf16.mxu0 %v14100_v59  ;;  %v14634_v61 = vsel %vm14483_vm2, %v193_v13, %v334_v45  ;;  %18905 = vst [vmem:[#allocation31_spill] sm:$0xff] %v14648_v19  ;;  %v491_v36 = vrot.slane %v336_v9, 7  ;;  %v339_v39 = vrot.slane %v199_v20, 7 }
  0x67   :  { %v14641_v10 = vsel %vm14483_vm2, %v327_v21, %v489_v32  ;;  %v762_v13 = vshll.u32 %v14634_v61, 16  ;;  %v338_v21 = vor.u32 %v336_v9, %v335_v11  ;;  %v202_v32 = vshrl.u32 %v141_v28, 16 }
  0x68   :  { %11641 = vmatmul.mubr.bf16.gmra.mrb[8].mxu0 %v14593_v47  ;;  %18904 = vst [vmem:[#allocation30_spill] sm:$0xff] %v14641_v10  ;;  %v755_v18 = vshll.u32 %v14641_v10, 16  ;;  %v344_v46 = vshll.u32 %v141_v28, 16  ;;  %v760_v60 = vshrl.u32 %v14634_v61, 16  ;;  %v767_v9 = vshll.u32 %v14648_v19, 16 }
  0x69   :  { %11644 = vmatprep.mubr.bf16.mxu0 %v14607_v8  ;;  %11705 = vmatpush3.bf16.msra.mxu0 %v14100_v59  ;;  %v14637_v59 = vsel %vm18707_vm3, %v717_v22, %v721_v15  ;;  %v14103_v15 = vld [vmem:[#allocation5 + $0x38] sm:$0xff]   ;;  %v340_v22 = vshll.u32 %v140_v52, 16  ;;  %v14655_v24 = vsel %vm14483_vm2, %v196_v48, %v338_v21  ;;  %v752_v52 = vrot.slane %v750_v14, 1 }
  0x6a   :  { %11706 = vmatprep.subr.bf16.mxu0 %v14101_v12  ;;  %18903 = vst [vmem:[#allocation29_spill] sm:$0xff] %v14637_v59  ;;  %v764_v63 = vrot.slane %v762_v13, 1  ;;  %v343_v47 = vrot.slane %v202_v32, 7  ;;  %v14667_v48 = vsel %vm14483_vm2, %v335_v11, %v491_v36  ;;  %v144_v14 = vpack.c.bf16 %v98_v29, %v97_v23  ;;  %v99_v11 = vld [vmem:[#allocation2 + $0x120] sm:$0xff]  ;;  %v100_v36 = vld [vmem:[#allocation2 + $0x128] sm:$0xff] }
  0x6b   :  { %v492_v45 = vrot.slane %v340_v22, 7  ;;  %v342_v8 = vor.u32 %v340_v22, %v339_v39  ;;  %18908 = vst [vmem:[#allocation34_spill] sm:$0xff] %v14667_v48  ;;  %v143_v28 = vpack.c.bf16 %v96_v42, %v95_v40  ;;  %v769_v22 = vrot.slane %v767_v9, 1 }
  0x6c   :  { %v765_v21 = vor.u32 %v764_v63, %v760_v60  ;;  %v493_v29 = vrot.slane %v344_v46, 7  ;;  %v208_v1 = vshrl.u32 %v144_v14, 16  ;;  %v145_v9 = vpack.c.bf16 %v100_v36, %v99_v11 }
  0x6d   :  { %11707 = vmatpush3.bf16.msra.mxu0 %v14101_v12  ;;  %v748_v12 = vshrl.u32 %v14630_v58, 16  ;;  %v14672_v13 = vsel %vm14483_vm2, %v199_v20, %v342_v8  ;;  %v352_v8 = vshll.u32 %v144_v14, 16  ;;  %v101_v20 = vld [vmem:[#allocation2 + $0x130] sm:$0xff]  ;;  %v356_v63 = vshll.u32 %v143_v28, 16 }
  0x6e   :  { %11708 = vmatprep.subr.bf16.mxu0 %v14102_v53  ;;  %v786_v23 = vshll.u32 %v14672_v13, 16  ;;  %v351_v40 = vrot.slane %v208_v1, 7  ;;  %v784_v60 = vshrl.u32 %v14672_v13, 16  ;;  %v14694_v14 = vsel %vm14483_vm2, %v343_v47, %v493_v29 }
  0x6f   :  { %v495_v42 = vrot.slane %v352_v8, 7  ;;  %18911 = vst [vmem:[#allocation37_spill] sm:$0xff] %v14694_v14  ;;  %v496_v0 = vrot.slane %v356_v63, 7  ;;  %v214_v11 = vshrl.u32 %v145_v9, 16  ;;  %v360_v36 = vshll.u32 %v145_v9, 16 }
  0x70   :  { %11645 = vmatmul.mubr.bf16.gmra.mrb[12].mxu0 %v14626_v56  ;;  %v14660_v56 = vsel %vm18707_vm3, %v729_v3, %v733_v6  ;;  %v14676_v3 = vsel %vm14483_vm2, %v339_v39, %v492_v45  ;;  %v346_v6 = vor.u32 %v344_v46, %v343_v47  ;;  %v772_v39 = vshrl.u32 %v14655_v24, 16  ;;  %v102_v46 = vld [vmem:[#allocation2 + $0x138] sm:$0xff] }
  0x71   :  { %11648 = vmatprep.mubr.bf16.mxu0 %v14637_v59  ;;  %11709 = vmatpush3.bf16.msra.mxu0 %v14102_v53  ;;  %18906 = vst [vmem:[#allocation32_spill] sm:$0xff] %v14660_v56  ;;  %v14663_v59 = vsel %vm18707_vm3, %v741_v33, %v745_v7  ;;  %v774_v53 = vshll.u32 %v14655_v24, 16  ;;  %18909 = vst [vmem:[#allocation35_spill] sm:$0xff] %v14676_v3  ;;  %v753_v33 = vor.u32 %v752_v52, %v748_v12 }
  0x72   :  { %11710 = vmatprep.subr.bf16.mxu0 %v14103_v15  ;;  %18907 = vst [vmem:[#allocation33_spill] sm:$0xff] %v14663_v59  ;;  %v757_v7 = vrot.slane %v755_v18, 1  ;;  %v791_v18 = vshll.u32 %v14676_v3, 16  ;;  %v14686_v12 = vsel %vm14483_vm2, %v202_v32, %v346_v6  ;;  %v14699_v6 = vsel %vm14483_vm2, %v351_v40, %v495_v42 }
  0x73   :  { %v776_v45 = vrot.slane %v774_v53, 1  ;;  %v788_v53 = vrot.slane %v786_v23, 1  ;;  %v798_v32 = vshll.u32 %v14686_v12, 16  ;;  %18912 = vst [vmem:[#allocation38_spill] sm:$0xff] %v14699_v6  ;;  %v14708_v47 = vsel %vm18707_vm3, %v765_v21, %v769_v22 }
  0x74   :  { %v14689_v52 = vsel %vm18707_vm3, %v753_v33, %v757_v7  ;;  %v14701_v33 = vpack.c.bf16 %v102_v46, %v101_v20  ;;  %18913 = vst [vmem:[#allocation39_spill] sm:$0xff] %v14708_v47  ;;  %v793_v29 = vrot.slane %v791_v18, 1  ;;  %v796_v46 = vshrl.u32 %v14686_v12, 16 }
  0x75   :  { %11711 = vmatpush3.bf16.msra.mxu0 %v14103_v15  ;;  %v779_v15 = vshll.u32 %v14667_v48, 16  ;;  %18910 = vst [vmem:[#allocation36_spill] sm:$0xff] %v14689_v52  ;;  %v800_v21 = vrot.slane %v798_v32, 1  ;;  %v815_v22 = vshll.u32 %v14699_v6, 16  ;;  %v497_v18 = vrot.slane %v360_v36, 7  ;;  %v105_v32 = vld [vmem:[#allocation2 + $0x150] sm:$0xff] }
  0x76   :  { %11776 = vmatprep.subr.bf16.mxu0 %v14104_v44  ;;  %v211_v44 = vshrl.u32 %v143_v28, 16 }
  0x77   :  { %v781_v23 = vrot.slane %v779_v15, 1  ;;  %v104_v15 = vld [vmem:[#allocation2 + $0x148] sm:$0xff]  ;;  %v801_v3 = vor.u32 %v800_v21, %v796_v46  ;;  %v817_v48 = vrot.slane %v815_v22, 1 }
  0x78   :  { %11649 = vmatmul.mubr.bf16.gmra.mrb[16].mxu0 %v14660_v56  ;;  %v355_v56 = vrot.slane %v211_v44, 7 }
  0x79   :  { %11652 = vmatprep.mubr.bf16.mxu0 %v14663_v59  ;;  %v354_v59 = vor.u32 %v352_v8, %v351_v40  ;;  %v803_v8 = vshll.u32 %v14694_v14, 16  ;;  %v777_v40 = vor.u32 %v776_v45, %v772_v39 }
  0x7a   :  { %v358_v7 = vor.u32 %v356_v63, %v355_v56  ;;  %v14722_v39 = vsel %vm14483_vm2, %v355_v56, %v496_v0 }
  0x7b   :  { %v14705_v28 = vsel %vm14483_vm2, %v208_v1, %v354_v59  ;;  %v359_v1 = vrot.slane %v214_v11, 7  ;;  %v789_v59 = vor.u32 %v788_v53, %v784_v60  ;;  %18914 = vst [vmem:[#allocation40_spill] sm:$0xff] %v14722_v39  ;;  %v805_v63 = vrot.slane %v803_v8, 1 }
  0x7c   :  { %v810_v42 = vshll.u32 %v14705_v28, 16  ;;  %v14714_v20 = vsel %vm14483_vm2, %v211_v44, %v358_v7  ;;  %v217_v44 = vshrl.u32 %v14701_v33, 16  ;;  %v808_v9 = vshrl.u32 %v14705_v28, 16  ;;  %v106_v7 = vld [vmem:[#allocation2 + $0x158] sm:$0xff] }
  0x7d   :  { %v362_v45 = vor.u32 %v360_v36, %v359_v1  ;;  %v822_v60 = vshll.u32 %v14714_v20, 16  ;;  %v364_v53 = vshll.u32 %v14701_v33, 16  ;;  %v147_v36 = vpack.c.bf16 %v104_v15, %v103_v4 }
  0x7e   :  { %v363_v56 = vrot.slane %v217_v44, 7  ;;  %v14733_v6 = vsel %vm18707_vm3, %v777_v40, %v781_v23  ;;  %v14736_v8 = vsel %vm18707_vm3, %v789_v59, %v793_v29  ;;  %v827_v14 = vshll.u32 %v14722_v39, 16 }
  0x7f   :  { %v14730_v0 = vsel %vm14483_vm2, %v214_v11, %v362_v45  ;;  %18915 = vst [vmem:[#allocation41_spill] sm:$0xff] %v14733_v6  ;;  %18916 = vst [vmem:[#allocation42_spill] sm:$0xff] %v14736_v8  ;;  %v498_v33 = vrot.slane %v364_v53, 7  ;;  %v220_v19 = vshrl.u32 %v147_v36, 16  ;;  %v820_v11 = vshrl.u32 %v14714_v20, 16 }
  0x80   :  { %11653 = vmatmul.mubr.bf16.gmra.mrb[20].mxu0 %v14689_v52  ;;  %v107_v52 = vld [vmem:[#allocation2 + $0x160] sm:$0xff]  ;;  %v824_v45 = vrot.slane %v822_v60, 1  ;;  %v834_v4 = vshll.u32 %v14730_v0, 16  ;;  %v368_v23 = vshll.u32 %v147_v36, 16  ;;  %v366_v40 = vor.u32 %v364_v53, %v363_v56 }
  0x81   :  { %11656 = vmatprep.mubr.bf16.mxu0 %v14708_v47  ;;  %v812_v47 = vrot.slane %v810_v42, 1  ;;  %v14741_v42 = vsel %vm14483_vm2, %v359_v1, %v497_v18  ;;  %v367_v15 = vrot.slane %v220_v19, 7  ;;  %v148_v29 = vpack.c.bf16 %v106_v7, %v105_v32 }
  0x82   :  { %18917 = vst [vmem:[#allocation43_spill] sm:$0xff] %v14741_v42  ;;  %v149_v59 = vpack.c.bf16 %v108_v34, %v107_v52  ;;  %v829_v46 = vrot.slane %v827_v14, 1  ;;  %v839_v21 = vshll.u32 %v14741_v42, 16  ;;  %v14749_v1 = vsel %vm14483_vm2, %v363_v56, %v498_v33  ;;  %v114_v42 = vld [vmem:[#allocation2 + $0x198] sm:$0xff] }
  0x83   :  { %v813_v39 = vor.u32 %v812_v47, %v808_v9  ;;  %18918 = vst [vmem:[#allocation44_spill] sm:$0xff] %v14749_v1  ;;  %v370_v22 = vor.u32 %v368_v23, %v367_v15  ;;  %v499_v18 = vrot.slane %v368_v23, 7  ;;  %v223_v60 = vshrl.u32 %v148_v29, 16 }
  0x84   :  { %v372_v36 = vshll.u32 %v148_v29, 16  ;;  %v825_v53 = vor.u32 %v824_v45, %v820_v11  ;;  %v832_v32 = vshrl.u32 %v14730_v0, 16  ;;  %v836_v34 = vrot.slane %v834_v4, 1  ;;  %v109_v11 = vld [vmem:[#allocation2 + $0x170] sm:$0xff]  ;;  %v110_v45 = vld [vmem:[#allocation2 + $0x178] sm:$0xff] }
  0x85   :  { %v226_v52 = vshrl.u32 %v149_v59, 16  ;;  %v14755_v14 = vsel %vm14483_vm2, %v217_v44, %v366_v40  ;;  %v14759_v47 = vsel %vm14483_vm2, %v220_v19, %v370_v22  ;;  %v371_v9 = vrot.slane %v223_v60, 7  ;;  %v112_v22 = vld [vmem:[#allocation2 + $0x188] sm:$0xff] }
  0x86   :  { %v376_v7 = vshll.u32 %v149_v59, 16  ;;  %v14762_v56 = vsel %vm18707_vm3, %v801_v3, %v805_v63  ;;  %v851_v33 = vshll.u32 %v14749_v1, 16  ;;  %v14766_v4 = vsel %vm18707_vm3, %v813_v39, %v817_v48  ;;  %v111_v63 = vld [vmem:[#allocation2 + $0x180] sm:$0xff]  ;;  %v113_v39 = vld [vmem:[#allocation2 + $0x190] sm:$0xff] }
  0x87   :  { %18919 = vst [vmem:[#allocation45_spill] sm:$0xff] %v14762_v56  ;;  %18920 = vst [vmem:[#allocation46_spill] sm:$0xff] %v14766_v4  ;;  %v14770_v44 = vsel %vm14483_vm2, %v367_v15, %v499_v18  ;;  %v374_v23 = vor.u32 %v372_v36, %v371_v9  ;;  %v375_v40 = vrot.slane %v226_v52, 7  ;;  %v837_v19 = vor.u32 %v836_v34, %v832_v32 }
  0x88   :  { %11657 = vmatmul.mubr.bf16.gmra.mrb[24].mxu0 %v14733_v6  ;;  %18921 = vst [vmem:[#allocation47_spill] sm:$0xff] %v14770_v44  ;;  %v841_v29 = vrot.slane %v839_v21, 1  ;;  %v846_v59 = vshll.u32 %v14755_v14, 16  ;;  %v858_v3 = vshll.u32 %v14759_v47, 16  ;;  %v150_v48 = vpack.c.bf16 %v110_v45, %v109_v11 }
  0x89   :  { %11660 = vmatprep.mubr.bf16.mxu0 %v14736_v8  ;;  %v14775_v8 = vsel %vm18707_vm3, %v825_v53, %v829_v46  ;;  %v378_v6 = vor.u32 %v376_v7, %v375_v40  ;;  %v844_v15 = vshrl.u32 %v14755_v14, 16  ;;  %v853_v18 = vrot.slane %v851_v33, 1 }
  0x8a   :  { %18922 = vst [vmem:[#allocation48_spill] sm:$0xff] %v14775_v8  ;;  %v863_v32 = vshll.u32 %v14770_v44, 16  ;;  %v500_v21 = vrot.slane %v372_v36, 7  ;;  %v14783_v34 = vsel %vm14483_vm2, %v223_v60, %v374_v23  ;;  %v501_v1 = vrot.slane %v376_v7, 7  ;;  %v115_v60 = vld [vmem:[#allocation2 + $0x1a0] sm:$0xff]  ;;  %v116_v23 = vld [vmem:[#allocation2 + $0x1a8] sm:$0xff] }
  0x8b   :  { %v229_v46 = vshrl.u32 %v150_v48, 16  ;;  %v380_v53 = vshll.u32 %v150_v48, 16  ;;  %v14786_v11 = vsel %vm18707_vm3, %v837_v19, %v841_v29  ;;  %v848_v45 = vrot.slane %v846_v59, 1 }
  0x8c   :  { %18923 = vst [vmem:[#allocation49_spill] sm:$0xff] %v14786_v11  ;;  %v860_v33 = vrot.slane %v858_v3, 1  ;;  %v14791_v36 = vsel %vm14483_vm2, %v226_v52, %v378_v6  ;;  %v151_v17 = vpack.c.bf16 %v112_v22, %v111_v63  ;;  %v14793_v7 = vrot.slane %v863_v32, 1 }
  0x8d   :  { %v379_v44 = vrot.slane %v229_v46, 7  ;;  %v502_v10 = vrot.slane %v380_v53, 7  ;;  %v14797_v48 = vsel %vm14483_vm2, %v371_v9, %v500_v21  ;;  %v870_v19 = vshll.u32 %v14783_v34, 16 }
  0x8e   :  { %18924 = vst [vmem:[#allocation50_spill] sm:$0xff] %v14797_v48  ;;  %v152_v29 = vpack.c.bf16 %v114_v42, %v113_v39  ;;  %v14802_v59 = vsel %vm14483_vm2, %v375_v40, %v501_v1  ;;  %v232_v52 = vshrl.u32 %v151_v17, 16  ;;  %v384_v3 = vshll.u32 %v151_v17, 16  ;;  %v118_v1 = vld [vmem:[#allocation2 + $0x1b8] sm:$0xff] }
  0x8f   :  { %18925 = vst [vmem:[#allocation51_spill] sm:$0xff] %v14802_v59  ;;  %v382_v6 = vor.u32 %v380_v53, %v379_v44  ;;  %v849_v54 = vor.u32 %v848_v45, %v844_v15  ;;  %v882_v63 = vshll.u32 %v14791_v36, 16  ;;  %v14805_v32 = vpack.c.bf16 %v116_v23, %v115_v60 }
  0x90   :  { %11661 = vmatmul.mubr.bf16.gmra.mrb[28].mxu0 %v14762_v56  ;;  %v856_v56 = vshrl.u32 %v14759_v47, 16  ;;  %v235_v22 = vshrl.u32 %v152_v29, 16  ;;  %v875_v9 = vshll.u32 %v14797_v48, 16  ;;  %v14810_v21 = vsel %vm14483_vm2, %v379_v44, %v502_v10 }
  0x91   :  { %11664 = vmatprep.mubr.bf16.mxu0 %v14766_v4  ;;  %18926 = vst [vmem:[#allocation52_spill] sm:$0xff] %v14810_v21  ;;  %v383_v42 = vrot.slane %v232_v52, 7  ;;  %v503_v39 = vrot.slane %v384_v3, 7  ;;  %v868_v17 = vshrl.u32 %v14783_v34, 16  ;;  %v872_v40 = vrot.slane %v870_v19, 1 }
  0x92   :  { %v887_v15 = vshll.u32 %v14802_v59, 16  ;;  %v388_v53 = vshll.u32 %v152_v29, 16  ;;  %v880_v45 = vshrl.u32 %v14791_v36, 16  ;;  %v14819_v60 = vsel %vm14483_vm2, %v229_v46, %v382_v6  ;;  %v119_v59 = vld [vmem:[#allocation2 + $0x1c0] sm:$0xff] }
  0x93   :  { %v386_v10 = vor.u32 %v384_v3, %v383_v42  ;;  %v387_v44 = vrot.slane %v235_v22, 7  ;;  %v884_v23 = vrot.slane %v882_v63, 1  ;;  %v899_v48 = vshll.u32 %v14810_v21, 16 }
  0x94   :  { %v238_v57 = vshrl.u32 %v14805_v32, 16  ;;  %v14824_v19 = vsel %vm18707_vm3, %v849_v54, %v853_v18  ;;  %v154_v46 = vpack.c.bf16 %v118_v1, %v117_v27  ;;  %v861_v6 = vor.u32 %v860_v33, %v856_v56 }
  0x95   :  { %18927 = vst [vmem:[#allocation53_spill] sm:$0xff] %v14824_v19  ;;  %v14828_v29 = vsel %vm14483_vm2, %v232_v52, %v386_v10  ;;  %v877_v3 = vrot.slane %v875_v9, 1  ;;  %v894_v63 = vshll.u32 %v14819_v60, 16  ;;  %v390_v21 = vor.u32 %v388_v53, %v387_v44  ;;  %v122_v52 = vld [vmem:[#allocation2 + $0x1d8] sm:$0xff] }
  0x96   :  { %18928 = vst [vmem:[#allocation54_spill] sm:$0xff] %v14828_v29  ;;  %v873_v5 = vor.u32 %v872_v40, %v868_v17  ;;  %v889_v54 = vrot.slane %v887_v15, 1  ;;  %v391_v18 = vrot.slane %v238_v57, 7  ;;  %v392_v55 = vshll.u32 %v14805_v32, 16 }
  0x97   :  { %v892_v10 = vshrl.u32 %v14819_v60, 16  ;;  %v14837_v35 = vrot.slane %v899_v48, 1  ;;  %v906_v27 = vshll.u32 %v14828_v29, 16  ;;  %v885_v33 = vor.u32 %v884_v23, %v880_v45 }
  0x98   :  { %11665 = vmatmul.mubr.bf16.gmra.mrb[32].mxu0 %v14775_v8  ;;  %v504_v8 = vrot.slane %v388_v53, 7  ;;  %v896_v1 = vrot.slane %v894_v63, 1  ;;  %v14849_v48 = vsel %vm14483_vm2, %v235_v22, %v390_v21  ;;  %v396_v17 = vshll.u32 %v154_v46, 16 }
  0x99   :  { %11668 = vmatprep.mubr.bf16.mxu0 %v14766_v4  ;;  %v14832_v4 = vsel %vm14483_vm2, %v383_v42, %v503_v39  ;;  %v505_v42 = vrot.slane %v392_v55, 7  ;;  %v241_v39 = vshrl.u32 %v154_v46, 16  ;;  %18930 = vst [vmem:[#allocation56_spill] sm:$0xff] %v14849_v48  ;;  %v394_v40 = vor.u32 %v392_v55, %v391_v18 }
  0x9a   :  { %v911_v56 = vshll.u32 %v14832_v4, 16  ;;  %v14843_v9 = vsel %vm14483_vm2, %v387_v44, %v504_v8  ;;  %v155_v53 = vpack.c.bf16 %v120_v38, %v119_v59  ;;  %v156_v45 = vpack.c.bf16 %v122_v52, %v121_v31  ;;  %v123_v38 = vld [vmem:[#allocation2 + $0x1e0] sm:$0xff]  ;;  %v124_v31 = vld [vmem:[#allocation2 + $0x1e8] sm:$0xff] }
  0x9b   :  { %18929 = vst [vmem:[#allocation55_spill] sm:$0xff] %v14843_v9  ;;  %v395_v15 = vrot.slane %v241_v39, 7  ;;  %v14854_v8 = vsel %vm18707_vm3, %v861_v6, %v14793_v7  ;;  %v14857_v44 = vsel %vm18707_vm3, %v873_v5, %v877_v3  ;;  %v923_v63 = vshll.u32 %v14843_v9, 16 }
  0x9c   :  { %18931 = vst [vmem:[#allocation57_spill] sm:$0xff] %v14854_v8  ;;  %18932 = vst [vmem:[#allocation58_spill] sm:$0xff] %v14857_v44  ;;  %v14859_v23 = vrot.slane %v911_v56, 1  ;;  %v908_v22 = vrot.slane %v906_v27, 1  ;;  %v14864_v21 = vsel %vm14483_vm2, %v391_v18, %v505_v42  ;;  %v244_v46 = vshrl.u32 %v155_v53, 16 }
  0x9d   :  { %18933 = vst [vmem:[#allocation59_spill] sm:$0xff] %v14864_v21  ;;  %v398_v55 = vor.u32 %v396_v17, %v395_v15  ;;  %v918_v59 = vshll.u32 %v14849_v48, 16  ;;  %v506_v7 = vrot.slane %v396_v17, 7  ;;  %v400_v6 = vshll.u32 %v155_v53, 16 }
  0x9e   :  { %v247_v52 = vshrl.u32 %v156_v45, 16  ;;  %v14868_v5 = vsel %vm18707_vm3, %v885_v33, %v889_v54  ;;  %v14872_v3 = vsel %vm14483_vm2, %v238_v57, %v394_v40  ;;  %v399_v27 = vrot.slane %v244_v46, 7 }
  0x9f   :  { %18934 = vst [vmem:[#allocation60_spill] sm:$0xff] %v14872_v3  ;;  %v404_v56 = vshll.u32 %v156_v45, 16  ;;  %v916_v18 = vshrl.u32 %v14849_v48, 16  ;;  %v925_v42 = vrot.slane %v923_v63, 1  ;;  %v935_v32 = vshll.u32 %v14864_v21, 16 }
  0xa0   :  { %11669 = vmatmul.mubr.bf16.gmra.mrb[36].mxu0 %v14786_v11  ;;  %v402_v17 = vor.u32 %v400_v6, %v399_v27  ;;  %v507_v53 = vrot.slane %v400_v6, 7  ;;  %v403_v11 = vrot.slane %v247_v52, 7  ;;  %v920_v33 = vrot.slane %v918_v59, 1 }
  0xa1   :  { %11672 = vmatprep.mubr.bf16.mxu0 %v14824_v19  ;;  %v14878_v19 = vsel %vm14483_vm2, %v241_v39, %v398_v55  ;;  %v508_v54 = vrot.slane %v404_v56, 7  ;;  %v930_v57 = vshll.u32 %v14872_v3, 16  ;;  %v14884_v40 = vsel %vm14483_vm2, %v395_v15, %v506_v7 }
  0xa2   :  { %18935 = vst [vmem:[#allocation61_spill] sm:$0xff] %v14878_v19  ;;  %18936 = vst [vmem:[#allocation62_spill] sm:$0xff] %v14884_v40  ;;  %v157_v45 = vpack.c.bf16 %v124_v31, %v123_v38  ;;  %v897_v63 = vor.u32 %v896_v1, %v892_v10  ;;  %v14889_v39 = vsel %vm14483_vm2, %v244_v46, %v402_v17  ;;  %v928_v59 = vshrl.u32 %v14872_v3, 16 }
  0xa3   :  { %18937 = vst [vmem:[#allocation63_spill] sm:$0xff] %v14889_v39  ;;  %v14893_v55 = vsel %vm14483_vm2, %v399_v27, %v507_v53  ;;  %v406_v6 = vor.u32 %v404_v56, %v403_v11  ;;  %v942_v21 = vshll.u32 %v14878_v19, 16  ;;  %v14899_v15 = vsel %vm14483_vm2, %v403_v11, %v508_v54 }
  0xa4   :  { %18938 = vst [vmem:[#allocation64_spill] sm:$0xff] %v14893_v55  ;;  %18939 = vst [vmem:[#allocation65_spill] sm:$0xff] %v14899_v15  ;;  %v947_v10 = vshll.u32 %v14884_v40, 16  ;;  %v250_v46 = vshrl.u32 %v157_v45, 16  ;;  %v408_v38 = vshll.u32 %v157_v45, 16  ;;  %v932_v31 = vrot.slane %v930_v57, 1 }
  0xa5   :  { %v14904_v1 = vsel %vm14483_vm2, %v247_v52, %v406_v6  ;;  %v940_v7 = vshrl.u32 %v14878_v19, 16  ;;  %v954_v27 = vshll.u32 %v14889_v39, 16  ;;  %v971_v11 = vshll.u32 %v14899_v15, 16 }
  0xa6   :  { %18940 = vst [vmem:[#allocation66_spill] sm:$0xff] %v14904_v1  ;;  %v966_v56 = vshll.u32 %v14904_v1, 16  ;;  %v407_v17 = vrot.slane %v250_v46, 7  ;;  %v509_v53 = vrot.slane %v408_v38, 7  ;;  %v14913_v54 = vsel %vm18707_vm3, %v897_v63, %v14837_v35 }
  0xa7   :  { %18941 = vst [vmem:[#allocation67_spill] sm:$0xff] %v14913_v54  ;;  %v944_v52 = vrot.slane %v942_v21, 1  ;;  %v949_v6 = vrot.slane %v947_v10, 1  ;;  %v952_v57 = vshrl.u32 %v14889_v39, 16  ;;  %v921_v15 = vor.u32 %v920_v33, %v916_v18 }
  0xa8   :  { %11673 = vmatmul.mubr.bf16.gmra.mrb[40].mxu0 %v14854_v8  ;;  %v937_v8 = vrot.slane %v935_v32, 1  ;;  %v959_v32 = vshll.u32 %v14893_v55, 16  ;;  %v410_v45 = vor.u32 %v408_v38, %v407_v17  ;;  %v18942_v55 = vshrl.u32 %v14828_v29, 16 }
  0xa9   :  { %11676 = vmatprep.mubr.bf16.mxu0 %v14857_v44  ;;  %v956_v44 = vrot.slane %v954_v27, 1  ;;  %v14926_v35 = vsel %vm14483_vm2, %v407_v17, %v509_v53  ;;  %v964_v63 = vshrl.u32 %v14904_v1, 16  ;;  %v968_v10 = vrot.slane %v966_v56, 1  ;;  %v14106_v17 = vld [vmem:[#allocation5 + $0x90] sm:$0xff]   ;;  %v14107_v53 = vld [vmem:[#allocation5 + $0x98] sm:$0xff]  }
  0xaa   :  { %v909_v40 = vor.u32 %v908_v22, %v18942_v55  ;;  %v14922_v9 = vsel %vm14483_vm2, %v250_v46, %v410_v45  ;;  %v961_v21 = vrot.slane %v959_v32, 1  ;;  %v973_v38 = vrot.slane %v971_v11, 1  ;;  %v14111_v45 = vld [vmem:[#allocation5 + $0xb8] sm:$0xff]  }
  0xab   :  { %18943 = vst [vmem:[#allocation68_spill] sm:$0xff] %v14922_v9  ;;  %v978_v27 = vshll.u32 %v14922_v9, 16  ;;  %v14936_v18 = vsel %vm18707_vm3, %v921_v15, %v925_v42  ;;  %v976_v33 = vshrl.u32 %v14922_v9, 16  ;;  %v933_v46 = vor.u32 %v932_v31, %v928_v59 }
  0xac   :  { %v14933_v22 = vsel %vm18707_vm3, %v909_v40, %v14859_v23  ;;  %18945 = vst [vmem:[#allocation70_spill] sm:$0xff] %v14936_v18  ;;  %v945_v32 = vor.u32 %v944_v52, %v940_v7  ;;  %v957_v23 = vor.u32 %v956_v44, %v952_v57  ;;  %v969_v42 = vor.u32 %v968_v10, %v964_v63  ;;  %v14105_v44 = vld [vmem:[#allocation5 + $0x88] sm:$0xff]   ;;  %v14240_v7 = vld [vmem:[#allocation5 + $0x80] sm:$0xff]  }
  0xad   :  { %18944 = vst [vmem:[#allocation69_spill] sm:$0xff] %v14933_v22  ;;  %v980_v55 = vrot.slane %v978_v27, 1  ;;  %v14942_v56 = vsel %vm18707_vm3, %v933_v46, %v937_v8  ;;  %v14109_v52 = vld [vmem:[#allocation5 + $0xa8] sm:$0xff]   ;;  %v14112_v57 = vld [vmem:[#allocation5 + $0xc0] sm:$0xff]   ;;  %v1770_v63 = vrot.slane %v14489_v30, 1  ;;  %v1775_v30 = vrot.slane %v14511_v49, 1 }
  0xae   :  { %v14945_v11 = vsel %vm18707_vm3, %v945_v32, %v949_v6  ;;  %v14950_v40 = vsel %vm18707_vm3, %v957_v23, %v961_v21  ;;  %v14953_v15 = vsel %vm18707_vm3, %v969_v42, %v973_v38  ;;  %v14110_v6 = vld [vmem:[#allocation5 + $0xb0] sm:$0xff]   ;;  %v1769_v21 = vrot.slane %v14498_v37, 1  ;;  %v18947_v38 = vld [vmem:[#allocation13_spill] sm:$0xff] }
  0xaf   :  { %18946 = vst [vmem:[#allocation71_spill] sm:$0xff] %v14950_v40  ;;  %v981_v8 = vor.u32 %v980_v55, %v976_v33  ;;  %v1773_v27 = vrot.slane %v18947_v38, 1  ;;  %v1772_v33 = vrot.slane %v14504_v43, 1  ;;  %v14113_v46 = vld [vmem:[#allocation5 + $0xc8] sm:$0xff]   ;;  %v18948_v32 = vld [vmem:[#allocation14_spill] sm:$0xff]  ;;  %v1778_v42 = vrot.slane %v14522_v2, 1 }
  0xb0   :  { %11677 = vmatmul.mubr.bf16.gmra.mrb[44].mxu0 %v14868_v5  ;;  %v14995_v10 = vsel %vm18706_vm4, %v1769_v21, %v1770_v63  ;;  %v1776_v23 = vrot.slane %v18948_v32, 1  ;;  %v14116_v63 = vld [vmem:[#allocation5 + $0xe0] sm:$0xff]  }
  0xb1   :  { %11680 = vmatprep.mubr.bf16.mxu0 %v14913_v54  ;;  %v983_v54 = vshll.u32 %v14926_v35, 16  ;;  %v15002_v55 = vsel %vm18706_vm4, %v1772_v33, %v1773_v27  ;;  %v14117_v33 = vld [vmem:[#allocation5 + $0xe8] sm:$0xff]  }
  0xb3   :  { %v985_v59 = vrot.slane %v983_v54, 1  ;;  %v14108_v54 = vld [vmem:[#allocation5 + $0xa0] sm:$0xff]  }
  0xb5   :  { %v14958_v31 = vsel %vm18707_vm3, %v981_v8, %v985_v59  ;;  %v18949_v59 = vld [vmem:[#allocation16_spill] sm:$0xff] }
  0xb6   :  { %v1779_v8 = vrot.slane %v18949_v59, 1 }
  0xb8   :  { %11681 = vmatmul.mubr.bf16.gmra.mrb[48].mxu0 %v14933_v22 }
  0xb9   :  { %11684 = vmatprep.mubr.bf16.mxu0 %v14936_v18 }
  0xc0   :  { %11685 = vmatmul.mubr.bf16.gmra.mrb[52].mxu0 %v14942_v56 }
  0xc1   :  { %11688 = vmatprep.mubr.bf16.mxu0 %v14945_v11 }
  0xc8   :  { %11689 = vmatmul.mubr.bf16.gmra.mrb[56].mxu0 %v14950_v40 }
  0xc9   :  { %11692 = vmatprep.mubr.bf16.mxu0 %v14953_v15 }
  0xd0   :  { %11693 = vmatmul.mubr.bf16.gmra.mrb[60].mxu0 %v14958_v31 }
  0xd1   :  { %11712 = vmatprep.mubr.bf16.mxu0 %v14498_v37 }
  0xd8   :  { %11713 = vmatmul.mubr.bf16.vlgmr.msra.gmra.mrb[0].mxu0 %v14504_v43 }
  0xd9   :  { %11777 = vmatpush3.bf16.msra.mxu0 %v14240_v7  ;;  %11716 = vmatprep.mubr.bf16.mxu0 %v14498_v37  ;;  %v15011_v7 = vsel %vm18706_vm4, %v1775_v30, %v1776_v23  ;;  %v18952_v30 = vld [vmem:[#allocation20_spill] sm:$0xff]  ;;  %v1790_v23 = vrot.slane %v14581_v26, 1 }
  0xda   :  { %11778 = vmatprep.subr.bf16.mxu0 %v14105_v44  ;;  %v1788_v32 = vrot.slane %v18952_v30, 1 }
  0xdd   :  { %11779 = vmatpush3.bf16.msra.mxu0 %v14105_v44  ;;  %v14114_v44 = vld [vmem:[#allocation5 + $0xd0] sm:$0xff]  }
  0xde   :  { %11780 = vmatprep.subr.bf16.mxu0 %v14106_v17 }
  0xe0   :  { %11717 = vmatmul.mubr.bf16.gmra.mrb[4].mxu0 %v14511_v49 }
  0xe1   :  { %11720 = vmatprep.mubr.bf16.mxu0 %v14522_v2  ;;  %11781 = vmatpush3.bf16.msra.mxu0 %v14106_v17  ;;  %v15014_v17 = vsel %vm18706_vm4, %v1778_v42, %v1779_v8  ;;  %v18953_v42 = vld [vmem:[#allocation23_spill] sm:$0xff]  ;;  %v14118_v8 = vld [vmem:[#allocation5 + $0xf0] sm:$0xff]  }
  0xe2   :  { %11782 = vmatprep.subr.bf16.mxu0 %v14107_v53  ;;  %v1791_v59 = vrot.slane %v18953_v42, 1 }
  0xe5   :  { %11783 = vmatpush3.bf16.msra.mxu0 %v14107_v53  ;;  %v14115_v53 = vld [vmem:[#allocation5 + $0xd8] sm:$0xff]  }
  0xe6   :  { %11784 = vmatprep.subr.bf16.mxu0 %v14108_v54 }
  0xe8   :  { %11721 = vmatmul.mubr.bf16.gmra.mrb[8].mxu0 %v14548_v41 }
  0xe9   :  { %11724 = vmatprep.mubr.bf16.mxu0 %v14554_v50  ;;  %11785 = vmatpush3.bf16.msra.mxu0 %v14108_v54  ;;  %v1781_v54 = vrot.slane %v14548_v41, 1 }
  0xea   :  { %11786 = vmatprep.subr.bf16.mxu0 %v14109_v52 }
  0xed   :  { %11787 = vmatpush3.bf16.msra.mxu0 %v14109_v52  ;;  %v18950_v52 = vld [vmem:[#allocation17_spill] sm:$0xff] }
  0xee   :  { %11788 = vmatprep.subr.bf16.mxu0 %v14110_v6 }
  0xf0   :  { %11725 = vmatmul.mubr.bf16.gmra.mrb[12].mxu0 %v14567_v62 }
  0xf1   :  { %11728 = vmatprep.mubr.bf16.mxu0 %v14581_v26  ;;  %11789 = vmatpush3.bf16.msra.mxu0 %v14110_v6  ;;  %v1782_v6 = vrot.slane %v18950_v52, 1  ;;  %v1793_v52 = vrot.slane %v14598_v51, 1 }
  0xf2   :  { %11790 = vmatprep.subr.bf16.mxu0 %v14111_v45 }
  0xf3   :  { %v15023_v38 = vsel %vm18706_vm4, %v1781_v54, %v1782_v6  ;;  %v14119_v54 = vld [vmem:[#allocation5 + $0xf8] sm:$0xff]   ;;  %v18954_v6 = vld [vmem:[#allocation25_spill] sm:$0xff] }
  0xf5   :  { %11791 = vmatpush3.bf16.msra.mxu0 %v14111_v45  ;;  %v1784_v45 = vrot.slane %v14554_v50, 1 }
  0xf6   :  { %11856 = vmatprep.subr.bf16.mxu0 %v14112_v57 }
  0xf8   :  { %11729 = vmatmul.mubr.bf16.gmra.mrb[16].mxu0 %v14598_v51 }
  0xf9   :  { %11732 = vmatprep.mubr.bf16.mxu0 %v14611_v16 }
 0x100   :  { %11733 = vmatmul.mubr.bf16.gmra.mrb[20].mxu0 %v14630_v58 }
 0x101   :  { %11736 = vmatprep.mubr.bf16.mxu0 %v14634_v61 }
 0x108   :  { %11737 = vmatmul.mubr.bf16.gmra.mrb[24].mxu0 %v14655_v24 }
 0x109   :  { %11740 = vmatprep.mubr.bf16.mxu0 %v14672_v13 }
 0x110   :  { %11741 = vmatmul.mubr.bf16.gmra.mrb[28].mxu0 %v14686_v12 }
 0x111   :  { %11744 = vmatprep.mubr.bf16.mxu0 %v14705_v28 }
 0x118   :  { %11745 = vmatmul.mubr.bf16.gmra.mrb[32].mxu0 %v14714_v20 }
 0x119   :  { %11748 = vmatprep.mubr.bf16.mxu0 %v14705_v28 }
 0x120   :  { %11749 = vmatmul.mubr.bf16.gmra.mrb[36].mxu0 %v14730_v0 }
 0x121   :  { %11752 = vmatprep.mubr.bf16.mxu0 %v14755_v14 }
 0x128   :  { %11753 = vmatmul.mubr.bf16.gmra.mrb[40].mxu0 %v14759_v47 }
 0x129   :  { %11756 = vmatprep.mubr.bf16.mxu0 %v14783_v34 }
 0x130   :  { %11757 = vmatmul.mubr.bf16.gmra.mrb[44].mxu0 %v14791_v36 }
 0x131   :  { %11760 = vmatprep.mubr.bf16.mxu0 %v14819_v60 }
 0x138   :  { %11761 = vmatmul.mubr.bf16.gmra.mrb[48].mxu0 %v14828_v29 }
 0x139   :  { %11764 = vmatprep.mubr.bf16.mxu0 %v14849_v48 }
 0x140   :  { %11765 = vmatmul.mubr.bf16.gmra.mrb[52].mxu0 %v14872_v3 }
 0x141   :  { %11768 = vmatprep.mubr.bf16.mxu0 %v14878_v19 }
 0x148   :  { %11769 = vmatmul.mubr.bf16.gmra.mrb[56].mxu0 %v14889_v39 }
 0x149   :  { %11772 = vmatprep.mubr.bf16.mxu0 %v14904_v1 }
 0x150   :  { %11773 = vmatmul.mubr.bf16.gmra.mrb[60].mxu0 %v14922_v9 }
 0x151   :  { %11792 = vmatprep.mubr.bf16.mxu0 %v14995_v10 }
 0x158   :  { %11793 = vmatmul.mubr.bf16.vlgmr.msra.gmra.mrb[0].mxu0 %v15002_v55 }
 0x159   :  { %11857 = vmatpush3.bf16.msra.mxu0 %v14112_v57  ;;  %11796 = vmatprep.mubr.bf16.mxu0 %v14995_v10  ;;  %v18951_v57 = vld [vmem:[#allocation19_spill] sm:$0xff] }
 0x15a   :  { %11858 = vmatprep.subr.bf16.mxu0 %v14113_v46  ;;  %v1785_v21 = vrot.slane %v18951_v57, 1  ;;  %v1796_v57 = vrot.slane %v14611_v16, 1 }
 0x15c   :  { %v15026_v27 = vsel %vm18706_vm4, %v1784_v45, %v1785_v21  ;;  %v1794_v45 = vrot.slane %v18954_v6, 1  ;;  %v18955_v21 = vld [vmem:[#allocation27_spill] sm:$0xff] }
 0x15d   :  { %11859 = vmatpush3.bf16.msra.mxu0 %v14113_v46  ;;  %v1787_v46 = vrot.slane %v14567_v62, 1 }
 0x15e   :  { %11860 = vmatprep.subr.bf16.mxu0 %v14114_v44 }
 0x160   :  { %11797 = vmatmul.mubr.bf16.gmra.mrb[4].mxu0 %v15011_v7 }
 0x161   :  { %11800 = vmatprep.mubr.bf16.mxu0 %v15014_v17  ;;  %11861 = vmatpush3.bf16.msra.mxu0 %v14114_v44  ;;  %v15035_v44 = vsel %vm18706_vm4, %v1787_v46, %v1788_v32  ;;  %v15049_v46 = vsel %vm18706_vm4, %v1793_v52, %v1794_v45  ;;  %v1799_v32 = vrot.slane %v14630_v58, 1  ;;  %v1805_v45 = vrot.slane %v14655_v24, 1 }
 0x162   :  { %11862 = vmatprep.subr.bf16.mxu0 %v14115_v53 }
 0x165   :  { %11863 = vmatpush3.bf16.msra.mxu0 %v14115_v53  ;;  %v15038_v53 = vsel %vm18706_vm4, %v1790_v23, %v1791_v59  ;;  %v18957_v23 = vld [vmem:[#allocation30_spill] sm:$0xff]  ;;  %v1802_v59 = vrot.slane %v14634_v61, 1 }
 0x166   :  { %11864 = vmatprep.subr.bf16.mxu0 %v14116_v63  ;;  %v1800_v42 = vrot.slane %v18957_v23, 1  ;;  %v18962_v23 = vld [vmem:[#allocation35_spill] sm:$0xff] }
 0x168   :  { %11801 = vmatmul.mubr.bf16.gmra.mrb[8].mxu0 %v15023_v38  ;;  %v15062_v52 = vsel %vm18706_vm4, %v1799_v32, %v1800_v42  ;;  %v1811_v42 = vrot.slane %v14686_v12, 1 }
 0x169   :  { %11804 = vmatprep.mubr.bf16.mxu0 %v15026_v27  ;;  %11865 = vmatpush3.bf16.msra.mxu0 %v14116_v63  ;;  %v1797_v63 = vrot.slane %v18955_v21, 1  ;;  %18959 = vst [vmem:[#allocation14_spill] sm:$0xff] %v15062_v52 }
 0x16a   :  { %11866 = vmatprep.subr.bf16.mxu0 %v14117_v33 }
 0x16b   :  { %v15052_v30 = vsel %vm18706_vm4, %v1796_v57, %v1797_v63  ;;  %v18961_v57 = vld [vmem:[#allocation34_spill] sm:$0xff]  ;;  %v1808_v63 = vrot.slane %v14672_v13, 1 }
 0x16c   :  { %18956 = vst [vmem:[#allocation13_spill] sm:$0xff] %v15052_v30  ;;  %v1806_v21 = vrot.slane %v18961_v57, 1  ;;  %v1814_v57 = vrot.slane %v14705_v28, 1 }
 0x16d   :  { %11867 = vmatpush3.bf16.msra.mxu0 %v14117_v33  ;;  %v15046_v33 = vld [vmem:[#allocation5 + $0x100] sm:$0xff]  }
 0x16e   :  { %11868 = vmatprep.subr.bf16.mxu0 %v14118_v8 }
 0x170   :  { %11805 = vmatmul.mubr.bf16.gmra.mrb[12].mxu0 %v15035_v44 }
 0x171   :  { %11808 = vmatprep.mubr.bf16.mxu0 %v15038_v53  ;;  %11869 = vmatpush3.bf16.msra.mxu0 %v14118_v8  ;;  %v18958_v8 = vld [vmem:[#allocation31_spill] sm:$0xff] }
 0x172   :  { %11870 = vmatprep.subr.bf16.mxu0 %v14119_v54  ;;  %v1803_v6 = vrot.slane %v18958_v8, 1  ;;  %v15074_v8 = vsel %vm18706_vm4, %v1805_v45, %v1806_v21  ;;  %v18969_v21 = vld [vmem:[#allocation40_spill] sm:$0xff] }
 0x173   :  { %18963 = vst [vmem:[#allocation17_spill] sm:$0xff] %v15074_v8 }
 0x175   :  { %11871 = vmatpush3.bf16.msra.mxu0 %v14119_v54  ;;  %v15065_v54 = vsel %vm18706_vm4, %v1802_v59, %v1803_v6  ;;  %v18965_v59 = vld [vmem:[#allocation37_spill] sm:$0xff] }
 0x176   :  { %11936 = vmatprep.subr.bf16.mxu0 %v15046_v33  ;;  %18960 = vst [vmem:[#allocation16_spill] sm:$0xff] %v15065_v54  ;;  %v1812_v6 = vrot.slane %v18965_v59, 1 }
 0x178   :  { %11809 = vmatmul.mubr.bf16.gmra.mrb[16].mxu0 %v15049_v46 }
 0x179   :  { %11812 = vmatprep.mubr.bf16.mxu0 %v15052_v30  ;;  %v1809_v30 = vrot.slane %v18962_v23, 1  ;;  %v15086_v23 = vsel %vm18706_vm4, %v1811_v42, %v1812_v6  ;;  %v18971_v42 = vld [vmem:[#allocation43_spill] sm:$0xff]  ;;  %v1823_v6 = vrot.slane %v14755_v14, 1 }
 0x17a   :  { %18967 = vst [vmem:[#allocation20_spill] sm:$0xff] %v15086_v23 }
 0x17b   :  { %v15077_v32 = vsel %vm18706_vm4, %v1808_v63, %v1809_v30  ;;  %v1817_v30 = vrot.slane %v14714_v20, 1  ;;  %v1818_v63 = vrot.slane %v18969_v21, 1 }
 0x17c   :  { %18964 = vst [vmem:[#allocation19_spill] sm:$0xff] %v15077_v32 }
 0x17d   :  { %v15096_v59 = vsel %vm18706_vm4, %v1817_v30, %v1818_v63  ;;  %v1826_v30 = vrot.slane %v14759_v47, 1  ;;  %v18975_v63 = vld [vmem:[#allocation47_spill] sm:$0xff] }
 0x17e   :  { %18970 = vst [vmem:[#allocation25_spill] sm:$0xff] %v15096_v59 }
 0x180   :  { %11813 = vmatmul.mubr.bf16.gmra.mrb[20].mxu0 %v15062_v52 }
 0x181   :  { %11816 = vmatprep.mubr.bf16.mxu0 %v15065_v54  ;;  %v18966_v54 = vld [vmem:[#allocation38_spill] sm:$0xff] }
 0x182   :  { %v1815_v52 = vrot.slane %v18966_v54, 1  ;;  %v1820_v54 = vrot.slane %v14730_v0, 1 }
 0x184   :  { %v15089_v45 = vsel %vm18706_vm4, %v1814_v57, %v1815_v52  ;;  %v1821_v52 = vrot.slane %v18971_v42, 1  ;;  %v18972_v57 = vld [vmem:[#allocation44_spill] sm:$0xff]  ;;  %v1829_v42 = vrot.slane %v14783_v34, 1 }
 0x185   :  { %18968 = vst [vmem:[#allocation23_spill] sm:$0xff] %v15089_v45 }
 0x188   :  { %11817 = vmatmul.mubr.bf16.gmra.mrb[24].mxu0 %v15074_v8 }
 0x189   :  { %11820 = vmatprep.mubr.bf16.mxu0 %v15077_v32  ;;  %v15105_v32 = vsel %vm18706_vm4, %v1820_v54, %v1821_v52  ;;  %v18978_v52 = vld [vmem:[#allocation51_spill] sm:$0xff] }
 0x18a   :  { %18973 = vst [vmem:[#allocation27_spill] sm:$0xff] %v15105_v32 }
 0x190   :  { %11821 = vmatmul.mubr.bf16.gmra.mrb[28].mxu0 %v15086_v23  ;;  %v1824_v23 = vrot.slane %v18972_v57, 1 }
 0x191   :  { %11824 = vmatprep.mubr.bf16.mxu0 %v15089_v45 }
 0x192   :  { %v15108_v21 = vsel %vm18706_vm4, %v1823_v6, %v1824_v23  ;;  %v1832_v23 = vrot.slane %v14791_v36, 1  ;;  %v1833_v6 = vrot.slane %v18978_v52, 1  ;;  %v18982_v52 = vld [vmem:[#allocation55_spill] sm:$0xff] }
 0x193   :  { %18974 = vst [vmem:[#allocation30_spill] sm:$0xff] %v15108_v21 }
 0x198   :  { %11825 = vmatmul.mubr.bf16.gmra.mrb[32].mxu0 %v15096_v59  ;;  %v18976_v59 = vld [vmem:[#allocation50_spill] sm:$0xff] }
 0x199   :  { %11828 = vmatprep.mubr.bf16.mxu0 %v15089_v45  ;;  %v1827_v45 = vrot.slane %v18975_v63, 1  ;;  %v1830_v8 = vrot.slane %v18976_v59, 1  ;;  %v1835_v63 = vrot.slane %v14819_v60, 1  ;;  %v15129_v59 = vsel %vm18706_vm4, %v1832_v23, %v1833_v6  ;;  %v18985_v6 = vld [vmem:[#allocation59_spill] sm:$0xff] }
 0x19a   :  { %18980 = vst [vmem:[#allocation34_spill] sm:$0xff] %v15129_v59 }
 0x19b   :  { %v15117_v57 = vsel %vm18706_vm4, %v1826_v30, %v1827_v45  ;;  %v15120_v54 = vsel %vm18706_vm4, %v1829_v42, %v1830_v8  ;;  %v1838_v8 = vrot.slane %v14828_v29, 1  ;;  %v1839_v30 = vrot.slane %v14832_v4, 1 }
 0x19c   :  { %18977 = vst [vmem:[#allocation31_spill] sm:$0xff] %v15120_v54  ;;  %v1841_v42 = vrot.slane %v14849_v48, 1  ;;  %v1847_v4 = vrot.slane %v14878_v19, 1 }
 0x1a0   :  { %11829 = vmatmul.mubr.bf16.gmra.mrb[36].mxu0 %v15105_v32 }
 0x1a1   :  { %11832 = vmatprep.mubr.bf16.mxu0 %v15108_v21  ;;  %v18979_v21 = vld [vmem:[#allocation52_spill] sm:$0xff] }
 0x1a2   :  { %v1836_v32 = vrot.slane %v18979_v21, 1  ;;  %v15141_v21 = vsel %vm18706_vm4, %v1838_v8, %v1839_v30  ;;  %v18988_v30 = vld [vmem:[#allocation64_spill] sm:$0xff] }
 0x1a3   :  { %18983 = vst [vmem:[#allocation37_spill] sm:$0xff] %v15141_v21 }
 0x1a4   :  { %v15132_v45 = vsel %vm18706_vm4, %v1835_v63, %v1836_v32  ;;  %v1844_v32 = vrot.slane %v14872_v3, 1  ;;  %v1845_v63 = vrot.slane %v18985_v6, 1  ;;  %v1853_v6 = vrot.slane %v14904_v1, 1 }
 0x1a5   :  { %18981 = vst [vmem:[#allocation35_spill] sm:$0xff] %v15132_v45 }
 0x1a8   :  { %11833 = vmatmul.mubr.bf16.gmra.mrb[40].mxu0 %v15117_v57 }
 0x1a9   :  { %11836 = vmatprep.mubr.bf16.mxu0 %v15120_v54  ;;  %v1842_v54 = vrot.slane %v18982_v52, 1  ;;  %v15153_v52 = vsel %vm18706_vm4, %v1844_v32, %v1845_v63  ;;  %v1857_v63 = vrot.slane %v14926_v35, 1  ;;  %v14124_v35 = vld [vmem:[#allocation5 + $0x120] sm:$0xff]  }
 0x1aa   :  { %18987 = vst [vmem:[#allocation40_spill] sm:$0xff] %v15153_v52 }
 0x1ab   :  { %v15144_v23 = vsel %vm18706_vm4, %v1841_v42, %v1842_v54  ;;  %v1850_v54 = vrot.slane %v14889_v39, 1  ;;  %v1851_v42 = vrot.slane %v18988_v30, 1  ;;  %v14127_v30 = vld [vmem:[#allocation5 + $0x138] sm:$0xff]  }
 0x1ac   :  { %18984 = vst [vmem:[#allocation38_spill] sm:$0xff] %v15144_v23 }
 0x1b0   :  { %11837 = vmatmul.mubr.bf16.gmra.mrb[44].mxu0 %v15129_v59 }
 0x1b1   :  { %11840 = vmatprep.mubr.bf16.mxu0 %v15132_v45  ;;  %v18986_v45 = vld [vmem:[#allocation62_spill] sm:$0xff] }
 0x1b2   :  { %v1848_v59 = vrot.slane %v18986_v45, 1  ;;  %v15165_v45 = vsel %vm18706_vm4, %v1850_v54, %v1851_v42  ;;  %v14123_v54 = vld [vmem:[#allocation5 + $0x118] sm:$0xff]   ;;  %v14128_v42 = vld [vmem:[#allocation5 + $0x140] sm:$0xff]  }
 0x1b4   :  { %v15156_v8 = vsel %vm18706_vm4, %v1847_v4, %v1848_v59  ;;  %v1856_v59 = vrot.slane %v14922_v9, 1 }
 0x1b6   :  { %v15175_v4 = vsel %vm18706_vm4, %v1856_v59, %v1857_v63  ;;  %v94_v59 = vld [vmem:[#allocation2 + $0xf8] sm:$0xff] }
 0x1b7   :  { %18991 = vst [vmem:[#allocation44_spill] sm:$0xff] %v15175_v4 }
 0x1b8   :  { %11841 = vmatmul.mubr.bf16.gmra.mrb[48].mxu0 %v15141_v21 }
 0x1b9   :  { %11844 = vmatprep.mubr.bf16.mxu0 %v15144_v23  ;;  %v18989_v23 = vld [vmem:[#allocation65_spill] sm:$0xff] }
 0x1ba   :  { %v1854_v21 = vrot.slane %v18989_v23, 1  ;;  %v14121_v23 = vld [vmem:[#allocation5 + $0x108] sm:$0xff]  }
 0x1bc   :  { %v15168_v32 = vsel %vm18706_vm4, %v1853_v6, %v1854_v21  ;;  %v14122_v21 = vld [vmem:[#allocation5 + $0x110] sm:$0xff]  }
 0x1bd   :  { %18990 = vst [vmem:[#allocation43_spill] sm:$0xff] %v15168_v32  ;;  %v93_v6 = vld [vmem:[#allocation2 + $0xf0] sm:$0xff] }
 0x1be   :  { %v15190_v63 = vpack.c.bf16 %v94_v59, %v93_v6 }
 0x1c0   :  { %11845 = vmatmul.mubr.bf16.gmra.mrb[52].mxu0 %v15153_v52 }
 0x1c1   :  { %11848 = vmatprep.mubr.bf16.mxu0 %v15156_v8 }
 0x1c8   :  { %11849 = vmatmul.mubr.bf16.gmra.mrb[56].mxu0 %v15165_v45 }
 0x1c9   :  { %11852 = vmatprep.mubr.bf16.mxu0 %v15168_v32 }
 0x1d0   :  { %11853 = vmatmul.mubr.bf16.gmra.mrb[60].mxu0 %v15175_v4 }
 0x1d1   :  { %11872 = vmatprep.mubr.bf16.mxu0 %v14504_v43  ;;  %v14125_v43 = vld [vmem:[#allocation5 + $0x128] sm:$0xff]  }
 0x1d8   :  { %11873 = vmatmul.mubr.bf16.vlgmr.msra.gmra.mrb[0].mxu0 %v14498_v37 }
 0x1d9   :  { %11937 = vmatpush3.bf16.msra.mxu0 %v15046_v33  ;;  %11876 = vmatprep.mubr.bf16.mxu0 %v14511_v49  ;;  %v14126_v33 = vld [vmem:[#allocation5 + $0x130] sm:$0xff]  }
 0x1da   :  { %11938 = vmatprep.subr.bf16.mxu0 %v14121_v23 }
 0x1dd   :  { %11939 = vmatpush3.bf16.msra.mxu0 %v14121_v23  ;;  %v205_v23 = vshrl.u32 %v15190_v63, 16 }
 0x1de   :  { %11940 = vmatprep.subr.bf16.mxu0 %v14122_v21 }
 0x1e0   :  { %11877 = vmatmul.mubr.bf16.gmra.mrb[4].mxu0 %v14522_v2 }
 0x1e1   :  { %11880 = vmatprep.mubr.bf16.mxu0 %v14548_v41  ;;  %11941 = vmatpush3.bf16.msra.mxu0 %v14122_v21  ;;  %v15195_v21 = vrot.slane %v205_v23, 7 }
 0x1e2   :  { %11942 = vmatprep.subr.bf16.mxu0 %v14123_v54 }
 0x1e5   :  { %11943 = vmatpush3.bf16.msra.mxu0 %v14123_v54  ;;  %v18636_v54 = vshll.u32 %v15190_v63, 16 }
 0x1e6   :  { %11944 = vmatprep.subr.bf16.mxu0 %v14124_v35 }
 0x1e8   :  { %11881 = vmatmul.mubr.bf16.gmra.mrb[8].mxu0 %v14554_v50 }
 0x1e9   :  { %11884 = vmatprep.mubr.bf16.mxu0 %v14567_v62  ;;  %11945 = vmatpush3.bf16.msra.mxu0 %v14124_v35  ;;  %v350_v35 = vor.u32 %v18636_v54, %v15195_v21  ;;  %v14129_v54 = vld [vmem:[#allocation5 + $0x148] sm:$0xff]  }
 0x1ea   :  { %11946 = vmatprep.subr.bf16.mxu0 %v14125_v43 }
 0x1ed   :  { %11947 = vmatpush3.bf16.msra.mxu0 %v14125_v43  ;;  %v15205_v43 = vsel %vm14483_vm2, %v205_v23, %v350_v35 }
 0x1ee   :  { %11948 = vmatprep.subr.bf16.mxu0 %v14126_v33 }
 0x1f0   :  { %11885 = vmatmul.mubr.bf16.gmra.mrb[12].mxu0 %v14581_v26 }
 0x1f1   :  { %11888 = vmatprep.mubr.bf16.mxu0 %v14598_v51  ;;  %11949 = vmatpush3.bf16.msra.mxu0 %v14126_v33  ;;  %v126_v33 = vld [vmem:[#allocation2 + $0x1f8] sm:$0xff] }
 0x1f2   :  { %11950 = vmatprep.subr.bf16.mxu0 %v14127_v30 }
 0x1f5   :  { %11951 = vmatpush3.bf16.msra.mxu0 %v14127_v30 }
 0x1f6   :  { %12016 = vmatprep.subr.bf16.mxu0 %v14128_v42 }
 0x1f8   :  { %11889 = vmatmul.mubr.bf16.gmra.mrb[16].mxu0 %v14611_v16 }
 0x1f9   :  { %11892 = vmatprep.mubr.bf16.mxu0 %v14630_v58 }
 0x200   :  { %11893 = vmatmul.mubr.bf16.gmra.mrb[20].mxu0 %v14634_v61 }
 0x201   :  { %11896 = vmatprep.mubr.bf16.mxu0 %v14655_v24 }
 0x208   :  { %11897 = vmatmul.mubr.bf16.gmra.mrb[24].mxu0 %v14672_v13 }
 0x209   :  { %11900 = vmatprep.mubr.bf16.mxu0 %v14686_v12 }
 0x210   :  { %11901 = vmatmul.mubr.bf16.gmra.mrb[28].mxu0 %v15205_v43 }
 0x211   :  { %11904 = vmatprep.mubr.bf16.mxu0 %v14714_v20  ;;  %v125_v20 = vld [vmem:[#allocation2 + $0x1f0] sm:$0xff] }
 0x212   :  { %v15219_v30 = vpack.c.bf16 %v126_v33, %v125_v20  ;;  %v18992_v33 = vld [vmem:[#allocation18_spill] sm:$0xff] }
 0x214   :  { %v253_v6 = vshrl.u32 %v15219_v30, 16  ;;  %v18642_v23 = vshll.u32 %v15219_v30, 16 }
 0x216   :  { %v15224_v59 = vrot.slane %v253_v6, 7 }
 0x218   :  { %11905 = vmatmul.mubr.bf16.gmra.mrb[32].mxu0 %v14705_v28  ;;  %v414_v35 = vor.u32 %v18642_v23, %v15224_v59  ;;  %v18995_v23 = vld [vmem:[#allocation22_spill] sm:$0xff] }
 0x219   :  { %11908 = vmatprep.mubr.bf16.mxu0 %v14730_v0 }
 0x21a   :  { %v15234_v20 = vsel %vm14483_vm2, %v253_v6, %v414_v35  ;;  %v14132_v6 = vld [vmem:[#allocation5 + $0x160] sm:$0xff]   ;;  %v14133_v35 = vld [vmem:[#allocation5 + $0x168] sm:$0xff]  }
 0x220   :  { %11909 = vmatmul.mubr.bf16.gmra.mrb[36].mxu0 %v14755_v14 }
 0x221   :  { %11912 = vmatprep.mubr.bf16.mxu0 %v14759_v47 }
 0x228   :  { %11913 = vmatmul.mubr.bf16.gmra.mrb[40].mxu0 %v14783_v34 }
 0x229   :  { %11916 = vmatprep.mubr.bf16.mxu0 %v14791_v36 }
 0x230   :  { %11917 = vmatmul.mubr.bf16.gmra.mrb[44].mxu0 %v14819_v60 }
 0x231   :  { %11920 = vmatprep.mubr.bf16.mxu0 %v14828_v29  ;;  %v19012_v29 = vld [vmem:[#allocation57_spill] sm:$0xff] }
 0x238   :  { %11921 = vmatmul.mubr.bf16.gmra.mrb[48].mxu0 %v14849_v48  ;;  %v19008_v48 = vld [vmem:[#allocation48_spill] sm:$0xff] }
 0x239   :  { %11924 = vmatprep.mubr.bf16.mxu0 %v14872_v3  ;;  %v18996_v3 = vld [vmem:[#allocation24_spill] sm:$0xff] }
 0x240   :  { %11925 = vmatmul.mubr.bf16.gmra.mrb[52].mxu0 %v14878_v19  ;;  %v18994_v19 = vld [vmem:[#allocation21_spill] sm:$0xff] }
 0x241   :  { %11928 = vmatprep.mubr.bf16.mxu0 %v14889_v39  ;;  %v18993_v39 = vld [vmem:[#allocation15_spill] sm:$0xff] }
 0x248   :  { %11929 = vmatmul.mubr.bf16.gmra.mrb[56].mxu0 %v14904_v1  ;;  %v14131_v1 = vld [vmem:[#allocation5 + $0x158] sm:$0xff]  }
 0x249   :  { %11932 = vmatprep.mubr.bf16.mxu0 %v14922_v9  ;;  %v14130_v9 = vld [vmem:[#allocation5 + $0x150] sm:$0xff]  }
 0x250   :  { %11933 = vmatmul.mubr.bf16.gmra.mrb[60].mxu0 %v15234_v20 }
 0x251   :  { %11952 = vmatprep.mubr.bf16.mxu0 %v18992_v33  ;;  %v18997_v33 = vld [vmem:[#allocation26_spill] sm:$0xff] }
 0x258   :  { %11953 = vmatmul.mubr.bf16.vlgmr.msra.gmra.mrb[0].mxu0 %v18993_v39  ;;  %v18999_v39 = vld [vmem:[#allocation29_spill] sm:$0xff] }
 0x259   :  { %12017 = vmatpush3.bf16.msra.mxu0 %v14128_v42  ;;  %11956 = vmatprep.mubr.bf16.mxu0 %v18994_v19  ;;  %v18998_v42 = vld [vmem:[#allocation28_spill] sm:$0xff]  ;;  %v14134_v19 = vld [vmem:[#allocation5 + $0x170] sm:$0xff]  }
 0x25a   :  { %12018 = vmatprep.subr.bf16.mxu0 %v14129_v54 }
 0x25d   :  { %12019 = vmatpush3.bf16.msra.mxu0 %v14129_v54  ;;  %v14135_v54 = vld [vmem:[#allocation5 + $0x178] sm:$0xff]  }
 0x25e   :  { %12020 = vmatprep.subr.bf16.mxu0 %v14130_v9 }
 0x260   :  { %11957 = vmatmul.mubr.bf16.gmra.mrb[4].mxu0 %v18995_v23  ;;  %v19000_v23 = vld [vmem:[#allocation32_spill] sm:$0xff] }
 0x261   :  { %11960 = vmatprep.mubr.bf16.mxu0 %v18996_v3  ;;  %12021 = vmatpush3.bf16.msra.mxu0 %v14130_v9  ;;  %v14136_v9 = vld [vmem:[#allocation5 + $0x180] sm:$0xff]   ;;  %v19004_v3 = vld [vmem:[#allocation39_spill] sm:$0xff] }
 0x262   :  { %12022 = vmatprep.subr.bf16.mxu0 %v14131_v1 }
 0x265   :  { %12023 = vmatpush3.bf16.msra.mxu0 %v14131_v1  ;;  %v19001_v1 = vld [vmem:[#allocation33_spill] sm:$0xff] }
 0x266   :  { %12024 = vmatprep.subr.bf16.mxu0 %v14132_v6 }
 0x268   :  { %11961 = vmatmul.mubr.bf16.gmra.mrb[8].mxu0 %v18997_v33  ;;  %v19002_v33 = vld [vmem:[#allocation36_spill] sm:$0xff] }
 0x269   :  { %11964 = vmatprep.mubr.bf16.mxu0 %v18998_v42  ;;  %12025 = vmatpush3.bf16.msra.mxu0 %v14132_v6  ;;  %v19003_v6 = vshll.u32 %v15190_v63, 16  ;;  %v19007_v63 = vld [vmem:[#allocation45_spill] sm:$0xff] }
 0x26a   :  { %12026 = vmatprep.subr.bf16.mxu0 %v14133_v35 }
 0x26b   :  { %v494_v42 = vrot.slane %v19003_v6, 7 }
 0x26d   :  { %12027 = vmatpush3.bf16.msra.mxu0 %v14133_v35  ;;  %v19005_v35 = vld [vmem:[#allocation41_spill] sm:$0xff] }
 0x26e   :  { %12028 = vmatprep.subr.bf16.mxu0 %v14134_v19 }
 0x270   :  { %11965 = vmatmul.mubr.bf16.gmra.mrb[12].mxu0 %v18999_v39  ;;  %v2728_v39 = vshll.u32 %v15205_v43, 16 }
 0x271   :  { %11968 = vmatprep.mubr.bf16.mxu0 %v19000_v23  ;;  %12029 = vmatpush3.bf16.msra.mxu0 %v14134_v19  ;;  %v15256_v19 = vsel %vm14483_vm2, %v15195_v21, %v494_v42  ;;  %v19009_v21 = vld [vmem:[#allocation46_spill] sm:$0xff]  ;;  %v19010_v42 = vld [vmem:[#allocation49_spill] sm:$0xff] }
 0x272   :  { %12030 = vmatprep.subr.bf16.mxu0 %v14135_v54  ;;  %v2730_v23 = vrot.slane %v2728_v39, 1  ;;  %v19011_v39 = vld [vmem:[#allocation53_spill] sm:$0xff] }
 0x275   :  { %12031 = vmatpush3.bf16.msra.mxu0 %v14135_v54  ;;  %v2726_v54 = vshrl.u32 %v15205_v43, 16 }
 0x276   :  { %12096 = vmatprep.subr.bf16.mxu0 %v14136_v9 }
 0x277   :  { %v2731_v6 = vor.u32 %v2730_v23, %v2726_v54  ;;  %v19014_v23 = vld [vmem:[#allocation67_spill] sm:$0xff] }
 0x278   :  { %11969 = vmatmul.mubr.bf16.gmra.mrb[16].mxu0 %v19001_v1  ;;  %v2733_v1 = vshll.u32 %v15256_v19, 16 }
 0x279   :  { %11972 = vmatprep.mubr.bf16.mxu0 %v19002_v33  ;;  %v19006_v33 = vld [vmem:[#allocation42_spill] sm:$0xff] }
 0x280   :  { %11973 = vmatmul.mubr.bf16.gmra.mrb[20].mxu0 %v19004_v3  ;;  %v2735_v3 = vrot.slane %v2733_v1, 1  ;;  %v2740_v1 = vshll.u32 %v15234_v20, 16 }
 0x281   :  { %11976 = vmatprep.mubr.bf16.mxu0 %v19005_v35 }
 0x282   :  { %v15263_v35 = vsel %vm18707_vm3, %v2731_v6, %v2735_v3  ;;  %v2738_v6 = vshrl.u32 %v15234_v20, 16 }
 0x288   :  { %11977 = vmatmul.mubr.bf16.gmra.mrb[24].mxu0 %v19006_v33  ;;  %v19013_v33 = vld [vmem:[#allocation58_spill] sm:$0xff] }
 0x289   :  { %11980 = vmatprep.mubr.bf16.mxu0 %v19007_v63 }
 0x290   :  { %11981 = vmatmul.mubr.bf16.gmra.mrb[28].mxu0 %v15263_v35 }
 0x291   :  { %11984 = vmatprep.mubr.bf16.mxu0 %v19008_v48  ;;  %v19015_v48 = vshll.u32 %v15219_v30, 16 }
 0x293   :  { %v510_v3 = vrot.slane %v19015_v48, 7 }
 0x295   :  { %v15285_v54 = vsel %vm14483_vm2, %v15224_v59, %v510_v3  ;;  %v14137_v59 = vld [vmem:[#allocation5 + $0x188] sm:$0xff]   ;;  %v14138_v3 = vld [vmem:[#allocation5 + $0x190] sm:$0xff]  }
 0x298   :  { %11985 = vmatmul.mubr.bf16.gmra.mrb[32].mxu0 %v19009_v21 }
 0x299   :  { %11988 = vmatprep.mubr.bf16.mxu0 %v19010_v42 }
 0x2a0   :  { %11989 = vmatmul.mubr.bf16.gmra.mrb[36].mxu0 %v19011_v39 }
 0x2a1   :  { %11992 = vmatprep.mubr.bf16.mxu0 %v19012_v29 }
 0x2a8   :  { %11993 = vmatmul.mubr.bf16.gmra.mrb[40].mxu0 %v19013_v33 }
 0x2a9   :  { %11996 = vmatprep.mubr.bf16.mxu0 %v14868_v5 }
 0x2b0   :  { %11997 = vmatmul.mubr.bf16.gmra.mrb[44].mxu0 %v19014_v23 }
 0x2b1   :  { %12000 = vmatprep.mubr.bf16.mxu0 %v14933_v22  ;;  %v2742_v22 = vrot.slane %v2740_v1, 1  ;;  %v14139_v1 = vld [vmem:[#allocation5 + $0x198] sm:$0xff]  }
 0x2b3   :  { %v2743_v30 = vor.u32 %v2742_v22, %v2738_v6  ;;  %v14140_v22 = vld [vmem:[#allocation5 + $0x1a0] sm:$0xff]  }
 0x2b4   :  { %v14144_v6 = vld [vmem:[#allocation5 + $0x1c0] sm:$0xff]  }
 0x2b8   :  { %12001 = vmatmul.mubr.bf16.gmra.mrb[48].mxu0 %v14936_v18  ;;  %v2745_v18 = vshll.u32 %v15285_v54, 16 }
 0x2b9   :  { %12004 = vmatprep.mubr.bf16.mxu0 %v14942_v56 }
 0x2ba   :  { %v2747_v48 = vrot.slane %v2745_v18, 1  ;;  %v14141_v18 = vld [vmem:[#allocation5 + $0x1a8] sm:$0xff]  }
 0x2c0   :  { %12005 = vmatmul.mubr.bf16.gmra.mrb[52].mxu0 %v14945_v11 }
 0x2c1   :  { %12008 = vmatprep.mubr.bf16.mxu0 %v14950_v40  ;;  %v15292_v40 = vsel %vm18707_vm3, %v2743_v30, %v2747_v48  ;;  %v19016_v30 = vld [vmem:[#allocation13_spill] sm:$0xff]  ;;  %v19017_v48 = vld [vmem:[#allocation14_spill] sm:$0xff] }
 0x2c8   :  { %12009 = vmatmul.mubr.bf16.gmra.mrb[56].mxu0 %v14953_v15 }
 0x2c9   :  { %12012 = vmatprep.mubr.bf16.mxu0 %v14958_v31 }
 0x2d0   :  { %12013 = vmatmul.mubr.bf16.gmra.mrb[60].mxu0 %v15292_v40 }
 0x2d1   :  { %12032 = vmatprep.mubr.bf16.mxu0 %v15002_v55  ;;  %v14142_v55 = vld [vmem:[#allocation5 + $0x1b0] sm:$0xff]  }
 0x2d8   :  { %12033 = vmatmul.mubr.bf16.vlgmr.msra.gmra.mrb[0].mxu0 %v14995_v10 }
 0x2d9   :  { %12097 = vmatpush3.bf16.msra.mxu0 %v14136_v9  ;;  %12036 = vmatprep.mubr.bf16.mxu0 %v15011_v7  ;;  %v14143_v9 = vld [vmem:[#allocation5 + $0x1b8] sm:$0xff]  }
 0x2da   :  { %12098 = vmatprep.subr.bf16.mxu0 %v14137_v59 }
 0x2dd   :  { %12099 = vmatpush3.bf16.msra.mxu0 %v14137_v59  ;;  %v19018_v59 = vld [vmem:[#allocation16_spill] sm:$0xff] }
 0x2de   :  { %12100 = vmatprep.subr.bf16.mxu0 %v14138_v3 }
 0x2e0   :  { %12037 = vmatmul.mubr.bf16.gmra.mrb[4].mxu0 %v15014_v17 }
 0x2e1   :  { %12040 = vmatprep.mubr.bf16.mxu0 %v15023_v38  ;;  %12101 = vmatpush3.bf16.msra.mxu0 %v14138_v3  ;;  %v19019_v3 = vld [vmem:[#allocation17_spill] sm:$0xff] }
 0x2e2   :  { %12102 = vmatprep.subr.bf16.mxu0 %v14139_v1 }
 0x2e5   :  { %12103 = vmatpush3.bf16.msra.mxu0 %v14139_v1  ;;  %v19020_v1 = vld [vmem:[#allocation19_spill] sm:$0xff] }
 0x2e6   :  { %12104 = vmatprep.subr.bf16.mxu0 %v14140_v22 }
 0x2e8   :  { %12041 = vmatmul.mubr.bf16.gmra.mrb[8].mxu0 %v15026_v27 }
 0x2e9   :  { %12044 = vmatprep.mubr.bf16.mxu0 %v15035_v44  ;;  %12105 = vmatpush3.bf16.msra.mxu0 %v14140_v22  ;;  %v19021_v22 = vld [vmem:[#allocation20_spill] sm:$0xff] }
 0x2ea   :  { %12106 = vmatprep.subr.bf16.mxu0 %v14141_v18 }
 0x2ed   :  { %12107 = vmatpush3.bf16.msra.mxu0 %v14141_v18  ;;  %v3173_v18 = vrot.slane %v15205_v43, 1 }
 0x2ee   :  { %12108 = vmatprep.subr.bf16.mxu0 %v14142_v55 }
 0x2f0   :  { %12045 = vmatmul.mubr.bf16.gmra.mrb[12].mxu0 %v15038_v53 }
 0x2f1   :  { %12048 = vmatprep.mubr.bf16.mxu0 %v15049_v46  ;;  %12109 = vmatpush3.bf16.msra.mxu0 %v14142_v55  ;;  %v3174_v55 = vrot.slane %v15256_v19, 1  ;;  %v19028_v19 = vld [vmem:[#allocation35_spill] sm:$0xff] }
 0x2f2   :  { %12110 = vmatprep.subr.bf16.mxu0 %v14143_v9 }
 0x2f3   :  { %v15313_v25 = vsel %vm18706_vm4, %v3173_v18, %v3174_v55  ;;  %v19029_v18 = vld [vmem:[#allocation37_spill] sm:$0xff]  ;;  %v19030_v55 = vld [vmem:[#allocation38_spill] sm:$0xff] }
 0x2f5   :  { %12111 = vmatpush3.bf16.msra.mxu0 %v14143_v9  ;;  %v19022_v9 = vld [vmem:[#allocation25_spill] sm:$0xff] }
 0x2f6   :  { %12176 = vmatprep.subr.bf16.mxu0 %v14144_v6 }
 0x2f8   :  { %12049 = vmatmul.mubr.bf16.gmra.mrb[16].mxu0 %v19016_v30 }
 0x2f9   :  { %12052 = vmatprep.mubr.bf16.mxu0 %v19017_v48  ;;  %v19023_v48 = vld [vmem:[#allocation23_spill] sm:$0xff] }
 0x300   :  { %12053 = vmatmul.mubr.bf16.gmra.mrb[20].mxu0 %v19018_v59  ;;  %v19024_v59 = vld [vmem:[#allocation27_spill] sm:$0xff] }
 0x301   :  { %12056 = vmatprep.mubr.bf16.mxu0 %v19019_v3  ;;  %v19025_v3 = vld [vmem:[#allocation30_spill] sm:$0xff] }
 0x308   :  { %12057 = vmatmul.mubr.bf16.gmra.mrb[24].mxu0 %v19020_v1  ;;  %v19027_v1 = vld [vmem:[#allocation34_spill] sm:$0xff] }
 0x309   :  { %12060 = vmatprep.mubr.bf16.mxu0 %v19021_v22  ;;  %v19026_v22 = vld [vmem:[#allocation31_spill] sm:$0xff] }
 0x310   :  { %12061 = vmatmul.mubr.bf16.gmra.mrb[28].mxu0 %v15313_v25 }
 0x311   :  { %12064 = vmatprep.mubr.bf16.mxu0 %v19022_v9  ;;  %v3176_v9 = vrot.slane %v15234_v20, 1 }
 0x318   :  { %12065 = vmatmul.mubr.bf16.gmra.mrb[32].mxu0 %v19023_v48 }
 0x319   :  { %12068 = vmatprep.mubr.bf16.mxu0 %v19024_v59 }
 0x320   :  { %12069 = vmatmul.mubr.bf16.gmra.mrb[36].mxu0 %v19025_v3 }
 0x321   :  { %12072 = vmatprep.mubr.bf16.mxu0 %v15117_v57 }
 0x328   :  { %12073 = vmatmul.mubr.bf16.gmra.mrb[40].mxu0 %v19026_v22 }
 0x329   :  { %12076 = vmatprep.mubr.bf16.mxu0 %v19027_v1  ;;  %v3177_v1 = vrot.slane %v15285_v54, 1  ;;  %v14148_v54 = vld [vmem:[#allocation5 + $0x1e0] sm:$0xff]  }
 0x330   :  { %12077 = vmatmul.mubr.bf16.gmra.mrb[44].mxu0 %v19028_v19  ;;  %v15334_v19 = vsel %vm18706_vm4, %v3176_v9, %v3177_v1  ;;  %v19047_v1 = vld [vmem:[#allocation36_spill] sm:$0xff]  ;;  %v19048_v9 = vld [vmem:[#allocation39_spill] sm:$0xff] }
 0x331   :  { %12080 = vmatprep.mubr.bf16.mxu0 %v19029_v18 }
 0x338   :  { %12081 = vmatmul.mubr.bf16.gmra.mrb[48].mxu0 %v19030_v55 }
 0x339   :  { %12084 = vmatprep.mubr.bf16.mxu0 %v15153_v52  ;;  %v14145_v52 = vld [vmem:[#allocation5 + $0x1c8] sm:$0xff]  }
 0x340   :  { %12085 = vmatmul.mubr.bf16.gmra.mrb[52].mxu0 %v15156_v8 }
 0x341   :  { %12088 = vmatprep.mubr.bf16.mxu0 %v15165_v45 }
 0x348   :  { %12089 = vmatmul.mubr.bf16.gmra.mrb[56].mxu0 %v15168_v32  ;;  %v14146_v32 = vld [vmem:[#allocation5 + $0x1d0] sm:$0xff]  }
 0x349   :  { %12092 = vmatprep.mubr.bf16.mxu0 %v15175_v4  ;;  %v14147_v4 = vld [vmem:[#allocation5 + $0x1d8] sm:$0xff]  }
 0x350   :  { %12093 = vmatmul.mubr.bf16.gmra.mrb[60].mxu0 %v15334_v19 }
 0x351   :  { %12112 = vmatprep.mubr.bf16.mxu0 %v14498_v37  ;;  %v14149_v37 = vld [vmem:[#allocation5 + $0x1e8] sm:$0xff]  }
 0x358   :  { %12113 = vmatmul.mubr.bf16.vlgmr.msra.gmra.mrb[0].mxu0 %v14511_v49  ;;  %v14150_v49 = vld [vmem:[#allocation5 + $0x1f0] sm:$0xff]  }
 0x359   :  { %12177 = vmatpush3.bf16.msra.mxu0 %v14144_v6  ;;  %12116 = vmatprep.mubr.bf16.mxu0 %v14522_v2  ;;  %v14151_v2 = vld [vmem:[#allocation5 + $0x1f8] sm:$0xff]   ;;  %v19046_v6 = vld [vmem:[#allocation33_spill] sm:$0xff] }
 0x35a   :  { %12178 = vmatprep.subr.bf16.mxu0 %v14145_v52 }
 0x35d   :  { %12179 = vmatpush3.bf16.msra.mxu0 %v14145_v52  ;;  %v19043_v52 = vld [vmem:[#allocation28_spill] sm:$0xff] }
 0x35e   :  { %12180 = vmatprep.subr.bf16.mxu0 %v14146_v32 }
 0x360   :  { %12117 = vmatmul.mubr.bf16.gmra.mrb[4].mxu0 %v14548_v41  ;;  %v14152_v41 = vld [vmem:[#allocation5 + $0x200] sm:$0xff]  }
 0x361   :  { %12120 = vmatprep.mubr.bf16.mxu0 %v14554_v50  ;;  %12181 = vmatpush3.bf16.msra.mxu0 %v14146_v32  ;;  %v19031_v50 = vld [vmem:[#allocation54_spill] sm:$0xff]  ;;  %v19044_v32 = vld [vmem:[#allocation29_spill] sm:$0xff] }
 0x362   :  { %12182 = vmatprep.subr.bf16.mxu0 %v14147_v4 }
 0x365   :  { %12183 = vmatpush3.bf16.msra.mxu0 %v14147_v4  ;;  %v14158_v4 = vld [vmem:[#allocation5 + $0x230] sm:$0xff]  }
 0x366   :  { %12184 = vmatprep.subr.bf16.mxu0 %v14148_v54 }
 0x368   :  { %12121 = vmatmul.mubr.bf16.gmra.mrb[8].mxu0 %v14567_v62  ;;  %v19032_v62 = vld [vmem:[#allocation56_spill] sm:$0xff] }
 0x369   :  { %12124 = vmatprep.mubr.bf16.mxu0 %v14581_v26  ;;  %12185 = vmatpush3.bf16.msra.mxu0 %v14148_v54  ;;  %v19033_v26 = vld [vmem:[#allocation60_spill] sm:$0xff]  ;;  %v19049_v54 = vld [vmem:[#allocation41_spill] sm:$0xff] }
 0x36a   :  { %12186 = vmatprep.subr.bf16.mxu0 %v14149_v37 }
 0x36d   :  { %12187 = vmatpush3.bf16.msra.mxu0 %v14149_v37  ;;  %v19050_v37 = vld [vmem:[#allocation42_spill] sm:$0xff] }
 0x36e   :  { %12188 = vmatprep.subr.bf16.mxu0 %v14150_v49 }
 0x370   :  { %12125 = vmatmul.mubr.bf16.gmra.mrb[12].mxu0 %v14598_v51  ;;  %v19034_v51 = vld [vmem:[#allocation61_spill] sm:$0xff] }
 0x371   :  { %12128 = vmatprep.mubr.bf16.mxu0 %v14611_v16  ;;  %12189 = vmatpush3.bf16.msra.mxu0 %v14150_v49  ;;  %v19035_v16 = vld [vmem:[#allocation63_spill] sm:$0xff]  ;;  %v19051_v49 = vld [vmem:[#allocation69_spill] sm:$0xff] }
 0x372   :  { %12190 = vmatprep.subr.bf16.mxu0 %v14151_v2 }
 0x375   :  { %12191 = vmatpush3.bf16.msra.mxu0 %v14151_v2  ;;  %v19052_v2 = vld [vmem:[#allocation70_spill] sm:$0xff] }
 0x376   :  { %12256 = vmatprep.subr.bf16.mxu0 %v14152_v41 }
 0x378   :  { %12129 = vmatmul.mubr.bf16.gmra.mrb[16].mxu0 %v14630_v58  ;;  %v19036_v58 = vld [vmem:[#allocation66_spill] sm:$0xff] }
 0x379   :  { %12132 = vmatprep.mubr.bf16.mxu0 %v14634_v61  ;;  %v19037_v61 = vld [vmem:[#allocation68_spill] sm:$0xff] }
 0x380   :  { %12133 = vmatmul.mubr.bf16.gmra.mrb[20].mxu0 %v14655_v24  ;;  %v19038_v24 = vld [vmem:[#allocation15_spill] sm:$0xff] }
 0x381   :  { %12136 = vmatprep.mubr.bf16.mxu0 %v14672_v13  ;;  %v14153_v13 = vld [vmem:[#allocation5 + $0x208] sm:$0xff]  }
 0x388   :  { %12137 = vmatmul.mubr.bf16.gmra.mrb[24].mxu0 %v14686_v12 }
 0x389   :  { %12140 = vmatprep.mubr.bf16.mxu0 %v15205_v43  ;;  %v14159_v43 = vld [vmem:[#allocation5 + $0x238] sm:$0xff]  }
 0x390   :  { %12141 = vmatmul.mubr.bf16.gmra.mrb[28].mxu0 %v14686_v12  ;;  %v19039_v12 = vld [vmem:[#allocation21_spill] sm:$0xff] }
 0x391   :  { %12144 = vmatprep.mubr.bf16.mxu0 %v14705_v28  ;;  %v19040_v28 = vld [vmem:[#allocation22_spill] sm:$0xff] }
 0x398   :  { %12145 = vmatmul.mubr.bf16.gmra.mrb[32].mxu0 %v14730_v0  ;;  %v14154_v0 = vld [vmem:[#allocation5 + $0x210] sm:$0xff]  }
 0x399   :  { %12148 = vmatprep.mubr.bf16.mxu0 %v14755_v14  ;;  %v14155_v14 = vld [vmem:[#allocation5 + $0x218] sm:$0xff]  }
 0x3a0   :  { %12149 = vmatmul.mubr.bf16.gmra.mrb[36].mxu0 %v14759_v47  ;;  %v19041_v47 = vld [vmem:[#allocation24_spill] sm:$0xff] }
 0x3a1   :  { %12152 = vmatprep.mubr.bf16.mxu0 %v14783_v34  ;;  %v19042_v34 = vld [vmem:[#allocation26_spill] sm:$0xff] }
 0x3a8   :  { %12153 = vmatmul.mubr.bf16.gmra.mrb[40].mxu0 %v14791_v36  ;;  %v14156_v36 = vld [vmem:[#allocation5 + $0x220] sm:$0xff]  }
 0x3a9   :  { %12156 = vmatprep.mubr.bf16.mxu0 %v14819_v60  ;;  %v14157_v60 = vld [vmem:[#allocation5 + $0x228] sm:$0xff]  }
 0x3b0   :  { %12157 = vmatmul.mubr.bf16.gmra.mrb[44].mxu0 %v19031_v50 }
 0x3b1   :  { %12160 = vmatprep.mubr.bf16.mxu0 %v19032_v62 }
 0x3b8   :  { %12161 = vmatmul.mubr.bf16.gmra.mrb[48].mxu0 %v19033_v26 }
 0x3b9   :  { %12164 = vmatprep.mubr.bf16.mxu0 %v19034_v51 }
 0x3c0   :  { %12165 = vmatmul.mubr.bf16.gmra.mrb[52].mxu0 %v19035_v16 }
 0x3c1   :  { %12168 = vmatprep.mubr.bf16.mxu0 %v19036_v58 }
 0x3c8   :  { %12169 = vmatmul.mubr.bf16.gmra.mrb[56].mxu0 %v19037_v61 }
 0x3c9   :  { %12172 = vmatprep.mubr.bf16.mxu0 %v15234_v20  ;;  %v19045_v20 = vld [vmem:[#allocation32_spill] sm:$0xff] }
 0x3d0   :  { %12173 = vmatmul.mubr.bf16.gmra.mrb[60].mxu0 %v19037_v61 }
 0x3d1   :  { %12192 = vmatprep.mubr.bf16.mxu0 %v19038_v24 }
 0x3d8   :  { %12193 = vmatmul.mubr.bf16.vlgmr.msra.gmra.mrb[0].mxu0 %v19039_v12 }
 0x3d9   :  { %12257 = vmatpush3.bf16.msra.mxu0 %v14152_v41  ;;  %12196 = vmatprep.mubr.bf16.mxu0 %v19040_v28 }
 0x3da   :  { %12258 = vmatprep.subr.bf16.mxu0 %v14153_v13 }
 0x3dd   :  { %12259 = vmatpush3.bf16.msra.mxu0 %v14153_v13 }
 0x3de   :  { %12260 = vmatprep.subr.bf16.mxu0 %v14154_v0 }
 0x3e0   :  { %12197 = vmatmul.mubr.bf16.gmra.mrb[4].mxu0 %v19041_v47 }
 0x3e1   :  { %12200 = vmatprep.mubr.bf16.mxu0 %v19042_v34  ;;  %12261 = vmatpush3.bf16.msra.mxu0 %v14154_v0 }
 0x3e2   :  { %12262 = vmatprep.subr.bf16.mxu0 %v14155_v14 }
 0x3e5   :  { %12263 = vmatpush3.bf16.msra.mxu0 %v14155_v14 }
 0x3e6   :  { %12264 = vmatprep.subr.bf16.mxu0 %v14156_v36 }
 0x3e8   :  { %12201 = vmatmul.mubr.bf16.gmra.mrb[8].mxu0 %v19043_v52 }
 0x3e9   :  { %12204 = vmatprep.mubr.bf16.mxu0 %v19044_v32  ;;  %12265 = vmatpush3.bf16.msra.mxu0 %v14156_v36 }
 0x3ea   :  { %12266 = vmatprep.subr.bf16.mxu0 %v14157_v60 }
 0x3ed   :  { %12267 = vmatpush3.bf16.msra.mxu0 %v14157_v60 }
 0x3ee   :  { %12268 = vmatprep.subr.bf16.mxu0 %v14158_v4 }
 0x3f0   :  { %12205 = vmatmul.mubr.bf16.gmra.mrb[12].mxu0 %v19045_v20 }
 0x3f1   :  { %12208 = vmatprep.mubr.bf16.mxu0 %v19046_v6  ;;  %12269 = vmatpush3.bf16.msra.mxu0 %v14158_v4 }
 0x3f2   :  { %12270 = vmatprep.subr.bf16.mxu0 %v14159_v43 }
 0x3f5   :  { %12271 = vmatpush3.bf16.msra.mxu0 %v14159_v43 }
 0x3f8   :  { %12209 = vmatmul.mubr.bf16.gmra.mrb[16].mxu0 %v19047_v1 }
 0x3f9   :  { %12212 = vmatprep.mubr.bf16.mxu0 %v19048_v9 }
 0x400   :  { %12213 = vmatmul.mubr.bf16.gmra.mrb[20].mxu0 %v19049_v54 }
 0x401   :  { %12216 = vmatprep.mubr.bf16.mxu0 %v19050_v37 }
 0x408   :  { %12217 = vmatmul.mubr.bf16.gmra.mrb[24].mxu0 %v19007_v63 }
 0x409   :  { %12220 = vmatprep.mubr.bf16.mxu0 %v15263_v35  ;;  %v19053_v35 = vld [vmem:[#allocation71_spill] sm:$0xff] }
 0x410   :  { %12221 = vmatmul.mubr.bf16.gmra.mrb[28].mxu0 %v19007_v63 }
 0x411   :  { %12224 = vmatprep.mubr.bf16.mxu0 %v19009_v21 }
 0x418   :  { %12225 = vmatmul.mubr.bf16.gmra.mrb[32].mxu0 %v19010_v42 }
 0x419   :  { %12228 = vmatprep.mubr.bf16.mxu0 %v19011_v39 }
 0x420   :  { %12229 = vmatmul.mubr.bf16.gmra.mrb[36].mxu0 %v19012_v29  ;;  %v19054_v29 = vld [vmem:[#allocation14_spill] sm:$0xff] }
 0x421   :  { %12232 = vmatprep.mubr.bf16.mxu0 %v19013_v33 }
 0x428   :  { %12233 = vmatmul.mubr.bf16.gmra.mrb[40].mxu0 %v14868_v5  ;;  %v19055_v5 = vld [vmem:[#allocation16_spill] sm:$0xff] }
 0x429   :  { %12236 = vmatprep.mubr.bf16.mxu0 %v19014_v23 }
 0x430   :  { %12237 = vmatmul.mubr.bf16.gmra.mrb[44].mxu0 %v19051_v49 }
 0x431   :  { %12240 = vmatprep.mubr.bf16.mxu0 %v19052_v2 }
 0x438   :  { %12241 = vmatmul.mubr.bf16.gmra.mrb[48].mxu0 %v14942_v56  ;;  %v19056_v56 = vld [vmem:[#allocation17_spill] sm:$0xff] }
 0x439   :  { %12244 = vmatprep.mubr.bf16.mxu0 %v14945_v11  ;;  %v19057_v11 = vld [vmem:[#allocation19_spill] sm:$0xff] }
 0x440   :  { %12245 = vmatmul.mubr.bf16.gmra.mrb[52].mxu0 %v19053_v35 }
 0x441   :  { %12248 = vmatprep.mubr.bf16.mxu0 %v14953_v15  ;;  %v19059_v15 = vld [vmem:[#allocation34_spill] sm:$0xff] }
 0x448   :  { %12249 = vmatmul.mubr.bf16.gmra.mrb[56].mxu0 %v14958_v31 }
 0x449   :  { %12252 = vmatprep.mubr.bf16.mxu0 %v15292_v40  ;;  %v19058_v40 = vld [vmem:[#allocation20_spill] sm:$0xff] }
 0x450   :  { %12253 = vmatmul.mubr.bf16.gmra.mrb[60].mxu0 %v14958_v31  ;;  %v19060_v31 = vld [vmem:[#allocation35_spill] sm:$0xff] }
 0x451   :  { %12272 = vmatprep.mubr.bf16.mxu0 %v14995_v10  ;;  %v19062_v10 = vld [vmem:[#allocation43_spill] sm:$0xff] }
 0x458   :  { %12273 = vmatmul.mubr.bf16.vlgmr.msra.gmra.mrb[0].mxu0 %v15011_v7  ;;  %v19063_v7 = vld [vmem:[#allocation44_spill] sm:$0xff] }
 0x459   :  { %12276 = vmatprep.mubr.bf16.mxu0 %v15014_v17 }
 0x460   :  { %12277 = vmatmul.mubr.bf16.gmra.mrb[4].mxu0 %v15023_v38  ;;  %v15436_v38 = vld [vmem:[%s18534_s2] ss:$0 sm:$0xff] }
 0x461   :  { %12280 = vmatprep.mubr.bf16.mxu0 %v15026_v27 }
 0x468   :  { %12281 = vmatmul.mubr.bf16.gmra.mrb[8].mxu0 %v15035_v44 }
 0x469   :  { %12284 = vmatprep.mubr.bf16.mxu0 %v15038_v53 }
 0x470   :  { %12285 = vmatmul.mubr.bf16.gmra.mrb[12].mxu0 %v15049_v46 }
 0x471   :  { %12288 = vmatprep.mubr.bf16.mxu0 %v19016_v30 }
 0x478   :  { %12289 = vmatmul.mubr.bf16.gmra.mrb[16].mxu0 %v19054_v29 }
 0x479   :  { %12292 = vmatprep.mubr.bf16.mxu0 %v19055_v5 }
 0x480   :  { %12293 = vmatmul.mubr.bf16.gmra.mrb[20].mxu0 %v19056_v56 }
 0x481   :  { %12296 = vmatprep.mubr.bf16.mxu0 %v19057_v11 }
 0x488   :  { %12297 = vmatmul.mubr.bf16.gmra.mrb[24].mxu0 %v19058_v40 }
 0x489   :  { %12300 = vmatprep.mubr.bf16.mxu0 %v15313_v25  ;;  %v19061_v25 = vld [vmem:[#allocation40_spill] sm:$0xff] }
 0x490   :  { %12301 = vmatmul.mubr.bf16.gmra.mrb[28].mxu0 %v19058_v40 }
 0x491   :  { %12304 = vmatprep.mubr.bf16.mxu0 %v19023_v48 }
 0x498   :  { %12305 = vmatmul.mubr.bf16.gmra.mrb[32].mxu0 %v19024_v59 }
 0x499   :  { %12308 = vmatprep.mubr.bf16.mxu0 %v19025_v3 }
 0x4a0   :  { %12309 = vmatmul.mubr.bf16.gmra.mrb[36].mxu0 %v15117_v57 }
 0x4a1   :  { %12312 = vmatprep.mubr.bf16.mxu0 %v19026_v22 }
 0x4a8   :  { %12313 = vmatmul.mubr.bf16.gmra.mrb[40].mxu0 %v19059_v15 }
 0x4a9   :  { %12316 = vmatprep.mubr.bf16.mxu0 %v19060_v31 }
 0x4b0   :  { %12317 = vmatmul.mubr.bf16.gmra.mrb[44].mxu0 %v19029_v18 }
 0x4b1   :  { %12320 = vmatprep.mubr.bf16.mxu0 %v19030_v55 }
 0x4b8   :  { %12321 = vmatmul.mubr.bf16.gmra.mrb[48].mxu0 %v19061_v25 }
 0x4b9   :  { %12324 = vmatprep.mubr.bf16.mxu0 %v15156_v8 }
 0x4c0   :  { %12325 = vmatmul.mubr.bf16.gmra.mrb[52].mxu0 %v15165_v45 }
 0x4c1   :  { %12328 = vmatprep.mubr.bf16.mxu0 %v19062_v10 }
 0x4c8   :  { %12329 = vmatmul.mubr.bf16.gmra.mrb[56].mxu0 %v19063_v7 }
 0x4c9   :  { %12332 = vmatprep.mubr.bf16.mxu0 %v15334_v19 }
 0x4d0   :  { %12333 = vmatmul.mubr.bf16.gmra.mrb[60].mxu0 %v19063_v7 }
 0x52b   :  { %v12274_v17 = vpop.f32.mrb[0].mxu0 }
 0x52c   :  { %v4534_v27 = vpop.f32.mrb[1].mxu0  ;;  %v15445_v8 = vadd.f32 %v12274_v17, %v15436_v38 }
 0x52d   :  { %v12275_v44 = vpop.f32.mrb[2].mxu0  ;;  %v15439_v46 = vadd.f32 %v15436_v38, %v4534_v27 }
 0x52e   :  { %v4537_v53 = vpop.f32.mrb[3].mxu0  ;;  %v15450_v33 = vadd.f32 %v12275_v44, %v15436_v38 }
 0x52f   :  { %v15442_v57 = vadd.f32 %v15436_v38, %v4537_v53 }
 0x531   :  { %v4924_v45 = vadd.f32 %v15442_v57, %v15439_v46 }
 0x533   :  { %v4925_v63 = vadd.f32 %v4924_v45, %v15445_v8  ;;  %v12278_v21 = vpop.f32.mrb[4].mxu0 }
 0x534   :  { %v4550_v42 = vpop.f32.mrb[5].mxu0  ;;  %v15462_v22 = vadd.f32 %v12278_v21, %v15436_v38 }
 0x535   :  { %v15454_v39 = vadd.f32 %v15436_v38, %v4550_v42  ;;  %v4926_v23 = vadd.f32 %v4925_v63, %v15450_v33  ;;  %v12279_v30 = vpop.f32.mrb[6].mxu0 }
 0x536   :  { %v4553_v48 = vpop.f32.mrb[7].mxu0  ;;  %v15466_v18 = vadd.f32 %v12279_v30, %v15436_v38 }
 0x537   :  { %v4927_v59 = vadd.f32 %v4926_v23, %v15454_v39  ;;  %v15459_v3 = vadd.f32 %v15436_v38, %v4553_v48 }
 0x539   :  { %v4928_v19 = vadd.f32 %v4927_v59, %v15459_v3 }
 0x53b   :  { %v4929_v55 = vadd.f32 %v4928_v19, %v15462_v22  ;;  %v12282_v41 = vpop.f32.mrb[8].mxu0 }
 0x53c   :  { %v4566_v50 = vpop.f32.mrb[9].mxu0  ;;  %v15478_v24 = vadd.f32 %v12282_v41, %v15436_v38 }
 0x53d   :  { %v15470_v62 = vadd.f32 %v15436_v38, %v4566_v50  ;;  %v4930_v26 = vadd.f32 %v4929_v55, %v15466_v18  ;;  %v12283_v51 = vpop.f32.mrb[10].mxu0 }
 0x53e   :  { %v4569_v16 = vpop.f32.mrb[11].mxu0  ;;  %v15482_v12 = vadd.f32 %v12283_v51, %v15436_v38 }
 0x53f   :  { %v4931_v58 = vadd.f32 %v4930_v26, %v15470_v62  ;;  %v15475_v61 = vadd.f32 %v15436_v38, %v4569_v16 }
 0x541   :  { %v4932_v13 = vadd.f32 %v4931_v58, %v15475_v61 }
 0x543   :  { %v4933_v28 = vadd.f32 %v4932_v13, %v15478_v24  ;;  %v12286_v0 = vpop.f32.mrb[12].mxu0 }
 0x544   :  { %v4582_v14 = vpop.f32.mrb[13].mxu0  ;;  %v15494_v4 = vadd.f32 %v12286_v0, %v15436_v38 }
 0x545   :  { %v15486_v47 = vadd.f32 %v15436_v38, %v4582_v14  ;;  %v4934_v34 = vadd.f32 %v4933_v28, %v15482_v12  ;;  %v12287_v36 = vpop.f32.mrb[14].mxu0 }
 0x546   :  { %v4585_v60 = vpop.f32.mrb[15].mxu0  ;;  %v15498_v20 = vadd.f32 %v12287_v36, %v15436_v38 }
 0x547   :  { %v4935_v52 = vadd.f32 %v4934_v34, %v15486_v47  ;;  %v15491_v32 = vadd.f32 %v15436_v38, %v4585_v60 }
 0x549   :  { %v4936_v43 = vadd.f32 %v4935_v52, %v15491_v32 }
 0x54b   :  { %v4937_v6 = vadd.f32 %v4936_v43, %v15494_v4  ;;  %v12290_v1 = vpop.f32.mrb[16].mxu0 }
 0x54c   :  { %v4598_v9 = vpop.f32.mrb[17].mxu0  ;;  %v15510_v5 = vadd.f32 %v12290_v1, %v15436_v38 }
 0x54d   :  { %v15502_v54 = vadd.f32 %v15436_v38, %v4598_v9  ;;  %v4938_v37 = vadd.f32 %v4937_v6, %v15498_v20  ;;  %v12291_v49 = vpop.f32.mrb[18].mxu0 }
 0x54e   :  { %v4601_v2 = vpop.f32.mrb[19].mxu0  ;;  %v15514_v11 = vadd.f32 %v12291_v49, %v15436_v38 }
 0x54f   :  { %v4939_v35 = vadd.f32 %v4938_v37, %v15502_v54  ;;  %v15507_v29 = vadd.f32 %v15436_v38, %v4601_v2 }
 0x551   :  { %v4940_v56 = vadd.f32 %v4939_v35, %v15507_v29 }
 0x553   :  { %v4941_v40 = vadd.f32 %v4940_v56, %v15510_v5  ;;  %v12294_v15 = vpop.f32.mrb[20].mxu0 }
 0x554   :  { %v4614_v31 = vpop.f32.mrb[21].mxu0  ;;  %v15526_v53 = vadd.f32 %v12294_v15, %v15436_v38 }
 0x555   :  { %v15518_v25 = vadd.f32 %v15436_v38, %v4614_v31  ;;  %v4942_v10 = vadd.f32 %v4941_v40, %v15514_v11  ;;  %v12295_v7 = vpop.f32.mrb[22].mxu0 }
 0x556   :  { %v4617_v17 = vpop.f32.mrb[23].mxu0  ;;  %v15530_v63 = vadd.f32 %v12295_v7, %v15436_v38 }
 0x557   :  { %v4943_v27 = vadd.f32 %v4942_v10, %v15518_v25  ;;  %v15523_v44 = vadd.f32 %v15436_v38, %v4617_v17 }
 0x559   :  { %v4944_v45 = vadd.f32 %v4943_v27, %v15523_v44 }
 0x55b   :  { %v4945_v21 = vadd.f32 %v4944_v45, %v15526_v53  ;;  %v12298_v42 = vpop.f32.mrb[24].mxu0 }
 0x55c   :  { %v4630_v23 = vpop.f32.mrb[25].mxu0  ;;  %v15542_v50 = vadd.f32 %v12298_v42, %v15436_v38 }
 0x55d   :  { %v15534_v30 = vadd.f32 %v15436_v38, %v4630_v23  ;;  %v4946_v48 = vadd.f32 %v4945_v21, %v15530_v63  ;;  %v12299_v59 = vpop.f32.mrb[26].mxu0 }
 0x55e   :  { %v4633_v19 = vpop.f32.mrb[27].mxu0  ;;  %v15546_v51 = vadd.f32 %v12299_v59, %v15436_v38 }
 0x55f   :  { %v4947_v55 = vadd.f32 %v4946_v48, %v15534_v30  ;;  %v15539_v41 = vadd.f32 %v15436_v38, %v4633_v19 }
 0x561   :  { %v4948_v26 = vadd.f32 %v4947_v55, %v15539_v41 }
 0x563   :  { %v4949_v16 = vadd.f32 %v4948_v26, %v15542_v50  ;;  %v12302_v58 = vpop.f32.mrb[28].mxu0 }
 0x564   :  { %v4646_v13 = vpop.f32.mrb[29].mxu0  ;;  %v4890_v52 = vadd.f32 %v12302_v58, %v15436_v38 }
 0x565   :  { %v4888_v28 = vadd.f32 %v15436_v38, %v4646_v13  ;;  %v4950_v0 = vadd.f32 %v4949_v16, %v15546_v51  ;;  %v12303_v14 = vpop.f32.mrb[30].mxu0 }
 0x566   :  { %v4649_v34 = vpop.f32.mrb[31].mxu0  ;;  %v4891_v6 = vadd.f32 %v12303_v14, %v15436_v38 }
 0x567   :  { %v4951_v36 = vadd.f32 %v4950_v0, %v4888_v28  ;;  %v4889_v60 = vadd.f32 %v15436_v38, %v4649_v34 }
 0x569   :  { %v4952_v43 = vadd.f32 %v4951_v36, %v4889_v60 }
 0x56b   :  { %v4953_v1 = vadd.f32 %v4952_v43, %v4890_v52  ;;  %v12306_v9 = vpop.f32.mrb[32].mxu0 }
 0x56c   :  { %v4662_v37 = vpop.f32.mrb[33].mxu0  ;;  %v15563_v27 = vadd.f32 %v12306_v9, %v15436_v38 }
 0x56d   :  { %v4954_v49 = vadd.f32 %v4953_v1, %v4891_v6  ;;  %v12307_v2 = vpop.f32.mrb[34].mxu0  ;;  %v15558_v15 = vadd.f32 %v15436_v38, %v4662_v37 }
 0x56e   :  { %v4665_v35 = vpop.f32.mrb[35].mxu0  ;;  %v15567_v19 = vadd.f32 %v12307_v2, %v15436_v38 }
 0x56f   :  { %v4955_v56 = vrot.slane %v4954_v49, 4  ;;  %v15555_v40 = vadd.f32 %v15436_v38, %v4665_v35 }
 0x571   :  { %v4956_v31 = vadd.f32 %v4955_v56, %v4954_v49  ;;  %v4961_v10 = vadd.f32 %v15555_v40, %v15558_v15 }
 0x573   :  { %v4957_v7 = vrot.slane %v4956_v31, 2  ;;  %v12310_v17 = vpop.f32.mrb[36].mxu0  ;;  %v4962_v23 = vadd.f32 %v4961_v10, %v15563_v27 }
 0x574   :  { %v4678_v45 = vpop.f32.mrb[37].mxu0 }
 0x575   :  { %v4958_v21 = vadd.f32 %v4957_v7, %v4956_v31  ;;  %v12311_v42 = vpop.f32.mrb[38].mxu0  ;;  %v15570_v26 = vadd.f32 %v15436_v38, %v4678_v45  ;;  %v4963_v16 = vadd.f32 %v4962_v23, %v15567_v19  ;;  %v15683_v7 = vadd.f32 %v12310_v17, %v15436_v38 }
 0x576   :  { %v4681_v48 = vpop.f32.mrb[39].mxu0 }
 0x577   :  { %v4959_v59 = vrot.slane %v4958_v21, 1  ;;  %v4964_v34 = vadd.f32 %v4963_v16, %v15570_v26  ;;  %v15579_v36 = vadd.f32 %v15436_v38, %v4681_v48 }
 0x579   :  { %v4960_v55 = vadd.f32 %v4959_v59, %v4958_v21  ;;  %v15699_v21 = vadd.f32 %v12311_v42, %v15436_v38 }
 0x57b   :  { %v15573_v58 = vmul.f32 0.00390625, %v4960_v55  ;;  %v12314_v13 = vpop.f32.mrb[40].mxu0 }
 0x57c   :  { %v4694_v0 = vpop.f32.mrb[41].mxu0 }
 0x57d   :  { %v15575_v14 = vpop.f32.mrb[42].mxu0  ;;  %v15583_v1 = vsub.f32 %v15470_v62, %v15573_v58  ;;  %v15587_v9 = vsub.f32 %v15475_v61, %v15573_v58  ;;  %v15591_v37 = vsub.f32 %v15478_v24, %v15573_v58  ;;  %v15595_v49 = vsub.f32 %v15482_v12, %v15573_v58 }
 0x57e   :  { %v4697_v43 = vpop.f32.mrb[43].mxu0  ;;  %v15599_v2 = vsub.f32 %v15486_v47, %v15573_v58  ;;  %v15603_v62 = vsub.f32 %v15491_v32, %v15573_v58  ;;  %v15607_v61 = vsub.f32 %v15494_v4, %v15573_v58  ;;  %v15611_v24 = vsub.f32 %v15498_v20, %v15573_v58 }
 0x57f   :  { %19064 = vst [vmem:[#allocation47_spill] sm:$0xff] %v15583_v1  ;;  %19065 = vst [vmem:[#allocation50_spill] sm:$0xff] %v15587_v9  ;;  %v15615_v12 = vsub.f32 %v15502_v54, %v15573_v58  ;;  %v15619_v47 = vsub.f32 %v15507_v29, %v15573_v58  ;;  %v15623_v32 = vsub.f32 %v15510_v5, %v15573_v58 }
 0x580   :  { %19066 = vst [vmem:[#allocation51_spill] sm:$0xff] %v15591_v37  ;;  %19067 = vst [vmem:[#allocation52_spill] sm:$0xff] %v15595_v49  ;;  %v15627_v4 = vsub.f32 %v15514_v11, %v15573_v58  ;;  %v15631_v20 = vsub.f32 %v15518_v25, %v15573_v58  ;;  %v15635_v54 = vsub.f32 %v15523_v44, %v15573_v58 }
 0x581   :  { %19068 = vst [vmem:[#allocation55_spill] sm:$0xff] %v15599_v2  ;;  %19069 = vst [vmem:[#allocation59_spill] sm:$0xff] %v15603_v62  ;;  %v15639_v29 = vsub.f32 %v15526_v53, %v15573_v58  ;;  %v15643_v5 = vsub.f32 %v15530_v63, %v15573_v58  ;;  %v15647_v11 = vsub.f32 %v15534_v30, %v15573_v58 }
 0x582   :  { %19070 = vst [vmem:[#allocation62_spill] sm:$0xff] %v15607_v61  ;;  %v15651_v25 = vsub.f32 %v15539_v41, %v15573_v58  ;;  %v15655_v44 = vsub.f32 %v15542_v50, %v15573_v58  ;;  %v15659_v53 = vsub.f32 %v15546_v51, %v15573_v58  ;;  %v15662_v63 = vsub.f32 %v4888_v28, %v15573_v58 }
 0x583   :  { %19071 = vst [vmem:[#allocation64_spill] sm:$0xff] %v15647_v11  ;;  %v12318_v35 = vpop.f32.mrb[44].mxu0  ;;  %v15665_v56 = vsub.f32 %v4889_v60, %v15573_v58  ;;  %v15668_v30 = vsub.f32 %v4890_v52, %v15573_v58  ;;  %v15671_v41 = vsub.f32 %v4891_v6, %v15573_v58  ;;  %v15675_v50 = vsub.f32 %v15439_v46, %v15573_v58 }
 0x584   :  { %19072 = vst [vmem:[#allocation65_spill] sm:$0xff] %v15651_v25  ;;  %19073 = vst [vmem:[#allocation18_spill] sm:$0xff] %v15655_v44  ;;  %v4710_v31 = vpop.f32.mrb[45].mxu0  ;;  %v15679_v51 = vsub.f32 %v15442_v57, %v15573_v58  ;;  %v4965_v28 = vadd.f32 %v4964_v34, %v15579_v36  ;;  %v15687_v52 = vsub.f32 %v15445_v8, %v15573_v58 }
 0x585   :  { %19074 = vst [vmem:[#allocation45_spill] sm:$0xff] %v15659_v53  ;;  %19075 = vst [vmem:[#allocation48_spill] sm:$0xff] %v15668_v30  ;;  %v12319_v10 = vpop.f32.mrb[46].mxu0  ;;  %v5064_v6 = vmul.f32 %v15675_v50, %v15675_v50  ;;  %v15696_v45 = vsub.f32 %v15450_v33, %v15573_v58  ;;  %v15703_v8 = vsub.f32 %v15454_v39, %v15573_v58 }
 0x586   :  { %19076 = vst [vmem:[#allocation46_spill] sm:$0xff] %v15671_v41  ;;  %19077 = vst [vmem:[#allocation49_spill] sm:$0xff] %v15679_v51  ;;  %v4713_v60 = vpop.f32.mrb[47].mxu0  ;;  %v5065_v46 = vmul.f32 %v15679_v51, %v15679_v51  ;;  %v4966_v57 = vadd.f32 %v4965_v28, %v15683_v7  ;;  %v5066_v48 = vmul.f32 %v15687_v52, %v15687_v52 }
 0x587   :  { %19078 = vst [vmem:[#allocation53_spill] sm:$0xff] %v15687_v52  ;;  %19079 = vst [vmem:[#allocation57_spill] sm:$0xff] %v15696_v45  ;;  %v15708_v55 = vadd.f32 %v15436_v38, %v4694_v0  ;;  %v15713_v42 = vsub.f32 %v15459_v3, %v15573_v58  ;;  %v15716_v34 = vadd.f32 %v15436_v38, %v4697_v43 }
 0x588   :  { %19080 = vst [vmem:[#allocation58_spill] sm:$0xff] %v15703_v8  ;;  %v5128_v59 = vadd.f32 %v5065_v46, %v5064_v6  ;;  %v4967_v16 = vadd.f32 %v4966_v57, %v15699_v21  ;;  %v5067_v28 = vmul.f32 %v15696_v45, %v15696_v45  ;;  %v15722_v0 = vadd.f32 %v12314_v13, %v15436_v38 }
 0x589   :  { %19081 = vst [vmem:[#allocation67_spill] sm:$0xff] %v15713_v42  ;;  %v15726_v46 = vsub.f32 %v15462_v22, %v15573_v58  ;;  %v5068_v3 = vmul.f32 %v15703_v8, %v15703_v8  ;;  %v15733_v52 = vsub.f32 %v15466_v18, %v15573_v58  ;;  %v15739_v13 = vadd.f32 %v15575_v14, %v15436_v38 }
 0x58a   :  { %v5129_v51 = vadd.f32 %v5128_v59, %v5066_v48  ;;  %v4968_v6 = vadd.f32 %v4967_v16, %v15708_v55  ;;  %v5069_v48 = vmul.f32 %v15713_v42, %v15713_v42  ;;  %v15743_v16 = vadd.f32 %v15436_v38, %v4710_v31 }
 0x58b   :  { %v12322_v17 = vpop.f32.mrb[48].mxu0  ;;  %19082 = vst [vmem:[#allocation13_spill] sm:$0xff] %v15726_v46  ;;  %19083 = vst [vmem:[#allocation25_spill] sm:$0xff] %v15733_v52  ;;  %v15749_v42 = vadd.f32 %v15436_v38, %v4713_v60  ;;  %v5071_v14 = vmul.f32 %v15733_v52, %v15733_v52  ;;  %v5072_v8 = vmul.f32 %v15583_v1, %v15583_v1 }
 0x58c   :  { %v4726_v23 = vpop.f32.mrb[49].mxu0  ;;  %v5130_v57 = vadd.f32 %v5129_v51, %v5067_v28  ;;  %v4969_v43 = vadd.f32 %v4968_v6, %v15716_v34  ;;  %v5070_v6 = vmul.f32 %v15726_v46, %v15726_v46  ;;  %v15757_v46 = vadd.f32 %v12318_v35, %v15436_v38 }
 0x58d   :  { %v12323_v33 = vpop.f32.mrb[50].mxu0  ;;  %v5073_v60 = vmul.f32 %v15587_v9, %v15587_v9  ;;  %v5074_v35 = vmul.f32 %v15591_v37, %v15591_v37  ;;  %v5076_v9 = vmul.f32 %v15599_v2, %v15599_v2  ;;  %v15781_v37 = vadd.f32 %v12322_v17, %v15436_v38 }
 0x58e   :  { %v4729_v39 = vpop.f32.mrb[51].mxu0  ;;  %v5131_v59 = vadd.f32 %v5130_v57, %v5068_v3  ;;  %v4970_v22 = vadd.f32 %v4969_v43, %v15722_v0  ;;  %v5078_v17 = vmul.f32 %v15607_v61, %v15607_v61 }
 0x590   :  { %v5132_v18 = vadd.f32 %v5131_v59, %v5069_v48  ;;  %v4971_v58 = vadd.f32 %v4970_v22, %v15739_v13  ;;  %v15763_v22 = vadd.f32 %v12319_v10, %v15436_v38  ;;  %v5075_v10 = vmul.f32 %v15595_v49, %v15595_v49 }
 0x592   :  { %v5133_v43 = vadd.f32 %v5132_v18, %v5070_v6  ;;  %v4972_v31 = vadd.f32 %v4971_v58, %v15743_v16  ;;  %v15767_v18 = vadd.f32 %v15436_v38, %v4726_v23 }
 0x593   :  { %v12326_v51 = vpop.f32.mrb[52].mxu0 }
 0x594   :  { %v4742_v28 = vpop.f32.mrb[53].mxu0  ;;  %v5134_v45 = vadd.f32 %v5133_v43, %v5071_v14  ;;  %v4973_v48 = vadd.f32 %v4972_v31, %v15749_v42  ;;  %v15773_v31 = vadd.f32 %v15436_v38, %v4729_v39  ;;  %v5077_v39 = vmul.f32 %v15603_v62, %v15603_v62 }
 0x595   :  { %v12327_v3 = vpop.f32.mrb[54].mxu0  ;;  %v5080_v62 = vmul.f32 %v15615_v12, %v15615_v12  ;;  %v15805_v61 = vadd.f32 %v12326_v51, %v15436_v38 }
 0x596   :  { %v4745_v57 = vpop.f32.mrb[55].mxu0  ;;  %v5135_v59 = vadd.f32 %v5134_v45, %v5072_v8  ;;  %v4974_v6 = vadd.f32 %v4973_v48, %v15757_v46 }
 0x598   :  { %v5136_v14 = vadd.f32 %v5135_v59, %v5073_v60  ;;  %v4975_v43 = vadd.f32 %v4974_v6, %v15763_v22  ;;  %v15787_v6 = vadd.f32 %v12323_v33, %v15436_v38  ;;  %v5079_v33 = vmul.f32 %v15611_v24, %v15611_v24 }
 0x59a   :  { %v5137_v48 = vadd.f32 %v5136_v14, %v5074_v35  ;;  %v4976_v23 = vadd.f32 %v4975_v43, %v15767_v18  ;;  %v15791_v14 = vadd.f32 %v15436_v38, %v4742_v28 }
 0x59b   :  { %v12330_v58 = vpop.f32.mrb[56].mxu0 }
 0x59c   :  { %v4758_v1 = vpop.f32.mrb[57].mxu0  ;;  %v5138_v52 = vadd.f32 %v5137_v48, %v5075_v10  ;;  %v4977_v60 = vadd.f32 %v4976_v23, %v15773_v31  ;;  %v15797_v23 = vadd.f32 %v15436_v38, %v4745_v57  ;;  %v5081_v57 = vmul.f32 %v15619_v47, %v15619_v47 }
 0x59d   :  { %v12331_v45 = vpop.f32.mrb[58].mxu0 }
 0x59e   :  { %v4761_v8 = vpop.f32.mrb[59].mxu0  ;;  %v5139_v59 = vadd.f32 %v5138_v52, %v5076_v9  ;;  %v4978_v35 = vadd.f32 %v4977_v60, %v15781_v37 }
 0x5a0   :  { %v5140_v10 = vadd.f32 %v5139_v59, %v5077_v39  ;;  %v4979_v48 = vadd.f32 %v4978_v35, %v15787_v6  ;;  %v15811_v35 = vadd.f32 %v12327_v3, %v15436_v38 }
 0x5a2   :  { %v5141_v60 = vadd.f32 %v5140_v10, %v5078_v17  ;;  %v4980_v28 = vadd.f32 %v4979_v48, %v15791_v14  ;;  %v15815_v10 = vadd.f32 %v15436_v38, %v4758_v1  ;;  %v5082_v48 = vmul.f32 %v15623_v32, %v15623_v32 }
 0x5a3   :  { %v12334_v43 = vpop.f32.mrb[60].mxu0 }
 0x5a4   :  { %v4774_v2 = vpop.f32.mrb[61].mxu0  ;;  %v5142_v49 = vadd.f32 %v5141_v60, %v5079_v33  ;;  %v4981_v39 = vadd.f32 %v4980_v28, %v15797_v23  ;;  %v15821_v60 = vadd.f32 %v15436_v38, %v4761_v8  ;;  %v5084_v28 = vmul.f32 %v15631_v20, %v15631_v20 }
 0x5a5   :  { %v12335_v9 = vpop.f32.mrb[62].mxu0 }
 0x5a6   :  { %v4777_v52 = vpop.f32.mrb[63].mxu0  ;;  %v5143_v59 = vadd.f32 %v5142_v49, %v5080_v62  ;;  %v4982_v17 = vadd.f32 %v4981_v39, %v15805_v61  ;;  %v5083_v49 = vmul.f32 %v15627_v4, %v15627_v4  ;;  %v15829_v39 = vadd.f32 %v12330_v58, %v15436_v38 }
 0x5a8   :  { %v5144_v33 = vadd.f32 %v5143_v59, %v5081_v57  ;;  %v4983_v51 = vadd.f32 %v4982_v17, %v15811_v35  ;;  %v5085_v59 = vmul.f32 %v15635_v54, %v15635_v54  ;;  %v15835_v17 = vadd.f32 %v12331_v45, %v15436_v38 }
 0x5aa   :  { %v5145_v62 = vadd.f32 %v5144_v33, %v5082_v48  ;;  %v4984_v3 = vadd.f32 %v4983_v51, %v15815_v10  ;;  %v15839_v33 = vadd.f32 %v15436_v38, %v4774_v2  ;;  %v5086_v51 = vmul.f32 %v15639_v29, %v15639_v29 }
 0x5ac   :  { %v5146_v1 = vadd.f32 %v5145_v62, %v5083_v49  ;;  %v4985_v57 = vadd.f32 %v4984_v3, %v15821_v60  ;;  %v15845_v62 = vadd.f32 %v15436_v38, %v4777_v52  ;;  %v5087_v3 = vmul.f32 %v15643_v5, %v15643_v5 }
 0x5ae   :  { %v5147_v8 = vadd.f32 %v5146_v1, %v5084_v28  ;;  %v4986_v48 = vadd.f32 %v4985_v57, %v15829_v39  ;;  %v5088_v1 = vmul.f32 %v15647_v11, %v15647_v11  ;;  %v15853_v57 = vadd.f32 %v12334_v43, %v15436_v38 }
 0x5af   :  { %v5091_v43 = vmul.f32 %v15659_v53, %v15659_v53  ;;  %v5094_v53 = vmul.f32 %v15668_v30, %v15668_v30 }
 0x5b0   :  { %v5148_v49 = vadd.f32 %v5147_v8, %v5085_v59  ;;  %v4987_v58 = vadd.f32 %v4986_v48, %v15835_v17  ;;  %v5089_v8 = vmul.f32 %v15651_v25, %v15651_v25  ;;  %v15859_v48 = vadd.f32 %v12335_v9, %v15436_v38 }
 0x5b1   :  { %v5092_v38 = vmul.f32 %v15662_v63, %v15662_v63 }
 0x5b2   :  { %v5149_v28 = vadd.f32 %v5148_v49, %v5086_v51  ;;  %v4988_v45 = vadd.f32 %v4987_v58, %v15839_v33  ;;  %v14160_v49 = vld [vmem:[#allocation7 + $0x40] sm:$0xff]   ;;  %v5090_v58 = vmul.f32 %v15655_v44, %v15655_v44 }
 0x5b3   :  { %12336 = vmatprep.subr.bf16.mxu1 %v14160_v49 }
 0x5b4   :  { %v5150_v2 = vadd.f32 %v5149_v28, %v5087_v3  ;;  %v4989_v59 = vadd.f32 %v4988_v45, %v15845_v62  ;;  %12337 = vmatpush3.bf16.msra.mxu1 %v14160_v49  ;;  %v5095_v49 = vmul.f32 %v15671_v41, %v15671_v41 }
 0x5b6   :  { %v5151_v52 = vadd.f32 %v5150_v2, %v5088_v1  ;;  %v4990_v51 = vadd.f32 %v4989_v59, %v15853_v57  ;;  %v14161_v1 = vld [vmem:[#allocation7 + $0x48] sm:$0xff]   ;;  %v5093_v59 = vmul.f32 %v15665_v56, %v15665_v56 }
 0x5b7   :  { %12338 = vmatprep.subr.bf16.mxu1 %v14161_v1 }
 0x5b8   :  { %v5152_v11 = vadd.f32 %v5151_v52, %v5089_v8  ;;  %v4991_v3 = vadd.f32 %v4990_v51, %v15859_v48  ;;  %12339 = vmatpush3.bf16.msra.mxu1 %v14161_v1  ;;  %v14162_v51 = vld [vmem:[#allocation7 + $0x50] sm:$0xff]   ;;  %v14164_v1 = vld [vmem:[#allocation7 + $0x60] sm:$0xff]  }
 0x5b9   :  { %12340 = vmatprep.subr.bf16.mxu1 %v14162_v51 }
 0x5ba   :  { %v5153_v28 = vadd.f32 %v5152_v11, %v5090_v58  ;;  %v4992_v45 = vrot.slane %v4991_v3, 4 }
 0x5bc   :  { %v5154_v9 = vadd.f32 %v5153_v28, %v5091_v43  ;;  %v4993_v2 = vadd.f32 %v4992_v45, %v4991_v3  ;;  %12341 = vmatpush3.bf16.msra.mxu1 %v14162_v51  ;;  %v14163_v3 = vld [vmem:[#allocation7 + $0x58] sm:$0xff]   ;;  %v14165_v51 = vld [vmem:[#allocation7 + $0x68] sm:$0xff]  }
 0x5bd   :  { %12342 = vmatprep.subr.bf16.mxu1 %v14163_v3 }
 0x5be   :  { %v5155_v8 = vadd.f32 %v5154_v9, %v5092_v38  ;;  %v4994_v52 = vrot.slane %v4993_v2, 2 }
 0x5c0   :  { %v5156_v11 = vadd.f32 %v5155_v8, %v5093_v59  ;;  %v4995_v58 = vadd.f32 %v4994_v52, %v4993_v2  ;;  %12343 = vmatpush3.bf16.msra.mxu1 %v14163_v3 }
 0x5c1   :  { %12344 = vmatprep.subr.bf16.mxu1 %v14164_v1 }
 0x5c2   :  { %v5157_v44 = vadd.f32 %v5156_v11, %v5094_v53  ;;  %v4996_v43 = vrot.slane %v4995_v58, 1 }
 0x5c4   :  { %v5158_v28 = vadd.f32 %v5157_v44, %v5095_v49  ;;  %v4997_v45 = vadd.f32 %v4996_v43, %v4995_v58  ;;  %12345 = vmatpush3.bf16.msra.mxu1 %v14164_v1  ;;  %v14167_v49 = vld [vmem:[#allocation7 + $0x78] sm:$0xff]  }
 0x5c5   :  { %12346 = vmatprep.subr.bf16.mxu1 %v14165_v51 }
 0x5c6   :  { %v5159_v38 = vrot.slane %v5158_v28, 4  ;;  %v4999_v9 = vmul.f32 0.00390625, %v4997_v45 }
 0x5c8   :  { %v5160_v25 = vadd.f32 %v5159_v38, %v5158_v28  ;;  %v15876_v2 = vsub.f32 %v15708_v55, %v4999_v9  ;;  %v15879_v59 = vsub.f32 %v15716_v34, %v4999_v9  ;;  %v15882_v53 = vsub.f32 %v15722_v0, %v4999_v9  ;;  %12347 = vmatpush3.bf16.msra.mxu1 %v14165_v51 }
 0x5c9   :  { %v15885_v44 = vsub.f32 %v15739_v13, %v4999_v9  ;;  %v15888_v8 = vsub.f32 %v15743_v16, %v4999_v9  ;;  %v15891_v52 = vsub.f32 %v15749_v42, %v4999_v9  ;;  %v15894_v55 = vsub.f32 %v15757_v46, %v4999_v9 }
 0x5ca   :  { %v5161_v30 = vrot.slane %v5160_v25, 2  ;;  %19084 = vst [vmem:[#allocation23_spill] sm:$0xff] %v15876_v2  ;;  %19085 = vst [vmem:[#allocation27_spill] sm:$0xff] %v15879_v59  ;;  %v15897_v34 = vsub.f32 %v15763_v22, %v4999_v9  ;;  %v15900_v0 = vsub.f32 %v15767_v18, %v4999_v9  ;;  %v15903_v13 = vsub.f32 %v15773_v31, %v4999_v9 }
 0x5cb   :  { %19086 = vst [vmem:[#allocation30_spill] sm:$0xff] %v15882_v53  ;;  %19087 = vst [vmem:[#allocation31_spill] sm:$0xff] %v15885_v44  ;;  %v15906_v16 = vsub.f32 %v15781_v37, %v4999_v9  ;;  %v15909_v42 = vsub.f32 %v15787_v6, %v4999_v9  ;;  %v15915_v46 = vsub.f32 %v15797_v23, %v4999_v9  ;;  %v14166_v23 = vld [vmem:[#allocation7 + $0x70] sm:$0xff]  }
 0x5cc   :  { %19088 = vst [vmem:[#allocation37_spill] sm:$0xff] %v15888_v8  ;;  %19089 = vst [vmem:[#allocation38_spill] sm:$0xff] %v15891_v52  ;;  %v5162_v11 = vadd.f32 %v5161_v30, %v5160_v25  ;;  %v15912_v25 = vsub.f32 %v15791_v14, %v4999_v9  ;;  %v15918_v22 = vsub.f32 %v15805_v61, %v4999_v9  ;;  %12348 = vmatprep.subr.bf16.mxu1 %v14166_v23 }
 0x5cd   :  { %19090 = vst [vmem:[#allocation54_spill] sm:$0xff] %v15894_v55  ;;  %19091 = vst [vmem:[#allocation56_spill] sm:$0xff] %v15897_v34  ;;  %v15921_v18 = vsub.f32 %v15811_v35, %v4999_v9  ;;  %v15924_v37 = vsub.f32 %v15815_v10, %v4999_v9  ;;  %v15927_v31 = vsub.f32 %v15821_v60, %v4999_v9  ;;  %12349 = vmatpush3.bf16.msra.mxu1 %v14166_v23 }
 0x5ce   :  { %19092 = vst [vmem:[#allocation60_spill] sm:$0xff] %v15900_v0  ;;  %19093 = vst [vmem:[#allocation61_spill] sm:$0xff] %v15903_v13  ;;  %v5163_v30 = vrot.slane %v5162_v11, 1  ;;  %v15930_v6 = vsub.f32 %v15829_v39, %v4999_v9  ;;  %v15933_v14 = vsub.f32 %v15835_v17, %v4999_v9  ;;  %v15936_v61 = vsub.f32 %v15839_v33, %v4999_v9 }
 0x5cf   :  { %19094 = vst [vmem:[#allocation63_spill] sm:$0xff] %v15906_v16  ;;  %19095 = vst [vmem:[#allocation66_spill] sm:$0xff] %v15909_v42  ;;  %v15939_v35 = vsub.f32 %v15845_v62, %v4999_v9  ;;  %v15942_v10 = vsub.f32 %v15853_v57, %v4999_v9  ;;  %v15945_v60 = vsub.f32 %v15859_v48, %v4999_v9  ;;  %12350 = vmatprep.subr.bf16.mxu1 %v14167_v49 }
 0x5d0   :  { %19096 = vst [vmem:[#allocation68_spill] sm:$0xff] %v15912_v25  ;;  %19097 = vst [vmem:[#allocation15_spill] sm:$0xff] %v15915_v46  ;;  %v5164_v58 = vadd.f32 %v5163_v30, %v5162_v11  ;;  %v15948_v33 = vsub.f32 %v15558_v15, %v4999_v9  ;;  %v15951_v62 = vsub.f32 %v15555_v40, %v4999_v9 }
 0x5d1   :  { %19098 = vst [vmem:[#allocation21_spill] sm:$0xff] %v15918_v22  ;;  %19099 = vst [vmem:[#allocation22_spill] sm:$0xff] %v15921_v18  ;;  %12351 = vmatpush3.bf16.msra.mxu1 %v14167_v49  ;;  %v15958_v43 = vsub.f32 %v15563_v27, %v4999_v9  ;;  %v15961_v3 = vsub.f32 %v15567_v19, %v4999_v9  ;;  %v15966_v15 = vsub.f32 %v15570_v26, %v4999_v9 }
 0x5d2   :  { %19100 = vst [vmem:[#allocation24_spill] sm:$0xff] %v15924_v37  ;;  %19101 = vst [vmem:[#allocation26_spill] sm:$0xff] %v15927_v31  ;;  %v5202_v39 = vmul.f32 0.00390625, %v5164_v58  ;;  %v5096_v57 = vmul.f32 %v15948_v33, %v15948_v33  ;;  %v5097_v48 = vmul.f32 %v15951_v62, %v15951_v62  ;;  %v15969_v40 = vsub.f32 %v15579_v36, %v4999_v9 }
 0x5d3   :  { %19102 = vst [vmem:[#allocation28_spill] sm:$0xff] %v15930_v6  ;;  %19103 = vst [vmem:[#allocation29_spill] sm:$0xff] %v15933_v14  ;;  %v15972_v45 = vsub.f32 %v15683_v7, %v4999_v9  ;;  %v15975_v38 = vsub.f32 %v15699_v21, %v4999_v9  ;;  %v5098_v26 = vmul.f32 %v15958_v43, %v15958_v43 }
 0x5d4   :  { %19104 = vst [vmem:[#allocation32_spill] sm:$0xff] %v15936_v61  ;;  %19105 = vst [vmem:[#allocation33_spill] sm:$0xff] %v15939_v35  ;;  %v5204_v17 = vadd.f32 1e-05, %v5202_v39  ;;  %v5165_v1 = vadd.f32 %v5097_v48, %v5096_v57  ;;  %v5099_v36 = vmul.f32 %v15961_v3, %v15961_v3  ;;  %v5100_v7 = vmul.f32 %v15966_v15, %v15966_v15 }
 0x5d5   :  { %19106 = vst [vmem:[#allocation36_spill] sm:$0xff] %v15942_v10  ;;  %19107 = vst [vmem:[#allocation39_spill] sm:$0xff] %v15945_v60  ;;  %v15989_v21 = vmul.f32 %v15969_v40, %v15969_v40  ;;  %v16001_v11 = vmul.f32 %v15876_v2, %v15876_v2  ;;  %v16005_v23 = vmul.f32 %v15879_v59, %v15879_v59  ;;  %v19140_v59 = vld [vmem:[#allocation67_spill] sm:$0xff]  ;;  %v19141_v2 = vld [vmem:[#allocation13_spill] sm:$0xff] }
 0x5d6   :  { %14232 = vrsqrt.f32 %v5204_v17  ;;  %19108 = vst [vmem:[#allocation41_spill] sm:$0xff] %v15948_v33  ;;  %19109 = vst [vmem:[#allocation42_spill] sm:$0xff] %v15951_v62  ;;  %v5166_v30 = vadd.f32 %v5165_v1, %v5098_v26  ;;  %v16009_v58 = vmul.f32 %v15882_v53, %v15882_v53  ;;  %v16013_v39 = vmul.f32 %v15885_v44, %v15885_v44  ;;  %v19152_v33 = vld [vmem:[#allocation64_spill] sm:$0xff] }
 0x5d7   :  { %19110 = vst [vmem:[#allocation69_spill] sm:$0xff] %v15958_v43  ;;  %19111 = vst [vmem:[#allocation70_spill] sm:$0xff] %v15961_v3  ;;  %v16017_v49 = vmul.f32 %v15888_v8, %v15888_v8  ;;  %v16021_v17 = vmul.f32 %v15891_v52, %v15891_v52  ;;  %v16025_v57 = vmul.f32 %v15894_v55, %v15894_v55 }
 0x5d8   :  { %19113 = vst [vmem:[#allocation14_spill] sm:$0xff] %v15966_v15  ;;  %19114 = vst [vmem:[#allocation16_spill] sm:$0xff] %v15969_v40  ;;  %v16029_v48 = vmul.f32 %v15897_v34, %v15897_v34  ;;  %v16033_v1 = vmul.f32 %v15900_v0, %v15900_v0  ;;  %v16037_v26 = vmul.f32 %v15903_v13, %v15903_v13 }
 0x5d9   :  { %19115 = vst [vmem:[#allocation17_spill] sm:$0xff] %v15972_v45  ;;  %19116 = vst [vmem:[#allocation19_spill] sm:$0xff] %v15975_v38  ;;  %v16041_v52 = vmul.f32 %v15906_v16, %v15906_v16  ;;  %v16045_v55 = vmul.f32 %v15909_v42, %v15909_v42  ;;  %v5167_v34 = vadd.f32 %v5166_v30, %v5099_v36  ;;  %v19138_v42 = vld [vmem:[#allocation57_spill] sm:$0xff]  ;;  %v19139_v16 = vld [vmem:[#allocation58_spill] sm:$0xff] }
 0x5da   :  { %19117 = vst [vmem:[#allocation20_spill] sm:$0xff] %v16025_v57  ;;  %19118 = vst [vmem:[#allocation34_spill] sm:$0xff] %v16029_v48  ;;  %v16049_v53 = vmul.f32 %v15912_v25, %v15912_v25  ;;  %v16053_v0 = vmul.f32 %v15915_v46, %v15915_v46  ;;  %v16057_v13 = vmul.f32 %v15918_v22, %v15918_v22  ;;  %v19137_v46 = vld [vmem:[#allocation53_spill] sm:$0xff] }
 0x5db   :  { %19119 = vst [vmem:[#allocation35_spill] sm:$0xff] %v16033_v1  ;;  %19120 = vst [vmem:[#allocation40_spill] sm:$0xff] %v16037_v26  ;;  %v16069_v36 = vmul.f32 %v15927_v31, %v15927_v31  ;;  %v16091_v31 = vmul.f32 %v15942_v10, %v15942_v10  ;;  %v5168_v22 = vadd.f32 %v5167_v34, %v5100_v7  ;;  %v19142_v34 = vld [vmem:[#allocation25_spill] sm:$0xff]  ;;  %v19143_v7 = vld [vmem:[#allocation47_spill] sm:$0xff] }
 0x5dc   :  { %19121 = vst [vmem:[#allocation43_spill] sm:$0xff] %v16041_v52  ;;  %19122 = vst [vmem:[#allocation44_spill] sm:$0xff] %v16045_v55 }
 0x5dd   :  { %19123 = vst [vmem:[#allocation72_spill] sm:$0xff] %v16049_v53  ;;  %19124 = vst [vmem:[#allocation73_spill] sm:$0xff] %v16053_v0 }
 0x5de   :  { %19125 = vst [vmem:[#allocation74_spill] sm:$0xff] %v16057_v13  ;;  %19128 = vst [vmem:[#allocation77_spill] sm:$0xff] %v16069_v36 }
 0x5df   :  { %19134 = vst [vmem:[#allocation83_spill] sm:$0xff] %v16091_v31 }
 0x5e0   :  { %v15963_v28 = vpop.eup %14232 }
 0x5e1   :  { %19112 = vst [vmem:[#allocation71_spill] sm:$0xff] %v15963_v28  ;;  %v5236_v27 = vmul.f32 %v15963_v28, %v15662_v63  ;;  %v5237_v19 = vmul.f32 %v15963_v28, %v15665_v56  ;;  %v15993_v63 = vmul.f32 %v15972_v45, %v15972_v45  ;;  %v15997_v56 = vmul.f32 %v15975_v38, %v15975_v38  ;;  %v19144_v38 = vld [vmem:[#allocation50_spill] sm:$0xff] }
 0x5e2   :  { %v16107_v25 = vmul.f32 %v15963_v28, %v19137_v46  ;;  %v16111_v10 = vmul.f32 %v15963_v28, %v19138_v42  ;;  %v16127_v46 = vmul.f32 %v15963_v28, %v19142_v34  ;;  %v16131_v42 = vmul.f32 %v15963_v28, %v19143_v7  ;;  %v19147_v34 = vld [vmem:[#allocation55_spill] sm:$0xff] }
 0x5e3   :  { %v5364_v9 = vmul.f32 0.01, %v5236_v27  ;;  %v5365_v51 = vmul.f32 0.01, %v5237_v19  ;;  %vm5300_vm5 = vcmp.gt.f32.partialorder %v5236_v27, 0.0  ;;  %vm5301_vm6 = vcmp.gt.f32.partialorder %v5237_v19, 0.0 }
 0x5e4   :  { %v16148_v3 = vmul.f32 %v15963_v28, %v19147_v34  ;;  %v19148_v7 = vld [vmem:[#allocation59_spill] sm:$0xff]  ;;  %v16169_v34 = vmul.f32 %v15963_v28, %v15619_v47  ;;  %v16189_v47 = vmul.f32 %v15963_v28, %v15639_v29  ;;  %vm5274_vm9 = vcmp.gt.f32.partialorder %v16107_v25, 0.0 }
 0x5e5   :  { %v5428_v8 = vsel %vm5300_vm5, %v5236_v27, %v5364_v9  ;;  %v5429_v44 = vsel %vm5301_vm6, %v5237_v19, %v5365_v51  ;;  %v16061_v27 = vmul.f32 %v15921_v18, %v15921_v18  ;;  %v16065_v19 = vmul.f32 %v15924_v37, %v15924_v37 }
 0x5e6   :  { %v16073_v9 = vmul.f32 %v15930_v6, %v15930_v6  ;;  %v16077_v51 = vmul.f32 %v15933_v14, %v15933_v14  ;;  %v16079_v30 = vpack.c.bf16 %v5429_v44, %v5428_v8  ;;  %v16083_v18 = vmul.f32 %v15936_v61, %v15936_v61  ;;  %v19135_v14 = vld [vmem:[#allocation49_spill] sm:$0xff]  ;;  %v19154_v61 = vld [vmem:[#allocation18_spill] sm:$0xff] }
 0x5e7   :  { %19126 = vst [vmem:[#allocation75_spill] sm:$0xff] %v16061_v27  ;;  %19127 = vst [vmem:[#allocation76_spill] sm:$0xff] %v16065_v19  ;;  %v16087_v37 = vmul.f32 %v15939_v35, %v15939_v35  ;;  %v16095_v6 = vmul.f32 %v15963_v28, %v15675_v50  ;;  %v16099_v44 = vmul.f32 %v15963_v28, %v19135_v14  ;;  %v19153_v35 = vld [vmem:[#allocation65_spill] sm:$0xff]  ;;  %vm5275_vm10 = vcmp.gt.f32.partialorder %v16111_v10, 0.0 }
 0x5e8   :  { %19129 = vst [vmem:[#allocation78_spill] sm:$0xff] %v16073_v9  ;;  %19130 = vst [vmem:[#allocation79_spill] sm:$0xff] %v16077_v51  ;;  %v16103_v8 = vmul.f32 %v15945_v60, %v15945_v60  ;;  %v16115_v50 = vmul.f32 %v15963_v28, %v19139_v16  ;;  %v16119_v14 = vmul.f32 %v15963_v28, %v19140_v59  ;;  %v19145_v59 = vld [vmem:[#allocation51_spill] sm:$0xff]  ;;  %v19150_v45 = vshrl.u32 %v16079_v30, 16 }
 0x5e9   :  { %19131 = vst [vmem:[#allocation80_spill] sm:$0xff] %v16079_v30  ;;  %19132 = vst [vmem:[#allocation81_spill] sm:$0xff] %v16083_v18  ;;  %v16123_v60 = vmul.f32 %v15963_v28, %v19141_v2  ;;  %v16135_v16 = vmul.f32 %v15963_v28, %v19144_v38  ;;  %v16140_v40 = vmul.f32 %v15963_v28, %v19145_v59  ;;  %v19146_v2 = vld [vmem:[#allocation52_spill] sm:$0xff]  ;;  %v19149_v38 = vld [vmem:[#allocation62_spill] sm:$0xff]  ;;  %vm5272_vm7 = vcmp.gt.f32.partialorder %v16095_v6, 0.0 }
 0x5ea   :  { %19133 = vst [vmem:[#allocation82_spill] sm:$0xff] %v16087_v37  ;;  %19136 = vst [vmem:[#allocation49_spill] sm:$0xff] %v16103_v8  ;;  %v16144_v15 = vmul.f32 %v15963_v28, %v19146_v2  ;;  %v16152_v43 = vmul.f32 %v15963_v28, %v19148_v7  ;;  %v16156_v62 = vmul.f32 %v15963_v28, %v19149_v38  ;;  %v19155_v8 = vld [vmem:[#allocation45_spill] sm:$0xff]  ;;  %vm5273_vm8 = vcmp.gt.f32.partialorder %v16099_v44, 0.0 }
 0x5eb   :  { %v16160_v59 = vmul.f32 %v15963_v28, %v15611_v24  ;;  %v16164_v2 = vmul.f32 %v15963_v28, %v15615_v12  ;;  %v16173_v7 = vmul.f32 %v15963_v28, %v15623_v32  ;;  %v16177_v38 = vmul.f32 %v15963_v28, %v15627_v4 }
 0x5ec   :  { %v16181_v24 = vmul.f32 %v15963_v28, %v15631_v20  ;;  %v16185_v12 = vmul.f32 %v15963_v28, %v15635_v54  ;;  %v16193_v32 = vmul.f32 %v15963_v28, %v15643_v5  ;;  %v16197_v4 = vrot.slane %v19150_v45, 7 }
 0x5ed   :  { %v16201_v20 = vmul.f32 %v15963_v28, %v19152_v33  ;;  %v16205_v54 = vmul.f32 %v15963_v28, %v19153_v35  ;;  %v16209_v29 = vmul.f32 %v15963_v28, %v19154_v61  ;;  %v16213_v5 = vmul.f32 %v15963_v28, %v19155_v8 }
 0x5ee   :  { %19151 = vst [vmem:[#allocation53_spill] sm:$0xff] %v16197_v4  ;;  %vm5276_vm11 = vcmp.gt.f32.partialorder %v16115_v50, 0.0  ;;  %vm5277_vm12 = vcmp.gt.f32.partialorder %v16119_v14, 0.0  ;;  %vm5278_vm13 = vcmp.gt.f32.partialorder %v16123_v60, 0.0  ;;  %v5336_v61 = vmul.f32 0.01, %v16095_v6 }
 0x5ef   :  { %vm5283_vm5 = vcmp.gt.f32.partialorder %v16144_v15, 0.0  ;;  %v5337_v35 = vmul.f32 0.01, %v16099_v44  ;;  %vm5287_vm14 = vcmp.gt.f32.partialorder %v16160_v59, 0.0  ;;  %v5338_v33 = vmul.f32 0.01, %v16107_v25 }
 0x5f0   :  { %v5339_v45 = vmul.f32 0.01, %v16111_v10  ;;  %vm5291_vm6 = vcmp.gt.f32.partialorder %v16177_v38, 0.0  ;;  %v5340_v8 = vmul.f32 0.01, %v16115_v50  ;;  %v16245_v18 = vadd.f32 %v5168_v22, %v15989_v21 }
 0x5f1   :  { %v5341_v31 = vmul.f32 0.01, %v16119_v14  ;;  %v5342_v37 = vmul.f32 0.01, %v16123_v60  ;;  %vm5295_vm0 = vcmp.gt.f32.partialorder %v16193_v32, 0.0  ;;  %vm5296_vm15 = vcmp.gt.f32.partialorder %v16201_v20, 0.0 }
 0x5f2   :  { %v5343_v51 = vmul.f32 0.01, %v16127_v46  ;;  %v5344_v30 = vmul.f32 0.01, %v16131_v42  ;;  %v5345_v4 = vmul.f32 0.01, %v16135_v16  ;;  %v5400_v41 = vsel %vm5272_vm7, %v16095_v6, %v5336_v61 }
 0x5f3   :  { %vm5297_vm3 = vcmp.gt.f32.partialorder %v16205_v54, 0.0  ;;  %vm5298_vm4 = vcmp.gt.f32.partialorder %v16209_v29, 0.0  ;;  %vm5299_vm1 = vcmp.gt.f32.partialorder %v16213_v5, 0.0  ;;  %v5346_v22 = vmul.f32 0.01, %v16140_v40 }
 0x5f4   :  { %v5347_v21 = vmul.f32 0.01, %v16144_v15  ;;  %v5348_v9 = vmul.f32 0.01, %v16148_v3  ;;  %v5401_v28 = vsel %vm5273_vm8, %v16099_v44, %v5337_v35  ;;  %v5349_v36 = vmul.f32 0.01, %v16152_v43 }
 0x5f5   :  { %v5350_v6 = vmul.f32 0.01, %v16156_v62  ;;  %v5351_v61 = vmul.f32 0.01, %v16160_v59  ;;  %v5402_v19 = vsel %vm5274_vm9, %v16107_v25, %v5338_v33  ;;  %v5352_v27 = vmul.f32 0.01, %v16164_v2 }
 0x5f6   :  { %v5353_v13 = vmul.f32 0.01, %v16169_v34  ;;  %v5354_v0 = vmul.f32 0.01, %v16173_v7  ;;  %v5403_v44 = vsel %vm5275_vm10, %v16111_v10, %v5339_v45  ;;  %v5355_v35 = vmul.f32 0.01, %v16177_v38 }
 0x5f7   :  { %v5356_v53 = vmul.f32 0.01, %v16181_v24  ;;  %v5357_v55 = vmul.f32 0.01, %v16185_v12  ;;  %v5404_v25 = vsel %vm5276_vm11, %v16115_v50, %v5340_v8  ;;  %v5358_v33 = vmul.f32 0.01, %v16189_v47 }
 0x5f8   :  { %v5359_v52 = vmul.f32 0.01, %v16193_v32  ;;  %v5360_v26 = vmul.f32 0.01, %v16201_v20  ;;  %v5405_v10 = vsel %vm5277_vm12, %v16119_v14, %v5341_v31  ;;  %v5361_v45 = vmul.f32 0.01, %v16205_v54 }
 0x5f9   :  { %v5362_v1 = vmul.f32 0.01, %v16209_v29  ;;  %v5363_v48 = vmul.f32 0.01, %v16213_v5  ;;  %v5406_v50 = vsel %vm5278_vm13, %v16123_v60, %v5342_v37  ;;  %vm19156_vm7 = vcmp.gt.f32.partialorder %v16127_v46, 0.0 }
 0x5fa   :  { %v5407_v8 = vsel %vm19156_vm7, %v16127_v46, %v5343_v51  ;;  %vm19157_vm8 = vcmp.gt.f32.partialorder %v16131_v42, 0.0  ;;  %vm19158_vm9 = vcmp.gt.f32.partialorder %v16135_v16, 0.0  ;;  %vm19159_vm10 = vcmp.gt.f32.partialorder %v16140_v40, 0.0 }
 0x5fb   :  { %v5408_v57 = vsel %vm19157_vm8, %v16131_v42, %v5344_v30  ;;  %v5409_v31 = vsel %vm19158_vm9, %v16135_v16, %v5345_v4  ;;  %v5410_v14 = vsel %vm19159_vm10, %v16140_v40, %v5346_v22  ;;  %v5411_v37 = vsel %vm5283_vm5, %v16144_v15, %v5347_v21 }
 0x5fc   :  { %vm19160_vm11 = vcmp.gt.f32.partialorder %v16148_v3, 0.0  ;;  %vm19161_vm12 = vcmp.gt.f32.partialorder %v16152_v43, 0.0  ;;  %vm19162_vm13 = vcmp.gt.f32.partialorder %v16156_v62, 0.0  ;;  %v5415_v40 = vsel %vm5287_vm14, %v16160_v59, %v5351_v61 }
 0x5fd   :  { %v5412_v60 = vsel %vm19160_vm11, %v16148_v3, %v5348_v9  ;;  %v5413_v51 = vsel %vm19161_vm12, %v16152_v43, %v5349_v36  ;;  %v5414_v30 = vsel %vm19162_vm13, %v16156_v62, %v5350_v6  ;;  %vm19163_vm7 = vcmp.gt.f32.partialorder %v16164_v2, 0.0 }
 0x5fe   :  { %v5416_v15 = vsel %vm19163_vm7, %v16164_v2, %v5352_v27  ;;  %vm19164_vm5 = vcmp.gt.f32.partialorder %v16169_v34, 0.0  ;;  %vm19165_vm8 = vcmp.gt.f32.partialorder %v16173_v7, 0.0  ;;  %v5419_v62 = vsel %vm5291_vm6, %v16177_v38, %v5355_v35 }
 0x5ff   :  { %v5417_v3 = vsel %vm19164_vm5, %v16169_v34, %v5353_v13  ;;  %v5418_v43 = vsel %vm19165_vm8, %v16173_v7, %v5354_v0  ;;  %vm19166_vm9 = vcmp.gt.f32.partialorder %v16181_v24, 0.0  ;;  %vm19167_vm14 = vcmp.gt.f32.partialorder %v16185_v12, 0.0 }
 0x600   :  { %v5420_v36 = vsel %vm19166_vm9, %v16181_v24, %v5356_v53  ;;  %v5421_v27 = vsel %vm19167_vm14, %v16185_v12, %v5357_v55  ;;  %v5465_v9 = vpack.c.bf16 %v5403_v44, %v5402_v19  ;;  %vm19168_vm10 = vcmp.gt.f32.partialorder %v16189_v47, 0.0  ;;  %v16376_v12 = vld [vmem:[#allocation7] sm:$0xff]  }
 0x601   :  { %v5422_v13 = vsel %vm19168_vm10, %v16189_v47, %v5358_v33  ;;  %v5423_v0 = vsel %vm5295_vm0, %v16193_v32, %v5359_v52  ;;  %v5424_v46 = vsel %vm5296_vm15, %v16201_v20, %v5360_v26  ;;  %v5464_v42 = vpack.c.bf16 %v5401_v28, %v5400_v41  ;;  %12416 = vmatprep.subr.bf16.mxu1 %v16376_v12 }
 0x602   :  { %v5425_v53 = vsel %vm5297_vm3, %v16205_v54, %v5361_v45  ;;  %v5426_v55 = vsel %vm5298_vm4, %v16209_v29, %v5362_v1  ;;  %v5427_v19 = vsel %vm5299_vm1, %v16213_v5, %v5363_v48  ;;  %v16358_v16 = vpack.c.bf16 %v5405_v10, %v5404_v25 }
 0x603   :  { %v16360_v52 = vpack.c.bf16 %v5407_v8, %v5406_v50  ;;  %v16362_v59 = vpack.c.bf16 %v5409_v31, %v5408_v57  ;;  %v16364_v26 = vpack.c.bf16 %v5411_v37, %v5410_v14  ;;  %v16366_v41 = vpack.c.bf16 %v5413_v51, %v5412_v60 }
 0x604   :  { %v16368_v28 = vpack.c.bf16 %v5415_v40, %v5414_v30  ;;  %v16370_v2 = vpack.c.bf16 %v5417_v3, %v5416_v15  ;;  %v16372_v34 = vpack.c.bf16 %v5419_v62, %v5418_v43  ;;  %v5497_v1 = vshrl.u32 %v5465_v9, 16 }
 0x605   :  { %v16374_v7 = vpack.c.bf16 %v5421_v27, %v5420_v36  ;;  %v5500_v48 = vshrl.u32 %v5464_v42, 16  ;;  %v5625_v38 = vshll.u32 %v5465_v9, 16  ;;  %v5629_v24 = vshll.u32 %v5464_v42, 16 }
 0x606   :  { %v16378_v57 = vpack.c.bf16 %v5423_v0, %v5422_v13  ;;  %v16380_v47 = vpack.c.bf16 %v5425_v53, %v5424_v46  ;;  %v5503_v32 = vshrl.u32 %v16358_v16, 16  ;;  %v5633_v4 = vshll.u32 %v16358_v16, 16 }
 0x607   :  { %v16384_v20 = vpack.c.bf16 %v5427_v19, %v5426_v55  ;;  %v5506_v54 = vshrl.u32 %v16360_v52, 16  ;;  %v5509_v29 = vshrl.u32 %v16362_v59, 16  ;;  %v5512_v5 = vshrl.u32 %v16364_v26, 16 }
 0x608   :  { %v5515_v22 = vshrl.u32 %v16366_v41, 16  ;;  %v5518_v21 = vshrl.u32 %v16368_v28, 16  ;;  %v5521_v6 = vshrl.u32 %v16370_v2, 16  ;;  %v5624_v61 = vrot.slane %v5497_v1, 7 }
 0x609   :  { %v5170_v44 = vadd.f32 %v16245_v18, %v15993_v63  ;;  %v5816_v35 = vrot.slane %v5625_v38, 7  ;;  %v5628_v25 = vrot.slane %v5500_v48, 7  ;;  %v5817_v33 = vrot.slane %v5629_v24, 7 }
 0x60a   :  { %v5637_v10 = vshll.u32 %v16360_v52, 16  ;;  %v5627_v45 = vor.u32 %v5625_v38, %v5624_v61  ;;  %v5632_v50 = vrot.slane %v5503_v32, 7  ;;  %v5818_v8 = vrot.slane %v5633_v4, 7 }
 0x60b   :  { %v5171_v31 = vadd.f32 %v5170_v44, %v15997_v56  ;;  %v16399_v37 = vsel %vm14483_vm2, %v5624_v61, %v5816_v35  ;;  %v5631_v60 = vor.u32 %v5629_v24, %v5628_v25  ;;  %v16403_v51 = vsel %vm14483_vm2, %v5628_v25, %v5817_v33  ;;  %v14169_v35 = vld [vmem:[#allocation7 + $0x8] sm:$0xff]  }
 0x60c   :  { %19170 = vst [vmem:[#allocation57_spill] sm:$0xff] %v16399_v37  ;;  %19171 = vst [vmem:[#allocation58_spill] sm:$0xff] %v16403_v51  ;;  %v5641_v18 = vshll.u32 %v16362_v59, 16  ;;  %v16408_v63 = vsel %vm14483_vm2, %v5497_v1, %v5627_v45  ;;  %v5968_v30 = vshll.u32 %v16399_v37, 16  ;;  %v5636_v40 = vrot.slane %v5506_v54, 7 }
 0x60d   :  { %v5645_v56 = vshll.u32 %v16364_v26, 16  ;;  %v5172_v15 = vadd.f32 %v5171_v31, %v16001_v11  ;;  %v5963_v3 = vshll.u32 %v16408_v63, 16  ;;  %v16416_v43 = vsel %vm14483_vm2, %v5500_v48, %v5631_v60 }
 0x60e   :  { %v5961_v62 = vshrl.u32 %v16408_v63, 16  ;;  %v5970_v36 = vrot.slane %v5968_v30, 1  ;;  %v5975_v27 = vshll.u32 %v16416_v43, 16  ;;  %v5980_v9 = vshll.u32 %v16403_v51, 16 }
 0x60f   :  { %v5173_v13 = vadd.f32 %v5172_v15, %v16005_v23  ;;  %v5965_v0 = vrot.slane %v5963_v3, 1  ;;  %v5635_v46 = vor.u32 %v5633_v4, %v5632_v50  ;;  %v16424_v11 = vsel %vm14483_vm2, %v5632_v50, %v5818_v8 }
 0x610   :  { %19172 = vst [vmem:[#allocation67_spill] sm:$0xff] %v16424_v11  ;;  %v5973_v42 = vshrl.u32 %v16416_v43, 16  ;;  %v5977_v53 = vrot.slane %v5975_v27, 1  ;;  %v5639_v55 = vor.u32 %v5637_v10, %v5636_v40  ;;  %v5819_v19 = vrot.slane %v5637_v10, 7 }
 0x611   :  { %v5174_v16 = vadd.f32 %v5173_v13, %v16009_v58  ;;  %v5966_v52 = vor.u32 %v5965_v0, %v5961_v62  ;;  %v16430_v1 = vsel %vm14483_vm2, %v5503_v32, %v5635_v46  ;;  %v5640_v23 = vrot.slane %v5509_v29, 7  ;;  %v19179_v0 = vld [vmem:[#allocation20_spill] sm:$0xff] }
 0x612   :  { %v5978_v48 = vor.u32 %v5977_v53, %v5973_v42  ;;  %v5982_v38 = vrot.slane %v5980_v9, 1  ;;  %v5987_v24 = vshll.u32 %v16430_v1, 16  ;;  %v5992_v4 = vshll.u32 %v16424_v11, 16 }
 0x613   :  { %v5175_v61 = vadd.f32 %v5174_v16, %v16013_v39  ;;  %vm19173_vm3 = vsmask.f32 7424  ;;  %v16442_v58 = vsel %vm14483_vm2, %v5506_v54, %v5639_v55  ;;  %v16446_v32 = vsel %vm14483_vm2, %v5636_v40, %v5819_v19  ;;  %v19183_v19 = vld [vmem:[#allocation34_spill] sm:$0xff] }
 0x614   :  { %v16438_v44 = vsel %vm19173_vm3, %v5966_v52, %v5970_v36  ;;  %19175 = vst [vmem:[#allocation25_spill] sm:$0xff] %v16446_v32  ;;  %vm19176_vm4 = vmmov %vm19173_vm3  ;;  %v5985_v33 = vshrl.u32 %v16430_v1, 16  ;;  %v5989_v39 = vrot.slane %v5987_v24, 1  ;;  %v5999_v10 = vshll.u32 %v16442_v58, 16 }
 0x615   :  { %19174 = vst [vmem:[#allocation13_spill] sm:$0xff] %v16438_v44  ;;  %12352 = vmatprep.mubr.bf16.mxu1 %v16438_v44  ;;  %v16450_v25 = vsel %vm19176_vm4, %v5978_v48, %v5982_v38  ;;  %v5176_v45 = vadd.f32 %v5175_v61, %v16017_v49  ;;  %v5997_v54 = vshrl.u32 %v16442_v58, 16  ;;  %v5643_v50 = vor.u32 %v5641_v18, %v5640_v23  ;;  %vm19181_vm15 = vmmov %vm19173_vm3  ;;  %v14171_v48 = vld [vmem:[#allocation7 + $0x18] sm:$0xff]  }
 0x616   :  { %19177 = vst [vmem:[#allocation47_spill] sm:$0xff] %v16450_v25  ;;  %12353 = vmatmul.mubr.bf16.vlgmr.msra.gmra.mrb[0].mxu1 %v16450_v25  ;;  %v5820_v8 = vrot.slane %v5641_v18, 7  ;;  %v5990_v31 = vor.u32 %v5989_v39, %v5985_v33  ;;  %v6001_v60 = vrot.slane %v5999_v10, 1  ;;  %v6004_v30 = vshll.u32 %v16446_v32, 16  ;;  %vm19186_vm0 = vmmov %vm19173_vm3  ;;  %v19279_v25 = vld [vmem:[#allocation15_spill] sm:$0xff] }
 0x617   :  { %12356 = vmatprep.mubr.bf16.mxu1 %v16438_v44  ;;  %12417 = vmatpush3.bf16.msra.mxu1 %v16376_v12  ;;  %v5644_v40 = vrot.slane %v5512_v5, 7  ;;  %v5524_v15 = vshrl.u32 %v16372_v34, 16  ;;  %v5177_v49 = vadd.f32 %v5176_v45, %v16021_v17  ;;  %v16468_v18 = vsel %vm14483_vm2, %v5509_v29, %v5643_v50  ;;  %v14170_v12 = vld [vmem:[#allocation7 + $0x10] sm:$0xff]   ;;  %vm19196_vm1 = vmmov %vm19186_vm0  ;;  %v19278_v44 = vld [vmem:[#allocation68_spill] sm:$0xff] }
 0x618   :  { %19178 = vst [vmem:[#allocation50_spill] sm:$0xff] %v16468_v18  ;;  %12418 = vmatprep.subr.bf16.mxu1 %v14169_v35  ;;  %v5821_v3 = vrot.slane %v5645_v56, 7  ;;  %v5649_v62 = vshll.u32 %v16366_v41, 16  ;;  %v5994_v36 = vrot.slane %v5992_v4, 1  ;;  %v6002_v27 = vor.u32 %v6001_v60, %v5997_v54  ;;  %vm19198_vm6 = vmmov %vm19186_vm0 }
 0x619   :  { %v6011_v9 = vshll.u32 %v16468_v18, 16  ;;  %v5653_v13 = vshll.u32 %v16368_v28, 16  ;;  %v5178_v46 = vadd.f32 %v5177_v49, %v19179_v0  ;;  %v16476_v17 = vsel %vm14483_vm2, %v5640_v23, %v5820_v8  ;;  %v19189_v8 = vld [vmem:[#allocation40_spill] sm:$0xff]  ;;  %vm19208_vm11 = vmmov %vm19186_vm0 }
 0x61a   :  { %19180 = vst [vmem:[#allocation51_spill] sm:$0xff] %v16476_v17  ;;  %v5647_v59 = vor.u32 %v5645_v56, %v5644_v40  ;;  %v5657_v29 = vshll.u32 %v16370_v2, 16  ;;  %v16480_v42 = vsel %vm19181_vm15, %v5990_v31, %v5994_v36  ;;  %v6006_v53 = vrot.slane %v6004_v30, 1  ;;  %v14172_v49 = vld [vmem:[#allocation7 + $0x20] sm:$0xff]   ;;  %vm19211_vm12 = vmmov %vm19186_vm0 }
 0x61b   :  { %19182 = vst [vmem:[#allocation52_spill] sm:$0xff] %v16480_v42  ;;  %12419 = vmatpush3.bf16.msra.mxu1 %v14169_v35  ;;  %v5648_v55 = vrot.slane %v5515_v22, 7  ;;  %v5179_v16 = vadd.f32 %v5178_v46, %v19183_v19  ;;  %v6009_v52 = vshrl.u32 %v16468_v18, 16  ;;  %v16494_v56 = vsel %vm14483_vm2, %v5644_v40, %v5821_v3  ;;  %v19188_v35 = vld [vmem:[#allocation35_spill] sm:$0xff]  ;;  %vm19225_vm13 = vmmov %vm19186_vm0 }
 0x61c   :  { %v16490_v23 = vsel %vm14483_vm2, %v5512_v5, %v5647_v59  ;;  %19185 = vst [vmem:[#allocation59_spill] sm:$0xff] %v16494_v56  ;;  %12420 = vmatprep.subr.bf16.mxu1 %v14170_v12  ;;  %v16497_v38 = vsel %vm19186_vm0, %v6002_v27, %v6006_v53  ;;  %v6013_v24 = vrot.slane %v6011_v9, 1  ;;  %v6016_v4 = vshll.u32 %v16476_v17, 16  ;;  %v19191_v27 = vld [vmem:[#allocation43_spill] sm:$0xff]  ;;  %vm19227_vm7 = vmmov %vm19186_vm0 }
 0x61d   :  { %19184 = vst [vmem:[#allocation55_spill] sm:$0xff] %v16490_v23  ;;  %19187 = vst [vmem:[#allocation62_spill] sm:$0xff] %v16497_v38  ;;  %v6023_v61 = vshll.u32 %v16490_v23, 16  ;;  %v5180_v26 = vadd.f32 %v5179_v16, %v19188_v35  ;;  %v5651_v5 = vor.u32 %v5649_v62, %v5648_v55  ;;  %v5822_v33 = vrot.slane %v5649_v62, 7  ;;  %v19194_v16 = vld [vmem:[#allocation44_spill] sm:$0xff] }
 0x61e   :  { %12357 = vmatmul.mubr.bf16.gmra.mrb[4].mxu1 %v16480_v42  ;;  %v5652_v39 = vrot.slane %v5518_v21, 7  ;;  %v6021_v10 = vshrl.u32 %v16490_v23, 16  ;;  %v6028_v54 = vshll.u32 %v16494_v56, 16  ;;  %v5823_v50 = vrot.slane %v5653_v13, 7  ;;  %v19200_v35 = vld [vmem:[#allocation72_spill] sm:$0xff]  ;;  %vm19240_vm9 = vmmov %vm19186_vm0  ;;  %v19277_v42 = vld [vmem:[#allocation66_spill] sm:$0xff] }
 0x61f   :  { %12360 = vmatprep.mubr.bf16.mxu1 %v16497_v38  ;;  %v6025_v45 = vrot.slane %v6023_v61, 1  ;;  %12421 = vmatpush3.bf16.msra.mxu1 %v14170_v12  ;;  %v5181_v31 = vadd.f32 %v5180_v26, %v19189_v8  ;;  %v16513_v60 = vsel %vm14483_vm2, %v5515_v22, %v5651_v5  ;;  %v5656_v40 = vrot.slane %v5521_v6, 7  ;;  %v19202_v8 = vld [vmem:[#allocation73_spill] sm:$0xff]  ;;  %vm19243_vm14 = vmmov %vm19186_vm0  ;;  %v19276_v38 = vld [vmem:[#allocation63_spill] sm:$0xff] }
 0x620   :  { %19190 = vst [vmem:[#allocation64_spill] sm:$0xff] %v16513_v60  ;;  %v5655_v30 = vor.u32 %v5653_v13, %v5652_v39  ;;  %12422 = vmatprep.subr.bf16.mxu1 %v14171_v48  ;;  %v5527_v3 = vshrl.u32 %v16374_v7, 16  ;;  %v6014_v62 = vor.u32 %v6013_v24, %v6009_v52  ;;  %v6035_v12 = vshll.u32 %v16513_v60, 16  ;;  %v14173_v52 = vld [vmem:[#allocation7 + $0x28] sm:$0xff]   ;;  %vm19248_vm10 = vmmov %vm19186_vm0 }
 0x621   :  { %v6026_v36 = vor.u32 %v6025_v45, %v6021_v10  ;;  %v5182_v9 = vadd.f32 %v5181_v31, %v19191_v27  ;;  %v16522_v41 = vsel %vm14483_vm2, %v5648_v55, %v5822_v33  ;;  %v5659_v13 = vor.u32 %v5657_v29, %v5656_v40  ;;  %vm19250_vm3 = vmmov %vm19186_vm0 }
 0x622   :  { %19192 = vst [vmem:[#allocation65_spill] sm:$0xff] %v16522_v41  ;;  %v16528_v22 = vsel %vm14483_vm2, %v5518_v21, %v5655_v30  ;;  %v5530_v0 = vshrl.u32 %v16378_v57, 16  ;;  %v6018_v46 = vrot.slane %v6016_v4, 1  ;;  %v6030_v59 = vrot.slane %v6028_v54, 1  ;;  %vm19254_vm4 = vmmov %vm19186_vm0 }
 0x623   :  { %19193 = vst [vmem:[#allocation18_spill] sm:$0xff] %v16528_v22  ;;  %v6047_v53 = vshll.u32 %v16528_v22, 16  ;;  %12423 = vmatpush3.bf16.msra.mxu1 %v14171_v48  ;;  %v5661_v19 = vshll.u32 %v16372_v34, 16  ;;  %v5665_v55 = vshll.u32 %v16374_v7, 16  ;;  %v5183_v28 = vadd.f32 %v5182_v9, %v19194_v16 }
 0x624   :  { %v16539_v21 = vsel %vm14483_vm2, %v5652_v39, %v5823_v50  ;;  %12424 = vmatprep.subr.bf16.mxu1 %v14172_v49  ;;  %v16542_v24 = vsel %vm19196_vm1, %v6014_v62, %v6018_v46  ;;  %v16545_v4 = vsel %vm19198_vm6, %v6026_v36, %v6030_v59  ;;  %v6037_v61 = vrot.slane %v6035_v12, 1 }
 0x625   :  { %19195 = vst [vmem:[#allocation45_spill] sm:$0xff] %v16539_v21  ;;  %19197 = vst [vmem:[#allocation12_spill] sm:$0xff] %v16542_v24  ;;  %v6040_v48 = vshll.u32 %v16522_v41, 16  ;;  %v5184_v26 = vadd.f32 %v5183_v28, %v19200_v35  ;;  %v6049_v5 = vrot.slane %v6047_v53, 1  ;;  %v16554_v33 = vsel %vm14483_vm2, %v5521_v6, %v5659_v13  ;;  %v19203_v13 = vld [vmem:[#allocation74_spill] sm:$0xff]  ;;  %v19205_v28 = vld [vmem:[#allocation75_spill] sm:$0xff] }
 0x626   :  { %19199 = vst [vmem:[#allocation20_spill] sm:$0xff] %v16545_v4  ;;  %12361 = vmatmul.mubr.bf16.gmra.mrb[8].mxu1 %v16542_v24  ;;  %19201 = vst [vmem:[#allocation34_spill] sm:$0xff] %v16554_v33  ;;  %v5660_v39 = vrot.slane %v5524_v15, 7  ;;  %v6033_v10 = vshrl.u32 %v16513_v60, 16  ;;  %v6045_v45 = vshrl.u32 %v16528_v22, 16  ;;  %v6052_v54 = vshll.u32 %v16539_v21, 16 }
 0x627   :  { %12364 = vmatprep.mubr.bf16.mxu1 %v16545_v4  ;;  %v5824_v50 = vrot.slane %v5657_v29, 7  ;;  %12425 = vmatpush3.bf16.msra.mxu1 %v14172_v49  ;;  %v5185_v31 = vadd.f32 %v5184_v26, %v19202_v8  ;;  %v5825_v6 = vrot.slane %v5661_v19, 7  ;;  %v5664_v62 = vrot.slane %v5527_v3, 7  ;;  %v19274_v4 = vld [vmem:[#allocation60_spill] sm:$0xff]  ;;  %v19275_v24 = vld [vmem:[#allocation61_spill] sm:$0xff] }
 0x628   :  { %v5663_v30 = vor.u32 %v5661_v19, %v5660_v39  ;;  %12426 = vmatprep.subr.bf16.mxu1 %v14173_v52  ;;  %v5533_v36 = vshrl.u32 %v16380_v47, 16  ;;  %v18714_v12 = vshrl.u32 %v16384_v20, 16  ;;  %v6038_v27 = vor.u32 %v6037_v61, %v6033_v10  ;;  %v19210_v10 = vld [vmem:[#allocation76_spill] sm:$0xff] }
 0x629   :  { %v6059_v9 = vshll.u32 %v16554_v33, 16  ;;  %v5186_v46 = vadd.f32 %v5185_v31, %v19203_v13  ;;  %v6050_v2 = vor.u32 %v6049_v5, %v6045_v45  ;;  %v5667_v49 = vor.u32 %v5665_v55, %v5664_v62 }
 0x62a   :  { %v16575_v29 = vsel %vm14483_vm2, %v5524_v15, %v5663_v30  ;;  %v5669_v59 = vshll.u32 %v16378_v57, 16  ;;  %v6042_v53 = vrot.slane %v6040_v48, 1  ;;  %v6054_v19 = vrot.slane %v6052_v54, 1 }
 0x62b   :  { %19204 = vst [vmem:[#allocation35_spill] sm:$0xff] %v16575_v29  ;;  %v6071_v16 = vshll.u32 %v16575_v29, 16  ;;  %12427 = vmatpush3.bf16.msra.mxu1 %v14173_v52  ;;  %v5187_v61 = vadd.f32 %v5186_v46, %v19205_v28  ;;  %v16582_v35 = vsel %vm14483_vm2, %v5656_v40, %v5824_v50  ;;  %v16586_v34 = vsel %vm14483_vm2, %v5660_v39, %v5825_v6  ;;  %v19218_v28 = vld [vmem:[#allocation78_spill] sm:$0xff] }
 0x62c   :  { %19206 = vst [vmem:[#allocation40_spill] sm:$0xff] %v16582_v35  ;;  %19207 = vst [vmem:[#allocation43_spill] sm:$0xff] %v16586_v34  ;;  %v5668_v15 = vrot.slane %v5530_v0, 7  ;;  %v16591_v26 = vsel %vm19208_vm11, %v6038_v27, %v6042_v53  ;;  %v6057_v48 = vshrl.u32 %v16554_v33, 16  ;;  %v6061_v5 = vrot.slane %v6059_v9, 1  ;;  %v19214_v27 = vld [vmem:[#allocation77_spill] sm:$0xff] }
 0x62d   :  { %19209 = vst [vmem:[#allocation44_spill] sm:$0xff] %v16591_v26  ;;  %v6073_v52 = vrot.slane %v6071_v16, 1  ;;  %v5188_v45 = vadd.f32 %v5187_v61, %v19210_v10  ;;  %v16597_v40 = vsel %vm19211_vm12, %v6050_v2, %v6054_v19  ;;  %v16603_v39 = vsel %vm14483_vm2, %v5527_v3, %v5667_v49  ;;  %v19216_v53 = vld [vmem:[#allocation48_spill] sm:$0xff]  ;;  %v19217_v19 = vld [vmem:[#allocation71_spill] sm:$0xff] }
 0x62e   :  { %12365 = vmatmul.mubr.bf16.gmra.mrb[12].mxu1 %v16591_v26  ;;  %19212 = vst [vmem:[#allocation72_spill] sm:$0xff] %v16597_v40  ;;  %19213 = vst [vmem:[#allocation73_spill] sm:$0xff] %v16603_v39  ;;  %v5671_v54 = vor.u32 %v5669_v59, %v5668_v15  ;;  %v6064_v50 = vshll.u32 %v16582_v35, 16  ;;  %v6069_v8 = vshrl.u32 %v16575_v29, 16  ;;  %v6076_v31 = vshll.u32 %v16586_v34, 16  ;;  %v19285_v35 = vld [vmem:[#allocation29_spill] sm:$0xff] }
 0x62f   :  { %12368 = vmatprep.mubr.bf16.mxu1 %v16597_v40  ;;  %v5672_v30 = vrot.slane %v5533_v36, 7  ;;  %v5673_v6 = vshll.u32 %v16380_v47, 16  ;;  %v5189_v9 = vadd.f32 %v5188_v45, %v19214_v27  ;;  %v5826_v13 = vrot.slane %v5665_v55, 7  ;;  %v14174_v55 = vld [vmem:[#allocation7 + $0x30] sm:$0xff]   ;;  %v19408_v14 = vld [vmem:[#allocation12_spill] sm:$0xff] }
 0x630   :  { %v16615_v7 = vsel %vm14483_vm2, %v5530_v0, %v5671_v54  ;;  %v6062_v3 = vor.u32 %v6061_v5, %v6057_v48  ;;  %v6074_v46 = vor.u32 %v6073_v52, %v6069_v8  ;;  %v6083_v2 = vshll.u32 %v16603_v39, 16  ;;  %v19219_v45 = vld [vmem:[#allocation46_spill] sm:$0xff]  ;;  %v19220_v5 = vld [vmem:[#allocation53_spill] sm:$0xff]  ;;  %v19221_v52 = vld [vmem:[#allocation80_spill] sm:$0xff]  ;;  %12428 = vmatprep.subr.bf16.mxu1 %v14174_v55 }
 0x631   :  { %19215 = vst [vmem:[#allocation74_spill] sm:$0xff] %v16615_v7  ;;  %v5827_v49 = vrot.slane %v5669_v59, 7  ;;  %v5238_v16 = vmul.f32 %v19217_v19, %v19216_v53  ;;  %v5190_v61 = vadd.f32 %v5189_v9, %v19218_v28  ;;  %v6095_v47 = vshll.u32 %v16615_v7, 16  ;;  %v19223_v53 = vld [vmem:[#allocation79_spill] sm:$0xff]  ;;  %12429 = vmatpush3.bf16.msra.mxu1 %v14174_v55 }
 0x632   :  { %v5675_v10 = vor.u32 %v5673_v6, %v5672_v30  ;;  %v5239_v57 = vmul.f32 %v19217_v19, %v19219_v45  ;;  %v6066_v27 = vrot.slane %v6064_v50, 1  ;;  %v6078_v0 = vrot.slane %v6076_v31, 1 }
 0x633   :  { %v5676_v48 = vrot.slane %v18714_v12, 7  ;;  %v19222_v59 = vshll.u32 %v19221_v52, 16  ;;  %v5677_v8 = vshll.u32 %v16384_v20, 16  ;;  %v5191_v9 = vadd.f32 %v5190_v61, %v19223_v53 }
 0x634   :  { %v16633_v28 = vsel %vm14483_vm2, %v5664_v62, %v5826_v13  ;;  %v16636_v19 = vsel %vm19225_vm13, %v6062_v3, %v6066_v27  ;;  %v16639_v50 = vsel %vm19227_vm7, %v6074_v46, %v6078_v0  ;;  %v6085_v31 = vrot.slane %v6083_v2, 1  ;;  %v19232_v2 = vld [vmem:[#allocation82_spill] sm:$0xff] }
 0x635   :  { %v5683_v54 = vor.u32 %v19222_v59, %v19220_v5  ;;  %19224 = vst [vmem:[#allocation75_spill] sm:$0xff] %v16633_v28  ;;  %19226 = vst [vmem:[#allocation76_spill] sm:$0xff] %v16636_v19  ;;  %v16643_v45 = vsel %vm14483_vm2, %v5668_v15, %v5827_v49  ;;  %v19230_v59 = vld [vmem:[#allocation81_spill] sm:$0xff]  ;;  %v6097_v61 = vrot.slane %v6095_v47, 1  ;;  %v16649_v62 = vsel %vm14483_vm2, %v5533_v36, %v5675_v10 }
 0x636   :  { %19228 = vst [vmem:[#allocation77_spill] sm:$0xff] %v16639_v50  ;;  %19229 = vst [vmem:[#allocation48_spill] sm:$0xff] %v16643_v45  ;;  %v5192_v12 = vadd.f32 %v5191_v9, %v19230_v59  ;;  %12369 = vmatmul.mubr.bf16.gmra.mrb[16].mxu1 %v16636_v19  ;;  %v5679_v13 = vor.u32 %v5677_v8, %v5676_v48  ;;  %vm5302_vm5 = vcmp.gt.f32.partialorder %v5238_v16, 0.0  ;;  %v6081_v3 = vshrl.u32 %v16603_v39, 16 }
 0x637   :  { %19231 = vst [vmem:[#allocation71_spill] sm:$0xff] %v16649_v62  ;;  %12372 = vmatprep.mubr.bf16.mxu1 %v16639_v50  ;;  %v6088_v46 = vshll.u32 %v16633_v28, 16  ;;  %v5828_v15 = vrot.slane %v5673_v6, 7  ;;  %v6093_v55 = vshrl.u32 %v16615_v7, 16  ;;  %v6100_v27 = vshll.u32 %v16643_v45, 16  ;;  %v19235_v50 = vld [vmem:[#allocation83_spill] sm:$0xff] }
 0x638   :  { %v5193_v49 = vadd.f32 %v5192_v12, %v19232_v2  ;;  %v19233_v47 = vshrl.u32 %v16384_v20, 16  ;;  %v5366_v10 = vmul.f32 0.01, %v5238_v16  ;;  %v6086_v0 = vor.u32 %v6085_v31, %v6081_v3 }
 0x639   :  { %v6107_v53 = vshll.u32 %v16649_v62, 16  ;;  %v5829_v9 = vrot.slane %v5677_v8, 7  ;;  %v5367_v59 = vmul.f32 0.01, %v5239_v57  ;;  %v6098_v19 = vor.u32 %v6097_v61, %v6093_v55 }
 0x63a   :  { %v16661_v36 = vsel %vm14483_vm2, %v19233_v47, %v5679_v13  ;;  %v5194_v6 = vadd.f32 %v5193_v49, %v19235_v50  ;;  %vm5303_vm8 = vcmp.gt.f32.partialorder %v5239_v57, 0.0  ;;  %v6090_v2 = vrot.slane %v6088_v46, 1  ;;  %v19238_v13 = vld [vmem:[#allocation49_spill] sm:$0xff] }
 0x63b   :  { %19234 = vst [vmem:[#allocation78_spill] sm:$0xff] %v16661_v36  ;;  %v6119_v12 = vshll.u32 %v16661_v36, 16  ;;  %v19236_v40 = vshrl.u32 %v19221_v52, 16  ;;  %v6102_v31 = vrot.slane %v6100_v27, 1  ;;  %v16675_v8 = vsel %vm14483_vm2, %v5672_v30, %v5828_v15 }
 0x63c   :  { %v5195_v47 = vadd.f32 %v5194_v6, %v19238_v13  ;;  %19239 = vst [vmem:[#allocation53_spill] sm:$0xff] %v16675_v8  ;;  %v5430_v50 = vsel %vm5302_vm5, %v5238_v16, %v5366_v10  ;;  %v16679_v61 = vsel %vm19240_vm9, %v6086_v0, %v6090_v2  ;;  %v6109_v3 = vrot.slane %v6107_v53, 1  ;;  %v14175_v6 = vld [vmem:[#allocation7 + $0x38] sm:$0xff]  }
 0x63d   :  { %v16670_v20 = vsel %vm14483_vm2, %v19236_v40, %v5683_v54  ;;  %19241 = vst [vmem:[#allocation80_spill] sm:$0xff] %v16679_v61  ;;  %v16683_v46 = vsel %vm14483_vm2, %v5676_v48, %v5829_v9  ;;  %v5431_v49 = vsel %vm5303_vm8, %v5239_v57, %v5367_v59  ;;  %v16687_v54 = vsel %vm19243_vm14, %v6098_v19, %v6102_v31 }
 0x63e   :  { %19237 = vst [vmem:[#allocation46_spill] sm:$0xff] %v16670_v20  ;;  %19242 = vst [vmem:[#allocation79_spill] sm:$0xff] %v16683_v46  ;;  %v5196_v40 = vrot.slane %v5195_v47, 4  ;;  %12373 = vmatmul.mubr.bf16.gmra.mrb[20].mxu1 %v16679_v61  ;;  %v6121_v55 = vrot.slane %v6119_v12, 1  ;;  %v6105_v30 = vshrl.u32 %v16649_v62, 16  ;;  %v6112_v16 = vshll.u32 %v16675_v8, 16  ;;  %12430 = vmatprep.subr.bf16.mxu1 %v14175_v6 }
 0x63f   :  { %19244 = vst [vmem:[#allocation81_spill] sm:$0xff] %v16687_v54  ;;  %12376 = vmatprep.mubr.bf16.mxu1 %v16687_v54  ;;  %v6117_v27 = vshrl.u32 %v16661_v36, 16  ;;  %v6124_v48 = vshll.u32 %v16683_v46, 16  ;;  %v19245_v57 = vshll.u32 %v19221_v52, 16  ;;  %v16696_v0 = vpack.c.bf16 %v5431_v49, %v5430_v50  ;;  %12431 = vmatpush3.bf16.msra.mxu1 %v14175_v6  ;;  %v19256_v6 = vld [vmem:[#allocation32_spill] sm:$0xff]  ;;  %v19268_v54 = vld [vmem:[#allocation30_spill] sm:$0xff] }
 0x640   :  { %v5197_v15 = vadd.f32 %v5196_v40, %v5195_v47  ;;  %v6110_v53 = vor.u32 %v6109_v3, %v6105_v30  ;;  %v6131_v19 = vshll.u32 %v16670_v20, 16  ;;  %v6114_v12 = vrot.slane %v6112_v16, 1  ;;  %v19284_v8 = vld [vmem:[#allocation28_spill] sm:$0xff] }
 0x641   :  { %v5830_v10 = vrot.slane %v19245_v57, 7  ;;  %19246 = vst [vmem:[#allocation82_spill] sm:$0xff] %v16696_v0  ;;  %v6122_v59 = vor.u32 %v6121_v55, %v6117_v27  ;;  %v6126_v13 = vrot.slane %v6124_v48, 1  ;;  %v18722_v52 = vshll.u32 %v16696_v0, 16 }
 0x642   :  { %v5198_v9 = vrot.slane %v5197_v15, 2  ;;  %v16706_v31 = vsel %vm19248_vm10, %v6110_v53, %v6114_v12  ;;  %v6133_v50 = vrot.slane %v6131_v19, 1  ;;  %v6129_v40 = vshrl.u32 %v16670_v20, 16  ;;  %v16731_v19 = vld [vmem:[#allocation7 + $0x80] sm:$0xff]  }
 0x643   :  { %v16702_v47 = vsel %vm14483_vm2, %v19220_v5, %v5830_v10  ;;  %19249 = vst [vmem:[#allocation49_spill] sm:$0xff] %v16706_v31  ;;  %v16710_v3 = vsel %vm19250_vm3, %v6122_v59, %v6126_v13  ;;  %v18721_v55 = vshrl.u32 %v16696_v0, 16  ;;  %v5831_v16 = vrot.slane %v18722_v52, 7  ;;  %12496 = vmatprep.subr.bf16.mxu1 %v16731_v19  ;;  %v19264_v52 = vld [vmem:[#allocation17_spill] sm:$0xff] }
 0x644   :  { %v5199_v2 = vadd.f32 %v5198_v9, %v5197_v15  ;;  %19247 = vst [vmem:[#allocation83_spill] sm:$0xff] %v16702_v47  ;;  %19251 = vst [vmem:[#allocation84_spill] sm:$0xff] %v16710_v3  ;;  %v6136_v5 = vshll.u32 %v16702_v47, 16  ;;  %v6134_v30 = vor.u32 %v6133_v50, %v6129_v40  ;;  %v19258_v40 = vld [vmem:[#allocation41_spill] sm:$0xff]  ;;  %v19282_v47 = vld [vmem:[#allocation24_spill] sm:$0xff] }
 0x645   :  { %v16720_v15 = vrot.slane %v18721_v55, 7  ;;  %v19263_v55 = vld [vmem:[#allocation16_spill] sm:$0xff]  ;;  %v19280_v0 = vld [vmem:[#allocation21_spill] sm:$0xff] }
 0x646   :  { %12377 = vmatmul.mubr.bf16.gmra.mrb[24].mxu1 %v16706_v31  ;;  %v5200_v49 = vrot.slane %v5199_v2, 1  ;;  %v6138_v48 = vrot.slane %v6136_v5, 1 }
 0x647   :  { %12380 = vmatprep.mubr.bf16.mxu1 %v16710_v3  ;;  %19252 = vst [vmem:[#allocation85_spill] sm:$0xff] %v16720_v15  ;;  %v16725_v57 = vsel %vm14483_vm2, %v16720_v15, %v5831_v16  ;;  %v19281_v15 = vld [vmem:[#allocation22_spill] sm:$0xff] }
 0x648   :  { %v5201_v27 = vadd.f32 %v5200_v49, %v5199_v2  ;;  %19253 = vst [vmem:[#allocation86_spill] sm:$0xff] %v16725_v57  ;;  %v16728_v10 = vsel %vm19254_vm4, %v6134_v30, %v6138_v48  ;;  %v19257_v2 = vld [vmem:[#allocation33_spill] sm:$0xff]  ;;  %v19259_v30 = vld [vmem:[#allocation42_spill] sm:$0xff] }
 0x649   :  { %19255 = vst [vmem:[#allocation87_spill] sm:$0xff] %v16728_v10 }
 0x64a   :  { %v5203_v53 = vmul.f32 0.00390625, %v5201_v27  ;;  %v19260_v27 = vld [vmem:[#allocation69_spill] sm:$0xff] }
 0x64c   :  { %v5205_v9 = vadd.f32 1e-05, %v5203_v53  ;;  %v19261_v53 = vld [vmem:[#allocation70_spill] sm:$0xff] }
 0x64e   :  { %12381 = vmatmul.mubr.bf16.gmra.mrb[28].mxu1 %v16728_v10  ;;  %14234 = vrsqrt.f32 %v5205_v9 }
 0x658   :  { %v16734_v59 = vpop.eup %14234 }
 0x659   :  { %v5268_v12 = vmul.f32 %v16734_v59, %v19256_v6  ;;  %v5269_v13 = vmul.f32 %v16734_v59, %v19257_v2  ;;  %v16742_v5 = vmul.f32 %v16734_v59, %v19258_v40  ;;  %v16746_v16 = vmul.f32 %v16734_v59, %v19259_v30  ;;  %v19262_v6 = vld [vmem:[#allocation14_spill] sm:$0xff] }
 0x65a   :  { %v16750_v48 = vmul.f32 %v16734_v59, %v19260_v27  ;;  %v16754_v9 = vmul.f32 %v16734_v59, %v19261_v53  ;;  %v16758_v2 = vmul.f32 %v16734_v59, %v19262_v6  ;;  %v16762_v40 = vmul.f32 %v16734_v59, %v19263_v55  ;;  %v19265_v27 = vld [vmem:[#allocation19_spill] sm:$0xff] }
 0x65b   :  { %v5396_v50 = vmul.f32 0.01, %v5268_v12  ;;  %vm5332_vm15 = vcmp.gt.f32.partialorder %v5268_v12, 0.0  ;;  %v5397_v49 = vmul.f32 0.01, %v5269_v13  ;;  %vm5333_vm0 = vcmp.gt.f32.partialorder %v5269_v13, 0.0 }
 0x65c   :  { %v16766_v30 = vmul.f32 %v16734_v59, %v19264_v52  ;;  %v16772_v10 = vmul.f32 %v16734_v59, %v19265_v27  ;;  %v19266_v53 = vld [vmem:[#allocation23_spill] sm:$0xff]  ;;  %v16786_v52 = vmul.f32 %v16734_v59, %v19268_v54  ;;  %v19270_v27 = vld [vmem:[#allocation37_spill] sm:$0xff]  ;;  %vm5304_vm1 = vcmp.gt.f32.partialorder %v16742_v5, 0.0 }
 0x65d   :  { %v16768_v57 = vsel %vm5332_vm15, %v5268_v12, %v5396_v50  ;;  %v16776_v3 = vmul.f32 %v16734_v59, %v19266_v53  ;;  %v19267_v6 = vld [vmem:[#allocation27_spill] sm:$0xff]  ;;  %v16782_v55 = vsel %vm5333_vm0, %v5269_v13, %v5397_v49  ;;  %v16794_v61 = vmul.f32 %v16734_v59, %v19270_v27  ;;  %v19271_v53 = vld [vmem:[#allocation38_spill] sm:$0xff]  ;;  %v19273_v49 = vld [vmem:[#allocation56_spill] sm:$0xff] }
 0x65e   :  { %v16780_v31 = vmul.f32 %v16734_v59, %v19267_v6  ;;  %v19269_v12 = vld [vmem:[#allocation31_spill] sm:$0xff]  ;;  %v16798_v26 = vmul.f32 %v16734_v59, %v19271_v53  ;;  %v19272_v6 = vld [vmem:[#allocation54_spill] sm:$0xff]  ;;  %v16806_v54 = vmul.f32 %v16734_v59, %v19273_v49  ;;  %v16814_v27 = vmul.f32 %v16734_v59, %v19275_v24 }
 0x65f   :  { %v16790_v50 = vmul.f32 %v16734_v59, %v19269_v12  ;;  %v16802_v13 = vmul.f32 %v16734_v59, %v19272_v6  ;;  %v16810_v12 = vmul.f32 %v16734_v59, %v19274_v4  ;;  %v16818_v53 = vmul.f32 %v16734_v59, %v19276_v38 }
 0x660   :  { %v16822_v6 = vmul.f32 %v16734_v59, %v19277_v42  ;;  %v16826_v49 = vmul.f32 %v16734_v59, %v19278_v44  ;;  %v16830_v4 = vmul.f32 %v16734_v59, %v19279_v25  ;;  %v16834_v24 = vmul.f32 %v16734_v59, %v19280_v0  ;;  %v19283_v25 = vld [vmem:[#allocation26_spill] sm:$0xff] }
 0x661   :  { %v16838_v38 = vmul.f32 %v16734_v59, %v19281_v15  ;;  %v16842_v42 = vmul.f32 %v16734_v59, %v19282_v47  ;;  %vm5305_vm6 = vcmp.gt.f32.partialorder %v16746_v16, 0.0  ;;  %vm5306_vm11 = vcmp.gt.f32.partialorder %v16750_v48, 0.0 }
 0x662   :  { %vm5307_vm12 = vcmp.gt.f32.partialorder %v16754_v9, 0.0  ;;  %vm5308_vm13 = vcmp.gt.f32.partialorder %v16758_v2, 0.0  ;;  %vm5309_vm7 = vcmp.gt.f32.partialorder %v16762_v40, 0.0  ;;  %vm5310_vm5 = vcmp.gt.f32.partialorder %v16766_v30, 0.0 }
 0x663   :  { %vm5311_vm8 = vcmp.gt.f32.partialorder %v16772_v10, 0.0  ;;  %vm5312_vm9 = vcmp.gt.f32.partialorder %v16776_v3, 0.0  ;;  %vm5313_vm14 = vcmp.gt.f32.partialorder %v16780_v31, 0.0  ;;  %v5368_v44 = vmul.f32 0.01, %v16742_v5 }
 0x664   :  { %v16858_v0 = vmul.f32 %v16734_v59, %v19283_v25  ;;  %v5369_v47 = vmul.f32 0.01, %v16746_v16  ;;  %v5370_v15 = vmul.f32 0.01, %v16750_v48  ;;  %v5371_v46 = vmul.f32 0.01, %v16754_v9 }
 0x665   :  { %v16868_v45 = vmul.f32 %v16734_v59, %v19284_v8  ;;  %v5372_v25 = vmul.f32 0.01, %v16758_v2  ;;  %v5373_v28 = vmul.f32 0.01, %v16762_v40  ;;  %v5374_v34 = vmul.f32 0.01, %v16766_v30 }
 0x666   :  { %v16878_v21 = vmul.f32 %v16734_v59, %v19285_v35  ;;  %vm5321_vm15 = vcmp.gt.f32.partialorder %v16814_v27, 0.0  ;;  %vm5322_vm4 = vcmp.gt.f32.partialorder %v16818_v53, 0.0  ;;  %v5375_v8 = vmul.f32 0.01, %v16772_v10 }
 0x667   :  { %v5376_v41 = vmul.f32 0.01, %v16776_v3  ;;  %v5377_v56 = vmul.f32 0.01, %v16780_v31  ;;  %v5378_v17 = vmul.f32 0.01, %v16786_v52  ;;  %v5432_v11 = vsel %vm5304_vm1, %v16742_v5, %v5368_v44 }
 0x668   :  { %v5379_v35 = vmul.f32 0.01, %v16790_v50  ;;  %v5380_v32 = vmul.f32 0.01, %v16794_v61  ;;  %vm5326_vm10 = vcmp.gt.f32.partialorder %v16834_v24, 0.0  ;;  %vm5327_vm0 = vcmp.gt.f32.partialorder %v16838_v38, 0.0 }
 0x669   :  { %v5381_v51 = vmul.f32 0.01, %v16798_v26  ;;  %v5382_v37 = vmul.f32 0.01, %v16802_v13  ;;  %v5434_v20 = vsel %vm5306_vm11, %v16750_v48, %v5370_v15  ;;  %v5435_v36 = vsel %vm5307_vm12, %v16754_v9, %v5371_v46 }
 0x66a   :  { %vm5328_vm3 = vcmp.gt.f32.partialorder %v16842_v42, 0.0  ;;  %vm5329_vm1 = vcmp.gt.f32.partialorder %v16858_v0, 0.0  ;;  %v5383_v5 = vmul.f32 0.01, %v16806_v54  ;;  %v5384_v44 = vmul.f32 0.01, %v16810_v12 }
 0x66b   :  { %v5385_v62 = vmul.f32 0.01, %v16814_v27  ;;  %v5433_v7 = vsel %vm5305_vm6, %v16746_v16, %v5369_v47  ;;  %vm5330_vm11 = vcmp.gt.f32.partialorder %v16868_v45, 0.0  ;;  %v5386_v48 = vmul.f32 0.01, %v16818_v53 }
 0x66c   :  { %v5387_v46 = vmul.f32 0.01, %v16822_v6  ;;  %v5388_v9 = vmul.f32 0.01, %v16826_v49  ;;  %v5436_v15 = vsel %vm5308_vm13, %v16758_v2, %v5372_v25  ;;  %v5389_v39 = vmul.f32 0.01, %v16830_v4 }
 0x66d   :  { %v5390_v29 = vmul.f32 0.01, %v16834_v24  ;;  %v5437_v16 = vsel %vm5309_vm7, %v16762_v40, %v5373_v28  ;;  %v5481_v47 = vpack.c.bf16 %v5435_v36, %v5434_v20  ;;  %v5391_v33 = vmul.f32 0.01, %v16838_v38 }
 0x66e   :  { %v5392_v22 = vmul.f32 0.01, %v16842_v42  ;;  %v5393_v60 = vmul.f32 0.01, %v16858_v0  ;;  %v5438_v23 = vsel %vm5310_vm5, %v16766_v30, %v5374_v34  ;;  %v5394_v2 = vmul.f32 0.01, %v16868_v45 }
 0x66f   :  { %v16932_v25 = vmul.f32 0.01, %v16878_v21  ;;  %v5439_v28 = vsel %vm5311_vm8, %v16772_v10, %v5375_v8  ;;  %v5440_v36 = vsel %vm5312_vm9, %v16776_v3, %v5376_v41  ;;  %v5441_v20 = vsel %vm5313_vm14, %v16780_v31, %v5377_v56 }
 0x670   :  { %vm19286_vm6 = vcmp.gt.f32.partialorder %v16786_v52, 0.0  ;;  %v5480_v40 = vpack.c.bf16 %v5433_v7, %v5432_v11  ;;  %v5545_v30 = vshrl.u32 %v5481_v47, 16  ;;  %vm19287_vm12 = vcmp.gt.f32.partialorder %v16790_v50, 0.0 }
 0x671   :  { %v5442_v34 = vsel %vm19286_vm6, %v16786_v52, %v5378_v17  ;;  %v5443_v18 = vsel %vm19287_vm12, %v16790_v50, %v5379_v35  ;;  %vm19288_vm13 = vcmp.gt.f32.partialorder %v16794_v61, 0.0  ;;  %vm19289_vm7 = vcmp.gt.f32.partialorder %v16798_v26, 0.0 }
 0x672   :  { %v5444_v10 = vsel %vm19288_vm13, %v16794_v61, %v5380_v32  ;;  %v5445_v41 = vsel %vm19289_vm7, %v16798_v26, %v5381_v51  ;;  %v5482_v3 = vpack.c.bf16 %v5437_v16, %v5436_v15  ;;  %vm19290_vm5 = vcmp.gt.f32.partialorder %v16802_v13, 0.0 }
 0x673   :  { %v5446_v56 = vsel %vm19290_vm5, %v16802_v13, %v5382_v37  ;;  %vm19291_vm8 = vcmp.gt.f32.partialorder %v16806_v54, 0.0  ;;  %vm19292_vm9 = vcmp.gt.f32.partialorder %v16810_v12, 0.0  ;;  %v5483_v7 = vpack.c.bf16 %v5439_v28, %v5438_v23 }
 0x674   :  { %v5447_v11 = vsel %vm19291_vm8, %v16806_v54, %v5383_v5  ;;  %v16964_v17 = vsel %vm19292_vm9, %v16810_v12, %v5384_v44  ;;  %v16969_v32 = vsel %vm5321_vm15, %v16814_v27, %v5385_v62  ;;  %v16974_v51 = vsel %vm5322_vm4, %v16818_v53, %v5386_v48 }
 0x675   :  { %vm19293_vm14 = vcmp.gt.f32.partialorder %v16822_v6, 0.0  ;;  %vm19294_vm6 = vcmp.gt.f32.partialorder %v16826_v49, 0.0  ;;  %vm19295_vm12 = vcmp.gt.f32.partialorder %v16830_v4, 0.0  ;;  %v5548_v62 = vshrl.u32 %v5480_v40, 16 }
 0x676   :  { %v16979_v37 = vsel %vm19293_vm14, %v16822_v6, %v5387_v46  ;;  %v16984_v26 = vsel %vm19294_vm6, %v16826_v49, %v5388_v9  ;;  %v16989_v23 = vsel %vm19295_vm12, %v16830_v4, %v5389_v39  ;;  %v5688_v61 = vrot.slane %v5545_v30, 7 }
 0x677   :  { %v5689_v31 = vshll.u32 %v5481_v47, 16  ;;  %v16994_v52 = vsel %vm5326_vm10, %v16834_v24, %v5390_v29  ;;  %v16999_v50 = vsel %vm5327_vm0, %v16838_v38, %v5391_v33  ;;  %v5551_v13 = vshrl.u32 %v5482_v3, 16 }
 0x678   :  { %v5693_v54 = vshll.u32 %v5480_v40, 16  ;;  %v17004_v39 = vsel %vm5328_vm3, %v16842_v42, %v5392_v22  ;;  %v17009_v12 = vsel %vm5329_vm1, %v16858_v0, %v5393_v60  ;;  %v5554_v27 = vshrl.u32 %v5483_v7, 16 }
 0x679   :  { %v5691_v29 = vor.u32 %v5689_v31, %v5688_v61  ;;  %v17014_v53 = vsel %vm5330_vm11, %v16868_v45, %v5394_v2  ;;  %v17016_v33 = vpack.c.bf16 %v5441_v20, %v5440_v36  ;;  %v17018_v6 = vpack.c.bf16 %v5443_v18, %v5442_v34 }
 0x67a   :  { %v17020_v49 = vpack.c.bf16 %v5445_v41, %v5444_v10  ;;  %v5697_v22 = vshll.u32 %v5482_v3, 16  ;;  %v5832_v60 = vrot.slane %v5689_v31, 7  ;;  %v5692_v24 = vrot.slane %v5548_v62, 7 }
 0x67b   :  { %v17024_v4 = vsel %vm14483_vm2, %v5545_v30, %v5691_v29  ;;  %v5701_v38 = vshll.u32 %v5483_v7, 16  ;;  %v5833_v0 = vrot.slane %v5693_v54, 7  ;;  %v5696_v8 = vrot.slane %v5551_v13, 7 }
 0x67c   :  { %v6143_v42 = vshll.u32 %v17024_v4, 16  ;;  %v17029_v45 = vsel %vm14483_vm2, %v5688_v61, %v5832_v60  ;;  %v6141_v18 = vshrl.u32 %v17024_v4, 16  ;;  %v5695_v35 = vor.u32 %v5693_v54, %v5692_v24 }
 0x67d   :  { %v5700_v5 = vrot.slane %v5554_v27, 7  ;;  %v6148_v48 = vshll.u32 %v17029_v45, 16  ;;  %v17035_v46 = vsel %vm14483_vm2, %v5692_v24, %v5833_v0  ;;  %v5699_v9 = vor.u32 %v5697_v22, %v5696_v8 }
 0x67e   :  { %v6145_v44 = vrot.slane %v6143_v42, 1  ;;  %v17037_v15 = vpack.c.bf16 %v5447_v11, %v5446_v56  ;;  %v5557_v16 = vshrl.u32 %v17016_v33, 16  ;;  %v17042_v47 = vsel %vm14483_vm2, %v5548_v62, %v5695_v35 }
 0x67f   :  { %v5703_v2 = vor.u32 %v5701_v38, %v5700_v5  ;;  %vm5331_vm10 = vcmp.gt.f32.partialorder %v16878_v21, 0.0  ;;  %v6150_v36 = vrot.slane %v6148_v48, 1  ;;  %v6155_v20 = vshll.u32 %v17042_v47, 16 }
 0x680   :  { %v6146_v28 = vor.u32 %v6145_v44, %v6141_v18  ;;  %v6160_v34 = vshll.u32 %v17035_v46, 16  ;;  %v5560_v40 = vshrl.u32 %v17018_v6, 16  ;;  %v5834_v30 = vrot.slane %v5697_v22, 7 }
 0x681   :  { %v17050_v10 = vsel %vm14483_vm2, %v5551_v13, %v5699_v9  ;;  %v5835_v41 = vrot.slane %v5701_v38, 7  ;;  %vm19296_vm3 = vsmask.f32 7424  ;;  %v6153_v56 = vshrl.u32 %v17042_v47, 16 }
 0x682   :  { %v17053_v3 = vsel %vm19296_vm3, %v6146_v28, %v6150_v36  ;;  %v6157_v11 = vrot.slane %v6155_v20, 1  ;;  %v6167_v7 = vshll.u32 %v17050_v10, 16  ;;  %v5563_v62 = vshrl.u32 %v17020_v49, 16  ;;  %vm19298_vm4 = vmmov %vm19296_vm3 }
 0x683   :  { %19297 = vst [vmem:[#allocation32_spill] sm:$0xff] %v17053_v3  ;;  %v5705_v61 = vshll.u32 %v17016_v33, 16  ;;  %12384 = vmatprep.mubr.bf16.mxu1 %v17053_v3  ;;  %v17062_v31 = vsel %vm14483_vm2, %v5554_v27, %v5703_v2  ;;  %v5704_v13 = vrot.slane %v5557_v16, 7  ;;  %v5709_v54 = vshll.u32 %v17018_v6, 16  ;;  %vm19299_vm15 = vmmov %vm19296_vm3 }
 0x684   :  { %v6158_v29 = vor.u32 %v6157_v11, %v6153_v56  ;;  %v6162_v22 = vrot.slane %v6160_v34, 1  ;;  %v6179_v60 = vshll.u32 %v17062_v31, 16  ;;  %v17068_v24 = vsel %vm14483_vm2, %v5696_v8, %v5834_v30  ;;  %vm19301_vm0 = vmmov %vm19296_vm3 }
 0x685   :  { %v17072_v33 = vsel %vm14483_vm2, %v5700_v5, %v5835_v41  ;;  %v5707_v38 = vor.u32 %v5705_v61, %v5704_v13  ;;  %v5708_v42 = vrot.slane %v5560_v40, 7  ;;  %v17076_v27 = vpack.c.bf16 %v16969_v32, %v16964_v17  ;;  %vm19304_vm1 = vmmov %vm19301_vm0 }
 0x686   :  { %v17079_v6 = vsel %vm19298_vm4, %v6158_v29, %v6162_v22  ;;  %v6169_v0 = vrot.slane %v6167_v7, 1  ;;  %v6181_v18 = vrot.slane %v6179_v60, 1  ;;  %v17083_v35 = vpack.c.bf16 %v16979_v37, %v16974_v51  ;;  %vm19306_vm11 = vmmov %vm19301_vm0 }
 0x687   :  { %v5566_v8 = vshrl.u32 %v17037_v15, 16  ;;  %12385 = vmatmul.mubr.bf16.gmra.mrb[32].mxu1 %v17079_v6  ;;  %v17089_v5 = vsel %vm14483_vm2, %v5557_v16, %v5707_v38  ;;  %v5711_v44 = vor.u32 %v5709_v54, %v5708_v42  ;;  %v6165_v17 = vshrl.u32 %v17050_v10, 16  ;;  %vm19309_vm7 = vmmov %vm19301_vm0 }
 0x688   :  { %12388 = vmatprep.mubr.bf16.mxu1 %v17053_v3  ;;  %v6172_v32 = vshll.u32 %v17068_v24, 16  ;;  %v6177_v48 = vshrl.u32 %v17062_v31, 16  ;;  %v6184_v51 = vshll.u32 %v17072_v33, 16  ;;  %v5713_v37 = vshll.u32 %v17020_v49, 16  ;;  %vm19311_vm5 = vmmov %vm19301_vm0 }
 0x689   :  { %v5836_v9 = vrot.slane %v5705_v61, 7  ;;  %v17099_v2 = vsel %vm14483_vm2, %v5560_v40, %v5711_v44  ;;  %v5712_v16 = vrot.slane %v5563_v62, 7  ;;  %v6170_v28 = vor.u32 %v6169_v0, %v6165_v17  ;;  %vm19314_vm9 = vmmov %vm19301_vm0 }
 0x68a   :  { %v6182_v36 = vor.u32 %v6181_v18, %v6177_v48  ;;  %v6191_v20 = vshll.u32 %v17089_v5, 16  ;;  %v5837_v34 = vrot.slane %v5709_v54, 7  ;;  %v5459_v30 = vsel %vm5331_vm10, %v16878_v21, %v16932_v25  ;;  %vm19316_vm14 = vmmov %vm19301_vm0 }
 0x68b   :  { %v5569_v41 = vshrl.u32 %v17076_v27, 16  ;;  %v6203_v49 = vshll.u32 %v17099_v2, 16  ;;  %v5715_v56 = vor.u32 %v5713_v37, %v5712_v16  ;;  %v17110_v40 = vpack.c.bf16 %v16989_v23, %v16984_v26  ;;  %vm19318_vm6 = vmmov %vm19301_vm0 }
 0x68c   :  { %v6174_v11 = vrot.slane %v6172_v32, 1  ;;  %v6186_v7 = vrot.slane %v6184_v51, 1  ;;  %v5716_v61 = vrot.slane %v5566_v8, 7  ;;  %v17114_v54 = vpack.c.bf16 %v16999_v50, %v16994_v52  ;;  %vm19322_vm12 = vmmov %vm19301_vm0 }
 0x68d   :  { %v5572_v29 = vshrl.u32 %v17083_v35, 16  ;;  %v5717_v21 = vshll.u32 %v17037_v15, 16  ;;  %v17120_v25 = vsel %vm14483_vm2, %v5704_v13, %v5836_v9  ;;  %v6193_v23 = vrot.slane %v6191_v20, 1  ;;  %vm19325_vm10 = vmmov %vm19301_vm0 }
 0x68e   :  { %v17123_v22 = vsel %vm19299_vm15, %v6170_v28, %v6174_v11  ;;  %v17126_v26 = vsel %vm19301_vm0, %v6182_v36, %v6186_v7  ;;  %v17130_v60 = vsel %vm14483_vm2, %v5708_v42, %v5837_v34  ;;  %v6205_v52 = vrot.slane %v6203_v49, 1  ;;  %v19303_v11 = vld [vmem:[#allocation36_spill] sm:$0xff]  ;;  %vm19327_vm3 = vmmov %vm19301_vm0 }
 0x68f   :  { %19300 = vst [vmem:[#allocation33_spill] sm:$0xff] %v17123_v22  ;;  %19302 = vst [vmem:[#allocation41_spill] sm:$0xff] %v17126_v26  ;;  %12389 = vmatmul.mubr.bf16.gmra.mrb[36].mxu1 %v17123_v22  ;;  %v17135_v50 = vsel %vm14483_vm2, %v5563_v62, %v5715_v56  ;;  %v5719_v15 = vor.u32 %v5717_v21, %v5716_v61  ;;  %v5720_v13 = vrot.slane %v5569_v41, 7  ;;  %v5721_v38 = vshll.u32 %v17076_v27, 16 }
 0x690   :  { %12392 = vmatprep.mubr.bf16.mxu1 %v17126_v26  ;;  %v6189_v0 = vshrl.u32 %v17089_v5, 16  ;;  %v6196_v18 = vshll.u32 %v17120_v25, 16  ;;  %v6201_v42 = vshrl.u32 %v17099_v2, 16  ;;  %v6208_v44 = vshll.u32 %v17130_v60, 16  ;;  %vm19329_vm4 = vmmov %vm19301_vm0 }
 0x691   :  { %v5838_v17 = vrot.slane %v5713_v37, 7  ;;  %v17145_v32 = vsel %vm14483_vm2, %v5566_v8, %v5719_v15  ;;  %v5724_v62 = vrot.slane %v5572_v29, 7  ;;  %v5725_v48 = vshll.u32 %v17083_v35, 16 }
 0x692   :  { %v6194_v51 = vor.u32 %v6193_v23, %v6189_v0  ;;  %v6215_v27 = vshll.u32 %v17135_v50, 16  ;;  %v5839_v9 = vrot.slane %v5717_v21, 7  ;;  %v5575_v28 = vshrl.u32 %v17110_v40, 16 }
 0x693   :  { %v6206_v36 = vor.u32 %v6205_v52, %v6201_v42  ;;  %v6227_v20 = vshll.u32 %v17145_v32, 16  ;;  %v5723_v34 = vor.u32 %v5721_v38, %v5720_v13  ;;  %v17153_v37 = vpack.c.bf16 %v16782_v55, %v16768_v57 }
 0x694   :  { %v5578_v8 = vshrl.u32 %v17114_v54, 16  ;;  %v6198_v49 = vrot.slane %v6196_v18, 1  ;;  %v5727_v56 = vor.u32 %v5725_v48, %v5724_v62  ;;  %v17158_v35 = vmul.f32 %v16734_v59, %v19303_v11 }
 0x695   :  { %v17162_v7 = vpack.c.bf16 %v17009_v12, %v17004_v39  ;;  %v6210_v21 = vrot.slane %v6208_v44, 1  ;;  %v17166_v23 = vsel %vm14483_vm2, %v5712_v16, %v5838_v17  ;;  %v17169_v57 = vpack.c.bf16 %v5459_v30, %v17014_v53 }
 0x696   :  { %v17172_v55 = vsel %vm19304_vm1, %v6194_v51, %v6198_v49  ;;  %v6217_v52 = vrot.slane %v6215_v27, 1  ;;  %v17176_v15 = vsel %vm14483_vm2, %v5716_v61, %v5839_v9  ;;  %v6229_v12 = vrot.slane %v6227_v20, 1 }
 0x697   :  { %19305 = vst [vmem:[#allocation42_spill] sm:$0xff] %v17172_v55  ;;  %12393 = vmatmul.mubr.bf16.gmra.mrb[40].mxu1 %v17172_v55  ;;  %v17180_v39 = vsel %vm19306_vm11, %v6206_v36, %v6210_v21  ;;  %v17184_v16 = vsel %vm14483_vm2, %v5569_v41, %v5723_v34  ;;  %v5728_v53 = vrot.slane %v5575_v28, 7  ;;  %v6213_v30 = vshrl.u32 %v17135_v50, 16 }
 0x698   :  { %19307 = vst [vmem:[#allocation69_spill] sm:$0xff] %v17180_v39  ;;  %12396 = vmatprep.mubr.bf16.mxu1 %v17180_v39  ;;  %v6220_v0 = vshll.u32 %v17166_v23, 16  ;;  %v17191_v61 = vsel %vm14483_vm2, %v5572_v29, %v5727_v56  ;;  %v5732_v18 = vrot.slane %v5578_v8, 7  ;;  %v5729_v42 = vshll.u32 %v17110_v40, 16  ;;  %v19308_v39 = vld [vmem:[#allocation39_spill] sm:$0xff] }
 0x699   :  { %v6225_v44 = vshrl.u32 %v17145_v32, 16  ;;  %v6232_v17 = vshll.u32 %v17176_v15, 16  ;;  %v5840_v41 = vrot.slane %v5721_v38, 7  ;;  %v5733_v51 = vshll.u32 %v17114_v54, 16 }
 0x69a   :  { %v6218_v27 = vor.u32 %v6217_v52, %v6213_v30  ;;  %v6239_v9 = vshll.u32 %v17184_v16, 16  ;;  %v5841_v36 = vrot.slane %v5725_v48, 7  ;;  %v5581_v20 = vshrl.u32 %v17162_v7, 16 }
 0x69b   :  { %v6230_v34 = vor.u32 %v6229_v12, %v6225_v44  ;;  %v6251_v29 = vshll.u32 %v17191_v61, 16  ;;  %v5731_v49 = vor.u32 %v5729_v42, %v5728_v53  ;;  %v5584_v40 = vshrl.u32 %v17169_v57, 16 }
 0x69c   :  { %v6222_v11 = vrot.slane %v6220_v0, 1  ;;  %v5735_v21 = vor.u32 %v5733_v51, %v5732_v18  ;;  %v5271_v38 = vmul.f32 %v16734_v59, %v19308_v39  ;;  %vm5334_vm13 = vcmp.gt.f32.partialorder %v17158_v35, 0.0 }
 0x69d   :  { %v6234_v54 = vrot.slane %v6232_v17, 1  ;;  %v17207_v48 = vsel %vm14483_vm2, %v5720_v13, %v5840_v41  ;;  %v5398_v52 = vmul.f32 0.01, %v17158_v35  ;;  %v6241_v30 = vrot.slane %v6239_v9, 1 }
 0x69e   :  { %v17211_v12 = vsel %vm19309_vm7, %v6218_v27, %v6222_v11  ;;  %v17215_v0 = vsel %vm14483_vm2, %v5724_v62, %v5841_v36  ;;  %v6253_v39 = vrot.slane %v6251_v29, 1  ;;  %v17223_v13 = vsel %vm14483_vm2, %v5575_v28, %v5731_v49 }
 0x69f   :  { %19310 = vst [vmem:[#allocation70_spill] sm:$0xff] %v17211_v12  ;;  %12397 = vmatmul.mubr.bf16.gmra.mrb[44].mxu1 %v17211_v12  ;;  %v17219_v59 = vsel %vm19311_vm5, %v6230_v34, %v6234_v54  ;;  %v5736_v44 = vrot.slane %v5581_v20, 7  ;;  %v6237_v17 = vshrl.u32 %v17184_v16, 16  ;;  %v6244_v41 = vshll.u32 %v17207_v48, 16 }
 0x6a0   :  { %19312 = vst [vmem:[#allocation14_spill] sm:$0xff] %v17219_v59  ;;  %12400 = vmatprep.mubr.bf16.mxu1 %v17219_v59  ;;  %v17230_v62 = vsel %vm14483_vm2, %v5578_v8, %v5735_v21  ;;  %v5740_v27 = vrot.slane %v5584_v40, 7  ;;  %v5737_v9 = vshll.u32 %v17162_v7, 16  ;;  %v6249_v36 = vshrl.u32 %v17191_v61, 16 }
 0x6a1   :  { %v6256_v34 = vshll.u32 %v17215_v0, 16  ;;  %v5842_v28 = vrot.slane %v5729_v42, 7  ;;  %v5741_v29 = vshll.u32 %v17169_v57, 16  ;;  %v6242_v49 = vor.u32 %v6241_v30, %v6237_v17 }
 0x6a2   :  { %v6263_v11 = vshll.u32 %v17223_v13, 16  ;;  %v5843_v54 = vrot.slane %v5733_v51, 7  ;;  %v5399_v56 = vmul.f32 0.01, %v5271_v38  ;;  %v6254_v59 = vor.u32 %v6253_v39, %v6249_v36 }
 0x6a3   :  { %v6275_v12 = vshll.u32 %v17230_v62, 16  ;;  %v5739_v8 = vor.u32 %v5737_v9, %v5736_v44  ;;  %vm5335_vm8 = vcmp.gt.f32.partialorder %v5271_v38, 0.0  ;;  %v6246_v21 = vrot.slane %v6244_v41, 1 }
 0x6a4   :  { %v5743_v55 = vor.u32 %v5741_v29, %v5740_v27  ;;  %v19313_v7 = vshrl.u32 %v17153_v37, 16  ;;  %v6258_v22 = vrot.slane %v6256_v34, 1  ;;  %v17242_v42 = vsel %vm14483_vm2, %v5728_v53, %v5842_v28 }
 0x6a5   :  { %v5462_v57 = vsel %vm5334_vm13, %v17158_v35, %v5398_v52  ;;  %v17248_v51 = vsel %vm19314_vm9, %v6242_v49, %v6246_v21  ;;  %v6265_v30 = vrot.slane %v6263_v11, 1  ;;  %v17252_v39 = vsel %vm14483_vm2, %v5732_v18, %v5843_v54 }
 0x6a6   :  { %v5744_v26 = vrot.slane %v19313_v7, 7  ;;  %19315 = vst [vmem:[#allocation16_spill] sm:$0xff] %v17248_v51  ;;  %v5463_v17 = vsel %vm5335_vm8, %v5271_v38, %v5399_v56  ;;  %v17256_v41 = vsel %vm19316_vm14, %v6254_v59, %v6258_v22  ;;  %v6277_v53 = vrot.slane %v6275_v12, 1 }
 0x6a7   :  { %12401 = vmatmul.mubr.bf16.gmra.mrb[48].mxu1 %v17248_v51  ;;  %19317 = vst [vmem:[#allocation17_spill] sm:$0xff] %v17256_v41  ;;  %v17260_v36 = vsel %vm14483_vm2, %v5581_v20, %v5739_v8  ;;  %v6261_v35 = vshrl.u32 %v17223_v13, 16  ;;  %v6268_v52 = vshll.u32 %v17242_v42, 16  ;;  %v17267_v18 = vsel %vm14483_vm2, %v5584_v40, %v5743_v55  ;;  %v14187_v51 = vld [vmem:[#allocation7 + $0xd8] sm:$0xff]  }
 0x6a8   :  { %12404 = vmatprep.mubr.bf16.mxu1 %v17256_v41  ;;  %v5745_v56 = vshll.u32 %v17153_v37, 16  ;;  %v6273_v22 = vshrl.u32 %v17230_v62, 16  ;;  %v6280_v38 = vshll.u32 %v17252_v39, 16  ;;  %v5844_v12 = vrot.slane %v5737_v9, 7  ;;  %v19349_v41 = vld [vmem:[#allocation25_spill] sm:$0xff] }
 0x6a9   :  { %v17272_v59 = vpack.c.bf16 %v5463_v17, %v5462_v57  ;;  %v6266_v20 = vor.u32 %v6265_v30, %v6261_v35  ;;  %v6287_v34 = vshll.u32 %v17260_v36, 16  ;;  %v5845_v28 = vrot.slane %v5741_v29, 7 }
 0x6aa   :  { %v5747_v49 = vor.u32 %v5745_v56, %v5744_v26  ;;  %v6278_v11 = vor.u32 %v6277_v53, %v6273_v22  ;;  %v6299_v54 = vshll.u32 %v17267_v18, 16  ;;  %v6270_v8 = vrot.slane %v6268_v52, 1 }
 0x6ab   :  { %v6282_v55 = vrot.slane %v6280_v38, 1  ;;  %v17278_v40 = vsel %vm14483_vm2, %v5736_v44, %v5844_v12  ;;  %v18800_v21 = vshll.u32 %v17272_v59, 16  ;;  %v6289_v7 = vrot.slane %v6287_v34, 1 }
 0x6ac   :  { %v17282_v9 = vsel %vm19318_vm6, %v6266_v20, %v6270_v8  ;;  %v17286_v57 = vsel %vm14483_vm2, %v5740_v27, %v5845_v28  ;;  %v19320_v29 = vshrl.u32 %v17153_v37, 16  ;;  %v6301_v17 = vrot.slane %v6299_v54, 1 }
 0x6ad   :  { %19319 = vst [vmem:[#allocation19_spill] sm:$0xff] %v17282_v9  ;;  %v17296_v44 = vsel %vm19322_vm12, %v6278_v11, %v6282_v55  ;;  %v6285_v53 = vshrl.u32 %v17260_v36, 16  ;;  %v6292_v35 = vshll.u32 %v17278_v40, 16  ;;  %v6297_v27 = vshrl.u32 %v17267_v18, 16 }
 0x6ae   :  { %v17292_v30 = vsel %vm14483_vm2, %v19320_v29, %v5747_v49  ;;  %19323 = vst [vmem:[#allocation27_spill] sm:$0xff] %v17296_v44  ;;  %v6304_v37 = vshll.u32 %v17286_v57, 16  ;;  %v5846_v52 = vrot.slane %v5745_v56, 7  ;;  %v18799_v22 = vshrl.u32 %v17272_v59, 16 }
 0x6af   :  { %19321 = vst [vmem:[#allocation23_spill] sm:$0xff] %v17292_v30  ;;  %12405 = vmatmul.mubr.bf16.gmra.mrb[52].mxu1 %v17282_v9  ;;  %v6290_v38 = vor.u32 %v6289_v7, %v6285_v53  ;;  %v6311_v12 = vshll.u32 %v17292_v30, 16  ;;  %v5847_v20 = vrot.slane %v18800_v21, 7  ;;  %v6302_v34 = vor.u32 %v6301_v17, %v6297_v27  ;;  %v14177_v27 = vld [vmem:[#allocation7 + $0x88] sm:$0xff]  }
 0x6b0   :  { %12408 = vmatprep.mubr.bf16.mxu1 %v17296_v44  ;;  %v17309_v28 = vrot.slane %v18799_v22, 7  ;;  %v6294_v49 = vrot.slane %v6292_v35, 1  ;;  %v6306_v11 = vrot.slane %v6304_v37, 1  ;;  %v17313_v54 = vsel %vm14483_vm2, %v5744_v26, %v5846_v52  ;;  %v14178_v37 = vld [vmem:[#allocation7 + $0x90] sm:$0xff]   ;;  %v14179_v52 = vld [vmem:[#allocation7 + $0x98] sm:$0xff]  }
 0x6b1   :  { %v6313_v55 = vrot.slane %v6311_v12, 1  ;;  %v6309_v29 = vshrl.u32 %v17292_v30, 16  ;;  %v6316_v26 = vshll.u32 %v17313_v54, 16  ;;  %v14181_v12 = vld [vmem:[#allocation7 + $0xa8] sm:$0xff]   ;;  %vm19343_vm15 = vcmask 1046528   ;;  %v19348_v44 = vld [vmem:[#allocation67_spill] sm:$0xff] }
 0x6b2   :  { %v17318_v56 = vsel %vm14483_vm2, %v17309_v28, %v5847_v20  ;;  %v17321_v8 = vsel %vm19325_vm10, %v6290_v38, %v6294_v49  ;;  %v17325_v7 = vsel %vm19327_vm3, %v6302_v34, %v6306_v11  ;;  %v14180_v38 = vld [vmem:[#allocation7 + $0xa0] sm:$0xff]   ;;  %v19331_v20 = vld [vmem:[#allocation50_spill] sm:$0xff]  ;;  %v19332_v34 = vld [vmem:[#allocation55_spill] sm:$0xff]  ;;  %v7104_v21 = vrot.slane %v16416_v43, 1 }
 0x6b3   :  { %19324 = vst [vmem:[#allocation30_spill] sm:$0xff] %v17318_v56  ;;  %19326 = vst [vmem:[#allocation31_spill] sm:$0xff] %v17321_v8  ;;  %v6314_v17 = vor.u32 %v6313_v55, %v6309_v29  ;;  %v6318_v53 = vrot.slane %v6316_v26, 1  ;;  %v14183_v49 = vld [vmem:[#allocation7 + $0xb8] sm:$0xff]   ;;  %v19333_v11 = vld [vmem:[#allocation64_spill] sm:$0xff]  ;;  %v7108_v9 = vrot.slane %v19348_v44, 1 }
 0x6b4   :  { %19328 = vst [vmem:[#allocation37_spill] sm:$0xff] %v17325_v7  ;;  %v19334_v55 = vld [vmem:[#allocation18_spill] sm:$0xff]  ;;  %v14184_v29 = vld [vmem:[#allocation7 + $0xc0] sm:$0xff]   ;;  %vm19346_vm0 = vmmov %vm19343_vm15  ;;  %v7113_v44 = vrot.slane %v19331_v20, 1 }
 0x6b5   :  { %v17331_v35 = vsel %vm19329_vm4, %v6314_v17, %v6318_v53  ;;  %v19335_v26 = vld [vmem:[#allocation34_spill] sm:$0xff]  ;;  %v19336_v17 = vld [vmem:[#allocation35_spill] sm:$0xff]  ;;  %v19337_v53 = vld [vmem:[#allocation73_spill] sm:$0xff] }
 0x6b6   :  { %19330 = vst [vmem:[#allocation38_spill] sm:$0xff] %v17331_v35  ;;  %v19345_v56 = vld [vmem:[#allocation58_spill] sm:$0xff]  ;;  %vm19350_vm1 = vmmov %vm19346_vm0 }
 0x6b7   :  { %12409 = vmatmul.mubr.bf16.gmra.mrb[56].mxu1 %v17321_v8  ;;  %vm19352_vm11 = vmmov %vm19346_vm0 }
 0x6b8   :  { %12412 = vmatprep.mubr.bf16.mxu1 %v17325_v7  ;;  %v14185_v7 = vld [vmem:[#allocation7 + $0xc8] sm:$0xff]   ;;  %vm19356_vm13 = vmmov %vm19346_vm0 }
 0x6b9   :  { %vm19358_vm7 = vmmov %vm19346_vm0 }
 0x6ba   :  { %vm19362_vm5 = vmmov %vm19346_vm0 }
 0x6bb   :  { %vm19364_vm8 = vmmov %vm19346_vm0 }
 0x6bc   :  { %vm19368_vm9 = vmmov %vm19346_vm0 }
 0x6bd   :  { %vm19370_vm14 = vmmov %vm19346_vm0 }
 0x6be   :  { %vm19374_vm6 = vmmov %vm19346_vm0 }
 0x6bf   :  { %12413 = vmatmul.mubr.bf16.gmra.mrb[60].mxu1 %v17331_v35  ;;  %v7105_v35 = vrot.slane %v19345_v56, 1  ;;  %v7111_v56 = vrot.slane %v19349_v41, 1  ;;  %v19354_v41 = vld [vmem:[#allocation51_spill] sm:$0xff]  ;;  %vm19375_vm12 = vmmov %vm19346_vm0 }
 0x6c0   :  { %12432 = vmatprep.mubr.bf16.mxu1 %v16408_v63  ;;  %vm19379_vm10 = vmmov %vm19346_vm0 }
 0x6c1   :  { %v17376_v8 = vsel %vm19346_vm0, %v7104_v21, %v7105_v35  ;;  %vm19380_vm3 = vmmov %vm19346_vm0 }
 0x6c2   :  { %19347 = vst [vmem:[#allocation56_spill] sm:$0xff] %v17376_v8  ;;  %vm19382_vm4 = vmmov %vm19346_vm0 }
 0x6c7   :  { %12433 = vmatmul.mubr.bf16.vlgmr.msra.gmra.mrb[0].mxu1 %v16416_v43 }
 0x6c8   :  { %12436 = vmatprep.mubr.bf16.mxu1 %v16408_v63  ;;  %12497 = vmatpush3.bf16.msra.mxu1 %v16731_v19  ;;  %v14182_v19 = vld [vmem:[#allocation7 + $0xb0] sm:$0xff]  }
 0x6c9   :  { %12498 = vmatprep.subr.bf16.mxu1 %v14177_v27 }
 0x6cc   :  { %12499 = vmatpush3.bf16.msra.mxu1 %v14177_v27  ;;  %v19338_v27 = vld [vmem:[#allocation74_spill] sm:$0xff] }
 0x6cd   :  { %12500 = vmatprep.subr.bf16.mxu1 %v14178_v37 }
 0x6cf   :  { %12437 = vmatmul.mubr.bf16.gmra.mrb[4].mxu1 %v16430_v1 }
 0x6d0   :  { %12440 = vmatprep.mubr.bf16.mxu1 %v16442_v58  ;;  %12501 = vmatpush3.bf16.msra.mxu1 %v14178_v37  ;;  %v19339_v37 = vld [vmem:[#allocation71_spill] sm:$0xff] }
 0x6d1   :  { %12502 = vmatprep.subr.bf16.mxu1 %v14179_v52 }
 0x6d4   :  { %12503 = vmatpush3.bf16.msra.mxu1 %v14179_v52  ;;  %v19340_v52 = vld [vmem:[#allocation78_spill] sm:$0xff] }
 0x6d5   :  { %12504 = vmatprep.subr.bf16.mxu1 %v14180_v38 }
 0x6d7   :  { %12441 = vmatmul.mubr.bf16.gmra.mrb[8].mxu1 %v19331_v20 }
 0x6d8   :  { %12444 = vmatprep.mubr.bf16.mxu1 %v19332_v34  ;;  %12505 = vmatpush3.bf16.msra.mxu1 %v14180_v38  ;;  %v19341_v38 = vld [vmem:[#allocation46_spill] sm:$0xff] }
 0x6d9   :  { %12506 = vmatprep.subr.bf16.mxu1 %v14181_v12 }
 0x6dc   :  { %12507 = vmatpush3.bf16.msra.mxu1 %v14181_v12  ;;  %v7101_v12 = vrot.slane %v16408_v63, 1 }
 0x6dd   :  { %12508 = vmatprep.subr.bf16.mxu1 %v14182_v19 }
 0x6df   :  { %12445 = vmatmul.mubr.bf16.gmra.mrb[12].mxu1 %v19333_v11 }
 0x6e0   :  { %12448 = vmatprep.mubr.bf16.mxu1 %v19334_v55  ;;  %12509 = vmatpush3.bf16.msra.mxu1 %v14182_v19  ;;  %v19342_v19 = vld [vmem:[#allocation57_spill] sm:$0xff] }
 0x6e1   :  { %12510 = vmatprep.subr.bf16.mxu1 %v14183_v49 }
 0x6e4   :  { %12511 = vmatpush3.bf16.msra.mxu1 %v14183_v49  ;;  %v7102_v49 = vrot.slane %v19342_v19, 1  ;;  %v14186_v19 = vld [vmem:[#allocation7 + $0xd0] sm:$0xff]  }
 0x6e5   :  { %12576 = vmatprep.subr.bf16.mxu1 %v14184_v29 }
 0x6e6   :  { %v17370_v22 = vsel %vm19343_vm15, %v7101_v12, %v7102_v49  ;;  %v7107_v12 = vrot.slane %v16430_v1, 1  ;;  %v7110_v49 = vrot.slane %v16442_v58, 1  ;;  %vm19383_vm15 = vmmov %vm19346_vm0 }
 0x6e7   :  { %12449 = vmatmul.mubr.bf16.gmra.mrb[16].mxu1 %v19335_v26  ;;  %19344 = vst [vmem:[#allocation54_spill] sm:$0xff] %v17370_v22 }
 0x6e8   :  { %12452 = vmatprep.mubr.bf16.mxu1 %v19336_v17  ;;  %v17385_v21 = vsel %vm19350_vm1, %v7107_v12, %v7108_v9  ;;  %v17389_v35 = vsel %vm19352_vm11, %v7110_v49, %v7111_v56  ;;  %v14189_v12 = vld [vmem:[#allocation7 + $0xe8] sm:$0xff]   ;;  %v14190_v49 = vld [vmem:[#allocation7 + $0xf0] sm:$0xff]   ;;  %v7119_v56 = vrot.slane %v19333_v11, 1  ;;  %vm19384_vm1 = vmmov %vm19346_vm0 }
 0x6e9   :  { %19351 = vst [vmem:[#allocation60_spill] sm:$0xff] %v17385_v21  ;;  %19353 = vst [vmem:[#allocation61_spill] sm:$0xff] %v17389_v35 }
 0x6ea   :  { %vm19385_vm11 = vmmov %vm19346_vm0 }
 0x6ef   :  { %12453 = vmatmul.mubr.bf16.gmra.mrb[20].mxu1 %v19337_v53 }
 0x6f0   :  { %12456 = vmatprep.mubr.bf16.mxu1 %v19338_v27 }
 0x6f7   :  { %12457 = vmatmul.mubr.bf16.gmra.mrb[24].mxu1 %v19339_v37 }
 0x6f8   :  { %12460 = vmatprep.mubr.bf16.mxu1 %v19340_v52 }
 0x6ff   :  { %12461 = vmatmul.mubr.bf16.gmra.mrb[28].mxu1 %v19341_v38 }
 0x700   :  { %12464 = vmatprep.mubr.bf16.mxu1 %v17024_v4 }
 0x707   :  { %12465 = vmatmul.mubr.bf16.gmra.mrb[32].mxu1 %v17042_v47 }
 0x708   :  { %12468 = vmatprep.mubr.bf16.mxu1 %v17024_v4 }
 0x70f   :  { %12469 = vmatmul.mubr.bf16.gmra.mrb[36].mxu1 %v17050_v10 }
 0x710   :  { %12472 = vmatprep.mubr.bf16.mxu1 %v17062_v31 }
 0x717   :  { %12473 = vmatmul.mubr.bf16.gmra.mrb[40].mxu1 %v17089_v5 }
 0x718   :  { %12476 = vmatprep.mubr.bf16.mxu1 %v17099_v2 }
 0x71f   :  { %12477 = vmatmul.mubr.bf16.gmra.mrb[44].mxu1 %v17135_v50 }
 0x720   :  { %12480 = vmatprep.mubr.bf16.mxu1 %v17145_v32 }
 0x727   :  { %12481 = vmatmul.mubr.bf16.gmra.mrb[48].mxu1 %v17184_v16 }
 0x728   :  { %12484 = vmatprep.mubr.bf16.mxu1 %v17191_v61 }
 0x72f   :  { %12485 = vmatmul.mubr.bf16.gmra.mrb[52].mxu1 %v17223_v13 }
 0x730   :  { %12488 = vmatprep.mubr.bf16.mxu1 %v17230_v62 }
 0x737   :  { %12489 = vmatmul.mubr.bf16.gmra.mrb[56].mxu1 %v17260_v36 }
 0x738   :  { %12492 = vmatprep.mubr.bf16.mxu1 %v17267_v18 }
 0x73f   :  { %12493 = vmatmul.mubr.bf16.gmra.mrb[60].mxu1 %v17292_v30 }
 0x740   :  { %12512 = vmatprep.mubr.bf16.mxu1 %v17370_v22 }
 0x747   :  { %12513 = vmatmul.mubr.bf16.vlgmr.msra.gmra.mrb[0].mxu1 %v17376_v8  ;;  %v19355_v8 = vld [vmem:[#allocation59_spill] sm:$0xff] }
 0x748   :  { %12516 = vmatprep.mubr.bf16.mxu1 %v17370_v22  ;;  %12577 = vmatpush3.bf16.msra.mxu1 %v14184_v29  ;;  %v14188_v29 = vld [vmem:[#allocation7 + $0xe0] sm:$0xff]   ;;  %v7114_v22 = vrot.slane %v19354_v41, 1  ;;  %v7117_v9 = vrot.slane %v19355_v8, 1  ;;  %v19360_v8 = vld [vmem:[#allocation65_spill] sm:$0xff] }
 0x749   :  { %12578 = vmatprep.subr.bf16.mxu1 %v14185_v7  ;;  %v7120_v41 = vrot.slane %v19360_v8, 1 }
 0x74c   :  { %12579 = vmatpush3.bf16.msra.mxu1 %v14185_v7  ;;  %v7116_v7 = vrot.slane %v19332_v34, 1 }
 0x74d   :  { %12580 = vmatprep.subr.bf16.mxu1 %v14186_v19 }
 0x74f   :  { %12517 = vmatmul.mubr.bf16.gmra.mrb[4].mxu1 %v17385_v21  ;;  %v17397_v21 = vsel %vm19356_vm13, %v7113_v44, %v7114_v22  ;;  %v14191_v44 = vld [vmem:[#allocation7 + $0xf8] sm:$0xff]   ;;  %vm19386_vm13 = vmmov %vm19346_vm0 }
 0x750   :  { %12520 = vmatprep.mubr.bf16.mxu1 %v17389_v35  ;;  %12581 = vmatpush3.bf16.msra.mxu1 %v14186_v19  ;;  %19357 = vst [vmem:[#allocation63_spill] sm:$0xff] %v17397_v21  ;;  %v17401_v19 = vsel %vm19358_vm7, %v7116_v7, %v7117_v9  ;;  %v19361_v35 = vld [vmem:[#allocation45_spill] sm:$0xff]  ;;  %v17416_v7 = vld [vmem:[#allocation7 + $0x100] sm:$0xff]   ;;  %v7125_v9 = vrot.slane %v19335_v26, 1  ;;  %vm19387_vm7 = vmmov %vm19346_vm0 }
 0x751   :  { %12582 = vmatprep.subr.bf16.mxu1 %v14187_v51  ;;  %19359 = vst [vmem:[#allocation66_spill] sm:$0xff] %v17401_v19  ;;  %v7123_v22 = vrot.slane %v19361_v35, 1  ;;  %v7128_v35 = vrot.slane %v19336_v17, 1 }
 0x754   :  { %12583 = vmatpush3.bf16.msra.mxu1 %v14187_v51  ;;  %v7122_v51 = vrot.slane %v19334_v55, 1 }
 0x755   :  { %12584 = vmatprep.subr.bf16.mxu1 %v14188_v29 }
 0x757   :  { %12521 = vmatmul.mubr.bf16.gmra.mrb[8].mxu1 %v17397_v21  ;;  %v17409_v21 = vsel %vm19362_vm5, %v7119_v56, %v7120_v41  ;;  %v19367_v56 = vld [vmem:[#allocation43_spill] sm:$0xff]  ;;  %vm19388_vm5 = vmmov %vm19346_vm0 }
 0x758   :  { %12524 = vmatprep.mubr.bf16.mxu1 %v17401_v19  ;;  %12585 = vmatpush3.bf16.msra.mxu1 %v14188_v29  ;;  %19363 = vst [vmem:[#allocation68_spill] sm:$0xff] %v17409_v21  ;;  %v17413_v29 = vsel %vm19364_vm8, %v7122_v51, %v7123_v22  ;;  %v7129_v41 = vrot.slane %v19367_v56, 1  ;;  %v7131_v22 = vrot.slane %v19337_v53, 1  ;;  %vm19389_vm8 = vmmov %vm19346_vm0 }
 0x759   :  { %12586 = vmatprep.subr.bf16.mxu1 %v14189_v12  ;;  %19365 = vst [vmem:[#allocation15_spill] sm:$0xff] %v17413_v29 }
 0x75c   :  { %12587 = vmatpush3.bf16.msra.mxu1 %v14189_v12  ;;  %v19366_v12 = vld [vmem:[#allocation40_spill] sm:$0xff] }
 0x75d   :  { %12588 = vmatprep.subr.bf16.mxu1 %v14190_v49  ;;  %v7126_v8 = vrot.slane %v19366_v12, 1  ;;  %v19372_v12 = vld [vmem:[#allocation75_spill] sm:$0xff] }
 0x75f   :  { %12525 = vmatmul.mubr.bf16.gmra.mrb[12].mxu1 %v17409_v21  ;;  %v17424_v51 = vsel %vm19368_vm9, %v7125_v9, %v7126_v8  ;;  %v19373_v21 = vld [vmem:[#allocation48_spill] sm:$0xff]  ;;  %v7140_v8 = vrot.slane %v19340_v52, 1  ;;  %vm19390_vm9 = vmmov %vm19346_vm0 }
 0x760   :  { %12528 = vmatprep.mubr.bf16.mxu1 %v17413_v29  ;;  %12589 = vmatpush3.bf16.msra.mxu1 %v14190_v49  ;;  %19369 = vst [vmem:[#allocation21_spill] sm:$0xff] %v17424_v51  ;;  %v17428_v49 = vsel %vm19370_vm14, %v7128_v35, %v7129_v41  ;;  %v7134_v29 = vrot.slane %v19338_v27, 1  ;;  %v7135_v56 = vrot.slane %v19373_v21, 1  ;;  %v7137_v35 = vrot.slane %v19339_v37, 1  ;;  %v19377_v41 = vld [vmem:[#allocation53_spill] sm:$0xff]  ;;  %vm19391_vm14 = vmmov %vm19346_vm0 }
 0x761   :  { %12590 = vmatprep.subr.bf16.mxu1 %v14191_v44  ;;  %19371 = vst [vmem:[#allocation22_spill] sm:$0xff] %v17428_v49 }
 0x762   :  { %v17440_v9 = vsel %vm19375_vm12, %v7134_v29, %v7135_v56  ;;  %v7143_v29 = vrot.slane %v19341_v38, 1  ;;  %v19381_v56 = vld [vmem:[#allocation83_spill] sm:$0xff]  ;;  %vm19393_vm12 = vmmov %vm19346_vm0 }
 0x763   :  { %19376 = vst [vmem:[#allocation24_spill] sm:$0xff] %v17440_v9 }
 0x764   :  { %12591 = vmatpush3.bf16.msra.mxu1 %v14191_v44  ;;  %v7132_v44 = vrot.slane %v19372_v12, 1 }
 0x765   :  { %12656 = vmatprep.subr.bf16.mxu1 %v17416_v7 }
 0x766   :  { %v17436_v19 = vsel %vm19374_vm6, %v7131_v22, %v7132_v44  ;;  %v7146_v44 = vrot.slane %v17024_v4, 1  ;;  %vm19392_vm6 = vmmov %vm19346_vm0 }
 0x767   :  { %12529 = vmatmul.mubr.bf16.gmra.mrb[16].mxu1 %v17424_v51  ;;  %v19378_v51 = vld [vmem:[#allocation79_spill] sm:$0xff] }
 0x768   :  { %12532 = vmatprep.mubr.bf16.mxu1 %v17428_v49  ;;  %v7138_v49 = vrot.slane %v19377_v41, 1  ;;  %v7141_v12 = vrot.slane %v19378_v51, 1  ;;  %v7147_v41 = vrot.slane %v17029_v45, 1  ;;  %v7152_v45 = vrot.slane %v17050_v10, 1 }
 0x76a   :  { %v17448_v21 = vsel %vm19379_vm10, %v7137_v35, %v7138_v49  ;;  %v17452_v22 = vsel %vm19380_vm3, %v7140_v8, %v7141_v12  ;;  %v17464_v49 = vsel %vm19383_vm15, %v7146_v44, %v7147_v41  ;;  %v7149_v35 = vrot.slane %v17042_v47, 1  ;;  %vm19394_vm10 = vmmov %vm19346_vm0 }
 0x76b   :  { %v7150_v8 = vrot.slane %v17035_v46, 1  ;;  %v7156_v44 = vrot.slane %v17072_v33, 1  ;;  %v7158_v41 = vrot.slane %v17089_v5, 1  ;;  %vm19395_vm3 = vmmov %vm19346_vm0 }
 0x76d   :  { %v17470_v12 = vsel %vm19346_vm0, %v7149_v35, %v7150_v8  ;;  %v7161_v35 = vrot.slane %v17099_v2, 1  ;;  %v7159_v8 = vrot.slane %v17120_v25, 1  ;;  %v7168_v25 = vrot.slane %v17176_v15, 1 }
 0x76f   :  { %12533 = vmatmul.mubr.bf16.gmra.mrb[20].mxu1 %v17436_v19  ;;  %v17491_v33 = vsel %vm19386_vm13, %v7158_v41, %v7159_v8  ;;  %v7173_v8 = vrot.slane %v17191_v61, 1 }
 0x770   :  { %12536 = vmatprep.mubr.bf16.mxu1 %v17440_v9  ;;  %v7144_v9 = vrot.slane %v19381_v56, 1 }
 0x772   :  { %v17460_v51 = vsel %vm19382_vm4, %v7143_v29, %v7144_v9  ;;  %v7155_v9 = vrot.slane %v17062_v31, 1  ;;  %v7153_v29 = vrot.slane %v17068_v24, 1  ;;  %v7162_v24 = vrot.slane %v17130_v60, 1  ;;  %vm19396_vm4 = vmmov %vm19346_vm0 }
 0x774   :  { %v17479_v56 = vsel %vm19384_vm1, %v7152_v45, %v7153_v29  ;;  %v17483_v46 = vsel %vm19385_vm11, %v7155_v9, %v7156_v44  ;;  %v17495_v45 = vsel %vm19387_vm7, %v7161_v35, %v7162_v24  ;;  %v7164_v9 = vrot.slane %v17135_v50, 1  ;;  %vm19448_vm1 = vmmov %vm19346_vm0 }
 0x775   :  { %v7167_v29 = vrot.slane %v17145_v32, 1  ;;  %v7165_v44 = vrot.slane %v17166_v23, 1  ;;  %v7170_v35 = vrot.slane %v17184_v16, 1  ;;  %v7171_v24 = vrot.slane %v17207_v48, 1 }
 0x776   :  { %v7174_v23 = vrot.slane %v17215_v0, 1  ;;  %v7180_v48 = vrot.slane %v17252_v39, 1 }
 0x777   :  { %12537 = vmatmul.mubr.bf16.gmra.mrb[24].mxu1 %v17448_v21  ;;  %v17503_v60 = vsel %vm19388_vm5, %v7164_v9, %v7165_v44  ;;  %v17507_v41 = vsel %vm19389_vm8, %v7167_v29, %v7168_v25  ;;  %v17515_v15 = vsel %vm19390_vm9, %v7170_v35, %v7171_v24  ;;  %v7176_v29 = vrot.slane %v17223_v13, 1 }
 0x778   :  { %12540 = vmatprep.mubr.bf16.mxu1 %v17452_v22  ;;  %v17519_v9 = vsel %vm19391_vm14, %v7173_v8, %v7174_v23  ;;  %v7179_v44 = vrot.slane %v17230_v62, 1  ;;  %v7177_v25 = vrot.slane %v17242_v42, 1  ;;  %v7182_v8 = vrot.slane %v17260_v36, 1 }
 0x779   :  { %v7185_v24 = vrot.slane %v17267_v18, 1  ;;  %v7183_v23 = vrot.slane %v17278_v40, 1  ;;  %v7186_v42 = vrot.slane %v17286_v57, 1  ;;  %v14193_v40 = vld [vmem:[#allocation7 + $0x108] sm:$0xff]   ;;  %v14194_v57 = vld [vmem:[#allocation7 + $0x110] sm:$0xff]  }
 0x77a   :  { %v17527_v0 = vsel %vm19392_vm6, %v7176_v29, %v7177_v25  ;;  %v17531_v35 = vsel %vm19393_vm12, %v7179_v44, %v7180_v48  ;;  %v7188_v44 = vrot.slane %v17292_v30, 1  ;;  %v7189_v25 = vrot.slane %v17313_v54, 1  ;;  %v14196_v54 = vld [vmem:[#allocation7 + $0x120] sm:$0xff]  }
 0x77b   :  { %v17539_v39 = vsel %vm19394_vm10, %v7182_v8, %v7183_v23  ;;  %v17543_v29 = vsel %vm19395_vm3, %v7185_v24, %v7186_v42  ;;  %v14195_v8 = vld [vmem:[#allocation7 + $0x118] sm:$0xff]   ;;  %v14200_v23 = vld [vmem:[#allocation7 + $0x140] sm:$0xff]   ;;  %v19398_v42 = vld [vmem:[#allocation85_spill] sm:$0xff] }
 0x77c   :  { %v17549_v48 = vsel %vm19396_vm4, %v7188_v44, %v7189_v25  ;;  %v14199_v24 = vld [vmem:[#allocation7 + $0x138] sm:$0xff]   ;;  %v19399_v44 = vld [vmem:[#allocation82_spill] sm:$0xff] }
 0x77d   :  { %19397 = vst [vmem:[#allocation26_spill] sm:$0xff] %v17549_v48  ;;  %v19400_v25 = vshll.u32 %v19399_v44, 16 }
 0x77f   :  { %12541 = vmatmul.mubr.bf16.gmra.mrb[28].mxu1 %v17460_v51 }
 0x780   :  { %12544 = vmatprep.mubr.bf16.mxu1 %v17464_v49 }
 0x787   :  { %12545 = vmatmul.mubr.bf16.gmra.mrb[32].mxu1 %v17470_v12 }
 0x788   :  { %12548 = vmatprep.mubr.bf16.mxu1 %v17464_v49 }
 0x78f   :  { %12549 = vmatmul.mubr.bf16.gmra.mrb[36].mxu1 %v17479_v56 }
 0x790   :  { %12552 = vmatprep.mubr.bf16.mxu1 %v17483_v46 }
 0x797   :  { %12553 = vmatmul.mubr.bf16.gmra.mrb[40].mxu1 %v17491_v33 }
 0x798   :  { %12556 = vmatprep.mubr.bf16.mxu1 %v17495_v45 }
 0x79f   :  { %12557 = vmatmul.mubr.bf16.gmra.mrb[44].mxu1 %v17503_v60 }
 0x7a0   :  { %12560 = vmatprep.mubr.bf16.mxu1 %v17507_v41 }
 0x7a7   :  { %12561 = vmatmul.mubr.bf16.gmra.mrb[48].mxu1 %v17515_v15 }
 0x7a8   :  { %12564 = vmatprep.mubr.bf16.mxu1 %v17519_v9 }
 0x7af   :  { %12565 = vmatmul.mubr.bf16.gmra.mrb[52].mxu1 %v17527_v0 }
 0x7b0   :  { %12568 = vmatprep.mubr.bf16.mxu1 %v17531_v35 }
 0x7b7   :  { %12569 = vmatmul.mubr.bf16.gmra.mrb[56].mxu1 %v17539_v39 }
 0x7b8   :  { %12572 = vmatprep.mubr.bf16.mxu1 %v17543_v29 }
 0x7bf   :  { %12573 = vmatmul.mubr.bf16.gmra.mrb[60].mxu1 %v17549_v48 }
 0x7c0   :  { %12592 = vmatprep.mubr.bf16.mxu1 %v16416_v43  ;;  %v14197_v43 = vld [vmem:[#allocation7 + $0x128] sm:$0xff]  }
 0x7c7   :  { %12593 = vmatmul.mubr.bf16.vlgmr.msra.gmra.mrb[0].mxu1 %v16408_v63 }
 0x7c8   :  { %12596 = vmatprep.mubr.bf16.mxu1 %v16430_v1  ;;  %12657 = vmatpush3.bf16.msra.mxu1 %v17416_v7  ;;  %v14198_v7 = vld [vmem:[#allocation7 + $0x130] sm:$0xff]  }
 0x7c9   :  { %12658 = vmatprep.subr.bf16.mxu1 %v14193_v40 }
 0x7cc   :  { %12659 = vmatpush3.bf16.msra.mxu1 %v14193_v40  ;;  %v5687_v40 = vor.u32 %v19400_v25, %v19398_v42  ;;  %v14201_v42 = vld [vmem:[#allocation7 + $0x148] sm:$0xff]   ;;  %v19406_v25 = vld [vmem:[#allocation52_spill] sm:$0xff] }
 0x7cd   :  { %12660 = vmatprep.subr.bf16.mxu1 %v14194_v57 }
 0x7cf   :  { %12597 = vmatmul.mubr.bf16.gmra.mrb[4].mxu1 %v16442_v58 }
 0x7d0   :  { %12600 = vmatprep.mubr.bf16.mxu1 %v19331_v20  ;;  %12661 = vmatpush3.bf16.msra.mxu1 %v14194_v57  ;;  %v19401_v57 = vshrl.u32 %v19399_v44, 16  ;;  %v19405_v44 = vld [vmem:[#allocation13_spill] sm:$0xff] }
 0x7d1   :  { %12662 = vmatprep.subr.bf16.mxu1 %v14195_v8 }
 0x7d4   :  { %12663 = vmatpush3.bf16.msra.mxu1 %v14195_v8  ;;  %v17575_v8 = vsel %vm14483_vm2, %v19401_v57, %v5687_v40  ;;  %v14202_v40 = vld [vmem:[#allocation7 + $0x150] sm:$0xff]   ;;  %v14204_v57 = vld [vmem:[#allocation7 + $0x160] sm:$0xff]  }
 0x7d5   :  { %12664 = vmatprep.subr.bf16.mxu1 %v14196_v54 }
 0x7d7   :  { %12601 = vmatmul.mubr.bf16.gmra.mrb[8].mxu1 %v19332_v34 }
 0x7d8   :  { %12604 = vmatprep.mubr.bf16.mxu1 %v19333_v11  ;;  %12665 = vmatpush3.bf16.msra.mxu1 %v14196_v54 }
 0x7d9   :  { %12666 = vmatprep.subr.bf16.mxu1 %v14197_v43 }
 0x7dc   :  { %12667 = vmatpush3.bf16.msra.mxu1 %v14197_v43  ;;  %v19403_v43 = vshrl.u32 %v17272_v59, 16 }
 0x7dd   :  { %12668 = vmatprep.subr.bf16.mxu1 %v14198_v7 }
 0x7df   :  { %12605 = vmatmul.mubr.bf16.gmra.mrb[12].mxu1 %v19334_v55 }
 0x7e0   :  { %12608 = vmatprep.mubr.bf16.mxu1 %v19335_v26  ;;  %12669 = vmatpush3.bf16.msra.mxu1 %v14198_v7 }
 0x7e1   :  { %12670 = vmatprep.subr.bf16.mxu1 %v14199_v24 }
 0x7e4   :  { %12671 = vmatpush3.bf16.msra.mxu1 %v14199_v24  ;;  %v19404_v24 = vld [vmem:[#allocation47_spill] sm:$0xff] }
 0x7e5   :  { %12736 = vmatprep.subr.bf16.mxu1 %v14200_v23 }
 0x7e7   :  { %12609 = vmatmul.mubr.bf16.gmra.mrb[16].mxu1 %v19336_v17 }
 0x7e8   :  { %12612 = vmatprep.mubr.bf16.mxu1 %v19337_v53 }
 0x7ef   :  { %12613 = vmatmul.mubr.bf16.gmra.mrb[20].mxu1 %v19338_v27 }
 0x7f0   :  { %12616 = vmatprep.mubr.bf16.mxu1 %v19339_v37 }
 0x7f7   :  { %12617 = vmatmul.mubr.bf16.gmra.mrb[24].mxu1 %v19340_v52 }
 0x7f8   :  { %12620 = vmatprep.mubr.bf16.mxu1 %v19341_v38 }
 0x7ff   :  { %12621 = vmatmul.mubr.bf16.gmra.mrb[28].mxu1 %v17575_v8 }
 0x800   :  { %12624 = vmatprep.mubr.bf16.mxu1 %v17042_v47  ;;  %v19402_v47 = vshll.u32 %v17272_v59, 16  ;;  %v19407_v59 = vld [vmem:[#allocation62_spill] sm:$0xff] }
 0x802   :  { %v5751_v54 = vor.u32 %v19402_v47, %v17309_v28  ;;  %v14203_v28 = vld [vmem:[#allocation7 + $0x158] sm:$0xff]   ;;  %v14205_v47 = vld [vmem:[#allocation7 + $0x168] sm:$0xff]  }
 0x804   :  { %v17600_v7 = vsel %vm14483_vm2, %v19403_v43, %v5751_v54  ;;  %v19409_v54 = vld [vmem:[#allocation20_spill] sm:$0xff]  ;;  %vm19420_vm2 = vsmask.f32 7424 }
 0x805   :  { %v19410_v43 = vld [vmem:[#allocation44_spill] sm:$0xff]  ;;  %vm19436_vm15 = vmmov %vm19420_vm2 }
 0x807   :  { %12625 = vmatmul.mubr.bf16.gmra.mrb[32].mxu1 %v17024_v4 }
 0x808   :  { %12628 = vmatprep.mubr.bf16.mxu1 %v17050_v10 }
 0x80f   :  { %12629 = vmatmul.mubr.bf16.gmra.mrb[36].mxu1 %v17062_v31 }
 0x810   :  { %12632 = vmatprep.mubr.bf16.mxu1 %v17089_v5 }
 0x817   :  { %12633 = vmatmul.mubr.bf16.gmra.mrb[40].mxu1 %v17099_v2 }
 0x818   :  { %12636 = vmatprep.mubr.bf16.mxu1 %v17135_v50 }
 0x81f   :  { %12637 = vmatmul.mubr.bf16.gmra.mrb[44].mxu1 %v17145_v32 }
 0x820   :  { %12640 = vmatprep.mubr.bf16.mxu1 %v17184_v16 }
 0x827   :  { %12641 = vmatmul.mubr.bf16.gmra.mrb[48].mxu1 %v17191_v61 }
 0x828   :  { %12644 = vmatprep.mubr.bf16.mxu1 %v17223_v13 }
 0x82f   :  { %12645 = vmatmul.mubr.bf16.gmra.mrb[52].mxu1 %v17230_v62 }
 0x830   :  { %12648 = vmatprep.mubr.bf16.mxu1 %v17260_v36 }
 0x837   :  { %12649 = vmatmul.mubr.bf16.gmra.mrb[56].mxu1 %v17267_v18 }
 0x838   :  { %12652 = vmatprep.mubr.bf16.mxu1 %v17292_v30 }
 0x83f   :  { %12653 = vmatmul.mubr.bf16.gmra.mrb[60].mxu1 %v17600_v7 }
 0x840   :  { %12672 = vmatprep.mubr.bf16.mxu1 %v19404_v24  ;;  %v14207_v24 = vld [vmem:[#allocation7 + $0x178] sm:$0xff]  }
 0x847   :  { %12673 = vmatmul.mubr.bf16.vlgmr.msra.gmra.mrb[0].mxu1 %v19405_v44 }
 0x848   :  { %12676 = vmatprep.mubr.bf16.mxu1 %v19406_v25  ;;  %12737 = vmatpush3.bf16.msra.mxu1 %v14200_v23  ;;  %v14206_v23 = vld [vmem:[#allocation7 + $0x170] sm:$0xff]   ;;  %v19417_v25 = vld [vmem:[#allocation84_spill] sm:$0xff] }
 0x849   :  { %12738 = vmatprep.subr.bf16.mxu1 %v14201_v42 }
 0x84c   :  { %12739 = vmatpush3.bf16.msra.mxu1 %v14201_v42  ;;  %v19411_v42 = vld [vmem:[#allocation72_spill] sm:$0xff] }
 0x84d   :  { %12740 = vmatprep.subr.bf16.mxu1 %v14202_v40 }
 0x84f   :  { %12677 = vmatmul.mubr.bf16.gmra.mrb[4].mxu1 %v19407_v59  ;;  %v19412_v59 = vld [vmem:[#allocation76_spill] sm:$0xff] }
 0x850   :  { %12680 = vmatprep.mubr.bf16.mxu1 %v19408_v14  ;;  %12741 = vmatpush3.bf16.msra.mxu1 %v14202_v40  ;;  %v14208_v40 = vld [vmem:[#allocation7 + $0x180] sm:$0xff]  }
 0x851   :  { %12742 = vmatprep.subr.bf16.mxu1 %v14203_v28 }
 0x854   :  { %12743 = vmatpush3.bf16.msra.mxu1 %v14203_v28  ;;  %v19413_v28 = vld [vmem:[#allocation77_spill] sm:$0xff] }
 0x855   :  { %12744 = vmatprep.subr.bf16.mxu1 %v14204_v57 }
 0x857   :  { %12681 = vmatmul.mubr.bf16.gmra.mrb[8].mxu1 %v19409_v54  ;;  %v19414_v54 = vld [vmem:[#allocation80_spill] sm:$0xff] }
 0x858   :  { %12684 = vmatprep.mubr.bf16.mxu1 %v19410_v43  ;;  %12745 = vmatpush3.bf16.msra.mxu1 %v14204_v57  ;;  %v19415_v43 = vld [vmem:[#allocation81_spill] sm:$0xff] }
 0x859   :  { %12746 = vmatprep.subr.bf16.mxu1 %v14205_v47  ;;  %v19416_v57 = vld [vmem:[#allocation49_spill] sm:$0xff] }
 0x85c   :  { %12747 = vmatpush3.bf16.msra.mxu1 %v14205_v47  ;;  %v8060_v47 = vshll.u32 %v17575_v8, 16 }
 0x85d   :  { %12748 = vmatprep.subr.bf16.mxu1 %v14206_v23 }
 0x85e   :  { %v8062_v14 = vrot.slane %v8060_v47, 1  ;;  %v19422_v47 = vld [vmem:[#allocation33_spill] sm:$0xff] }
 0x85f   :  { %12685 = vmatmul.mubr.bf16.gmra.mrb[12].mxu1 %v19411_v42  ;;  %v19418_v42 = vld [vmem:[#allocation87_spill] sm:$0xff] }
 0x860   :  { %12688 = vmatprep.mubr.bf16.mxu1 %v19412_v59  ;;  %12749 = vmatpush3.bf16.msra.mxu1 %v14206_v23  ;;  %v8058_v23 = vshrl.u32 %v17575_v8, 16  ;;  %v19419_v59 = vld [vmem:[#allocation86_spill] sm:$0xff] }
 0x861   :  { %12750 = vmatprep.subr.bf16.mxu1 %v14207_v24 }
 0x862   :  { %v8063_v44 = vor.u32 %v8062_v14, %v8058_v23  ;;  %v19427_v14 = vld [vmem:[#allocation14_spill] sm:$0xff]  ;;  %v19430_v23 = vld [vmem:[#allocation19_spill] sm:$0xff] }
 0x864   :  { %12751 = vmatpush3.bf16.msra.mxu1 %v14207_v24  ;;  %v8065_v24 = vshll.u32 %v19419_v59, 16 }
 0x865   :  { %12816 = vmatprep.subr.bf16.mxu1 %v14208_v40 }
 0x866   :  { %v8067_v30 = vrot.slane %v8065_v24, 1  ;;  %v19432_v24 = vld [vmem:[#allocation31_spill] sm:$0xff] }
 0x867   :  { %12689 = vmatmul.mubr.bf16.gmra.mrb[16].mxu1 %v19413_v28 }
 0x868   :  { %12692 = vmatprep.mubr.bf16.mxu1 %v19414_v54  ;;  %v17622_v28 = vsel %vm19420_vm2, %v8063_v44, %v8067_v30  ;;  %v19428_v30 = vld [vmem:[#allocation16_spill] sm:$0xff]  ;;  %v19429_v44 = vld [vmem:[#allocation17_spill] sm:$0xff] }
 0x869   :  { %19421 = vst [vmem:[#allocation28_spill] sm:$0xff] %v17622_v28 }
 0x86f   :  { %12693 = vmatmul.mubr.bf16.gmra.mrb[20].mxu1 %v19415_v43  ;;  %v19426_v43 = vld [vmem:[#allocation70_spill] sm:$0xff] }
 0x870   :  { %12696 = vmatprep.mubr.bf16.mxu1 %v19416_v57  ;;  %v19425_v57 = vld [vmem:[#allocation69_spill] sm:$0xff] }
 0x877   :  { %12697 = vmatmul.mubr.bf16.gmra.mrb[24].mxu1 %v19417_v25  ;;  %v19423_v25 = vld [vmem:[#allocation41_spill] sm:$0xff] }
 0x878   :  { %12700 = vmatprep.mubr.bf16.mxu1 %v19418_v42  ;;  %v19424_v42 = vld [vmem:[#allocation42_spill] sm:$0xff] }
 0x87f   :  { %12701 = vmatmul.mubr.bf16.gmra.mrb[28].mxu1 %v17622_v28 }
 0x880   :  { %12704 = vmatprep.mubr.bf16.mxu1 %v17079_v6  ;;  %v19431_v6 = vld [vmem:[#allocation27_spill] sm:$0xff] }
 0x887   :  { %12705 = vmatmul.mubr.bf16.gmra.mrb[32].mxu1 %v17053_v3 }
 0x888   :  { %12708 = vmatprep.mubr.bf16.mxu1 %v19422_v47 }
 0x88f   :  { %12709 = vmatmul.mubr.bf16.gmra.mrb[36].mxu1 %v19423_v25  ;;  %v8072_v25 = vshll.u32 %v17600_v7, 16 }
 0x890   :  { %12712 = vmatprep.mubr.bf16.mxu1 %v19424_v42  ;;  %v19433_v42 = vld [vmem:[#allocation37_spill] sm:$0xff] }
 0x891   :  { %v8074_v47 = vrot.slane %v8072_v25, 1  ;;  %v19439_v25 = vld [vmem:[#allocation60_spill] sm:$0xff] }
 0x897   :  { %12713 = vmatmul.mubr.bf16.gmra.mrb[40].mxu1 %v19425_v57  ;;  %v19434_v57 = vld [vmem:[#allocation38_spill] sm:$0xff] }
 0x898   :  { %12716 = vmatprep.mubr.bf16.mxu1 %v19426_v43  ;;  %v8070_v43 = vshrl.u32 %v17600_v7, 16 }
 0x89f   :  { %12717 = vmatmul.mubr.bf16.gmra.mrb[44].mxu1 %v19427_v14  ;;  %v19435_v14 = vld [vmem:[#allocation30_spill] sm:$0xff] }
 0x8a0   :  { %12720 = vmatprep.mubr.bf16.mxu1 %v19428_v30  ;;  %v8077_v3 = vshll.u32 %v19435_v14, 16  ;;  %v8075_v30 = vor.u32 %v8074_v47, %v8070_v43  ;;  %v19440_v43 = vld [vmem:[#allocation61_spill] sm:$0xff] }
 0x8a1   :  { %v14213_v47 = vld [vmem:[#allocation7 + $0x1a8] sm:$0xff]  }
 0x8a2   :  { %v8079_v28 = vrot.slane %v8077_v3, 1  ;;  %v19441_v3 = vld [vmem:[#allocation63_spill] sm:$0xff] }
 0x8a7   :  { %12721 = vmatmul.mubr.bf16.gmra.mrb[48].mxu1 %v19429_v44  ;;  %v17644_v44 = vsel %vm19436_vm15, %v8075_v30, %v8079_v28  ;;  %v14212_v28 = vld [vmem:[#allocation7 + $0x1a0] sm:$0xff]   ;;  %v19442_v30 = vld [vmem:[#allocation66_spill] sm:$0xff] }
 0x8a8   :  { %12724 = vmatprep.mubr.bf16.mxu1 %v19430_v23  ;;  %v19438_v23 = vld [vmem:[#allocation54_spill] sm:$0xff] }
 0x8af   :  { %12725 = vmatmul.mubr.bf16.gmra.mrb[52].mxu1 %v19431_v6  ;;  %v19437_v6 = vld [vmem:[#allocation56_spill] sm:$0xff] }
 0x8b0   :  { %12728 = vmatprep.mubr.bf16.mxu1 %v19432_v24  ;;  %v14209_v24 = vld [vmem:[#allocation7 + $0x188] sm:$0xff]  }
 0x8b7   :  { %12729 = vmatmul.mubr.bf16.gmra.mrb[56].mxu1 %v19433_v42  ;;  %v14211_v42 = vld [vmem:[#allocation7 + $0x198] sm:$0xff]  }
 0x8b8   :  { %12732 = vmatprep.mubr.bf16.mxu1 %v19434_v57  ;;  %v14210_v57 = vld [vmem:[#allocation7 + $0x190] sm:$0xff]  }
 0x8bf   :  { %12733 = vmatmul.mubr.bf16.gmra.mrb[60].mxu1 %v17644_v44 }
 0x8c0   :  { %12752 = vmatprep.mubr.bf16.mxu1 %v19437_v6  ;;  %v19443_v6 = vld [vmem:[#allocation68_spill] sm:$0xff] }
 0x8c7   :  { %12753 = vmatmul.mubr.bf16.vlgmr.msra.gmra.mrb[0].mxu1 %v19438_v23 }
 0x8c8   :  { %12756 = vmatprep.mubr.bf16.mxu1 %v19439_v25  ;;  %12817 = vmatpush3.bf16.msra.mxu1 %v14208_v40  ;;  %v14214_v40 = vld [vmem:[#allocation7 + $0x1b0] sm:$0xff]   ;;  %v19444_v25 = vld [vmem:[#allocation15_spill] sm:$0xff] }
 0x8c9   :  { %12818 = vmatprep.subr.bf16.mxu1 %v14209_v24 }
 0x8cc   :  { %12819 = vmatpush3.bf16.msra.mxu1 %v14209_v24  ;;  %v14215_v24 = vld [vmem:[#allocation7 + $0x1b8] sm:$0xff]  }
 0x8cd   :  { %12820 = vmatprep.subr.bf16.mxu1 %v14210_v57 }
 0x8cf   :  { %12757 = vmatmul.mubr.bf16.gmra.mrb[4].mxu1 %v19440_v43  ;;  %v19445_v43 = vld [vmem:[#allocation21_spill] sm:$0xff] }
 0x8d0   :  { %12760 = vmatprep.mubr.bf16.mxu1 %v19441_v3  ;;  %12821 = vmatpush3.bf16.msra.mxu1 %v14210_v57  ;;  %v14216_v57 = vld [vmem:[#allocation7 + $0x1c0] sm:$0xff]  }
 0x8d1   :  { %12822 = vmatprep.subr.bf16.mxu1 %v14211_v42 }
 0x8d4   :  { %12823 = vmatpush3.bf16.msra.mxu1 %v14211_v42  ;;  %v19446_v42 = vld [vmem:[#allocation22_spill] sm:$0xff] }
 0x8d5   :  { %12824 = vmatprep.subr.bf16.mxu1 %v14212_v28 }
 0x8d7   :  { %12761 = vmatmul.mubr.bf16.gmra.mrb[8].mxu1 %v19442_v30 }
 0x8d8   :  { %12764 = vmatprep.mubr.bf16.mxu1 %v19443_v6  ;;  %12825 = vmatpush3.bf16.msra.mxu1 %v14212_v28  ;;  %v19447_v6 = vld [vmem:[#allocation24_spill] sm:$0xff]  ;;  %v8505_v28 = vrot.slane %v17575_v8, 1 }
 0x8d9   :  { %12826 = vmatprep.subr.bf16.mxu1 %v14213_v47 }
 0x8dc   :  { %12827 = vmatpush3.bf16.msra.mxu1 %v14213_v47  ;;  %v8506_v47 = vrot.slane %v19419_v59, 1  ;;  %v8509_v59 = vrot.slane %v19435_v14, 1  ;;  %v14220_v14 = vld [vmem:[#allocation7 + $0x1e0] sm:$0xff]  }
 0x8dd   :  { %12828 = vmatprep.subr.bf16.mxu1 %v14214_v40 }
 0x8df   :  { %12765 = vmatmul.mubr.bf16.gmra.mrb[12].mxu1 %v19444_v25 }
 0x8e0   :  { %12768 = vmatprep.mubr.bf16.mxu1 %v19445_v43  ;;  %12829 = vmatpush3.bf16.msra.mxu1 %v14214_v40  ;;  %v17665_v40 = vsel %vm19346_vm0, %v8505_v28, %v8506_v47  ;;  %v14217_v28 = vld [vmem:[#allocation7 + $0x1c8] sm:$0xff]   ;;  %v14218_v47 = vld [vmem:[#allocation7 + $0x1d0] sm:$0xff]  }
 0x8e1   :  { %12830 = vmatprep.subr.bf16.mxu1 %v14215_v24 }
 0x8e4   :  { %12831 = vmatpush3.bf16.msra.mxu1 %v14215_v24 }
 0x8e5   :  { %12896 = vmatprep.subr.bf16.mxu1 %v14216_v57 }
 0x8e7   :  { %12769 = vmatmul.mubr.bf16.gmra.mrb[16].mxu1 %v19446_v42 }
 0x8e8   :  { %12772 = vmatprep.mubr.bf16.mxu1 %v17436_v19 }
 0x8ef   :  { %12773 = vmatmul.mubr.bf16.gmra.mrb[20].mxu1 %v19447_v6 }
 0x8f0   :  { %12776 = vmatprep.mubr.bf16.mxu1 %v17448_v21 }
 0x8f7   :  { %12777 = vmatmul.mubr.bf16.gmra.mrb[24].mxu1 %v17452_v22 }
 0x8f8   :  { %12780 = vmatprep.mubr.bf16.mxu1 %v17460_v51 }
 0x8ff   :  { %12781 = vmatmul.mubr.bf16.gmra.mrb[28].mxu1 %v17665_v40 }
 0x900   :  { %12784 = vmatprep.mubr.bf16.mxu1 %v17470_v12  ;;  %v8508_v12 = vrot.slane %v17600_v7, 1 }
 0x902   :  { %v17686_v24 = vsel %vm19448_vm1, %v8508_v12, %v8509_v59  ;;  %v19470_v12 = vld [vmem:[#allocation14_spill] sm:$0xff]  ;;  %v19471_v59 = vld [vmem:[#allocation16_spill] sm:$0xff] }
 0x907   :  { %12785 = vmatmul.mubr.bf16.gmra.mrb[32].mxu1 %v17464_v49 }
 0x908   :  { %12788 = vmatprep.mubr.bf16.mxu1 %v17479_v56 }
 0x90f   :  { %12789 = vmatmul.mubr.bf16.gmra.mrb[36].mxu1 %v17483_v46 }
 0x910   :  { %12792 = vmatprep.mubr.bf16.mxu1 %v17491_v33 }
 0x917   :  { %12793 = vmatmul.mubr.bf16.gmra.mrb[40].mxu1 %v17495_v45 }
 0x918   :  { %12796 = vmatprep.mubr.bf16.mxu1 %v17503_v60 }
 0x91f   :  { %12797 = vmatmul.mubr.bf16.gmra.mrb[44].mxu1 %v17507_v41 }
 0x920   :  { %12800 = vmatprep.mubr.bf16.mxu1 %v17515_v15 }
 0x927   :  { %12801 = vmatmul.mubr.bf16.gmra.mrb[48].mxu1 %v17519_v9 }
 0x928   :  { %12804 = vmatprep.mubr.bf16.mxu1 %v17527_v0 }
 0x92f   :  { %12805 = vmatmul.mubr.bf16.gmra.mrb[52].mxu1 %v17531_v35 }
 0x930   :  { %12808 = vmatprep.mubr.bf16.mxu1 %v17539_v39 }
 0x937   :  { %12809 = vmatmul.mubr.bf16.gmra.mrb[56].mxu1 %v17543_v29 }
 0x938   :  { %12812 = vmatprep.mubr.bf16.mxu1 %v17549_v48  ;;  %v14219_v48 = vld [vmem:[#allocation7 + $0x1d8] sm:$0xff]  }
 0x93f   :  { %12813 = vmatmul.mubr.bf16.gmra.mrb[60].mxu1 %v17686_v24 }
 0x940   :  { %12832 = vmatprep.mubr.bf16.mxu1 %v16408_v63  ;;  %v14221_v63 = vld [vmem:[#allocation7 + $0x1e8] sm:$0xff]  }
 0x947   :  { %12833 = vmatmul.mubr.bf16.vlgmr.msra.gmra.mrb[0].mxu1 %v16430_v1  ;;  %v14222_v1 = vld [vmem:[#allocation7 + $0x1f0] sm:$0xff]  }
 0x948   :  { %12836 = vmatprep.mubr.bf16.mxu1 %v16442_v58  ;;  %12897 = vmatpush3.bf16.msra.mxu1 %v14216_v57  ;;  %v14223_v58 = vld [vmem:[#allocation7 + $0x1f8] sm:$0xff]   ;;  %v19469_v57 = vld [vmem:[#allocation70_spill] sm:$0xff] }
 0x949   :  { %12898 = vmatprep.subr.bf16.mxu1 %v14217_v28 }
 0x94c   :  { %12899 = vmatpush3.bf16.msra.mxu1 %v14217_v28  ;;  %v19472_v28 = vld [vmem:[#allocation17_spill] sm:$0xff] }
 0x94d   :  { %12900 = vmatprep.subr.bf16.mxu1 %v14218_v47 }
 0x94f   :  { %12837 = vmatmul.mubr.bf16.gmra.mrb[4].mxu1 %v19331_v20  ;;  %v14224_v20 = vld [vmem:[#allocation7 + $0x200] sm:$0xff]  }
 0x950   :  { %12840 = vmatprep.mubr.bf16.mxu1 %v19332_v34  ;;  %12901 = vmatpush3.bf16.msra.mxu1 %v14218_v47  ;;  %v14230_v34 = vld [vmem:[#allocation7 + $0x230] sm:$0xff]   ;;  %v19473_v47 = vld [vmem:[#allocation19_spill] sm:$0xff] }
 0x951   :  { %12902 = vmatprep.subr.bf16.mxu1 %v14219_v48 }
 0x954   :  { %12903 = vmatpush3.bf16.msra.mxu1 %v14219_v48  ;;  %v19465_v48 = vld [vmem:[#allocation33_spill] sm:$0xff] }
 0x955   :  { %12904 = vmatprep.subr.bf16.mxu1 %v14220_v14 }
 0x957   :  { %12841 = vmatmul.mubr.bf16.gmra.mrb[8].mxu1 %v19333_v11  ;;  %v14231_v11 = vld [vmem:[#allocation7 + $0x238] sm:$0xff]  }
 0x958   :  { %12844 = vmatprep.mubr.bf16.mxu1 %v19334_v55  ;;  %12905 = vmatpush3.bf16.msra.mxu1 %v14220_v14  ;;  %v19457_v55 = vld [vmem:[#allocation76_spill] sm:$0xff]  ;;  %v19474_v14 = vld [vmem:[#allocation27_spill] sm:$0xff] }
 0x959   :  { %12906 = vmatprep.subr.bf16.mxu1 %v14221_v63 }
 0x95c   :  { %12907 = vmatpush3.bf16.msra.mxu1 %v14221_v63  ;;  %v19475_v63 = vld [vmem:[#allocation31_spill] sm:$0xff] }
 0x95d   :  { %12908 = vmatprep.subr.bf16.mxu1 %v14222_v1 }
 0x95f   :  { %12845 = vmatmul.mubr.bf16.gmra.mrb[12].mxu1 %v19335_v26  ;;  %v19458_v26 = vld [vmem:[#allocation77_spill] sm:$0xff] }
 0x960   :  { %12848 = vmatprep.mubr.bf16.mxu1 %v19336_v17  ;;  %12909 = vmatpush3.bf16.msra.mxu1 %v14222_v1  ;;  %v19459_v17 = vld [vmem:[#allocation81_spill] sm:$0xff] }
 0x961   :  { %12910 = vmatprep.subr.bf16.mxu1 %v14223_v58  ;;  %v19476_v1 = vld [vmem:[#allocation37_spill] sm:$0xff] }
 0x964   :  { %12911 = vmatpush3.bf16.msra.mxu1 %v14223_v58  ;;  %v19477_v58 = vld [vmem:[#allocation38_spill] sm:$0xff] }
 0x965   :  { %12976 = vmatprep.subr.bf16.mxu1 %v14224_v20 }
 0x967   :  { %12849 = vmatmul.mubr.bf16.gmra.mrb[16].mxu1 %v19337_v53  ;;  %v19460_v53 = vld [vmem:[#allocation49_spill] sm:$0xff] }
 0x968   :  { %12852 = vmatprep.mubr.bf16.mxu1 %v19338_v27  ;;  %v19461_v27 = vld [vmem:[#allocation84_spill] sm:$0xff] }
 0x96f   :  { %12853 = vmatmul.mubr.bf16.gmra.mrb[20].mxu1 %v19339_v37  ;;  %v19462_v37 = vld [vmem:[#allocation87_spill] sm:$0xff] }
 0x970   :  { %12856 = vmatprep.mubr.bf16.mxu1 %v19340_v52  ;;  %v19463_v52 = vld [vmem:[#allocation28_spill] sm:$0xff] }
 0x977   :  { %12857 = vmatmul.mubr.bf16.gmra.mrb[24].mxu1 %v19341_v38 }
 0x978   :  { %12860 = vmatprep.mubr.bf16.mxu1 %v17575_v8  ;;  %v19466_v8 = vld [vmem:[#allocation41_spill] sm:$0xff] }
 0x97f   :  { %12861 = vmatmul.mubr.bf16.gmra.mrb[28].mxu1 %v19341_v38  ;;  %v19464_v38 = vld [vmem:[#allocation32_spill] sm:$0xff] }
 0x980   :  { %12864 = vmatprep.mubr.bf16.mxu1 %v17024_v4  ;;  %v19449_v4 = vld [vmem:[#allocation23_spill] sm:$0xff] }
 0x987   :  { %12865 = vmatmul.mubr.bf16.gmra.mrb[32].mxu1 %v17050_v10  ;;  %v19450_v10 = vld [vmem:[#allocation13_spill] sm:$0xff] }
 0x988   :  { %12868 = vmatprep.mubr.bf16.mxu1 %v17062_v31  ;;  %v14225_v31 = vld [vmem:[#allocation7 + $0x208] sm:$0xff]  }
 0x98f   :  { %12869 = vmatmul.mubr.bf16.gmra.mrb[36].mxu1 %v17089_v5  ;;  %v19451_v5 = vld [vmem:[#allocation52_spill] sm:$0xff] }
 0x990   :  { %12872 = vmatprep.mubr.bf16.mxu1 %v17099_v2  ;;  %v19452_v2 = vld [vmem:[#allocation62_spill] sm:$0xff] }
 0x997   :  { %12873 = vmatmul.mubr.bf16.gmra.mrb[40].mxu1 %v17135_v50  ;;  %v14226_v50 = vld [vmem:[#allocation7 + $0x210] sm:$0xff]  }
 0x998   :  { %12876 = vmatprep.mubr.bf16.mxu1 %v17145_v32  ;;  %v14227_v32 = vld [vmem:[#allocation7 + $0x218] sm:$0xff]  }
 0x99f   :  { %12877 = vmatmul.mubr.bf16.gmra.mrb[44].mxu1 %v17184_v16  ;;  %v19453_v16 = vld [vmem:[#allocation12_spill] sm:$0xff] }
 0x9a0   :  { %12880 = vmatprep.mubr.bf16.mxu1 %v17191_v61  ;;  %v19454_v61 = vld [vmem:[#allocation20_spill] sm:$0xff] }
 0x9a7   :  { %12881 = vmatmul.mubr.bf16.gmra.mrb[48].mxu1 %v17223_v13  ;;  %v14228_v13 = vld [vmem:[#allocation7 + $0x220] sm:$0xff]  }
 0x9a8   :  { %12884 = vmatprep.mubr.bf16.mxu1 %v17230_v62  ;;  %v14229_v62 = vld [vmem:[#allocation7 + $0x228] sm:$0xff]  }
 0x9af   :  { %12885 = vmatmul.mubr.bf16.gmra.mrb[52].mxu1 %v17260_v36  ;;  %v19455_v36 = vld [vmem:[#allocation44_spill] sm:$0xff] }
 0x9b0   :  { %12888 = vmatprep.mubr.bf16.mxu1 %v17267_v18  ;;  %v19456_v18 = vld [vmem:[#allocation72_spill] sm:$0xff] }
 0x9b7   :  { %12889 = vmatmul.mubr.bf16.gmra.mrb[56].mxu1 %v19449_v4 }
 0x9b8   :  { %12892 = vmatprep.mubr.bf16.mxu1 %v17600_v7  ;;  %v19467_v7 = vld [vmem:[#allocation42_spill] sm:$0xff] }
 0x9bf   :  { %12893 = vmatmul.mubr.bf16.gmra.mrb[60].mxu1 %v19449_v4  ;;  %v19479_v4 = vld [vmem:[#allocation61_spill] sm:$0xff] }
 0x9c0   :  { %12912 = vmatprep.mubr.bf16.mxu1 %v19450_v10  ;;  %v19480_v10 = vld [vmem:[#allocation68_spill] sm:$0xff] }
 0x9c7   :  { %12913 = vmatmul.mubr.bf16.vlgmr.msra.gmra.mrb[0].mxu1 %v19451_v5 }
 0x9c8   :  { %12916 = vmatprep.mubr.bf16.mxu1 %v19452_v2  ;;  %12977 = vmatpush3.bf16.msra.mxu1 %v14224_v20  ;;  %v19478_v20 = vld [vmem:[#allocation60_spill] sm:$0xff] }
 0x9c9   :  { %12978 = vmatprep.subr.bf16.mxu1 %v14225_v31 }
 0x9cc   :  { %12979 = vmatpush3.bf16.msra.mxu1 %v14225_v31 }
 0x9cd   :  { %12980 = vmatprep.subr.bf16.mxu1 %v14226_v50 }
 0x9cf   :  { %12917 = vmatmul.mubr.bf16.gmra.mrb[4].mxu1 %v19453_v16 }
 0x9d0   :  { %12920 = vmatprep.mubr.bf16.mxu1 %v19454_v61  ;;  %12981 = vmatpush3.bf16.msra.mxu1 %v14226_v50 }
 0x9d1   :  { %12982 = vmatprep.subr.bf16.mxu1 %v14227_v32 }
 0x9d4   :  { %12983 = vmatpush3.bf16.msra.mxu1 %v14227_v32 }
 0x9d5   :  { %12984 = vmatprep.subr.bf16.mxu1 %v14228_v13 }
 0x9d7   :  { %12921 = vmatmul.mubr.bf16.gmra.mrb[8].mxu1 %v19455_v36 }
 0x9d8   :  { %12924 = vmatprep.mubr.bf16.mxu1 %v19456_v18  ;;  %12985 = vmatpush3.bf16.msra.mxu1 %v14228_v13 }
 0x9d9   :  { %12986 = vmatprep.subr.bf16.mxu1 %v14229_v62 }
 0x9dc   :  { %12987 = vmatpush3.bf16.msra.mxu1 %v14229_v62 }
 0x9dd   :  { %12988 = vmatprep.subr.bf16.mxu1 %v14230_v34 }
 0x9df   :  { %12925 = vmatmul.mubr.bf16.gmra.mrb[12].mxu1 %v19457_v55 }
 0x9e0   :  { %12928 = vmatprep.mubr.bf16.mxu1 %v19458_v26  ;;  %12989 = vmatpush3.bf16.msra.mxu1 %v14230_v34 }
 0x9e1   :  { %12990 = vmatprep.subr.bf16.mxu1 %v14231_v11 }
 0x9e4   :  { %12991 = vmatpush3.bf16.msra.mxu1 %v14231_v11 }
 0x9e7   :  { %12929 = vmatmul.mubr.bf16.gmra.mrb[16].mxu1 %v19414_v54  ;;  %v19468_v54 = vld [vmem:[#allocation69_spill] sm:$0xff] }
 0x9e8   :  { %12932 = vmatprep.mubr.bf16.mxu1 %v19459_v17 }
 0x9ef   :  { %12933 = vmatmul.mubr.bf16.gmra.mrb[20].mxu1 %v19460_v53 }
 0x9f0   :  { %12936 = vmatprep.mubr.bf16.mxu1 %v19461_v27 }
 0x9f7   :  { %12937 = vmatmul.mubr.bf16.gmra.mrb[24].mxu1 %v19462_v37 }
 0x9f8   :  { %12940 = vmatprep.mubr.bf16.mxu1 %v19463_v52 }
 0x9ff   :  { %12941 = vmatmul.mubr.bf16.gmra.mrb[28].mxu1 %v19462_v37 }
 0xa00   :  { %12944 = vmatprep.mubr.bf16.mxu1 %v19464_v38 }
 0xa07   :  { %12945 = vmatmul.mubr.bf16.gmra.mrb[32].mxu1 %v19465_v48 }
 0xa08   :  { %12948 = vmatprep.mubr.bf16.mxu1 %v19466_v8 }
 0xa0f   :  { %12949 = vmatmul.mubr.bf16.gmra.mrb[36].mxu1 %v19467_v7 }
 0xa10   :  { %12952 = vmatprep.mubr.bf16.mxu1 %v19468_v54 }
 0xa17   :  { %12953 = vmatmul.mubr.bf16.gmra.mrb[40].mxu1 %v19469_v57 }
 0xa18   :  { %12956 = vmatprep.mubr.bf16.mxu1 %v19470_v12 }
 0xa1f   :  { %12957 = vmatmul.mubr.bf16.gmra.mrb[44].mxu1 %v19471_v59 }
 0xa20   :  { %12960 = vmatprep.mubr.bf16.mxu1 %v19472_v28 }
 0xa27   :  { %12961 = vmatmul.mubr.bf16.gmra.mrb[48].mxu1 %v19473_v47 }
 0xa28   :  { %12964 = vmatprep.mubr.bf16.mxu1 %v19474_v14 }
 0xa2f   :  { %12965 = vmatmul.mubr.bf16.gmra.mrb[52].mxu1 %v19475_v63 }
 0xa30   :  { %12968 = vmatprep.mubr.bf16.mxu1 %v19476_v1 }
 0xa37   :  { %12969 = vmatmul.mubr.bf16.gmra.mrb[56].mxu1 %v19477_v58 }
 0xa38   :  { %12972 = vmatprep.mubr.bf16.mxu1 %v17644_v44 }
 0xa3f   :  { %12973 = vmatmul.mubr.bf16.gmra.mrb[60].mxu1 %v19477_v58 }
 0xa40   :  { %12992 = vmatprep.mubr.bf16.mxu1 %v19438_v23 }
 0xa47   :  { %12993 = vmatmul.mubr.bf16.vlgmr.msra.gmra.mrb[0].mxu1 %v19478_v20 }
 0xa48   :  { %12996 = vmatprep.mubr.bf16.mxu1 %v19479_v4 }
 0xa4f   :  { %12997 = vmatmul.mubr.bf16.gmra.mrb[4].mxu1 %v19441_v3 }
 0xa50   :  { %13000 = vmatprep.mubr.bf16.mxu1 %v19442_v30 }
 0xa57   :  { %13001 = vmatmul.mubr.bf16.gmra.mrb[8].mxu1 %v19480_v10 }
 0xa58   :  { %13004 = vmatprep.mubr.bf16.mxu1 %v19444_v25 }
 0xa5f   :  { %13005 = vmatmul.mubr.bf16.gmra.mrb[12].mxu1 %v19445_v43 }
 0xa60   :  { %13008 = vmatprep.mubr.bf16.mxu1 %v19446_v42 }
 0xa67   :  { %13009 = vmatmul.mubr.bf16.gmra.mrb[16].mxu1 %v17436_v19  ;;  %v19481_v19 = vld [vmem:[#allocation26_spill] sm:$0xff] }
 0xa68   :  { %13012 = vmatprep.mubr.bf16.mxu1 %v19447_v6 }
 0xa6f   :  { %13013 = vmatmul.mubr.bf16.gmra.mrb[20].mxu1 %v17448_v21 }
 0xa70   :  { %13016 = vmatprep.mubr.bf16.mxu1 %v17452_v22  ;;  %v17788_v22 = vld [vmem:[%s18536_s4] ss:$0 sm:$0xff]  ;;  %s14406_s4 = smov [#allocation8]  }
 0xa71   :  { %s18502_s8 = sshll.u32 %s14406_s4, 4  ;;  %s10738_s8 = int_to_ptr.vmem [resolvable:$true] %s18502_s8 }
 0xa72   :  { %s14371_s9 = scalar_lea.vmem %s10738_s8, 8192  ;;  %p14376_p11 = scmp.lt.s32.totalorder %s10738_s8, %s10738_s8 }
 0xa73   :  { %p14372_p10 = scmp.ne.s32.totalorder %s10738_s8, %s14371_s9  ;;  %p14377_p12 = scmp.lt.s32.totalorder %s14371_s9, %s14371_s9 }
 0xa75   :  { %p14378_p13 = por %p14377_p12, %p14376_p11 }
 0xa77   :  { %13017 = vmatmul.mubr.bf16.gmra.mrb[24].mxu1 %v17460_v51  ;;  %p14379_p0 = pnand %p14378_p13, %p14372_p10 }
 0xa78   :  { %13020 = vmatprep.mubr.bf16.mxu1 %v17665_v40 }
 0xa7f   :  { %13021 = vmatmul.mubr.bf16.gmra.mrb[28].mxu1 %v17460_v51 }
 0xa80   :  { %13024 = vmatprep.mubr.bf16.mxu1 %v17464_v49 }
 0xa87   :  { %13025 = vmatmul.mubr.bf16.gmra.mrb[32].mxu1 %v17479_v56 }
 0xa88   :  { %13028 = vmatprep.mubr.bf16.mxu1 %v17483_v46 }
 0xa8f   :  { %13029 = vmatmul.mubr.bf16.gmra.mrb[36].mxu1 %v17491_v33 }
 0xa90   :  { %13032 = vmatprep.mubr.bf16.mxu1 %v17495_v45 }
 0xa97   :  { %13033 = vmatmul.mubr.bf16.gmra.mrb[40].mxu1 %v17503_v60 }
 0xa98   :  { %13036 = vmatprep.mubr.bf16.mxu1 %v17507_v41 }
 0xa9f   :  { %13037 = vmatmul.mubr.bf16.gmra.mrb[44].mxu1 %v17515_v15 }
 0xaa0   :  { %13040 = vmatprep.mubr.bf16.mxu1 %v17519_v9 }
 0xaa7   :  { %13041 = vmatmul.mubr.bf16.gmra.mrb[48].mxu1 %v17527_v0 }
 0xaa8   :  { %13044 = vmatprep.mubr.bf16.mxu1 %v17531_v35 }
 0xaaf   :  { %13045 = vmatmul.mubr.bf16.gmra.mrb[52].mxu1 %v17539_v39 }
 0xab0   :  { %13048 = vmatprep.mubr.bf16.mxu1 %v17543_v29 }
 0xab7   :  { %13049 = vmatmul.mubr.bf16.gmra.mrb[56].mxu1 %v19481_v19 }
 0xab8   :  { %13052 = vmatprep.mubr.bf16.mxu1 %v17686_v24 }
 0xabf   :  { %13053 = vmatmul.mubr.bf16.gmra.mrb[60].mxu1 %v19481_v19 }
 0xb1a   :  { %v12994_v21 = vpop.f32.mrb[0].mxu1 }
 0xb1b   :  { %v9866_v51 = vpop.f32.mrb[1].mxu1  ;;  %v17797_v45 = vadd.f32 %v12994_v21, %v17788_v22 }
 0xb1c   :  { %v12995_v49 = vpop.f32.mrb[2].mxu1  ;;  %v17791_v46 = vadd.f32 %v17788_v22, %v9866_v51 }
 0xb1d   :  { %v9869_v56 = vpop.f32.mrb[3].mxu1  ;;  %v17802_v41 = vadd.f32 %v12995_v49, %v17788_v22 }
 0xb1e   :  { %v17794_v33 = vadd.f32 %v17788_v22, %v9869_v56 }
 0xb20   :  { %v10256_v60 = vadd.f32 %v17794_v33, %v17791_v46 }
 0xb22   :  { %v10257_v15 = vadd.f32 %v10256_v60, %v17797_v45  ;;  %v12998_v9 = vpop.f32.mrb[4].mxu1 }
 0xb23   :  { %v9882_v0 = vpop.f32.mrb[5].mxu1  ;;  %v17814_v43 = vadd.f32 %v12998_v9, %v17788_v22 }
 0xb24   :  { %v17806_v35 = vadd.f32 %v17788_v22, %v9882_v0  ;;  %v10258_v39 = vadd.f32 %v10257_v15, %v17802_v41  ;;  %v12999_v29 = vpop.f32.mrb[6].mxu1 }
 0xb25   :  { %v9885_v44 = vpop.f32.mrb[7].mxu1  ;;  %v17818_v30 = vadd.f32 %v12999_v29, %v17788_v22 }
 0xb26   :  { %v10259_v23 = vadd.f32 %v10258_v39, %v17806_v35  ;;  %v17811_v25 = vadd.f32 %v17788_v22, %v9885_v44 }
 0xb28   :  { %v10260_v3 = vadd.f32 %v10259_v23, %v17811_v25 }
 0xb2a   :  { %v10261_v6 = vadd.f32 %v10260_v3, %v17814_v43  ;;  %v13002_v42 = vpop.f32.mrb[8].mxu1 }
 0xb2b   :  { %v9898_v40 = vpop.f32.mrb[9].mxu1  ;;  %v17830_v16 = vadd.f32 %v13002_v42, %v17788_v22 }
 0xb2c   :  { %v17822_v24 = vadd.f32 %v17788_v22, %v9898_v40  ;;  %v10262_v31 = vadd.f32 %v10261_v6, %v17818_v30  ;;  %v13003_v5 = vpop.f32.mrb[10].mxu1 }
 0xb2d   :  { %v9901_v2 = vpop.f32.mrb[11].mxu1  ;;  %v17834_v13 = vadd.f32 %v13003_v5, %v17788_v22 }
 0xb2e   :  { %v10263_v50 = vadd.f32 %v10262_v31, %v17822_v24  ;;  %v17827_v32 = vadd.f32 %v17788_v22, %v9901_v2 }
 0xb30   :  { %v10264_v61 = vadd.f32 %v10263_v50, %v17827_v32 }
 0xb32   :  { %v10265_v62 = vadd.f32 %v10264_v61, %v17830_v16  ;;  %v13006_v36 = vpop.f32.mrb[12].mxu1 }
 0xb33   :  { %v9914_v18 = vpop.f32.mrb[13].mxu1  ;;  %v17846_v27 = vadd.f32 %v13006_v36, %v17788_v22 }
 0xb34   :  { %v17838_v34 = vadd.f32 %v17788_v22, %v9914_v18  ;;  %v10266_v11 = vadd.f32 %v10265_v62, %v17834_v13  ;;  %v13007_v55 = vpop.f32.mrb[14].mxu1 }
 0xb35   :  { %v9917_v26 = vpop.f32.mrb[15].mxu1  ;;  %v17850_v52 = vadd.f32 %v13007_v55, %v17788_v22 }
 0xb36   :  { %v10267_v17 = vadd.f32 %v10266_v11, %v17838_v34  ;;  %v17843_v53 = vadd.f32 %v17788_v22, %v9917_v26 }
 0xb38   :  { %v10268_v37 = vadd.f32 %v10267_v17, %v17843_v53 }
 0xb3a   :  { %v10269_v38 = vadd.f32 %v10268_v37, %v17846_v27  ;;  %v13010_v48 = vpop.f32.mrb[16].mxu1 }
 0xb3b   :  { %v9930_v8 = vpop.f32.mrb[17].mxu1  ;;  %v17862_v47 = vadd.f32 %v13010_v48, %v17788_v22 }
 0xb3c   :  { %v17854_v7 = vadd.f32 %v17788_v22, %v9930_v8  ;;  %v10270_v54 = vadd.f32 %v10269_v38, %v17850_v52  ;;  %v13011_v57 = vpop.f32.mrb[18].mxu1 }
 0xb3d   :  { %v9933_v12 = vpop.f32.mrb[19].mxu1  ;;  %v17866_v63 = vadd.f32 %v13011_v57, %v17788_v22 }
 0xb3e   :  { %v10271_v59 = vadd.f32 %v10270_v54, %v17854_v7  ;;  %v17859_v28 = vadd.f32 %v17788_v22, %v9933_v12 }
 0xb40   :  { %v10272_v14 = vadd.f32 %v10271_v59, %v17859_v28 }
 0xb42   :  { %v10273_v1 = vadd.f32 %v10272_v14, %v17862_v47  ;;  %v13014_v58 = vpop.f32.mrb[20].mxu1 }
 0xb43   :  { %v9946_v20 = vpop.f32.mrb[21].mxu1  ;;  %v17878_v56 = vadd.f32 %v13014_v58, %v17788_v22 }
 0xb44   :  { %v17870_v4 = vadd.f32 %v17788_v22, %v9946_v20  ;;  %v10274_v10 = vadd.f32 %v10273_v1, %v17866_v63  ;;  %v13015_v19 = vpop.f32.mrb[22].mxu1 }
 0xb45   :  { %v9949_v21 = vpop.f32.mrb[23].mxu1  ;;  %v17882_v15 = vadd.f32 %v13015_v19, %v17788_v22 }
 0xb46   :  { %v10275_v51 = vadd.f32 %v10274_v10, %v17870_v4  ;;  %v17875_v49 = vadd.f32 %v17788_v22, %v9949_v21 }
 0xb48   :  { %v10276_v60 = vadd.f32 %v10275_v51, %v17875_v49 }
 0xb4a   :  { %v10277_v9 = vadd.f32 %v10276_v60, %v17878_v56  ;;  %v13018_v0 = vpop.f32.mrb[24].mxu1 }
 0xb4b   :  { %v9962_v39 = vpop.f32.mrb[25].mxu1  ;;  %v17894_v40 = vadd.f32 %v13018_v0, %v17788_v22 }
 0xb4c   :  { %v17886_v29 = vadd.f32 %v17788_v22, %v9962_v39  ;;  %v10278_v44 = vadd.f32 %v10277_v9, %v17882_v15  ;;  %v13019_v23 = vpop.f32.mrb[26].mxu1 }
 0xb4d   :  { %v9965_v3 = vpop.f32.mrb[27].mxu1  ;;  %v17898_v5 = vadd.f32 %v13019_v23, %v17788_v22 }
 0xb4e   :  { %v10279_v6 = vadd.f32 %v10278_v44, %v17886_v29  ;;  %v17891_v42 = vadd.f32 %v17788_v22, %v9965_v3 }
 0xb50   :  { %v10280_v31 = vadd.f32 %v10279_v6, %v17891_v42 }
 0xb52   :  { %v10281_v2 = vadd.f32 %v10280_v31, %v17894_v40  ;;  %v13022_v50 = vpop.f32.mrb[28].mxu1 }
 0xb53   :  { %v9978_v61 = vpop.f32.mrb[29].mxu1  ;;  %v10222_v17 = vadd.f32 %v13022_v50, %v17788_v22 }
 0xb54   :  { %v10220_v62 = vadd.f32 %v17788_v22, %v9978_v61  ;;  %v10282_v36 = vadd.f32 %v10281_v2, %v17898_v5  ;;  %v13023_v18 = vpop.f32.mrb[30].mxu1 }
 0xb55   :  { %v9981_v11 = vpop.f32.mrb[31].mxu1  ;;  %v10223_v38 = vadd.f32 %v13023_v18, %v17788_v22 }
 0xb56   :  { %v10283_v55 = vadd.f32 %v10282_v36, %v10220_v62  ;;  %v10221_v26 = vadd.f32 %v17788_v22, %v9981_v11 }
 0xb58   :  { %v10284_v37 = vadd.f32 %v10283_v55, %v10221_v26 }
 0xb5a   :  { %v10285_v48 = vadd.f32 %v10284_v37, %v10222_v17  ;;  %v13026_v8 = vpop.f32.mrb[32].mxu1 }
 0xb5b   :  { %v9994_v54 = vpop.f32.mrb[33].mxu1  ;;  %v17915_v51 = vadd.f32 %v13026_v8, %v17788_v22 }
 0xb5c   :  { %v10286_v57 = vadd.f32 %v10285_v48, %v10223_v38  ;;  %v13027_v12 = vpop.f32.mrb[34].mxu1  ;;  %v17910_v58 = vadd.f32 %v17788_v22, %v9994_v54 }
 0xb5d   :  { %v9997_v59 = vpop.f32.mrb[35].mxu1  ;;  %v17919_v3 = vadd.f32 %v13027_v12, %v17788_v22 }
 0xb5e   :  { %v10287_v14 = vrot.slane %v10286_v57, 4  ;;  %v17907_v1 = vadd.f32 %v17788_v22, %v9997_v59 }
 0xb60   :  { %v10288_v20 = vadd.f32 %v10287_v14, %v10286_v57  ;;  %v10293_v10 = vadd.f32 %v17907_v1, %v17910_v58 }
 0xb62   :  { %v10289_v19 = vrot.slane %v10288_v20, 2  ;;  %v13030_v21 = vpop.f32.mrb[36].mxu1  ;;  %v10294_v39 = vadd.f32 %v10293_v10, %v17915_v51 }
 0xb63   :  { %v10010_v60 = vpop.f32.mrb[37].mxu1 }
 0xb64   :  { %v10290_v9 = vadd.f32 %v10289_v19, %v10288_v20  ;;  %v13031_v0 = vpop.f32.mrb[38].mxu1  ;;  %v17922_v31 = vadd.f32 %v17788_v22, %v10010_v60  ;;  %v10295_v2 = vadd.f32 %v10294_v39, %v17919_v3  ;;  %v18035_v19 = vadd.f32 %v13030_v21, %v17788_v22 }
 0xb65   :  { %v10013_v44 = vpop.f32.mrb[39].mxu1 }
 0xb66   :  { %v10291_v23 = vrot.slane %v10290_v9, 1  ;;  %v10296_v11 = vadd.f32 %v10295_v2, %v17922_v31  ;;  %v17931_v55 = vadd.f32 %v17788_v22, %v10013_v44 }
 0xb68   :  { %v10292_v6 = vadd.f32 %v10291_v23, %v10290_v9  ;;  %v18051_v9 = vadd.f32 %v13031_v0, %v17788_v22 }
 0xb6a   :  { %v17925_v50 = vmul.f32 0.00390625, %v10292_v6  ;;  %v13034_v61 = vpop.f32.mrb[40].mxu1 }
 0xb6b   :  { %v10026_v36 = vpop.f32.mrb[41].mxu1 }
 0xb6c   :  { %v17927_v18 = vpop.f32.mrb[42].mxu1  ;;  %v17935_v48 = vsub.f32 %v17822_v24, %v17925_v50  ;;  %v17939_v8 = vsub.f32 %v17827_v32, %v17925_v50  ;;  %v17943_v54 = vsub.f32 %v17830_v16, %v17925_v50  ;;  %v17947_v57 = vsub.f32 %v17834_v13, %v17925_v50 }
 0xb6d   :  { %v10029_v37 = vpop.f32.mrb[43].mxu1  ;;  %v17951_v12 = vsub.f32 %v17838_v34, %v17925_v50  ;;  %v17955_v24 = vsub.f32 %v17843_v53, %v17925_v50  ;;  %v17959_v32 = vsub.f32 %v17846_v27, %v17925_v50  ;;  %v17963_v16 = vsub.f32 %v17850_v52, %v17925_v50 }
 0xb6e   :  { %19482 = vst [vmem:[#allocation29_spill] sm:$0xff] %v17935_v48  ;;  %19483 = vst [vmem:[#allocation36_spill] sm:$0xff] %v17939_v8  ;;  %v17967_v13 = vsub.f32 %v17854_v7, %v17925_v50  ;;  %v17971_v34 = vsub.f32 %v17859_v28, %v17925_v50  ;;  %v17975_v53 = vsub.f32 %v17862_v47, %v17925_v50 }
 0xb6f   :  { %19484 = vst [vmem:[#allocation39_spill] sm:$0xff] %v17943_v54  ;;  %19485 = vst [vmem:[#allocation50_spill] sm:$0xff] %v17947_v57  ;;  %v17979_v27 = vsub.f32 %v17866_v63, %v17925_v50  ;;  %v17983_v52 = vsub.f32 %v17870_v4, %v17925_v50  ;;  %v17987_v7 = vsub.f32 %v17875_v49, %v17925_v50 }
 0xb70   :  { %19486 = vst [vmem:[#allocation55_spill] sm:$0xff] %v17951_v12  ;;  %19487 = vst [vmem:[#allocation64_spill] sm:$0xff] %v17955_v24  ;;  %v17991_v28 = vsub.f32 %v17878_v56, %v17925_v50  ;;  %v17995_v47 = vsub.f32 %v17882_v15, %v17925_v50  ;;  %v17999_v63 = vsub.f32 %v17886_v29, %v17925_v50 }
 0xb71   :  { %19488 = vst [vmem:[#allocation18_spill] sm:$0xff] %v17959_v32  ;;  %19489 = vst [vmem:[#allocation34_spill] sm:$0xff] %v17987_v7  ;;  %v18003_v4 = vsub.f32 %v17891_v42, %v17925_v50  ;;  %v18007_v49 = vsub.f32 %v17894_v40, %v17925_v50  ;;  %v18011_v56 = vsub.f32 %v17898_v5, %v17925_v50 }
 0xb72   :  { %19490 = vst [vmem:[#allocation35_spill] sm:$0xff] %v17995_v47  ;;  %19491 = vst [vmem:[#allocation73_spill] sm:$0xff] %v17999_v63  ;;  %v13038_v59 = vpop.f32.mrb[44].mxu1  ;;  %v18014_v15 = vsub.f32 %v10220_v62, %v17925_v50  ;;  %v18017_v14 = vsub.f32 %v10221_v26, %v17925_v50  ;;  %v18020_v29 = vsub.f32 %v10222_v17, %v17925_v50 }
 0xb73   :  { %19492 = vst [vmem:[#allocation74_spill] sm:$0xff] %v18011_v56  ;;  %v18023_v42 = vsub.f32 %v10223_v38, %v17925_v50  ;;  %v10042_v20 = vpop.f32.mrb[45].mxu1  ;;  %v18027_v40 = vsub.f32 %v17791_v46, %v17925_v50  ;;  %v18031_v5 = vsub.f32 %v17794_v33, %v17925_v50  ;;  %v10297_v62 = vadd.f32 %v10296_v11, %v17931_v55 }
 0xb74   :  { %19493 = vst [vmem:[#allocation71_spill] sm:$0xff] %v18014_v15  ;;  %v13039_v10 = vpop.f32.mrb[46].mxu1  ;;  %v18039_v17 = vsub.f32 %v17797_v45, %v17925_v50  ;;  %v18048_v60 = vsub.f32 %v17802_v41, %v17925_v50  ;;  %v18055_v45 = vsub.f32 %v17806_v35, %v17925_v50  ;;  %v18060_v6 = vadd.f32 %v17788_v22, %v10026_v36 }
 0xb75   :  { %19494 = vst [vmem:[#allocation78_spill] sm:$0xff] %v18031_v5  ;;  %v10045_v26 = vpop.f32.mrb[47].mxu1  ;;  %v10396_v38 = vmul.f32 %v18027_v40, %v18027_v40  ;;  %v10397_v46 = vmul.f32 %v18031_v5, %v18031_v5  ;;  %v10298_v33 = vadd.f32 %v10297_v62, %v18035_v19  ;;  %v18065_v0 = vsub.f32 %v17811_v25, %v17925_v50 }
 0xb76   :  { %19495 = vst [vmem:[#allocation46_spill] sm:$0xff] %v18039_v17  ;;  %19496 = vst [vmem:[#allocation57_spill] sm:$0xff] %v18048_v60  ;;  %v10398_v44 = vmul.f32 %v18039_v17, %v18039_v17  ;;  %v18068_v11 = vadd.f32 %v17788_v22, %v10029_v37  ;;  %v10399_v62 = vmul.f32 %v18048_v60, %v18048_v60 }
 0xb77   :  { %19497 = vst [vmem:[#allocation58_spill] sm:$0xff] %v18055_v45  ;;  %v10460_v23 = vadd.f32 %v10397_v46, %v10396_v38  ;;  %v10299_v2 = vadd.f32 %v10298_v33, %v18051_v9  ;;  %19498 = vst [vmem:[#allocation67_spill] sm:$0xff] %v18065_v0  ;;  %v18074_v36 = vadd.f32 %v13034_v61, %v17788_v22 }
 0xb78   :  { %v18078_v46 = vsub.f32 %v17814_v43, %v17925_v50  ;;  %v10400_v25 = vmul.f32 %v18055_v45, %v18055_v45  ;;  %v18085_v17 = vsub.f32 %v17818_v30, %v17925_v50  ;;  %v18091_v61 = vadd.f32 %v17927_v18, %v17788_v22 }
 0xb79   :  { %v10461_v5 = vadd.f32 %v10460_v23, %v10398_v44  ;;  %v10300_v38 = vadd.f32 %v10299_v2, %v18060_v6  ;;  %v10401_v44 = vmul.f32 %v18065_v0, %v18065_v0  ;;  %v18095_v2 = vadd.f32 %v17788_v22, %v10042_v20 }
 0xb7a   :  { %v13042_v21 = vpop.f32.mrb[48].mxu1  ;;  %19499 = vst [vmem:[#allocation25_spill] sm:$0xff] %v18078_v46  ;;  %19500 = vst [vmem:[#allocation51_spill] sm:$0xff] %v18085_v17  ;;  %v18101_v0 = vadd.f32 %v17788_v22, %v10045_v26  ;;  %v10403_v18 = vmul.f32 %v18085_v17, %v18085_v17  ;;  %v10404_v45 = vmul.f32 %v17935_v48, %v17935_v48 }
 0xb7b   :  { %v10058_v39 = vpop.f32.mrb[49].mxu1  ;;  %v10462_v33 = vadd.f32 %v10461_v5, %v10399_v62  ;;  %v10301_v37 = vadd.f32 %v10300_v38, %v18068_v11  ;;  %v10402_v38 = vmul.f32 %v18078_v46, %v18078_v46  ;;  %v18109_v46 = vadd.f32 %v13038_v59, %v17788_v22 }
 0xb7c   :  { %v13043_v41 = vpop.f32.mrb[50].mxu1  ;;  %v10405_v26 = vmul.f32 %v17939_v8, %v17939_v8  ;;  %v10406_v59 = vmul.f32 %v17943_v54, %v17943_v54  ;;  %v10408_v8 = vmul.f32 %v17951_v12, %v17951_v12  ;;  %v18133_v54 = vadd.f32 %v13042_v21, %v17788_v22 }
 0xb7d   :  { %v10061_v35 = vpop.f32.mrb[51].mxu1  ;;  %v10463_v23 = vadd.f32 %v10462_v33, %v10400_v25  ;;  %v10302_v43 = vadd.f32 %v10301_v37, %v18074_v36  ;;  %v10410_v21 = vmul.f32 %v17959_v32, %v17959_v32 }
 0xb7f   :  { %v10464_v30 = vadd.f32 %v10463_v23, %v10401_v44  ;;  %v10303_v50 = vadd.f32 %v10302_v43, %v18091_v61  ;;  %v18115_v43 = vadd.f32 %v13039_v10, %v17788_v22  ;;  %v10407_v10 = vmul.f32 %v17947_v57, %v17947_v57 }
 0xb81   :  { %v10465_v37 = vadd.f32 %v10464_v30, %v10402_v38  ;;  %v10304_v20 = vadd.f32 %v10303_v50, %v18095_v2  ;;  %v18119_v30 = vadd.f32 %v17788_v22, %v10058_v39 }
 0xb82   :  { %v13046_v5 = vpop.f32.mrb[52].mxu1 }
 0xb83   :  { %v10074_v62 = vpop.f32.mrb[53].mxu1  ;;  %v10466_v60 = vadd.f32 %v10465_v37, %v10403_v18  ;;  %v10305_v44 = vadd.f32 %v10304_v20, %v18101_v0  ;;  %v18125_v20 = vadd.f32 %v17788_v22, %v10061_v35  ;;  %v10409_v35 = vmul.f32 %v17955_v24, %v17955_v24 }
 0xb84   :  { %v13047_v25 = vpop.f32.mrb[54].mxu1  ;;  %v10412_v24 = vmul.f32 %v17967_v13, %v17967_v13  ;;  %v18157_v32 = vadd.f32 %v13046_v5, %v17788_v22 }
 0xb85   :  { %v10077_v33 = vpop.f32.mrb[55].mxu1  ;;  %v10467_v23 = vadd.f32 %v10466_v60, %v10404_v45  ;;  %v10306_v38 = vadd.f32 %v10305_v44, %v18109_v46 }
 0xb87   :  { %v10468_v18 = vadd.f32 %v10467_v23, %v10405_v26  ;;  %v10307_v37 = vadd.f32 %v10306_v38, %v18115_v43  ;;  %v18139_v38 = vadd.f32 %v13043_v41, %v17788_v22  ;;  %v10411_v41 = vmul.f32 %v17963_v16, %v17963_v16 }
 0xb89   :  { %v10469_v44 = vadd.f32 %v10468_v18, %v10406_v59  ;;  %v10308_v39 = vadd.f32 %v10307_v37, %v18119_v30  ;;  %v18143_v18 = vadd.f32 %v17788_v22, %v10074_v62 }
 0xb8a   :  { %v13050_v50 = vpop.f32.mrb[56].mxu1 }
 0xb8b   :  { %v10090_v48 = vpop.f32.mrb[57].mxu1  ;;  %v10470_v17 = vadd.f32 %v10469_v44, %v10407_v10  ;;  %v10309_v26 = vadd.f32 %v10308_v39, %v18125_v20  ;;  %v18149_v39 = vadd.f32 %v17788_v22, %v10077_v33  ;;  %v10413_v33 = vmul.f32 %v17971_v34, %v17971_v34 }
 0xb8c   :  { %v13051_v60 = vpop.f32.mrb[58].mxu1 }
 0xb8d   :  { %v10093_v45 = vpop.f32.mrb[59].mxu1  ;;  %v10471_v23 = vadd.f32 %v10470_v17, %v10408_v8  ;;  %v10310_v59 = vadd.f32 %v10309_v26, %v18133_v54 }
 0xb8f   :  { %v10472_v10 = vadd.f32 %v10471_v23, %v10409_v35  ;;  %v10311_v44 = vadd.f32 %v10310_v59, %v18139_v38  ;;  %v18163_v59 = vadd.f32 %v13047_v25, %v17788_v22 }
 0xb91   :  { %v10473_v26 = vadd.f32 %v10472_v10, %v10410_v21  ;;  %v10312_v62 = vadd.f32 %v10311_v44, %v18143_v18  ;;  %v18167_v10 = vadd.f32 %v17788_v22, %v10090_v48  ;;  %v10414_v44 = vmul.f32 %v17975_v53, %v17975_v53 }
 0xb92   :  { %v13054_v37 = vpop.f32.mrb[60].mxu1 }
 0xb93   :  { %v10106_v12 = vpop.f32.mrb[61].mxu1  ;;  %v10474_v57 = vadd.f32 %v10473_v26, %v10411_v41  ;;  %v10313_v35 = vadd.f32 %v10312_v62, %v18149_v39  ;;  %v18173_v26 = vadd.f32 %v17788_v22, %v10093_v45  ;;  %v10416_v62 = vmul.f32 %v17983_v52, %v17983_v52 }
 0xb94   :  { %v13055_v8 = vpop.f32.mrb[62].mxu1 }
 0xb95   :  { %v10109_v17 = vpop.f32.mrb[63].mxu1  ;;  %v10475_v23 = vadd.f32 %v10474_v57, %v10412_v24  ;;  %v10314_v21 = vadd.f32 %v10313_v35, %v18157_v32  ;;  %v10415_v57 = vmul.f32 %v17979_v27, %v17979_v27  ;;  %v18181_v35 = vadd.f32 %v13050_v50, %v17788_v22 }
 0xb97   :  { %v10476_v41 = vadd.f32 %v10475_v23, %v10413_v33  ;;  %v10315_v5 = vadd.f32 %v10314_v21, %v18163_v59  ;;  %v10417_v23 = vmul.f32 %v17987_v7, %v17987_v7  ;;  %v18187_v21 = vadd.f32 %v13051_v60, %v17788_v22 }
 0xb99   :  { %v10477_v24 = vadd.f32 %v10476_v41, %v10414_v44  ;;  %v10316_v25 = vadd.f32 %v10315_v5, %v18167_v10  ;;  %v18191_v41 = vadd.f32 %v17788_v22, %v10106_v12  ;;  %v10418_v5 = vmul.f32 %v17991_v28, %v17991_v28 }
 0xb9a   :  { %v10254_v12 = vadd.f32 %v13054_v37, %v17788_v22  ;;  %v10424_v37 = vmul.f32 %v18014_v15, %v18014_v15 }
 0xb9b   :  { %v10478_v48 = vadd.f32 %v10477_v24, %v10415_v57  ;;  %v10317_v33 = vadd.f32 %v10316_v25, %v18173_v26  ;;  %v10253_v24 = vadd.f32 %v17788_v22, %v10109_v17  ;;  %v10419_v25 = vmul.f32 %v17995_v47, %v17995_v47 }
 0xb9c   :  { %v10422_v47 = vmul.f32 %v18007_v49, %v18007_v49 }
 0xb9d   :  { %v10479_v45 = vadd.f32 %v10478_v48, %v10416_v62  ;;  %v10318_v44 = vadd.f32 %v10317_v33, %v18181_v35  ;;  %v10420_v48 = vmul.f32 %v17999_v63, %v17999_v63 }
 0xb9f   :  { %v10480_v57 = vadd.f32 %v10479_v45, %v10417_v23  ;;  %v10319_v50 = vadd.f32 %v10318_v44, %v18187_v21  ;;  %v10421_v23 = vmul.f32 %v18003_v4, %v18003_v4  ;;  %v10255_v44 = vadd.f32 %v13055_v8, %v17788_v22 }
 0xba0   :  { %v10426_v8 = vmul.f32 %v18020_v29, %v18020_v29 }
 0xba1   :  { %v10481_v62 = vadd.f32 %v10480_v57, %v10418_v5  ;;  %v10320_v60 = vadd.f32 %v10319_v50, %v18191_v41  ;;  %v10423_v50 = vmul.f32 %v18011_v56, %v18011_v56 }
 0xba3   :  { %v10482_v33 = vadd.f32 %v10481_v62, %v10419_v25  ;;  %v10321_v7 = vadd.f32 %v10320_v60, %v10253_v24 }
 0xba5   :  { %v10483_v45 = vadd.f32 %v10482_v33, %v10420_v48  ;;  %v10322_v17 = vadd.f32 %v10321_v7, %v10254_v12  ;;  %v10425_v48 = vmul.f32 %v18017_v14, %v18017_v14 }
 0xba7   :  { %v10484_v5 = vadd.f32 %v10483_v45, %v10421_v23  ;;  %v10323_v57 = vadd.f32 %v10322_v17, %v10255_v44  ;;  %v10427_v45 = vmul.f32 %v18023_v42, %v18023_v42 }
 0xba9   :  { %v10485_v63 = vadd.f32 %v10484_v5, %v10422_v47  ;;  %v10324_v25 = vrot.slane %v10323_v57, 4 }
 0xbab   :  { %v10486_v62 = vadd.f32 %v10485_v63, %v10423_v50  ;;  %v10325_v60 = vadd.f32 %v10324_v25, %v10323_v57 }
 0xbad   :  { %v10487_v22 = vadd.f32 %v10486_v62, %v10424_v37  ;;  %v10326_v7 = vrot.slane %v10325_v60, 2 }
 0xbaf   :  { %v10488_v33 = vadd.f32 %v10487_v22, %v10425_v48  ;;  %v10327_v23 = vadd.f32 %v10326_v7, %v10325_v60 }
 0xbb1   :  { %v10489_v47 = vadd.f32 %v10488_v33, %v10426_v8  ;;  %v10328_v17 = vrot.slane %v10327_v23, 1 }
 0xbb3   :  { %v10490_v5 = vadd.f32 %v10489_v47, %v10427_v45  ;;  %v10329_v56 = vadd.f32 %v10328_v17, %v10327_v23 }
 0xbb5   :  { %v10491_v15 = vrot.slane %v10490_v5, 4  ;;  %v10331_v63 = vmul.f32 0.00390625, %v10329_v56 }
 0xbb7   :  { %v10492_v57 = vadd.f32 %v10491_v15, %v10490_v5  ;;  %v18219_v25 = vsub.f32 %v18060_v6, %v10331_v63  ;;  %v18222_v37 = vsub.f32 %v18068_v11, %v10331_v63  ;;  %v18225_v62 = vsub.f32 %v18074_v36, %v10331_v63 }
 0xbb8   :  { %v18228_v60 = vsub.f32 %v18091_v61, %v10331_v63  ;;  %v18231_v48 = vsub.f32 %v18095_v2, %v10331_v63  ;;  %v18234_v22 = vsub.f32 %v18101_v0, %v10331_v63  ;;  %v18237_v15 = vsub.f32 %v18109_v46, %v10331_v63 }
 0xbb9   :  { %v10493_v50 = vrot.slane %v10492_v57, 2  ;;  %v18240_v6 = vsub.f32 %v18115_v43, %v10331_v63  ;;  %v18243_v11 = vsub.f32 %v18119_v30, %v10331_v63  ;;  %v18246_v36 = vsub.f32 %v18125_v20, %v10331_v63 }
 0xbba   :  { %v18249_v61 = vsub.f32 %v18133_v54, %v10331_v63  ;;  %v18252_v2 = vsub.f32 %v18139_v38, %v10331_v63  ;;  %v18255_v0 = vsub.f32 %v18143_v18, %v10331_v63  ;;  %v18258_v7 = vsub.f32 %v18149_v39, %v10331_v63 }
 0xbbb   :  { %v10494_v56 = vadd.f32 %v10493_v50, %v10492_v57  ;;  %19501 = vst [vmem:[#allocation59_spill] sm:$0xff] %v18243_v11  ;;  %19502 = vst [vmem:[#allocation65_spill] sm:$0xff] %v18246_v36  ;;  %v18261_v43 = vsub.f32 %v18157_v32, %v10331_v63  ;;  %v18264_v30 = vsub.f32 %v18163_v59, %v10331_v63  ;;  %v14252_v11 = vld [vmem:[#allocation2 + $0x50] sm:$0xff] }
 0xbbc   :  { %19503 = vst [vmem:[#allocation45_spill] sm:$0xff] %v18249_v61  ;;  %19504 = vst [vmem:[#allocation40_spill] sm:$0xff] %v18252_v2  ;;  %v18267_v20 = vsub.f32 %v18167_v10, %v10331_v63  ;;  %v18270_v54 = vsub.f32 %v18173_v26, %v10331_v63  ;;  %v18273_v38 = vsub.f32 %v18181_v35, %v10331_v63  ;;  %v14249_v2 = vld [vmem:[#allocation2 + $0x38] sm:$0xff]  ;;  %v14250_v61 = vld [vmem:[#allocation2 + $0x40] sm:$0xff] }
 0xbbd   :  { %19505 = vst [vmem:[#allocation43_spill] sm:$0xff] %v18255_v0  ;;  %v10495_v46 = vrot.slane %v10494_v56, 1  ;;  %19506 = vst [vmem:[#allocation75_spill] sm:$0xff] %v18258_v7  ;;  %v18276_v18 = vsub.f32 %v18187_v21, %v10331_v63  ;;  %v18279_v8 = vsub.f32 %v18191_v41, %v10331_v63  ;;  %v18281_v32 = vsub.f32 %v10253_v24, %v10331_v63 }
 0xbbe   :  { %19507 = vst [vmem:[#allocation48_spill] sm:$0xff] %v18261_v43  ;;  %19508 = vst [vmem:[#allocation53_spill] sm:$0xff] %v18264_v30  ;;  %v18283_v59 = vsub.f32 %v10254_v12, %v10331_v63  ;;  %v18285_v33 = vsub.f32 %v10255_v44, %v10331_v63  ;;  %v18288_v26 = vsub.f32 %v17910_v58, %v10331_v63  ;;  %v14246_v30 = vld [vmem:[#allocation2 + $0x20] sm:$0xff]  ;;  %v14247_v43 = vld [vmem:[#allocation2 + $0x28] sm:$0xff] }
 0xbbf   :  { %19509 = vst [vmem:[#allocation79_spill] sm:$0xff] %v18267_v20  ;;  %19510 = vst [vmem:[#allocation83_spill] sm:$0xff] %v18270_v54  ;;  %v10496_v39 = vadd.f32 %v10495_v46, %v10494_v56  ;;  %v18291_v35 = vsub.f32 %v17907_v1, %v10331_v63  ;;  %v18294_v21 = vsub.f32 %v17915_v51, %v10331_v63 }
 0xbc0   :  { %19511 = vst [vmem:[#allocation85_spill] sm:$0xff] %v18273_v38  ;;  %19512 = vst [vmem:[#allocation82_spill] sm:$0xff] %v18276_v18  ;;  %v10428_v41 = vmul.f32 %v18288_v26, %v18288_v26  ;;  %v18301_v12 = vsub.f32 %v17919_v3, %v10331_v63  ;;  %v18304_v58 = vsub.f32 %v17922_v31, %v10331_v63  ;;  %v14243_v18 = vld [vmem:[#allocation2 + $0x8] sm:$0xff]  ;;  %v14244_v38 = vld [vmem:[#allocation2 + $0x10] sm:$0xff] }
 0xbc1   :  { %19513 = vst [vmem:[#allocation47_spill] sm:$0xff] %v18279_v8  ;;  %19514 = vst [vmem:[#allocation80_spill] sm:$0xff] %v18281_v32  ;;  %v10534_v10 = vmul.f32 0.00390625, %v10496_v39  ;;  %v10429_v24 = vmul.f32 %v18291_v35, %v18291_v35  ;;  %v10430_v1 = vmul.f32 %v18294_v21, %v18294_v21  ;;  %v18309_v45 = vsub.f32 %v17931_v55, %v10331_v63  ;;  %v19523_v39 = vld [vmem:[#allocation78_spill] sm:$0xff] }
 0xbc2   :  { %19515 = vst [vmem:[#allocation86_spill] sm:$0xff] %v18283_v59  ;;  %19516 = vst [vmem:[#allocation30_spill] sm:$0xff] %v18285_v33  ;;  %v10431_v51 = vmul.f32 %v18301_v12, %v18301_v12  ;;  %v10432_v17 = vmul.f32 %v18304_v58, %v18304_v58  ;;  %v18316_v57 = vsub.f32 %v18035_v19, %v10331_v63  ;;  %v19534_v33 = vld [vmem:[#allocation55_spill] sm:$0xff]  ;;  %v19535_v59 = vld [vmem:[#allocation64_spill] sm:$0xff] }
 0xbc3   :  { %19517 = vst [vmem:[#allocation56_spill] sm:$0xff] %v18288_v26  ;;  %19518 = vst [vmem:[#allocation54_spill] sm:$0xff] %v18291_v35  ;;  %v10536_v23 = vadd.f32 1e-05, %v10534_v10  ;;  %v10497_v44 = vadd.f32 %v10429_v24, %v10428_v41  ;;  %v18319_v31 = vsub.f32 %v18051_v9, %v10331_v63  ;;  %v18323_v50 = vmul.f32 %v18309_v45, %v18309_v45  ;;  %v19525_v24 = vld [vmem:[#allocation57_spill] sm:$0xff]  ;;  %v19527_v9 = vld [vmem:[#allocation67_spill] sm:$0xff] }
 0xbc4   :  { %19519 = vst [vmem:[#allocation63_spill] sm:$0xff] %v18294_v21  ;;  %19520 = vst [vmem:[#allocation66_spill] sm:$0xff] %v18301_v12  ;;  %v19530_v12 = vld [vmem:[#allocation29_spill] sm:$0xff]  ;;  %v19531_v21 = vld [vmem:[#allocation36_spill] sm:$0xff] }
 0xbc5   :  { %14236 = vrsqrt.f32 %v10536_v23  ;;  %19521 = vst [vmem:[#allocation15_spill] sm:$0xff] %v18304_v58  ;;  %19522 = vst [vmem:[#allocation21_spill] sm:$0xff] %v18309_v45  ;;  %v10498_v47 = vadd.f32 %v10497_v44, %v10430_v1  ;;  %v19524_v23 = vld [vmem:[#allocation46_spill] sm:$0xff]  ;;  %v14241_v45 = vld [vmem:[#allocation2 + $0xe8] sm:$0xff] }
 0xbc6   :  { %v19526_v1 = vld [vmem:[#allocation58_spill] sm:$0xff]  ;;  %v19532_v35 = vld [vmem:[#allocation39_spill] sm:$0xff] }
 0xbc7   :  { %v10499_v5 = vadd.f32 %v10498_v47, %v10431_v51  ;;  %v19528_v51 = vld [vmem:[#allocation25_spill] sm:$0xff]  ;;  %v19533_v26 = vld [vmem:[#allocation50_spill] sm:$0xff] }
 0xbc9   :  { %v18325_v55 = vadd.f32 %v10499_v5, %v10432_v17  ;;  %v19529_v17 = vld [vmem:[#allocation51_spill] sm:$0xff] }
 0xbcf   :  { %v14237_v3 = vpop.eup %14236 }
 0xbd0   :  { %v10569_v56 = vmul.f32 %v14237_v3, %v18017_v14  ;;  %v10540_v46 = vmul.f32 %v14237_v3, %v18027_v40  ;;  %v10541_v10 = vmul.f32 %v14237_v3, %v19523_v39  ;;  %v10542_v41 = vmul.f32 %v14237_v3, %v19524_v23 }
 0xbd1   :  { %v10543_v19 = vmul.f32 %v14237_v3, %v19525_v24  ;;  %v10544_v44 = vmul.f32 %v14237_v3, %v19526_v1  ;;  %v10545_v63 = vmul.f32 %v14237_v3, %v19527_v9  ;;  %v10546_v47 = vmul.f32 %v14237_v3, %v19528_v51  ;;  %v19536_v9 = vld [vmem:[#allocation18_spill] sm:$0xff] }
 0xbd2   :  { %v10633_v58 = vadd.f32 %v14241_v45, %v10569_v56  ;;  %v10547_v5 = vmul.f32 %v14237_v3, %v19529_v17  ;;  %v10548_v14 = vmul.f32 %v14237_v3, %v19530_v12  ;;  %v10549_v40 = vmul.f32 %v14237_v3, %v19531_v21 }
 0xbd3   :  { %v10550_v39 = vmul.f32 %v14237_v3, %v19532_v35  ;;  %v10551_v23 = vmul.f32 %v14237_v3, %v19533_v26  ;;  %v10552_v24 = vmul.f32 %v14237_v3, %v19534_v33  ;;  %v10553_v1 = vmul.f32 %v14237_v3, %v19535_v59  ;;  %v19537_v26 = vld [vmem:[#allocation34_spill] sm:$0xff] }
 0xbd4   :  { %10697 = vst [vmem:[#allocation8 + $0xe8] sm:$0xff] %v10633_v58  ;;  %v10554_v32 = vmul.f32 %v14237_v3, %v19536_v9  ;;  %v10555_v51 = vmul.f32 %v14237_v3, %v17963_v16  ;;  %v10556_v45 = vmul.f32 %v14237_v3, %v17967_v13  ;;  %v10557_v56 = vmul.f32 %v14237_v3, %v17971_v34  ;;  %v19538_v58 = vld [vmem:[#allocation35_spill] sm:$0xff]  ;;  %v19539_v16 = vld [vmem:[#allocation73_spill] sm:$0xff] }
 0xbd5   :  { %v10558_v12 = vmul.f32 %v14237_v3, %v17975_v53  ;;  %v10559_v21 = vmul.f32 %v14237_v3, %v17979_v27  ;;  %v18349_v35 = vmul.f32 %v14237_v3, %v17983_v52  ;;  %v18352_v33 = vmul.f32 %v14237_v3, %v19537_v26  ;;  %v19540_v27 = vld [vmem:[#allocation74_spill] sm:$0xff]  ;;  %v19541_v9 = vld [vmem:[#allocation71_spill] sm:$0xff] }
 0xbd6   :  { %v18355_v59 = vmul.f32 %v14237_v3, %v17991_v28  ;;  %v18358_v17 = vmul.f32 %v14237_v3, %v19538_v58  ;;  %v18361_v13 = vmul.f32 %v14237_v3, %v19539_v16  ;;  %v18364_v34 = vmul.f32 %v14237_v3, %v18003_v4  ;;  %v14242_v16 = vld [vmem:[#allocation2] sm:$0xff] }
 0xbd7   :  { %v18367_v53 = vmul.f32 %v14237_v3, %v18007_v49  ;;  %v18370_v52 = vmul.f32 %v14237_v3, %v19540_v27  ;;  %v18373_v26 = vmul.f32 %v14237_v3, %v19541_v9  ;;  %v18376_v28 = vmul.f32 %v14237_v3, %v18020_v29  ;;  %v14245_v49 = vld [vmem:[#allocation2 + $0x18] sm:$0xff]  ;;  %v14248_v9 = vld [vmem:[#allocation2 + $0x30] sm:$0xff] }
 0xbd8   :  { %v18379_v58 = vmul.f32 %v14237_v3, %v18023_v42  ;;  %v10604_v8 = vadd.f32 %v14242_v16, %v10540_v46  ;;  %v10605_v4 = vadd.f32 %v14243_v18, %v10541_v10  ;;  %v10606_v54 = vadd.f32 %v14244_v38, %v10542_v41  ;;  %v14251_v42 = vld [vmem:[#allocation2 + $0x48] sm:$0xff]  ;;  %v14253_v38 = vld [vmem:[#allocation2 + $0x58] sm:$0xff]  ;;  %v14254_v10 = vld [vmem:[#allocation2 + $0x60] sm:$0xff] }
 0xbd9   :  { %v10607_v20 = vadd.f32 %v14245_v49, %v10543_v19  ;;  %v10608_v27 = vadd.f32 %v14246_v30, %v10544_v44  ;;  %v10609_v7 = vadd.f32 %v14247_v43, %v10545_v63  ;;  %v10610_v0 = vadd.f32 %v14248_v9, %v10546_v47  ;;  %v14255_v30 = vld [vmem:[#allocation2 + $0x68] sm:$0xff]  ;;  %v14256_v43 = vld [vmem:[#allocation2 + $0x70] sm:$0xff]  ;;  %v14258_v63 = vld [vmem:[#allocation2 + $0x80] sm:$0xff] }
 0xbda   :  { %v10611_v29 = vadd.f32 %v14249_v2, %v10547_v5  ;;  %v10612_v36 = vadd.f32 %v14250_v61, %v10548_v14  ;;  %v10613_v3 = vadd.f32 %v14251_v42, %v10549_v40  ;;  %v10614_v46 = vadd.f32 %v14252_v11, %v10550_v39  ;;  %10668 = vst [vmem:[#allocation8] sm:$0xff] %v10604_v8  ;;  %v14257_v61 = vld [vmem:[#allocation2 + $0x78] sm:$0xff]  ;;  %v14259_v11 = vld [vmem:[#allocation2 + $0x88] sm:$0xff]  ;;  %v14260_v5 = vld [vmem:[#allocation2 + $0x90] sm:$0xff] }
 0xbdb   :  { %10669 = vst [vmem:[#allocation8 + $0x8] sm:$0xff] %v10605_v4  ;;  %10670 = vst [vmem:[#allocation8 + $0x10] sm:$0xff] %v10606_v54  ;;  %v10615_v18 = vadd.f32 %v14253_v38, %v10551_v23  ;;  %v10616_v41 = vadd.f32 %v14254_v10, %v10552_v24  ;;  %v10617_v19 = vadd.f32 %v14255_v30, %v10553_v1  ;;  %v14261_v14 = vld [vmem:[#allocation2 + $0x98] sm:$0xff]  ;;  %v14262_v39 = vld [vmem:[#allocation2 + $0xa0] sm:$0xff] }
 0xbdc   :  { %v10618_v44 = vadd.f32 %v14256_v43, %v10554_v32  ;;  %10671 = vst [vmem:[#allocation8 + $0x18] sm:$0xff] %v10607_v20  ;;  %10672 = vst [vmem:[#allocation8 + $0x20] sm:$0xff] %v10608_v27  ;;  %v10619_v2 = vadd.f32 %v14257_v61, %v10555_v51  ;;  %v10620_v47 = vadd.f32 %v14258_v63, %v10556_v45  ;;  %v14263_v32 = vld [vmem:[#allocation2 + $0xa8] sm:$0xff]  ;;  %v14265_v24 = vld [vmem:[#allocation2 + $0xb8] sm:$0xff] }
 0xbdd   :  { %10673 = vst [vmem:[#allocation8 + $0x28] sm:$0xff] %v10609_v7  ;;  %10674 = vst [vmem:[#allocation8 + $0x30] sm:$0xff] %v10610_v0  ;;  %v10621_v8 = vadd.f32 %v14259_v11, %v10557_v56  ;;  %v10622_v54 = vadd.f32 %v14260_v5, %v10558_v12  ;;  %v10623_v40 = vadd.f32 %v14261_v14, %v10559_v21  ;;  %v14264_v7 = vld [vmem:[#allocation2 + $0xb0] sm:$0xff]  ;;  %v14266_v1 = vld [vmem:[#allocation2 + $0xc0] sm:$0xff] }
 0xbde   :  { %10675 = vst [vmem:[#allocation8 + $0x38] sm:$0xff] %v10611_v29  ;;  %10676 = vst [vmem:[#allocation8 + $0x40] sm:$0xff] %v10612_v36  ;;  %v10624_v20 = vadd.f32 %v14262_v39, %v18349_v35  ;;  %v10625_v0 = vadd.f32 %v14263_v32, %v18352_v33  ;;  %v10626_v23 = vadd.f32 %v14264_v7, %v18355_v59  ;;  %v14267_v45 = vld [vmem:[#allocation2 + $0xc8] sm:$0xff]  ;;  %v14268_v12 = vld [vmem:[#allocation2 + $0xd0] sm:$0xff] }
 0xbdf   :  { %10677 = vst [vmem:[#allocation8 + $0x48] sm:$0xff] %v10613_v3  ;;  %10678 = vst [vmem:[#allocation8 + $0x50] sm:$0xff] %v10614_v46  ;;  %v10627_v36 = vadd.f32 %v14265_v24, %v18358_v17  ;;  %v10628_v51 = vadd.f32 %v14266_v1, %v18361_v13  ;;  %v10629_v56 = vadd.f32 %v14267_v45, %v18364_v34  ;;  %v14269_v35 = vld [vmem:[#allocation2 + $0xd8] sm:$0xff]  ;;  %v14270_v59 = vld [vmem:[#allocation2 + $0xe0] sm:$0xff] }
 0xbe0   :  { %10679 = vst [vmem:[#allocation8 + $0x58] sm:$0xff] %v10615_v18  ;;  %10680 = vst [vmem:[#allocation8 + $0x60] sm:$0xff] %v10616_v41  ;;  %v10630_v21 = vadd.f32 %v14268_v12, %v18367_v53  ;;  %v10631_v33 = vadd.f32 %v14269_v35, %v18370_v52  ;;  %v10632_v16 = vadd.f32 %v14270_v59, %v18373_v26  ;;  %v14271_v17 = vld [vmem:[#allocation2 + $0xf0] sm:$0xff]  ;;  %v14272_v13 = vld [vmem:[#allocation2 + $0xf8] sm:$0xff] }
 0xbe1   :  { %10681 = vst [vmem:[#allocation8 + $0x68] sm:$0xff] %v10617_v19  ;;  %10682 = vst [vmem:[#allocation8 + $0x70] sm:$0xff] %v10618_v44  ;;  %v10634_v4 = vadd.f32 %v14271_v17, %v18376_v28  ;;  %v10635_v49 = vadd.f32 %v14272_v13, %v18379_v58  ;;  %v10434_v34 = vmul.f32 %v18316_v57, %v18316_v57  ;;  %v19542_v43 = vld [vmem:[#allocation59_spill] sm:$0xff]  ;;  %v19544_v11 = vld [vmem:[#allocation45_spill] sm:$0xff] }
 0xbe2   :  { %10683 = vst [vmem:[#allocation8 + $0x78] sm:$0xff] %v10619_v2  ;;  %10684 = vst [vmem:[#allocation8 + $0x80] sm:$0xff] %v10620_v47  ;;  %v10501_v53 = vadd.f32 %v18325_v55, %v18323_v50  ;;  %v10435_v52 = vmul.f32 %v18319_v31, %v18319_v31  ;;  %v10436_v28 = vmul.f32 %v18219_v25, %v18219_v25  ;;  %v19543_v2 = vld [vmem:[#allocation65_spill] sm:$0xff]  ;;  %v19546_v39 = vld [vmem:[#allocation43_spill] sm:$0xff] }
 0xbe3   :  { %10685 = vst [vmem:[#allocation8 + $0x88] sm:$0xff] %v10621_v8  ;;  %10686 = vst [vmem:[#allocation8 + $0x90] sm:$0xff] %v10622_v54  ;;  %v10437_v27 = vmul.f32 %v18222_v37, %v18222_v37  ;;  %v10438_v29 = vmul.f32 %v18225_v62, %v18225_v62  ;;  %v10439_v55 = vmul.f32 %v18228_v60, %v18228_v60  ;;  %v19545_v54 = vld [vmem:[#allocation40_spill] sm:$0xff]  ;;  %v19550_v12 = vld [vmem:[#allocation79_spill] sm:$0xff] }
 0xbe4   :  { %10687 = vst [vmem:[#allocation8 + $0x98] sm:$0xff] %v10623_v40  ;;  %10688 = vst [vmem:[#allocation8 + $0xa0] sm:$0xff] %v10624_v20  ;;  %v10502_v26 = vadd.f32 %v10501_v53, %v10434_v34  ;;  %v10440_v3 = vmul.f32 %v18231_v48, %v18231_v48  ;;  %v10441_v38 = vmul.f32 %v18234_v22, %v18234_v22  ;;  %v19548_v24 = vld [vmem:[#allocation48_spill] sm:$0xff]  ;;  %v19552_v17 = vld [vmem:[#allocation85_spill] sm:$0xff] }
 0xbe5   :  { %10689 = vst [vmem:[#allocation8 + $0xa8] sm:$0xff] %v10625_v0  ;;  %10690 = vst [vmem:[#allocation8 + $0xb0] sm:$0xff] %v10626_v23  ;;  %v10442_v10 = vmul.f32 %v18237_v15, %v18237_v15  ;;  %v10443_v30 = vmul.f32 %v18240_v6, %v18240_v6  ;;  %v10444_v44 = vmul.f32 %v19542_v43, %v19542_v43  ;;  %v19547_v0 = vld [vmem:[#allocation75_spill] sm:$0xff] }
 0xbe6   :  { %10691 = vst [vmem:[#allocation8 + $0xb8] sm:$0xff] %v10627_v36  ;;  %10692 = vst [vmem:[#allocation8 + $0xc0] sm:$0xff] %v10628_v51  ;;  %v10503_v58 = vadd.f32 %v10502_v26, %v10435_v52  ;;  %v10445_v63 = vmul.f32 %v19543_v2, %v19543_v2  ;;  %v10446_v8 = vmul.f32 %v19544_v11, %v19544_v11  ;;  %v19549_v51 = vld [vmem:[#allocation53_spill] sm:$0xff]  ;;  %v19554_v52 = vld [vmem:[#allocation47_spill] sm:$0xff] }
 0xbe7   :  { %10693 = vst [vmem:[#allocation8 + $0xc8] sm:$0xff] %v10629_v56  ;;  %10694 = vst [vmem:[#allocation8 + $0xd0] sm:$0xff] %v10630_v21  ;;  %v10447_v14 = vmul.f32 %v19545_v54, %v19545_v54  ;;  %v10448_v20 = vmul.f32 %v19546_v39, %v19546_v39  ;;  %v10449_v7 = vmul.f32 %v19547_v0, %v19547_v0 }
 0xbe8   :  { %10695 = vst [vmem:[#allocation8 + $0xd8] sm:$0xff] %v10631_v33  ;;  %10696 = vst [vmem:[#allocation8 + $0xe0] sm:$0xff] %v10632_v16  ;;  %v10504_v9 = vadd.f32 %v10503_v58, %v10436_v28  ;;  %v10450_v36 = vmul.f32 %v19548_v24, %v19548_v24  ;;  %v10451_v45 = vmul.f32 %v19549_v51, %v19549_v51  ;;  %v19551_v33 = vld [vmem:[#allocation83_spill] sm:$0xff]  ;;  %v19555_v58 = vld [vmem:[#allocation80_spill] sm:$0xff] }
 0xbe9   :  { %10698 = vst [vmem:[#allocation8 + $0xf0] sm:$0xff] %v10634_v4  ;;  %10699 = vst [vmem:[#allocation8 + $0xf8] sm:$0xff] %v10635_v49  ;;  %v10452_v21 = vmul.f32 %v19550_v12, %v19550_v12  ;;  %v10453_v59 = vmul.f32 %v19551_v33, %v19551_v33  ;;  %v10454_v4 = vmul.f32 %v19552_v17, %v19552_v17  ;;  %v19553_v49 = vld [vmem:[#allocation82_spill] sm:$0xff] }
 0xbea   :  { %v10505_v50 = vadd.f32 %v10504_v9, %v10437_v27  ;;  %v10455_v34 = vmul.f32 %v19553_v49, %v19553_v49  ;;  %v10456_v26 = vmul.f32 %v19554_v52, %v19554_v52  ;;  %v10457_v27 = vmul.f32 %v19555_v58, %v19555_v58 }
 0xbec   :  { %v10506_v42 = vadd.f32 %v10505_v50, %v10438_v29  ;;  %v19556_v29 = vld [vmem:[#allocation86_spill] sm:$0xff] }
 0xbed   :  { %v10458_v50 = vmul.f32 %v19556_v29, %v19556_v29 }
 0xbee   :  { %v10507_v46 = vadd.f32 %v10506_v42, %v10439_v55  ;;  %v19557_v42 = vld [vmem:[#allocation30_spill] sm:$0xff] }
 0xbf0   :  { %v10508_v18 = vadd.f32 %v10507_v46, %v10440_v3  ;;  %v10459_v3 = vmul.f32 %v19557_v42, %v19557_v42 }
 0xbf2   :  { %v10509_v41 = vadd.f32 %v10508_v18, %v10441_v38 }
 0xbf4   :  { %v10510_v19 = vadd.f32 %v10509_v41, %v10442_v10 }
 0xbf6   :  { %v10511_v61 = vadd.f32 %v10510_v19, %v10443_v30 }
 0xbf8   :  { %v10512_v47 = vadd.f32 %v10511_v61, %v10444_v44 }
 0xbfa   :  { %v10513_v5 = vadd.f32 %v10512_v47, %v10445_v63 }
 0xbfc   :  { %v10514_v40 = vadd.f32 %v10513_v5, %v10446_v8  ;;  %v19558_v5 = vld [vmem:[#allocation56_spill] sm:$0xff] }
 0xbfe   :  { %v10515_v32 = vadd.f32 %v10514_v40, %v10447_v14  ;;  %v19559_v40 = vld [vmem:[#allocation54_spill] sm:$0xff] }
 0xc00   :  { %v10516_v23 = vadd.f32 %v10515_v32, %v10448_v20  ;;  %v19560_v32 = vld [vmem:[#allocation63_spill] sm:$0xff] }
 0xc02   :  { %v10517_v1 = vadd.f32 %v10516_v23, %v10449_v7  ;;  %v19561_v23 = vld [vmem:[#allocation66_spill] sm:$0xff] }
 0xc04   :  { %v10518_v56 = vadd.f32 %v10517_v1, %v10450_v36  ;;  %v19562_v1 = vld [vmem:[#allocation15_spill] sm:$0xff] }
 0xc06   :  { %v10519_v35 = vadd.f32 %v10518_v56, %v10451_v45  ;;  %v19563_v56 = vld [vmem:[#allocation21_spill] sm:$0xff] }
 0xc08   :  { %v10520_v16 = vadd.f32 %v10519_v35, %v10452_v21 }
 0xc0a   :  { %v10521_v13 = vadd.f32 %v10520_v16, %v10453_v59  ;;  %v14273_v59 = vld [vmem:[#allocation2 + $0x1e8] sm:$0xff] }
 0xc0c   :  { %v10522_v53 = vadd.f32 %v10521_v13, %v10454_v4 }
 0xc0e   :  { %v10523_v28 = vadd.f32 %v10522_v53, %v10455_v34 }
 0xc10   :  { %v10524_v9 = vadd.f32 %v10523_v28, %v10456_v26 }
 0xc12   :  { %v10525_v55 = vadd.f32 %v10524_v9, %v10457_v27 }
 0xc14   :  { %v10526_v46 = vadd.f32 %v10525_v55, %v10458_v50 }
 0xc16   :  { %v10527_v38 = vadd.f32 %v10526_v46, %v10459_v3  ;;  %v14278_v3 = vld [vmem:[#allocation2 + $0x120] sm:$0xff]  ;;  %v14279_v46 = vld [vmem:[#allocation2 + $0x128] sm:$0xff] }
 0xc18   :  { %v10528_v18 = vrot.slane %v10527_v38, 4 }
 0xc1a   :  { %v10529_v10 = vadd.f32 %v10528_v18, %v10527_v38 }
 0xc1c   :  { %v10530_v41 = vrot.slane %v10529_v10, 2 }
 0xc1e   :  { %v10531_v30 = vadd.f32 %v10530_v41, %v10529_v10  ;;  %v14281_v10 = vld [vmem:[#allocation2 + $0x138] sm:$0xff]  ;;  %v14282_v41 = vld [vmem:[#allocation2 + $0x140] sm:$0xff] }
 0xc20   :  { %v10532_v19 = vrot.slane %v10531_v30, 1 }
 0xc22   :  { %v10533_v44 = vadd.f32 %v10532_v19, %v10531_v30 }
 0xc24   :  { %v10535_v61 = vmul.f32 0.00390625, %v10533_v44  ;;  %v14284_v44 = vld [vmem:[#allocation2 + $0x150] sm:$0xff] }
 0xc26   :  { %v10537_v63 = vadd.f32 1e-05, %v10535_v61 }
 0xc28   :  { %14238 = vrsqrt.f32 %v10537_v63  ;;  %v14285_v63 = vld [vmem:[#allocation2 + $0x158] sm:$0xff] }
 0xc32   :  { %v14239_v47 = vpop.eup %14238 }
 0xc33   :  { %v10601_v8 = vmul.f32 %v14239_v47, %v19555_v58  ;;  %v10572_v14 = vmul.f32 %v14239_v47, %v19558_v5  ;;  %v10573_v20 = vmul.f32 %v14239_v47, %v19559_v40  ;;  %v10574_v7 = vmul.f32 %v14239_v47, %v19560_v32 }
 0xc34   :  { %v10575_v36 = vmul.f32 %v14239_v47, %v19561_v23  ;;  %v10576_v45 = vmul.f32 %v14239_v47, %v19562_v1  ;;  %v10577_v21 = vmul.f32 %v14239_v47, %v19563_v56  ;;  %v10578_v35 = vmul.f32 %v14239_v47, %v18316_v57 }
 0xc35   :  { %v10665_v16 = vadd.f32 %v14273_v59, %v10601_v8  ;;  %v10579_v4 = vmul.f32 %v14239_v47, %v18319_v31  ;;  %v10580_v13 = vmul.f32 %v14239_v47, %v18219_v25  ;;  %v10581_v34 = vmul.f32 %v14239_v47, %v18222_v37  ;;  %v14286_v8 = vld [vmem:[#allocation2 + $0x160] sm:$0xff]  ;;  %v14293_v59 = vld [vmem:[#allocation2 + $0x198] sm:$0xff] }
 0xc36   :  { %v10582_v53 = vmul.f32 %v14239_v47, %v18225_v62  ;;  %v10583_v26 = vmul.f32 %v14239_v47, %v18228_v60  ;;  %v10584_v28 = vmul.f32 %v14239_v47, %v18231_v48  ;;  %v10585_v58 = vmul.f32 %v14239_v47, %v18234_v22 }
 0xc37   :  { %10729 = vst [vmem:[#allocation8 + $0x1e8] sm:$0xff] %v10665_v16  ;;  %v10586_v27 = vmul.f32 %v14239_v47, %v18237_v15  ;;  %v10587_v57 = vmul.f32 %v14239_v47, %v18240_v6  ;;  %v10588_v9 = vmul.f32 %v14239_v47, %v19542_v43  ;;  %v10589_v31 = vmul.f32 %v14239_v47, %v19543_v2 }
 0xc38   :  { %v10590_v25 = vmul.f32 %v14239_v47, %v19544_v11  ;;  %v18467_v37 = vmul.f32 %v14239_v47, %v19545_v54  ;;  %v18470_v62 = vmul.f32 %v14239_v47, %v19546_v39  ;;  %v18473_v60 = vmul.f32 %v14239_v47, %v19547_v0  ;;  %v14274_v0 = vld [vmem:[#allocation2 + $0x100] sm:$0xff] }
 0xc39   :  { %v18476_v48 = vmul.f32 %v14239_v47, %v19548_v24  ;;  %v18479_v22 = vmul.f32 %v14239_v47, %v19549_v51  ;;  %v18482_v15 = vmul.f32 %v14239_v47, %v19550_v12  ;;  %v18485_v6 = vmul.f32 %v14239_v47, %v19551_v33  ;;  %v14275_v51 = vld [vmem:[#allocation2 + $0x108] sm:$0xff]  ;;  %v14276_v33 = vld [vmem:[#allocation2 + $0x110] sm:$0xff] }
 0xc3a   :  { %v18488_v43 = vmul.f32 %v14239_v47, %v19552_v17  ;;  %v18491_v2 = vmul.f32 %v14239_v47, %v19553_v49  ;;  %v18494_v11 = vmul.f32 %v14239_v47, %v19554_v52  ;;  %v18497_v54 = vmul.f32 %v14239_v47, %v19556_v29  ;;  %v14277_v17 = vld [vmem:[#allocation2 + $0x118] sm:$0xff]  ;;  %v14280_v52 = vld [vmem:[#allocation2 + $0x130] sm:$0xff] }
 0xc3b   :  { %v18500_v39 = vmul.f32 %v14239_v47, %v19557_v42  ;;  %v10636_v24 = vadd.f32 %v14274_v0, %v10572_v14  ;;  %v10637_v12 = vadd.f32 %v14275_v51, %v10573_v20  ;;  %v10638_v50 = vadd.f32 %v14276_v33, %v10574_v7  ;;  %v14283_v42 = vld [vmem:[#allocation2 + $0x148] sm:$0xff]  ;;  %v14288_v20 = vld [vmem:[#allocation2 + $0x170] sm:$0xff]  ;;  %v14289_v7 = vld [vmem:[#allocation2 + $0x178] sm:$0xff] }
 0xc3c   :  { %v10639_v55 = vadd.f32 %v14277_v17, %v10575_v36  ;;  %v10640_v49 = vadd.f32 %v14278_v3, %v10576_v45  ;;  %v10641_v38 = vadd.f32 %v14279_v46, %v10577_v21  ;;  %v10642_v18 = vadd.f32 %v14280_v52, %v10578_v35  ;;  %v14287_v14 = vld [vmem:[#allocation2 + $0x168] sm:$0xff]  ;;  %v14290_v36 = vld [vmem:[#allocation2 + $0x180] sm:$0xff]  ;;  %v14292_v21 = vld [vmem:[#allocation2 + $0x190] sm:$0xff] }
 0xc3d   :  { %v10643_v29 = vadd.f32 %v14281_v10, %v10579_v4  ;;  %v10644_v30 = vadd.f32 %v14282_v41, %v10580_v13  ;;  %v10645_v19 = vadd.f32 %v14283_v42, %v10581_v34  ;;  %v10646_v61 = vadd.f32 %v14284_v44, %v10582_v53  ;;  %10700 = vst [vmem:[#allocation8 + $0x100] sm:$0xff] %v10636_v24  ;;  %v14291_v45 = vld [vmem:[#allocation2 + $0x188] sm:$0xff]  ;;  %v14294_v4 = vld [vmem:[#allocation2 + $0x1a0] sm:$0xff]  ;;  %v14303_v24 = vld [vmem:[#allocation2 + $0x1f0] sm:$0xff] }
 0xc3e   :  { %10701 = vst [vmem:[#allocation8 + $0x108] sm:$0xff] %v10637_v12  ;;  %10702 = vst [vmem:[#allocation8 + $0x110] sm:$0xff] %v10638_v50  ;;  %v10647_v47 = vadd.f32 %v14285_v63, %v10583_v26  ;;  %v10648_v5 = vadd.f32 %v14286_v8, %v10584_v28  ;;  %v10649_v40 = vadd.f32 %v14287_v14, %v10585_v58  ;;  %v14295_v34 = vld [vmem:[#allocation2 + $0x1a8] sm:$0xff]  ;;  %v14296_v26 = vld [vmem:[#allocation2 + $0x1b0] sm:$0xff] }
 0xc3f   :  { %v10650_v32 = vadd.f32 %v14288_v20, %v10586_v27  ;;  %10703 = vst [vmem:[#allocation8 + $0x118] sm:$0xff] %v10639_v55  ;;  %10704 = vst [vmem:[#allocation8 + $0x120] sm:$0xff] %v10640_v49  ;;  %v10651_v23 = vadd.f32 %v14289_v7, %v10587_v57  ;;  %v10652_v1 = vadd.f32 %v14290_v36, %v10588_v9  ;;  %v14297_v58 = vld [vmem:[#allocation2 + $0x1b8] sm:$0xff]  ;;  %v14298_v57 = vld [vmem:[#allocation2 + $0x1c0] sm:$0xff] }
 0xc40   :  { %10705 = vst [vmem:[#allocation8 + $0x128] sm:$0xff] %v10641_v38  ;;  %10706 = vst [vmem:[#allocation8 + $0x130] sm:$0xff] %v10642_v18  ;;  %v10653_v56 = vadd.f32 %v14291_v45, %v10589_v31  ;;  %v10654_v35 = vadd.f32 %v14292_v21, %v10590_v25  ;;  %v10655_v16 = vadd.f32 %v14293_v59, %v18467_v37  ;;  %v14299_v31 = vld [vmem:[#allocation2 + $0x1c8] sm:$0xff]  ;;  %v14300_v37 = vld [vmem:[#allocation2 + $0x1d0] sm:$0xff] }
 0xc41   :  { %10707 = vst [vmem:[#allocation8 + $0x138] sm:$0xff] %v10643_v29  ;;  %10708 = vst [vmem:[#allocation8 + $0x140] sm:$0xff] %v10644_v30  ;;  %v10656_v13 = vadd.f32 %v14294_v4, %v18470_v62  ;;  %v10657_v53 = vadd.f32 %v14295_v34, %v18473_v60  ;;  %v10658_v28 = vadd.f32 %v14296_v26, %v18476_v48  ;;  %v14301_v60 = vld [vmem:[#allocation2 + $0x1d8] sm:$0xff]  ;;  %v14302_v0 = vld [vmem:[#allocation2 + $0x1e0] sm:$0xff] }
 0xc42   :  { %10709 = vst [vmem:[#allocation8 + $0x148] sm:$0xff] %v10645_v19  ;;  %10710 = vst [vmem:[#allocation8 + $0x150] sm:$0xff] %v10646_v61  ;;  %v10659_v27 = vadd.f32 %v14297_v58, %v18479_v22  ;;  %v10660_v9 = vadd.f32 %v14298_v57, %v18482_v15  ;;  %v10661_v25 = vadd.f32 %v14299_v31, %v18485_v6  ;;  %v14304_v51 = vld [vmem:[#allocation2 + $0x1f8] sm:$0xff] }
 0xc43   :  { %10711 = vst [vmem:[#allocation8 + $0x158] sm:$0xff] %v10647_v47  ;;  %10712 = vst [vmem:[#allocation8 + $0x160] sm:$0xff] %v10648_v5  ;;  %v10662_v62 = vadd.f32 %v14300_v37, %v18488_v43  ;;  %v10663_v48 = vadd.f32 %v14301_v60, %v18491_v2  ;;  %v10664_v22 = vadd.f32 %v14302_v0, %v18494_v11 }
 0xc44   :  { %10713 = vst [vmem:[#allocation8 + $0x168] sm:$0xff] %v10649_v40  ;;  %10714 = vst [vmem:[#allocation8 + $0x170] sm:$0xff] %v10650_v32  ;;  %v10666_v15 = vadd.f32 %v14303_v24, %v18497_v54  ;;  %v10667_v6 = vadd.f32 %v14304_v51, %v18500_v39 }
 0xc45   :  { %10715 = vst [vmem:[#allocation8 + $0x178] sm:$0xff] %v10651_v23  ;;  %10716 = vst [vmem:[#allocation8 + $0x180] sm:$0xff] %v10652_v1 }
 0xc46   :  { %10717 = vst [vmem:[#allocation8 + $0x188] sm:$0xff] %v10653_v56  ;;  %10718 = vst [vmem:[#allocation8 + $0x190] sm:$0xff] %v10654_v35 }
 0xc47   :  { %10719 = vst [vmem:[#allocation8 + $0x198] sm:$0xff] %v10655_v16  ;;  %10720 = vst [vmem:[#allocation8 + $0x1a0] sm:$0xff] %v10656_v13 }
 0xc48   :  { %10721 = vst [vmem:[#allocation8 + $0x1a8] sm:$0xff] %v10657_v53  ;;  %10722 = vst [vmem:[#allocation8 + $0x1b0] sm:$0xff] %v10658_v28 }
 0xc49   :  { %10723 = vst [vmem:[#allocation8 + $0x1b8] sm:$0xff] %v10659_v27  ;;  %10724 = vst [vmem:[#allocation8 + $0x1c0] sm:$0xff] %v10660_v9 }
 0xc4a   :  { %10725 = vst [vmem:[#allocation8 + $0x1c8] sm:$0xff] %v10661_v25  ;;  %10726 = vst [vmem:[#allocation8 + $0x1d0] sm:$0xff] %v10662_v62 }
 0xc4b   :  { %10727 = vst [vmem:[#allocation8 + $0x1d8] sm:$0xff] %v10663_v48  ;;  %10728 = vst [vmem:[#allocation8 + $0x1e0] sm:$0xff] %v10664_v22 }
 0xc4c   :  { %10730 = vst [vmem:[#allocation8 + $0x1f0] sm:$0xff] %v10666_v15  ;;  %10731 = vst [vmem:[#allocation8 + $0x1f8] sm:$0xff] %v10667_v6 }
 0xc4d   :  { %14382 = shalt.err (!%p14379_p0)
}
 0xc4e   :  { %s14383_s12 = scalar_lea.hbm %s18537_s5, 8192 }
 0xc4f   :  { %p14384_p1 = scmp.ne.s32.totalorder %s18537_s5, %s14383_s12  ;;  %p14387_p2 = scmp.lt.u32.totalorder %s14383_s12, %s18537_s5 }
 0xc51   :  { %p14389_p3 = pnand %p14387_p2, %p14384_p1 }
 0xc53   :  { %14392 = shalt.err (!%p14389_p3)
}
 0xc54   :  { %10743 = dma.vmem_to_hbm [thread:$0]  %s10738_s8, 8192, %s18537_s5, [#allocation4], %s14403_s1, %s14403_s1, %s14404_s17  }
 0xc55   :  { %14397 = dma.done.wait [#allocation4], 8192  }
 0xc56   :  { %14398 = vsyncadd [#allocation4], 4294959104 }
 0xc57   :  { %10747 = vsyncpa [#allocation3], 1 }
 0xc58   :  { %10748 = vsyncpa [#allocation6], 1 }
 0xc59   :  { %10749 = vsyncpa [#allocation4], 1 }

</bundles_post_ra>
